<compile_context>
chip_gen: v7x
topology: tpu7x:2x2x1
jax: 0.10.0
libtpu: 0.0.40
codegen_flags: <defaults>
</compile_context>

<pallas_src>
import jax
import jax.numpy as jnp
from jax.experimental import pallas as pl
from jax.experimental.pallas import tpu as pltpu


def _leaky_relu(y):
    # nn.LeakyReLU default negative_slope = 0.01
    return jnp.where(y > 0, y, 0.01 * y)


def _round_up(x: int, m: int) -> int:
    return ((x + m - 1) // m) * m


# ----------------------------------------------------------------------------
# Fused encoder kernel.
# Grid = (M_pad // tm  [parallel],  K_pad // tk0  [arbitrary]).
# ----------------------------------------------------------------------------
def _encoder_kernel(x_ref, w1_ref, b1_ref, w2_ref, b2_ref, w3_ref, b3_ref,
                    w4_ref, b4_ref, o_ref, acc_ref):
    k = pl.program_id(1)

    @pl.when(k == 0)
    def _():
        acc_ref[...] = jnp.zeros_like(acc_ref)

    # Layer-0 input preprocess: relu(expr); log2(expr + 1).  Runs once per
    # element (each (m, k) tile of x is visited exactly once on this grid).
    x = jnp.log2(jnp.maximum(x_ref[...], 0.0) + 1.0)
    acc_ref[...] += jnp.dot(x.astype(w1_ref.dtype), w1_ref[...],
                            preferred_element_type=jnp.float32)

    @pl.when(k == pl.num_programs(1) - 1)
    def _():
        # Finish layer 0 for this M-tile, then run layers 1..2 and the output
        # Linear on the VMEM-resident activations (no HBM round-trips).
        h = _leaky_relu(acc_ref[...] + b1_ref[...])
        h = _leaky_relu(
            jnp.dot(h.astype(w2_ref.dtype), w2_ref[...],
                    preferred_element_type=jnp.float32) + b2_ref[...])
        h = _leaky_relu(
            jnp.dot(h.astype(w3_ref.dtype), w3_ref[...],
                    preferred_element_type=jnp.float32) + b3_ref[...])
        o_ref[...] = (jnp.dot(h.astype(w4_ref.dtype), w4_ref[...],
                              preferred_element_type=jnp.float32)
                      + b4_ref[...]).astype(o_ref.dtype)


def _vmem_caps():
    """(physical VMEM bytes, safe scoped-VMEM cap bytes), generation-gated."""
    try:
        phys = int(pltpu.get_tpu_info().vmem_capacity_bytes)
    except Exception:
        phys = 64 * 1024 * 1024  # conservative default (v7x-sized)
    if phys <= 64 * 1024 * 1024:
        return phys, 48 * 1024 * 1024     # v7x: leave headroom below 64 MiB
    return phys, 100 * 1024 * 1024        # v5e/v6e: 128 MiB physical


def encoder_forward(params, expr, tissue, *, tm: int = 256, tk0: int | None = None):
    """Mirrors Encoder.forward(expr, tissues) with dropout=None, fully fused."""
    M, K0 = expr.shape
    l1, l2, l3 = params["layers"]
    out = params["out"]
    w1 = l1["w"]
    D1 = l1["w"].shape[1]
    D2 = l2["w"].shape[1]
    D3 = l3["w"].shape[1]
    Dc = out["w"].shape[1]
    wbytes = jnp.dtype(w1.dtype).itemsize
    xbytes = jnp.dtype(expr.dtype).itemsize

    _, vmem_cap = _vmem_caps()
    if tk0 is None:
        # Big-VMEM parts (v5e/v6e, 128 MiB) take larger K tiles (fewer pipeline
        # steps, bigger contiguous w1 DMAs); v7x (64 MiB) stays at 2048.
        tk0 = 4096 if vmem_cap >= 100 * 1024 * 1024 else 2048

    # --- tiling / padding (exact: relu->log2(0+1)=0 and padded w1 rows are 0) ---
    tm = min(tm, _round_up(M, 8))          # multiple of 8
    tk0 = min(tk0, _round_up(K0, 128))     # multiple of 128

    def vmem_estimate(tm_, tk_):
        return (2 * tm_ * tk_ * xbytes                      # streamed x tiles
                + 2 * tk_ * D1 * wbytes                     # streamed w1 tiles
                + 2 * (D1 * D2 + D2 * D3 + D3 * Dc) * wbytes  # resident weights
                + 2 * (D1 + D2 + D3 + Dc) * 4               # resident biases
                + 2 * tm_ * Dc * 4                          # output block
                + tm_ * D1 * 4)                             # f32 accumulator

    while vmem_estimate(tm, tk0) > int(0.85 * vmem_cap) and tk0 > 512:
        tk0 = max(128, ((tk0 // 2) // 128) * 128)

    M_pad = _round_up(M, tm)
    K_pad = _round_up(K0, tk0)
    if K_pad != K0:
        expr = jnp.pad(expr, ((0, 0), (0, K_pad - K0)))
        w1 = jnp.pad(w1, ((0, K_pad - K0), (0, 0)))
    if M_pad != M:
        expr = jnp.pad(expr, ((0, M_pad - M), (0, 0)))

    # Fold the per-tissue bias into the layer bias once in the wrapper
    # (scalar-index gather is glue, not kernel work; the kernel never sees the
    # tissue id, so varying it does not retrace the kernel).
    b1 = l1["b"] + jnp.take(l1["tissue_emb"], tissue, axis=0)[None, :]
    b2 = l2["b"] + jnp.take(l2["tissue_emb"], tissue, axis=0)[None, :]
    b3 = l3["b"] + jnp.take(l3["tissue_emb"], tissue, axis=0)[None, :]
    b4 = out["b"]

    n_mtiles = M_pad // tm
    cost = pl.CostEstimate(
        flops=int(2 * M_pad * (K_pad * D1 + D1 * D2 + D2 * D3 + D3 * Dc)),
        transcendentals=int(M_pad * K_pad),                 # log2 preprocess
        bytes_accessed=int(M_pad * K_pad * xbytes
                           + n_mtiles * K_pad * D1 * wbytes  # w1 re-streamed per M-tile
                           + (D1 * D2 + D2 * D3 + D3 * Dc) * wbytes
                           + (D1 + D2 + D3 + Dc) * 4
                           + M_pad * Dc * 4),
    )

    result = pl.pallas_call(
        _encoder_kernel,
        out_shape=jax.ShapeDtypeStruct((M_pad, Dc), jnp.float32),
        grid_spec=pltpu.PrefetchScalarGridSpec(
            num_scalar_prefetch=0,
            grid=(M_pad // tm, K_pad // tk0),
            in_specs=[
                pl.BlockSpec((tm, tk0), lambda m, k: (m, k)),   # x      (streamed)
                pl.BlockSpec((tk0, D1), lambda m, k: (k, 0)),   # w1     (streamed)
                pl.BlockSpec((1, D1), lambda m, k: (0, 0)),     # b1+tis (resident)
                pl.BlockSpec((D1, D2), lambda m, k: (0, 0)),    # w2     (resident)
                pl.BlockSpec((1, D2), lambda m, k: (0, 0)),     # b2+tis (resident)
                pl.BlockSpec((D2, D3), lambda m, k: (0, 0)),    # w3     (resident)
                pl.BlockSpec((1, D3), lambda m, k: (0, 0)),     # b3+tis (resident)
                pl.BlockSpec((D3, Dc), lambda m, k: (0, 0)),    # w_out  (resident)
                pl.BlockSpec((1, Dc), lambda m, k: (0, 0)),     # b_out  (resident)
            ],
            out_specs=pl.BlockSpec((tm, Dc), lambda m, k: (m, 0)),
            scratch_shapes=[pltpu.VMEM((tm, D1), jnp.float32)],
        ),
        compiler_params=pltpu.CompilerParams(
            dimension_semantics=("parallel", "arbitrary"),
            vmem_limit_bytes=int(vmem_cap)),
        cost_estimate=cost,
    )(expr, w1, b1, l2["w"], b2, l3["w"], b3, out["w"], b4)

    return result[:M] if M_pad != M else result


# ----------------------------------------------------------------------------
# Encoder parameters (weights in bf16, biases/embeddings in f32)
# ----------------------------------------------------------------------------
def init_encoder_params(key, n_genes, n_tissues, dim_code,
                        weight_dtype=jnp.bfloat16):
    dims = [n_genes, 2048, 1024, 512]
    params = {"layers": [], "out": None}
    for i in range(3):
        key, kw, kb, kt = jax.random.split(key, 4)
        fan_in, fan_out = dims[i], dims[i + 1]
        scale = 1.0 / jnp.sqrt(fan_in)
        params["layers"].append({
            "w": jax.random.uniform(kw, (fan_in, fan_out), jnp.float32,
                                    -scale, scale).astype(weight_dtype),
            "b": jax.random.uniform(kb, (1, fan_out), jnp.float32,
                                    -scale, scale),
            "tissue_emb": jax.random.uniform(kt, (n_tissues, fan_out),
                                             jnp.float32, -scale, scale),
        })
    key, kw, kb = jax.random.split(key, 3)
    scale = 1.0 / jnp.sqrt(512)
    params["out"] = {
        "w": jax.random.uniform(kw, (512, dim_code), jnp.float32,
                                -scale, scale).astype(weight_dtype),
        "b": jax.random.uniform(kb, (1, dim_code), jnp.float32, -scale, scale),
    }
    return params


# ----------------------------------------------------------------------------
# Pure-JAX reference (same bf16 weight / f32 accumulation recipe)
# ----------------------------------------------------------------------------
def encoder_ref(params, expr, tissue):
    h = jnp.log2(jnp.maximum(expr, 0.0) + 1.0)
    for lyr in params["layers"]:
        b = lyr["b"] + jnp.take(lyr["tissue_emb"], tissue, axis=0)[None, :]
        h = jnp.dot(h.astype(lyr["w"].dtype), lyr["w"],
                    preferred_element_type=jnp.float32) + b
        h = jnp.where(h > 0, h, 0.01 * h)
    out = params["out"]
    return jnp.dot(h.astype(out["w"].dtype), out["w"],
                   preferred_element_type=jnp.float32) + out["b"]


if __name__ == "__main__":
    # Small, deliberately non-aligned shapes to exercise the padding path.
    batch, n_genes, n_tissues, dim_code = 6, 300, 4, 100

    key = jax.random.PRNGKey(0)
    key, k_expr = jax.random.split(key)
    # Expression-like input (can be negative pre-relu, matching the module).
    expr = jax.random.normal(k_expr, (batch, n_genes), jnp.float32) * 3.0
    tissue = jnp.int32(2)  # device scalar tissue index (no kernel retrace)

    params = init_encoder_params(key, n_genes, n_tissues, dim_code)

    code = encoder_forward(params, expr, tissue)
    code = jax.block_until_ready(code)

    ref = encoder_ref(params, expr, tissue)
    assert code.shape == (batch, dim_code)
    max_err = float(jnp.max(jnp.abs(code - ref)))
    assert jnp.allclose(code, ref, atol=2e-2, rtol=2e-2), max_err

    print("KERNEL_OK")
</pallas_src>

<mosaic_0001>
module attributes {stable_mosaic.version = 11 : i64} {
  func.func @_encoder_kernel(%arg0: i32, %arg1: i32, %arg2: memref<8x384xf32, #tpu.memory_space<vmem>>, %arg3: memref<384x2048xbf16, #tpu.memory_space<vmem>>, %arg4: memref<1x2048xf32, #tpu.memory_space<vmem>>, %arg5: memref<2048x1024xbf16, #tpu.memory_space<vmem>>, %arg6: memref<1x1024xf32, #tpu.memory_space<vmem>>, %arg7: memref<1024x512xbf16, #tpu.memory_space<vmem>>, %arg8: memref<1x512xf32, #tpu.memory_space<vmem>>, %arg9: memref<512x100xbf16, #tpu.memory_space<vmem>>, %arg10: memref<1x100xf32, #tpu.memory_space<vmem>>, %arg11: memref<8x100xf32, #tpu.memory_space<vmem>>, %arg12: memref<8x2048xf32, #tpu.memory_space<vmem>>) attributes {dimension_semantics = [#tpu.dimension_semantics<parallel>, #tpu.dimension_semantics<arbitrary>], iteration_bounds = array<i64: 1, 1>, scalar_prefetch = 0 : i64, scratch_operands = 1 : i64, tpu.core_type = #tpu.core_type<tc>, window_params = [{transform_indices = @transform_0, window_bounds = array<i64: 8, 384>}, {transform_indices = @transform_1, window_bounds = array<i64: 384, 2048>}, {pipeline_mode = #tpu.pipeline_mode<synchronous>, transform_indices = @transform_2, window_bounds = array<i64: 1, 2048>}, {pipeline_mode = #tpu.pipeline_mode<synchronous>, transform_indices = @transform_3, window_bounds = array<i64: 2048, 1024>}, {pipeline_mode = #tpu.pipeline_mode<synchronous>, transform_indices = @transform_4, window_bounds = array<i64: 1, 1024>}, {pipeline_mode = #tpu.pipeline_mode<synchronous>, transform_indices = @transform_5, window_bounds = array<i64: 1024, 512>}, {pipeline_mode = #tpu.pipeline_mode<synchronous>, transform_indices = @transform_6, window_bounds = array<i64: 1, 512>}, {pipeline_mode = #tpu.pipeline_mode<synchronous>, transform_indices = @transform_7, window_bounds = array<i64: 512, 100>}, {pipeline_mode = #tpu.pipeline_mode<synchronous>, transform_indices = @transform_8, window_bounds = array<i64: 1, 100>}, {transform_indices = @transform_9, window_bounds = array<i64: 8, 100>}]} {
    %c0_i32 = arith.constant 0 : i32
    %0 = arith.cmpi eq, %arg1, %c0_i32 : i32
    %1 = arith.extui %0 : i1 to i32
    %c0_i32_0 = arith.constant 0 : i32
    %2 = arith.cmpi ne, %1, %c0_i32_0 : i32
    scf.if %2 {
      %cst_13 = arith.constant 0.000000e+00 : f32
      %21 = vector.broadcast %cst_13 : f32 to vector<8x2048xf32>
      %c0_14 = arith.constant 0 : index
      %c0_15 = arith.constant 0 : index
      %22 = vector.load %arg12[%c0_14, %c0_15] : memref<8x2048xf32, #tpu.memory_space<vmem>>, vector<8x2048xf32>
      tpu.vector_store %arg12[%c0_14, %c0_15], %21 {strides = array<i32>} : memref<8x2048xf32, #tpu.memory_space<vmem>>, vector<8x2048xf32>,
    } else {
    }
    %c0 = arith.constant 0 : index
    %c0_1 = arith.constant 0 : index
    %3 = vector.load %arg2[%c0, %c0_1] : memref<8x384xf32, #tpu.memory_space<vmem>>, vector<8x384xf32>
    %cst = arith.constant 0.000000e+00 : f32
    %4 = vector.broadcast %cst : f32 to vector<8x384xf32>
    %5 = arith.maximumf %3, %4 : vector<8x384xf32>
    %cst_2 = arith.constant 1.000000e+00 : f32
    %6 = vector.broadcast %cst_2 : f32 to vector<8x384xf32>
    %7 = arith.addf %5, %6 : vector<8x384xf32>
    %8 = math.log %7 : vector<8x384xf32>
    %cst_3 = arith.constant 2.000000e+00 : f32
    %9 = math.log %cst_3 : f32
    %10 = vector.broadcast %9 : f32 to vector<8x384xf32>
    %11 = arith.divf %8, %10 : vector<8x384xf32>
    %c0_4 = arith.constant 0 : index
    %c0_5 = arith.constant 0 : index
    %12 = vector.load %arg12[%c0_4, %c0_5] : memref<8x2048xf32, #tpu.memory_space<vmem>>, vector<8x2048xf32>
    %13 = arith.truncf %11 : vector<8x384xf32> to vector<8x384xbf16>
    %c0_6 = arith.constant 0 : index
    %c0_7 = arith.constant 0 : index
    %14 = vector.load %arg3[%c0_6, %c0_7] : memref<384x2048xbf16, #tpu.memory_space<vmem>>, vector<384x2048xbf16>
    %cst_8 = arith.constant dense<0.000000e+00> : vector<8x2048xf32>
    %15 = tpu.matmul %13, %14, %cst_8 {dimension_numbers = #tpu.dot_dimension_numbers<[1], [0], [0], [1], [0, 0, 1, 1], [], []>} : vector<8x384xbf16>, vector<384x2048xbf16>, vector<8x2048xf32> -> vector<8x2048xf32>
    %16 = arith.addf %12, %15 : vector<8x2048xf32>
    %c0_9 = arith.constant 0 : index
    %c0_10 = arith.constant 0 : index
    %17 = vector.load %arg12[%c0_9, %c0_10] : memref<8x2048xf32, #tpu.memory_space<vmem>>, vector<8x2048xf32>
    tpu.vector_store %arg12[%c0_9, %c0_10], %16 {strides = array<i32>} : memref<8x2048xf32, #tpu.memory_space<vmem>>, vector<8x2048xf32>,
    %c0_i32_11 = arith.constant 0 : i32
    %18 = arith.cmpi eq, %arg1, %c0_i32_11 : i32
    %19 = arith.extui %18 : i1 to i32
    %c0_i32_12 = arith.constant 0 : i32
    %20 = arith.cmpi ne, %19, %c0_i32_12 : i32
    scf.if %20 {
      %c0_13 = arith.constant 0 : index
      %c0_14 = arith.constant 0 : index
      %21 = vector.load %arg12[%c0_13, %c0_14] : memref<8x2048xf32, #tpu.memory_space<vmem>>, vector<8x2048xf32>
      %c0_15 = arith.constant 0 : index
      %c0_16 = arith.constant 0 : index
      %22 = vector.load %arg4[%c0_15, %c0_16] : memref<1x2048xf32, #tpu.memory_space<vmem>>, vector<1x2048xf32>
      %23 = vector.broadcast %22 : vector<1x2048xf32> to vector<8x2048xf32>
      %24 = arith.addf %21, %23 : vector<8x2048xf32>
      %cst_17 = arith.constant 0.000000e+00 : f32
      %25 = vector.broadcast %cst_17 : f32 to vector<8x2048xf32>
      %26 = arith.cmpf ogt, %24, %25 : vector<8x2048xf32>
      %cst_18 = arith.constant 0.00999999977 : f32
      %27 = vector.broadcast %cst_18 : f32 to vector<8x2048xf32>
      %28 = arith.mulf %27, %24 : vector<8x2048xf32>
      %29 = arith.select %26, %24, %28 : vector<8x2048xi1>, vector<8x2048xf32>
      %30 = arith.truncf %29 : vector<8x2048xf32> to vector<8x2048xbf16>
      %c0_19 = arith.constant 0 : index
      %c0_20 = arith.constant 0 : index
      %31 = vector.load %arg5[%c0_19, %c0_20] : memref<2048x1024xbf16, #tpu.memory_space<vmem>>, vector<2048x1024xbf16>
      %cst_21 = arith.constant dense<0.000000e+00> : vector<8x1024xf32>
      %32 = tpu.matmul %30, %31, %cst_21 {dimension_numbers = #tpu.dot_dimension_numbers<[1], [0], [0], [1], [0, 0, 1, 1], [], []>} : vector<8x2048xbf16>, vector<2048x1024xbf16>, vector<8x1024xf32> -> vector<8x1024xf32>
      %c0_22 = arith.constant 0 : index
      %c0_23 = arith.constant 0 : index
      %33 = vector.load %arg6[%c0_22, %c0_23] : memref<1x1024xf32, #tpu.memory_space<vmem>>, vector<1x1024xf32>
      %34 = vector.broadcast %33 : vector<1x1024xf32> to vector<8x1024xf32>
      %35 = arith.addf %32, %34 : vector<8x1024xf32>
      %cst_24 = arith.constant 0.000000e+00 : f32
      %36 = vector.broadcast %cst_24 : f32 to vector<8x1024xf32>
      %37 = arith.cmpf ogt, %35, %36 : vector<8x1024xf32>
      %cst_25 = arith.constant 0.00999999977 : f32
      %38 = vector.broadcast %cst_25 : f32 to vector<8x1024xf32>
      %39 = arith.mulf %38, %35 : vector<8x1024xf32>
      %40 = arith.select %37, %35, %39 : vector<8x1024xi1>, vector<8x1024xf32>
      %41 = arith.truncf %40 : vector<8x1024xf32> to vector<8x1024xbf16>
      %c0_26 = arith.constant 0 : index
      %c0_27 = arith.constant 0 : index
      %42 = vector.load %arg7[%c0_26, %c0_27] : memref<1024x512xbf16, #tpu.memory_space<vmem>>, vector<1024x512xbf16>
      %cst_28 = arith.constant dense<0.000000e+00> : vector<8x512xf32>
      %43 = tpu.matmul %41, %42, %cst_28 {dimension_numbers = #tpu.dot_dimension_numbers<[1], [0], [0], [1], [0, 0, 1, 1], [], []>} : vector<8x1024xbf16>, vector<1024x512xbf16>, vector<8x512xf32> -> vector<8x512xf32>
      %c0_29 = arith.constant 0 : index
      %c0_30 = arith.constant 0 : index
      %44 = vector.load %arg8[%c0_29, %c0_30] : memref<1x512xf32, #tpu.memory_space<vmem>>, vector<1x512xf32>
      %45 = vector.broadcast %44 : vector<1x512xf32> to vector<8x512xf32>
      %46 = arith.addf %43, %45 : vector<8x512xf32>
      %cst_31 = arith.constant 0.000000e+00 : f32
      %47 = vector.broadcast %cst_31 : f32 to vector<8x512xf32>
      %48 = arith.cmpf ogt, %46, %47 : vector<8x512xf32>
      %cst_32 = arith.constant 0.00999999977 : f32
      %49 = vector.broadcast %cst_32 : f32 to vector<8x512xf32>
      %50 = arith.mulf %49, %46 : vector<8x512xf32>
      %51 = arith.select %48, %46, %50 : vector<8x512xi1>, vector<8x512xf32>
      %52 = arith.truncf %51 : vector<8x512xf32> to vector<8x512xbf16>
      %c0_33 = arith.constant 0 : index
      %c0_34 = arith.constant 0 : index
      %53 = vector.load %arg9[%c0_33, %c0_34] : memref<512x100xbf16, #tpu.memory_space<vmem>>, vector<512x100xbf16>
      %cst_35 = arith.constant dense<0.000000e+00> : vector<8x100xf32>
      %54 = tpu.matmul %52, %53, %cst_35 {dimension_numbers = #tpu.dot_dimension_numbers<[1], [0], [0], [1], [0, 0, 1, 1], [], []>} : vector<8x512xbf16>, vector<512x100xbf16>, vector<8x100xf32> -> vector<8x100xf32>
      %c0_36 = arith.constant 0 : index
      %c0_37 = arith.constant 0 : index
      %55 = vector.load %arg10[%c0_36, %c0_37] : memref<1x100xf32, #tpu.memory_space<vmem>>, vector<1x100xf32>
      %56 = vector.broadcast %55 : vector<1x100xf32> to vector<8x100xf32>
      %57 = arith.addf %54, %56 : vector<8x100xf32>
      %c0_38 = arith.constant 0 : index
      %c0_39 = arith.constant 0 : index
      %58 = vector.load %arg11[%c0_38, %c0_39] : memref<8x100xf32, #tpu.memory_space<vmem>>, vector<8x100xf32>
      tpu.vector_store %arg11[%c0_38, %c0_39], %57 {strides = array<i32>} : memref<8x100xf32, #tpu.memory_space<vmem>>, vector<8x100xf32>,
    } else {
    }
    return
  }
  func.func @transform_0(%arg0: i32, %arg1: i32) -> (i32, i32) {
    %c0_i32 = arith.constant 0 : i32
    return %arg0, %arg1 : i32, i32
  }
  func.func @transform_1(%arg0: i32, %arg1: i32) -> (i32, i32) {
    %c0_i32 = arith.constant 0 : i32
    %c0_i32_0 = arith.constant 0 : i32
    return %arg1, %c0_i32 : i32, i32
  }
  func.func @transform_2(%arg0: i32, %arg1: i32) -> (i32, i32) {
    %c0_i32 = arith.constant 0 : i32
    %c0_i32_0 = arith.constant 0 : i32
    %c0_i32_1 = arith.constant 0 : i32
    return %c0_i32, %c0_i32_0 : i32, i32
  }
  func.func @transform_3(%arg0: i32, %arg1: i32) -> (i32, i32) {
    %c0_i32 = arith.constant 0 : i32
    %c0_i32_0 = arith.constant 0 : i32
    %c0_i32_1 = arith.constant 0 : i32
    return %c0_i32, %c0_i32_0 : i32, i32
  }
  func.func @transform_4(%arg0: i32, %arg1: i32) -> (i32, i32) {
    %c0_i32 = arith.constant 0 : i32
    %c0_i32_0 = arith.constant 0 : i32
    %c0_i32_1 = arith.constant 0 : i32
    return %c0_i32, %c0_i32_0 : i32, i32
  }
  func.func @transform_5(%arg0: i32, %arg1: i32) -> (i32, i32) {
    %c0_i32 = arith.constant 0 : i32
    %c0_i32_0 = arith.constant 0 : i32
    %c0_i32_1 = arith.constant 0 : i32
    return %c0_i32, %c0_i32_0 : i32, i32
  }
  func.func @transform_6(%arg0: i32, %arg1: i32) -> (i32, i32) {
    %c0_i32 = arith.constant 0 : i32
    %c0_i32_0 = arith.constant 0 : i32
    %c0_i32_1 = arith.constant 0 : i32
    return %c0_i32, %c0_i32_0 : i32, i32
  }
  func.func @transform_7(%arg0: i32, %arg1: i32) -> (i32, i32) {
    %c0_i32 = arith.constant 0 : i32
    %c0_i32_0 = arith.constant 0 : i32
    %c0_i32_1 = arith.constant 0 : i32
    return %c0_i32, %c0_i32_0 : i32, i32
  }
  func.func @transform_8(%arg0: i32, %arg1: i32) -> (i32, i32) {
    %c0_i32 = arith.constant 0 : i32
    %c0_i32_0 = arith.constant 0 : i32
    %c0_i32_1 = arith.constant 0 : i32
    return %c0_i32, %c0_i32_0 : i32, i32
  }
  func.func @transform_9(%arg0: i32, %arg1: i32) -> (i32, i32) {
    %c0_i32 = arith.constant 0 : i32
    %c0_i32_0 = arith.constant 0 : i32
    return %arg0, %c0_i32 : i32, i32
  }
}

</mosaic_0001>

<bundles_post_ra>
// kernel: tpu_custom_call.1
= control target key start
LH: loop header
LB: loop body
LE: loop exit
PB: predicated region body
PF: predicated region fallthrough
CT: control target
= control target key end

     0   :  { %14 = vsyncpa [#allocation4], 0  ;;  %s16280_s0 = inlined_call_operand.hbm [shape: f32[8,384], index: 0, kind: input, shape index: {}]   ;;  %s16281_s1 = inlined_call_operand.hbm [shape: bf16[384,2048], index: 1, kind: input, shape index: {}]   ;;  %s16282_s2 = inlined_call_operand.hbm [shape: f32[1,2048], index: 2, kind: input, shape index: {}]   ;;  %s16283_s3 = inlined_call_operand.hbm [shape: bf16[2048,1024], index: 3, kind: input, shape index: {}]   ;;  %s16284_s4 = inlined_call_operand.hbm [shape: f32[1,1024], index: 4, kind: input, shape index: {}]   ;;  %s16285_s5 = inlined_call_operand.hbm [shape: bf16[1024,512], index: 5, kind: input, shape index: {}]   ;;  %s16286_s6 = inlined_call_operand.hbm [shape: f32[1,512], index: 6, kind: input, shape index: {}]   ;;  %s16287_s7 = inlined_call_operand.vmem [shape: bf16[512,100], index: 7, kind: input, shape index: {}]   ;;  %s16288_s8 = inlined_call_operand.hbm [shape: f32[1,100], index: 8, kind: input, shape index: {}]   ;;  %s16289_s9 = inlined_call_operand.hbm [shape: f32[8,100], index: 9, kind: output, shape index: {}]  }
   0x1   :  { %15 = vsyncpa [#allocation7], 0 }
   0x2   :  { %16 = vsyncpa [#allocation10], 0 }
   0x3   :  { %17 = vsyncpa [#allocation13], 0 }
   0x4   :  { %18 = vsyncpa [#allocation16], 0 }
   0x5   :  { %19 = vsyncpa [#allocation5], 0  ;;  %s15702_s30 = smov [#allocation6]   ;;  %s15492_s13 = scalar_lea.hbm %s16281_s1, 49152 }
   0x6   :  { %s35_s10 = sshll.u32 %s15702_s30, 4  ;;  %p15493_p0 = scmp.ne.s32.totalorder %s16281_s1, %s15492_s13  ;;  %s36_s10 = int_to_ptr.vmem [resolvable:$true] %s35_s10 }
   0x7   :  { %p15496_p1 = scmp.lt.u32.totalorder %s15492_s13, %s16281_s1 }
   0x9   :  { %p15498_p2 = pnand %p15496_p1, %p15493_p0 }
   0xb   :  { %15501 = shalt.err (!%p15498_p2)
}
   0xc   :  { %s15502_s18 = scalar_lea.vmem %s36_s10, 49152  ;;  %p15507_p4 = scmp.lt.s32.totalorder %s36_s10, %s36_s10 }
   0xd   :  { %p15503_p3 = scmp.ne.s32.totalorder %s36_s10, %s15502_s18  ;;  %p15508_p5 = scmp.lt.s32.totalorder %s15502_s18, %s15502_s18 }
   0xf   :  { %p15509_p6 = por %p15508_p5, %p15507_p4 }
  0x11   :  { %p15510_p7 = pnand %p15509_p6, %p15503_p3 }
  0x13   :  { %15513 = shalt.err (!%p15510_p7)
}
  0x14   :  { %s15703_s19 = smov 1024   ;;  %s15704_s20 = smov 64  }
  0x15   :  { %41 = dma.hbm_to_vmem [thread:$0]  %s16281_s1, 49152, %s36_s10, [#allocation7], %s15703_s19, %s15703_s19, %s15704_s20  }
  0x16   :  { %s15705_s23 = smov [#allocation9]   ;;  %s15514_s27 = scalar_lea.hbm %s16283_s3, 131072 }
  0x17   :  { %s57_s24 = sshll.u32 %s15705_s23, 4  ;;  %p15515_p8 = scmp.ne.s32.totalorder %s16283_s3, %s15514_s27  ;;  %s58_s24 = int_to_ptr.vmem [resolvable:$true] %s57_s24 }
  0x18   :  { %p15518_p9 = scmp.lt.u32.totalorder %s15514_s27, %s16283_s3 }
  0x1a   :  { %p15520_p10 = pnand %p15518_p9, %p15515_p8 }
  0x1c   :  { %15523 = shalt.err (!%p15520_p10)
}
  0x1d   :  { %s15524_s12 = scalar_lea.vmem %s58_s24, 131072  ;;  %p15529_p12 = scmp.lt.s32.totalorder %s58_s24, %s58_s24 }
  0x1e   :  { %p15525_p11 = scmp.ne.s32.totalorder %s58_s24, %s15524_s12  ;;  %p15530_p13 = scmp.lt.s32.totalorder %s15524_s12, %s15524_s12 }
  0x20   :  { %p15531_p0 = por %p15530_p13, %p15529_p12 }
  0x22   :  { %p15532_p1 = pnand %p15531_p0, %p15525_p11 }
  0x24   :  { %15535 = shalt.err (!%p15532_p1)
}
  0x25   :  { %s15706_s1 = smov 512   ;;  %s15707_s10 = smov 32  }
  0x26   :  { %63 = dma.hbm_to_vmem [thread:$0]  %s16283_s3, 131072, %s58_s24, [#allocation10], %s15706_s1, %s15706_s1, %s15707_s10  }
  0x27   :  { %s15708_s15 = smov [#allocation12]   ;;  %s15536_s19 = scalar_lea.hbm %s16285_s5, 32768 }
  0x28   :  { %s79_s16 = sshll.u32 %s15708_s15, 4  ;;  %p15537_p2 = scmp.ne.s32.totalorder %s16285_s5, %s15536_s19  ;;  %s80_s16 = int_to_ptr.vmem [resolvable:$true] %s79_s16 }
  0x29   :  { %p15540_p3 = scmp.lt.u32.totalorder %s15536_s19, %s16285_s5 }
  0x2b   :  { %p15542_p4 = pnand %p15540_p3, %p15537_p2 }
  0x2d   :  { %15545 = shalt.err (!%p15542_p4)
}
  0x2e   :  { %s15546_s25 = scalar_lea.vmem %s80_s16, 32768  ;;  %p15551_p6 = scmp.lt.s32.totalorder %s80_s16, %s80_s16 }
  0x2f   :  { %p15547_p5 = scmp.ne.s32.totalorder %s80_s16, %s15546_s25  ;;  %p15552_p7 = scmp.lt.s32.totalorder %s15546_s25, %s15546_s25 }
  0x31   :  { %p15553_p8 = por %p15552_p7, %p15551_p6 }
  0x33   :  { %p15554_p9 = pnand %p15553_p8, %p15547_p5 }
  0x35   :  { %15557 = shalt.err (!%p15554_p9)
}
  0x36   :  { %s15709_s3 = smov 256   ;;  %s15710_s24 = smov 16  }
  0x37   :  { %85 = dma.hbm_to_vmem [thread:$0]  %s16285_s5, 32768, %s80_s16, [#allocation13], %s15709_s3, %s15709_s3, %s15710_s24  }
  0x38   :  { %s15711_s28 = smov [#allocation3]   ;;  %s15712_s30 = smov [#allocation8]  }
  0x39   :  { %s26_s29 = sshll.u32 %s15711_s28, 4  ;;  %s48_s11 = sshll.u32 %s15712_s30, 4  ;;  %s27_s29 = int_to_ptr.vmem [resolvable:$true] %s26_s29  ;;  %s49_s11 = int_to_ptr.vmem [resolvable:$true] %s48_s11 }
  0x3a   :  { %s15558_s10 = scalar_lea.hbm %s16280_s0, 384 }
  0x3b   :  { %p15559_p10 = scmp.ne.s32.totalorder %s16280_s0, %s15558_s10  ;;  %p15562_p11 = scmp.lt.u32.totalorder %s15558_s10, %s16280_s0 }
  0x3d   :  { %p15564_p12 = pnand %p15562_p11, %p15559_p10 }
  0x3f   :  { %15567 = shalt.err (!%p15564_p12)
}
  0x40   :  { %s15568_s5 = scalar_lea.vmem %s27_s29, 384  ;;  %p15573_p0 = scmp.lt.s32.totalorder %s27_s29, %s27_s29 }
  0x41   :  { %p15569_p13 = scmp.ne.s32.totalorder %s27_s29, %s15568_s5  ;;  %p15574_p1 = scmp.lt.s32.totalorder %s15568_s5, %s15568_s5 }
  0x43   :  { %p15575_p2 = por %p15574_p1, %p15573_p0 }
  0x45   :  { %p15576_p3 = pnand %p15575_p2, %p15569_p13 }
  0x47   :  { %15579 = shalt.err (!%p15576_p3)
}
  0x48   :  { %29 = dma.hbm_to_vmem [thread:$0]  %s16280_s0, 384, %s27_s29, [#allocation4]  }
  0x49   :  { %s15580_s21 = scalar_lea.hbm %s16282_s2, 256 }
  0x4a   :  { %p15581_p4 = scmp.ne.s32.totalorder %s16282_s2, %s15580_s21  ;;  %p15584_p5 = scmp.lt.u32.totalorder %s15580_s21, %s16282_s2 }
  0x4c   :  { %p15586_p6 = pnand %p15584_p5, %p15581_p4 }
  0x4e   :  { %15589 = shalt.err (!%p15586_p6)
}
  0x4f   :  { %s15590_s24 = scalar_lea.vmem %s49_s11, 256  ;;  %p15595_p8 = scmp.lt.s32.totalorder %s49_s11, %s49_s11 }
  0x50   :  { %p15591_p7 = scmp.ne.s32.totalorder %s49_s11, %s15590_s24  ;;  %p15596_p9 = scmp.lt.s32.totalorder %s15590_s24, %s15590_s24 }
  0x52   :  { %p15597_p10 = por %p15596_p9, %p15595_p8 }
  0x54   :  { %p15598_p11 = pnand %p15597_p10, %p15591_p7 }
  0x56   :  { %15601 = shalt.err (!%p15598_p11)
}
  0x57   :  { %51 = dma.hbm_to_vmem [thread:$0]  %s16282_s2, 256, %s49_s11, [#allocation7]  }
  0x58   :  { %s15713_s27 = smov [#allocation11]   ;;  %s15714_s29 = smov [#allocation14]  }
  0x59   :  { %s70_s28 = sshll.u32 %s15713_s27, 4  ;;  %s92_s30 = sshll.u32 %s15714_s29, 4  ;;  %s71_s28 = int_to_ptr.vmem [resolvable:$true] %s70_s28  ;;  %s93_s30 = int_to_ptr.vmem [resolvable:$true] %s92_s30 }
  0x5a   :  { %s15602_s10 = scalar_lea.hbm %s16284_s4, 128 }
  0x5b   :  { %p15603_p12 = scmp.ne.s32.totalorder %s16284_s4, %s15602_s10  ;;  %p15606_p13 = scmp.lt.u32.totalorder %s15602_s10, %s16284_s4 }
  0x5d   :  { %p15608_p0 = pnand %p15606_p13, %p15603_p12 }
  0x5f   :  { %15611 = shalt.err (!%p15608_p0)
}
  0x60   :  { %s15612_s2 = scalar_lea.vmem %s71_s28, 128  ;;  %p15617_p2 = scmp.lt.s32.totalorder %s71_s28, %s71_s28 }
  0x61   :  { %p15613_p1 = scmp.ne.s32.totalorder %s71_s28, %s15612_s2  ;;  %p15618_p3 = scmp.lt.s32.totalorder %s15612_s2, %s15612_s2 }
  0x63   :  { %p15619_p4 = por %p15618_p3, %p15617_p2 }
  0x65   :  { %p15620_p5 = pnand %p15619_p4, %p15613_p1 }
  0x67   :  { %15623 = shalt.err (!%p15620_p5)
}
  0x68   :  { %73 = dma.hbm_to_vmem [thread:$0]  %s16284_s4, 128, %s71_s28, [#allocation10]  }
  0x69   :  { %s15624_s19 = scalar_lea.hbm %s16286_s6, 64 }
  0x6a   :  { %p15625_p6 = scmp.ne.s32.totalorder %s16286_s6, %s15624_s19  ;;  %p15628_p7 = scmp.lt.u32.totalorder %s15624_s19, %s16286_s6 }
  0x6c   :  { %p15630_p8 = pnand %p15628_p7, %p15625_p6 }
  0x6e   :  { %15633 = shalt.err (!%p15630_p8)
}
  0x6f   :  { %s15634_s25 = scalar_lea.vmem %s93_s30, 64  ;;  %p15639_p10 = scmp.lt.s32.totalorder %s93_s30, %s93_s30 }
  0x70   :  { %p15635_p9 = scmp.ne.s32.totalorder %s93_s30, %s15634_s25  ;;  %p15640_p11 = scmp.lt.s32.totalorder %s15634_s25, %s15634_s25 }
  0x72   :  { %p15641_p12 = por %p15640_p11, %p15639_p10 }
  0x74   :  { %p15642_p13 = pnand %p15641_p12, %p15635_p9 }
  0x76   :  { %15645 = shalt.err (!%p15642_p13)
}
  0x77   :  { %95 = dma.hbm_to_vmem [thread:$0]  %s16286_s6, 64, %s93_s30, [#allocation13]  }
  0x78   :  { %s15715_s24 = smov [#allocation15]   ;;  %s15646_s28 = scalar_lea.hbm %s16288_s8, 16 }
  0x79   :  { %s104_s0 = sshll.u32 %s15715_s24, 4  ;;  %p15647_p0 = scmp.ne.s32.totalorder %s16288_s8, %s15646_s28  ;;  %s105_s0 = int_to_ptr.vmem [resolvable:$true] %s104_s0 }
  0x7a   :  { %p15650_p1 = scmp.lt.u32.totalorder %s15646_s28, %s16288_s8 }
  0x7c   :  { %p15652_p2 = pnand %p15650_p1, %p15647_p0 }
  0x7e   :  { %15655 = shalt.err (!%p15652_p2)
}
  0x7f   :  { %s15656_s13 = scalar_lea.vmem %s105_s0, 16  ;;  %s15660_s6 = scalar_lea.vmem %s105_s0, 32 }
  0x80   :  { %p15657_p3 = scmp.ne.s32.totalorder %s105_s0, %s15656_s13  ;;  %p15661_p4 = scmp.lt.s32.totalorder %s105_s0, %s105_s0 }
  0x81   :  { %p15662_p5 = scmp.lt.s32.totalorder %s15660_s6, %s15656_s13 }
  0x83   :  { %p15663_p6 = por %p15662_p5, %p15661_p4 }
  0x85   :  { %p15664_p7 = pnand %p15663_p6, %p15657_p3 }
  0x87   :  { %15667 = shalt.err (!%p15664_p7)
}
  0x88   :  { %107 = dma.hbm_to_vmem [thread:$0]  %s16288_s8, 16, %s105_s0, [#allocation16]  }
  0x89   :  { %15690 = dma.done.wait [#allocation4], 384  }
  0x8a   :  { %15691 = vsyncadd [#allocation4], 4294966912 }
  0x8b   :  { %15692 = dma.done.wait [#allocation7], 49408  }
  0x8c   :  { %15693 = vsyncadd [#allocation7], 4294917888 }
  0x8d   :  { %15694 = dma.done.wait [#allocation10], 131200  }
  0x8e   :  { %15695 = vsyncadd [#allocation10], 4294836096 }
  0x8f   :  { %15696 = dma.done.wait [#allocation13], 32832  }
  0x90   :  { %15697 = vsyncadd [#allocation13], 4294934464 }
  0x91   :  { %15698 = dma.done.wait [#allocation16], 16  }
  0x92   :  { %15699 = vsyncadd [#allocation16], 4294967280  ;;  %v15716_v0 = vmov 0   ;;  %v191_v1 = vld [vmem:[#allocation6] sm:$0xff]  ;;  %v155_v36 = vld [vmem:[#allocation3 + $0x10] sm:$0xff] }
  0x93   :  { %2568 = vmatprep.mubr.bf16.mxu1 %v15716_v0  ;;  %v199_v2 = vld [vmem:[#allocation6 + $0x40] sm:$0xff]  ;;  %v158_v39 = vmax.f32 %v155_v36, 0.0  ;;  %v154_v57 = vld [vmem:[#allocation3 + $0x8] sm:$0xff] }
  0x94   :  { %v447_v3 = vld [vmem:[#allocation6 + $0x800] sm:$0xff]  ;;  %v13163_v4 = vcombine.high %v191_v1, %v199_v2  ;;  %v13162_v6 = vcombine.low %v191_v1, %v199_v2  ;;  %v157_v61 = vmax.f32 %v154_v57, 0.0 }
  0x95   :  { %v455_v5 = vld [vmem:[#allocation6 + $0x840] sm:$0xff]  ;;  %v161_v45 = vadd.f32 1.0, %v158_v39 }
  0x96   :  { %v207_v7 = vld [vmem:[#allocation6 + $0x80] sm:$0xff]  ;;  %v13419_v9 = vcombine.high %v447_v3, %v455_v5  ;;  %v13418_v10 = vcombine.low %v447_v3, %v455_v5  ;;  %2495 = vmatprep.subr.bf16.mxu0 %v13163_v4  ;;  %v160_v2 = vadd.f32 1.0, %v157_v61 }
  0x97   :  { %v215_v8 = vld [vmem:[#allocation6 + $0xc0] sm:$0xff]  ;;  %2496 = vmatpush1.bf16.msra.mxu0 %v13162_v6  ;;  %15483 = vlog2.f32 %v161_v45 }
  0x98   :  { %v13179_v11 = vcombine.high %v207_v7, %v215_v8  ;;  %v463_v12 = vld [vmem:[#allocation6 + $0x880] sm:$0xff]  ;;  %2536 = vmatprep.subr.bf16.mxu1 %v13419_v9  ;;  %v13178_v19 = vcombine.low %v207_v7, %v215_v8  ;;  %15485 = vlog2.f32 %v160_v2  ;;  %v192_v9 = vld [vmem:[#allocation6 + $0x8] sm:$0xff] }
  0x99   :  { %v471_v13 = vld [vmem:[#allocation6 + $0x8c0] sm:$0xff]  ;;  %2537 = vmatpush1.bf16.msra.mxu1 %v13418_v10  ;;  %v200_v10 = vld [vmem:[#allocation6 + $0x48] sm:$0xff] }
  0x9a   :  { %v223_v14 = vld [vmem:[#allocation6 + $0x100] sm:$0xff]  ;;  %v13435_v15 = vcombine.high %v463_v12, %v471_v13  ;;  %2497 = vmatprep.subr.bf16.mxu0 %v13179_v11  ;;  %v13434_v20 = vcombine.low %v463_v12, %v471_v13 }
  0x9b   :  { %v231_v16 = vld [vmem:[#allocation6 + $0x140] sm:$0xff]  ;;  %2498 = vmatpush1.bf16.msra.mxu0 %v13178_v19  ;;  %v208_v19 = vld [vmem:[#allocation6 + $0x88] sm:$0xff] }
  0x9c   :  { %v479_v17 = vld [vmem:[#allocation6 + $0x900] sm:$0xff]  ;;  %v13195_v21 = vcombine.high %v223_v14, %v231_v16  ;;  %2538 = vmatprep.subr.bf16.mxu1 %v13435_v15  ;;  %v13194_v27 = vcombine.low %v223_v14, %v231_v16  ;;  %v13165_v15 = vcombine.high %v192_v9, %v200_v10 }
  0x9d   :  { %v487_v18 = vld [vmem:[#allocation6 + $0x940] sm:$0xff]  ;;  %2539 = vmatpush1.bf16.msra.mxu1 %v13434_v20  ;;  %v216_v20 = vld [vmem:[#allocation6 + $0xc8] sm:$0xff] }
  0x9e   :  { %v13451_v22 = vcombine.high %v479_v17, %v487_v18  ;;  %v239_v23 = vld [vmem:[#allocation6 + $0x180] sm:$0xff]  ;;  %2499 = vmatprep.subr.bf16.mxu0 %v13195_v21  ;;  %v13450_v28 = vcombine.low %v479_v17, %v487_v18  ;;  %v153_v21 = vld [vmem:[#allocation3] sm:$0xff] }
  0x9f   :  { %v247_v24 = vld [vmem:[#allocation6 + $0x1c0] sm:$0xff]  ;;  %2500 = vmatpush1.bf16.msra.mxu0 %v13194_v27 }
  0xa0   :  { %v495_v25 = vld [vmem:[#allocation6 + $0x980] sm:$0xff]  ;;  %v13211_v29 = vcombine.high %v239_v23, %v247_v24  ;;  %2540 = vmatprep.subr.bf16.mxu1 %v13451_v22  ;;  %v13210_v35 = vcombine.low %v239_v23, %v247_v24  ;;  %v13164_v24 = vcombine.low %v192_v9, %v200_v10 }
  0xa1   :  { %v503_v26 = vld [vmem:[#allocation6 + $0x9c0] sm:$0xff]  ;;  %2541 = vmatpush1.bf16.msra.mxu1 %v13450_v28  ;;  %v15484_v8 = vpop.eup %15483 }
  0xa2   :  { %v13467_v30 = vcombine.high %v495_v25, %v503_v26  ;;  %v255_v31 = vld [vmem:[#allocation6 + $0x200] sm:$0xff]  ;;  %2501 = vmatprep.subr.bf16.mxu0 %v13211_v29  ;;  %v13466_v37 = vcombine.low %v495_v25, %v503_v26  ;;  %v167_v12 = vmul.f32 0.6931472, %v15484_v8  ;;  %v13181_v26 = vcombine.high %v208_v19, %v216_v20 }
  0xa3   :  { %v263_v32 = vld [vmem:[#allocation6 + $0x240] sm:$0xff]  ;;  %2502 = vmatpush1.bf16.msra.mxu0 %v13210_v35  ;;  %v156_v29 = vmax.f32 %v153_v21, 0.0  ;;  %v456_v21 = vld [vmem:[#allocation6 + $0x848] sm:$0xff] }
  0xa4   :  { %v511_v33 = vld [vmem:[#allocation6 + $0xa00] sm:$0xff]  ;;  %v13227_v38 = vcombine.high %v255_v31, %v263_v32  ;;  %2542 = vmatprep.subr.bf16.mxu1 %v13467_v30  ;;  %v13226_v46 = vcombine.low %v255_v31, %v263_v32  ;;  %v171_v16 = vmul.f32 1.442695, %v167_v12  ;;  %v224_v30 = vld [vmem:[#allocation6 + $0x108] sm:$0xff]  ;;  %v15486_v32 = vpop.eup %15485 }
  0xa5   :  { %v519_v34 = vld [vmem:[#allocation6 + $0xa40] sm:$0xff]  ;;  %2543 = vmatpush1.bf16.msra.mxu1 %v13466_v37  ;;  %v232_v31 = vld [vmem:[#allocation6 + $0x148] sm:$0xff]  ;;  %v165_v36 = vmul.f32 0.6931472, %v15486_v32 }
  0xa6   :  { %v13483_v40 = vcombine.high %v511_v33, %v519_v34  ;;  %v271_v41 = vld [vmem:[#allocation6 + $0x280] sm:$0xff]  ;;  %2503 = vmatprep.subr.bf16.mxu0 %v13227_v38  ;;  %v13482_v47 = vcombine.low %v511_v33, %v519_v34  ;;  %v15865_v23 = vpack.c.bf16 %v171_v16, %v171_v16  ;;  %v13180_v34 = vcombine.low %v208_v19, %v216_v20  ;;  %v448_v20 = vld [vmem:[#allocation6 + $0x808] sm:$0xff] }
  0xa7   :  { %v279_v42 = vld [vmem:[#allocation6 + $0x2c0] sm:$0xff]  ;;  %2504 = vmatpush1.bf16.msra.mxu0 %v13226_v46  ;;  %v13197_v37 = vcombine.high %v224_v30, %v232_v31  ;;  %v13196_v45 = vcombine.low %v224_v30, %v232_v31  ;;  %v464_v30 = vld [vmem:[#allocation6 + $0x888] sm:$0xff] }
  0xa8   :  { %v527_v43 = vld [vmem:[#allocation6 + $0xa80] sm:$0xff]  ;;  %v13243_v48 = vcombine.high %v271_v41, %v279_v42  ;;  %2544 = vmatprep.subr.bf16.mxu1 %v13483_v40  ;;  %v13242_v54 = vcombine.low %v271_v41, %v279_v42  ;;  %v159_v40 = vadd.f32 1.0, %v156_v29  ;;  %v240_v41 = vld [vmem:[#allocation6 + $0x188] sm:$0xff] }
  0xa9   :  { %v535_v44 = vld [vmem:[#allocation6 + $0xac0] sm:$0xff]  ;;  %2545 = vmatpush1.bf16.msra.mxu1 %v13482_v47  ;;  %v248_v42 = vld [vmem:[#allocation6 + $0x1c8] sm:$0xff] }
  0xaa   :  { %v13499_v49 = vcombine.high %v527_v43, %v535_v44  ;;  %v287_v50 = vld [vmem:[#allocation6 + $0x300] sm:$0xff]  ;;  %2505 = vmatprep.subr.bf16.mxu0 %v13243_v48  ;;  %v13498_v55 = vcombine.low %v527_v43, %v535_v44  ;;  %v170_v43 = vmul.f32 1.442695, %v165_v36  ;;  %v13213_v48 = vcombine.high %v240_v41, %v248_v42  ;;  %v472_v31 = vld [vmem:[#allocation6 + $0x8c8] sm:$0xff] }
  0xab   :  { %v295_v51 = vld [vmem:[#allocation6 + $0x340] sm:$0xff]  ;;  %2506 = vmatpush1.bf16.msra.mxu0 %v13242_v54  ;;  %15487 = vlog2.f32 %v159_v40  ;;  %v13212_v54 = vcombine.low %v240_v41, %v248_v42  ;;  %v480_v40 = vld [vmem:[#allocation6 + $0x908] sm:$0xff] }
  0xac   :  { %v543_v52 = vld [vmem:[#allocation6 + $0xb00] sm:$0xff]  ;;  %v13259_v56 = vcombine.high %v287_v50, %v295_v51  ;;  %2546 = vmatprep.subr.bf16.mxu1 %v13499_v49  ;;  %v13258_v1 = vcombine.low %v287_v50, %v295_v51  ;;  %v15868_v47 = vpack.c.bf16 %v170_v43, %v170_v43  ;;  %v256_v51 = vld [vmem:[#allocation6 + $0x208] sm:$0xff]  ;;  %v13436_v43 = vcombine.low %v464_v30, %v472_v31 }
  0xad   :  { %v551_v53 = vld [vmem:[#allocation6 + $0xb40] sm:$0xff]  ;;  %2547 = vmatpush1.bf16.msra.mxu1 %v13498_v55  ;;  %v488_v42 = vld [vmem:[#allocation6 + $0x948] sm:$0xff] }
  0xae   :  { %v13515_v58 = vcombine.high %v543_v52, %v551_v53  ;;  %v303_v59 = vld [vmem:[#allocation6 + $0x380] sm:$0xff]  ;;  %2507 = vmatprep.subr.bf16.mxu0 %v13259_v56  ;;  %v13514_v3 = vcombine.low %v543_v52, %v551_v53  ;;  %v264_v52 = vld [vmem:[#allocation6 + $0x248] sm:$0xff]  ;;  %2527 = vmatprep.mubr.bf16.mxu0 %v15868_v47 }
  0xaf   :  { %v311_v60 = vld [vmem:[#allocation6 + $0x3c0] sm:$0xff]  ;;  %2508 = vmatpush1.bf16.msra.mxu0 %v13258_v1  ;;  %v13229_v56 = vcombine.high %v256_v51, %v264_v52 }
  0xb0   :  { %v559_v62 = vld [vmem:[#allocation6 + $0xb80] sm:$0xff]  ;;  %v13275_v4 = vcombine.high %v303_v59, %v311_v60  ;;  %2548 = vmatprep.subr.bf16.mxu1 %v13515_v58  ;;  %v13274_v11 = vcombine.low %v303_v59, %v311_v60  ;;  %v272_v59 = vld [vmem:[#allocation6 + $0x288] sm:$0xff] }
  0xb1   :  { %v567_v63 = vld [vmem:[#allocation6 + $0xbc0] sm:$0xff]  ;;  %2549 = vmatpush1.bf16.msra.mxu1 %v13514_v3  ;;  %v280_v60 = vld [vmem:[#allocation6 + $0x2c8] sm:$0xff] }
  0xb2   :  { %v13531_v5 = vcombine.high %v559_v62, %v567_v63  ;;  %v319_v6 = vld [vmem:[#allocation6 + $0x400] sm:$0xff]  ;;  %2509 = vmatprep.subr.bf16.mxu0 %v13275_v4  ;;  %v13530_v13 = vcombine.low %v559_v62, %v567_v63  ;;  %v13228_v62 = vcombine.low %v256_v51, %v264_v52  ;;  %v13245_v1 = vcombine.high %v272_v59, %v280_v60  ;;  %v288_v4 = vld [vmem:[#allocation6 + $0x308] sm:$0xff] }
  0xb3   :  { %v327_v7 = vld [vmem:[#allocation6 + $0x440] sm:$0xff]  ;;  %2510 = vmatpush1.bf16.msra.mxu0 %v13274_v11  ;;  %v13244_v8 = vcombine.low %v272_v59, %v280_v60  ;;  %v504_v51 = vld [vmem:[#allocation6 + $0x9c8] sm:$0xff]  ;;  %v13452_v52 = vcombine.low %v480_v40, %v488_v42 }
  0xb4   :  { %v13291_v14 = vcombine.high %v319_v6, %v327_v7  ;;  %2550 = vmatprep.subr.bf16.mxu1 %v13531_v5  ;;  %v335_v17 = vld [vmem:[#allocation6 + $0x480] sm:$0xff]  ;;  %v13290_v22 = vcombine.low %v319_v6, %v327_v7  ;;  %v296_v5 = vld [vmem:[#allocation6 + $0x348] sm:$0xff] }
  0xb5   :  { %v343_v18 = vld [vmem:[#allocation6 + $0x4c0] sm:$0xff]  ;;  %2551 = vmatpush1.bf16.msra.mxu1 %v13530_v13  ;;  %v15488_v6 = vpop.eup %15487  ;;  %v13261_v10 = vcombine.high %v288_v4, %v296_v5  ;;  %v304_v13 = vld [vmem:[#allocation6 + $0x388] sm:$0xff] }
  0xb6   :  { %2511 = vmatprep.subr.bf16.mxu0 %v13291_v14  ;;  %v13307_v25 = vcombine.high %v335_v17, %v343_v18  ;;  %2577 = vmatprep.subr.bf16.mxu1 %v13165_v15  ;;  %v351_v27 = vld [vmem:[#allocation6 + $0x500] sm:$0xff]  ;;  %v13306_v33 = vcombine.low %v335_v17, %v343_v18  ;;  %v312_v14 = vld [vmem:[#allocation6 + $0x3c8] sm:$0xff]  ;;  %v163_v15 = vmul.f32 0.6931472, %v15488_v6  ;;  %v13260_v17 = vcombine.low %v288_v4, %v296_v5 }
  0xb7   :  { %v359_v28 = vld [vmem:[#allocation6 + $0x540] sm:$0xff]  ;;  %2512 = vmatpush1.bf16.msra.mxu0 %v13290_v22  ;;  %v13277_v19 = vcombine.high %v304_v13, %v312_v14  ;;  %v520_v59 = vld [vmem:[#allocation6 + $0xa48] sm:$0xff] }
  0xb8   :  { %2569 = vmatmul.mubr.bf16.vlgmr.msra.gmra.mrb[0].mxu1 %v15865_v23  ;;  %2513 = vmatprep.subr.bf16.mxu0 %v13307_v25  ;;  %v13323_v35 = vcombine.high %v351_v27, %v359_v28  ;;  %v367_v38 = vld [vmem:[#allocation6 + $0x580] sm:$0xff]  ;;  %v13322_v44 = vcombine.low %v351_v27, %v359_v28  ;;  %v169_v22 = vmul.f32 1.442695, %v163_v15  ;;  %v328_v25 = vld [vmem:[#allocation6 + $0x448] sm:$0xff]  ;;  %v13276_v27 = vcombine.low %v304_v13, %v312_v14 }
  0xb9   :  { %2578 = vmatpush1.bf16.msra.mxu1 %v13164_v24  ;;  %v375_v39 = vld [vmem:[#allocation6 + $0x5c0] sm:$0xff]  ;;  %2609 = vmatprep.mubr.bf16.mxu1 %v15868_v47  ;;  %v320_v24 = vld [vmem:[#allocation6 + $0x408] sm:$0xff]  ;;  %v13421_v28 = vcombine.high %v448_v20, %v456_v21 }
  0xba   :  { %2579 = vmatprep.subr.bf16.mxu1 %v13181_v26  ;;  %v13339_v46 = vcombine.high %v367_v38, %v375_v39  ;;  %v383_v49 = vld [vmem:[#allocation6 + $0x600] sm:$0xff]  ;;  %v13338_v53 = vcombine.low %v367_v38, %v375_v39  ;;  %v13293_v29 = vcombine.high %v320_v24, %v328_v25  ;;  %v15872_v32 = vpack.c.bf16 %v169_v22, %v169_v22  ;;  %v352_v38 = vld [vmem:[#allocation6 + $0x508] sm:$0xff] }
  0xbb   :  { %2514 = vmatpush1.bf16.msra.mxu0 %v13306_v33  ;;  %v391_v50 = vld [vmem:[#allocation6 + $0x640] sm:$0xff]  ;;  %v336_v33 = vld [vmem:[#allocation6 + $0x488] sm:$0xff]  ;;  %v13292_v36 = vcombine.low %v320_v24, %v328_v25  ;;  %v193_v25 = vld [vmem:[#allocation6 + $0x10] sm:$0xff] }
  0xbc   :  { %2515 = vmatprep.subr.bf16.mxu0 %v13323_v35  ;;  %v13355_v55 = vcombine.high %v383_v49, %v391_v50  ;;  %v399_v57 = vld [vmem:[#allocation6 + $0x680] sm:$0xff]  ;;  %v13354_v61 = vcombine.low %v383_v49, %v391_v50  ;;  %v13420_v35 = vcombine.low %v448_v20, %v456_v21  ;;  %v360_v39 = vld [vmem:[#allocation6 + $0x548] sm:$0xff] }
  0xbd   :  { %2580 = vmatpush1.bf16.msra.mxu1 %v13180_v34  ;;  %v407_v58 = vld [vmem:[#allocation6 + $0x6c0] sm:$0xff]  ;;  %v344_v34 = vld [vmem:[#allocation6 + $0x4c8] sm:$0xff]  ;;  %v13325_v50 = vcombine.high %v352_v38, %v360_v39 }
  0xbe   :  { %2581 = vmatprep.subr.bf16.mxu1 %v13197_v37  ;;  %v13371_v63 = vcombine.high %v399_v57, %v407_v58  ;;  %v415_v2 = vld [vmem:[#allocation6 + $0x700] sm:$0xff]  ;;  %v13370_v7 = vcombine.low %v399_v57, %v407_v58  ;;  %v13437_v37 = vcombine.high %v464_v30, %v472_v31  ;;  %v13309_v41 = vcombine.high %v336_v33, %v344_v34  ;;  %v496_v49 = vld [vmem:[#allocation6 + $0x988] sm:$0xff] }
  0xbf   :  { %2516 = vmatpush1.bf16.msra.mxu0 %v13322_v44  ;;  %v423_v3 = vld [vmem:[#allocation6 + $0x740] sm:$0xff]  ;;  %v13308_v44 = vcombine.low %v336_v33, %v344_v34  ;;  %v512_v57 = vld [vmem:[#allocation6 + $0xa08] sm:$0xff]  ;;  %v13468_v60 = vcombine.low %v496_v49, %v504_v51  ;;  %v209_v34 = vld [vmem:[#allocation6 + $0x90] sm:$0xff] }
  0xc0   :  { %2517 = vmatprep.subr.bf16.mxu0 %v13339_v46  ;;  %v13387_v9 = vcombine.high %v415_v2, %v423_v3  ;;  %v431_v11 = vld [vmem:[#allocation6 + $0x780] sm:$0xff]  ;;  %v13386_v16 = vcombine.low %v415_v2, %v423_v3  ;;  %v368_v46 = vld [vmem:[#allocation6 + $0x588] sm:$0xff]  ;;  %v13484_v5 = vcombine.low %v512_v57, %v520_v59 }
  0xc1   :  { %2582 = vmatpush1.bf16.msra.mxu1 %v13196_v45  ;;  %v439_v12 = vld [vmem:[#allocation6 + $0x7c0] sm:$0xff]  ;;  %v13453_v45 = vcombine.high %v480_v40, %v488_v42  ;;  %v528_v2 = vld [vmem:[#allocation6 + $0xa88] sm:$0xff]  ;;  %v225_v42 = vld [vmem:[#allocation6 + $0x110] sm:$0xff] }
  0xc2   :  { %2583 = vmatprep.subr.bf16.mxu1 %v13213_v48  ;;  %v13403_v18 = vcombine.high %v431_v11, %v439_v12  ;;  %v13402_v26 = vcombine.low %v431_v11, %v439_v12  ;;  %v376_v48 = vld [vmem:[#allocation6 + $0x5c8] sm:$0xff] }
  0xc3   :  { %2518 = vmatpush1.bf16.msra.mxu0 %v13338_v53  ;;  %v13324_v53 = vcombine.low %v352_v38, %v360_v39  ;;  %v13341_v58 = vcombine.high %v368_v46, %v376_v48  ;;  %v536_v4 = vld [vmem:[#allocation6 + $0xac8] sm:$0xff]  ;;  %v473_v38 = vld [vmem:[#allocation6 + $0x8d0] sm:$0xff] }
  0xc4   :  { %2519 = vmatprep.subr.bf16.mxu0 %v13355_v55  ;;  %v384_v55 = vld [vmem:[#allocation6 + $0x608] sm:$0xff]  ;;  %v13500_v13 = vcombine.low %v528_v2, %v536_v4 }
  0xc5   :  { %2584 = vmatpush1.bf16.msra.mxu1 %v13212_v54  ;;  %v13469_v54 = vcombine.high %v496_v49, %v504_v51  ;;  %v552_v12 = vld [vmem:[#allocation6 + $0xb48] sm:$0xff]  ;;  %v241_v51 = vld [vmem:[#allocation6 + $0x190] sm:$0xff] }
  0xc6   :  { %2585 = vmatprep.subr.bf16.mxu1 %v13229_v56  ;;  %v392_v56 = vld [vmem:[#allocation6 + $0x648] sm:$0xff] }
  0xc7   :  { %2520 = vmatpush1.bf16.msra.mxu0 %v13354_v61  ;;  %v13340_v61 = vcombine.low %v368_v46, %v376_v48  ;;  %v13357_v3 = vcombine.high %v384_v55, %v392_v56  ;;  %v13356_v6 = vcombine.low %v384_v55, %v392_v56  ;;  %v568_v20 = vld [vmem:[#allocation6 + $0xbc8] sm:$0xff]  ;;  %v489_v46 = vld [vmem:[#allocation6 + $0x950] sm:$0xff] }
  0xc8   :  { %2521 = vmatprep.subr.bf16.mxu0 %v13371_v63  ;;  %v400_v63 = vld [vmem:[#allocation6 + $0x688] sm:$0xff]  ;;  %v505_v55 = vld [vmem:[#allocation6 + $0x9d0] sm:$0xff] }
  0xc9   :  { %2586 = vmatpush1.bf16.msra.mxu1 %v13228_v62  ;;  %v13485_v62 = vcombine.high %v512_v57, %v520_v59  ;;  %v257_v59 = vld [vmem:[#allocation6 + $0x210] sm:$0xff] }
  0xca   :  { %2587 = vmatprep.subr.bf16.mxu1 %v13245_v1  ;;  %v408_v1 = vld [vmem:[#allocation6 + $0x6c8] sm:$0xff] }
  0xcb   :  { %2522 = vmatpush1.bf16.msra.mxu0 %v13370_v7  ;;  %v13501_v7 = vcombine.high %v528_v2, %v536_v4  ;;  %v13373_v11 = vcombine.high %v400_v63, %v408_v1  ;;  %v13372_v14 = vcombine.low %v400_v63, %v408_v1  ;;  %v521_v63 = vld [vmem:[#allocation6 + $0xa50] sm:$0xff] }
  0xcc   :  { %2523 = vmatprep.subr.bf16.mxu0 %v13387_v9  ;;  %v424_v9 = vld [vmem:[#allocation6 + $0x748] sm:$0xff]  ;;  %v273_v4 = vld [vmem:[#allocation6 + $0x290] sm:$0xff] }
  0xcd   :  { %2588 = vmatpush1.bf16.msra.mxu1 %v13244_v8  ;;  %v416_v8 = vld [vmem:[#allocation6 + $0x708] sm:$0xff] }
  0xce   :  { %2589 = vmatprep.subr.bf16.mxu1 %v13261_v10  ;;  %v544_v10 = vld [vmem:[#allocation6 + $0xb08] sm:$0xff]  ;;  %v13388_v22 = vcombine.low %v416_v8, %v424_v9 }
  0xcf   :  { %2524 = vmatpush1.bf16.msra.mxu0 %v13386_v16  ;;  %v13517_v15 = vcombine.high %v544_v10, %v552_v12  ;;  %v432_v16 = vld [vmem:[#allocation6 + $0x788] sm:$0xff]  ;;  %v13516_v21 = vcombine.low %v544_v10, %v552_v12  ;;  %v289_v12 = vld [vmem:[#allocation6 + $0x310] sm:$0xff] }
  0xd0   :  { %2525 = vmatprep.subr.bf16.mxu0 %v13403_v18  ;;  %v560_v18 = vld [vmem:[#allocation6 + $0xb88] sm:$0xff] }
  0xd1   :  { %2590 = vmatpush1.bf16.msra.mxu1 %v13260_v17  ;;  %v440_v17 = vld [vmem:[#allocation6 + $0x7c8] sm:$0xff]  ;;  %v13533_v24 = vcombine.high %v560_v18, %v568_v20  ;;  %v13532_v30 = vcombine.low %v560_v18, %v568_v20  ;;  %v305_v20 = vld [vmem:[#allocation6 + $0x390] sm:$0xff] }
  0xd2   :  { %2591 = vmatprep.subr.bf16.mxu1 %v13277_v19  ;;  %v13389_v19 = vcombine.high %v416_v8, %v424_v9  ;;  %v13404_v31 = vcombine.low %v432_v16, %v440_v17  ;;  %v537_v8 = vld [vmem:[#allocation6 + $0xad0] sm:$0xff] }
  0xd3   :  { %2526 = vmatpush1.bf16.msra.mxu0 %v13402_v26  ;;  %v201_v26 = vld [vmem:[#allocation6 + $0x50] sm:$0xff] }
  0xd4   :  { %2618 = vmatprep.subr.bf16.mxu0 %v13421_v28  ;;  %v13405_v28 = vcombine.high %v432_v16, %v440_v17  ;;  %v13167_v33 = vcombine.high %v193_v25, %v201_v26  ;;  %v13166_v39 = vcombine.low %v193_v25, %v201_v26  ;;  %v553_v16 = vld [vmem:[#allocation6 + $0xb50] sm:$0xff] }
  0xd5   :  { %2592 = vmatpush1.bf16.msra.mxu1 %v13276_v27  ;;  %v449_v27 = vld [vmem:[#allocation6 + $0x810] sm:$0xff] }
  0xd6   :  { %2593 = vmatprep.subr.bf16.mxu1 %v13293_v29  ;;  %2528 = vmatmul.mubr.bf16.vlgmr.msra.gmra.mrb[0].mxu0 %v15872_v32  ;;  %v457_v29 = vld [vmem:[#allocation6 + $0x850] sm:$0xff] }
  0xd7   :  { %2619 = vmatpush1.bf16.msra.mxu0 %v13420_v35  ;;  %2650 = vmatprep.mubr.bf16.mxu0 %v15716_v0  ;;  %v217_v35 = vld [vmem:[#allocation6 + $0xd0] sm:$0xff]  ;;  %v13422_v40 = vcombine.low %v449_v27, %v457_v29 }
  0xd8   :  { %2620 = vmatprep.subr.bf16.mxu0 %v13437_v37  ;;  %v13423_v37 = vcombine.high %v449_v27, %v457_v29  ;;  %v13182_v48 = vcombine.low %v209_v34, %v217_v35  ;;  %v569_v25 = vld [vmem:[#allocation6 + $0xbd0] sm:$0xff] }
  0xd9   :  { %2594 = vmatpush1.bf16.msra.mxu1 %v13292_v36  ;;  %v465_v36 = vld [vmem:[#allocation6 + $0x890] sm:$0xff] }
  0xda   :  { %2595 = vmatprep.subr.bf16.mxu1 %v13309_v41  ;;  %v13183_v41 = vcombine.high %v209_v34, %v217_v35  ;;  %v13438_v49 = vcombine.low %v465_v36, %v473_v38  ;;  %v321_v29 = vld [vmem:[#allocation6 + $0x410] sm:$0xff]  ;;  %v202_v34 = vld [vmem:[#allocation6 + $0x58] sm:$0xff] }
  0xdb   :  { %2621 = vmatpush1.bf16.msra.mxu0 %v13436_v43  ;;  %v233_v43 = vld [vmem:[#allocation6 + $0x150] sm:$0xff] }
  0xdc   :  { %2622 = vmatprep.subr.bf16.mxu0 %v13453_v45  ;;  %v13439_v45 = vcombine.high %v465_v36, %v473_v38  ;;  %v13198_v56 = vcombine.low %v225_v42, %v233_v43  ;;  %v337_v38 = vld [vmem:[#allocation6 + $0x490] sm:$0xff] }
  0xdd   :  { %2596 = vmatpush1.bf16.msra.mxu1 %v13308_v44  ;;  %v481_v44 = vld [vmem:[#allocation6 + $0x910] sm:$0xff] }
  0xde   :  { %2597 = vmatprep.subr.bf16.mxu1 %v13325_v50  ;;  %v13199_v50 = vcombine.high %v225_v42, %v233_v43  ;;  %v13454_v57 = vcombine.low %v481_v44, %v489_v46  ;;  %v218_v42 = vld [vmem:[#allocation6 + $0xd8] sm:$0xff] }
  0xdf   :  { %2623 = vmatpush1.bf16.msra.mxu0 %v13452_v52  ;;  %v249_v52 = vld [vmem:[#allocation6 + $0x1d0] sm:$0xff] }
  0xe0   :  { %2624 = vmatprep.subr.bf16.mxu0 %v13469_v54  ;;  %v13455_v54 = vcombine.high %v481_v44, %v489_v46  ;;  %v13214_v1 = vcombine.low %v241_v51, %v249_v52  ;;  %v353_v46 = vld [vmem:[#allocation6 + $0x510] sm:$0xff] }
  0xe1   :  { %2598 = vmatpush1.bf16.msra.mxu1 %v13324_v53  ;;  %v497_v53 = vld [vmem:[#allocation6 + $0x990] sm:$0xff] }
  0xe2   :  { %2599 = vmatprep.subr.bf16.mxu1 %v13341_v58  ;;  %v13215_v58 = vcombine.high %v241_v51, %v249_v52  ;;  %v13470_v2 = vcombine.low %v497_v53, %v505_v55  ;;  %v234_v51 = vld [vmem:[#allocation6 + $0x158] sm:$0xff] }
  0xe3   :  { %2625 = vmatpush1.bf16.msra.mxu0 %v13468_v60  ;;  %v265_v60 = vld [vmem:[#allocation6 + $0x250] sm:$0xff] }
  0xe4   :  { %2626 = vmatprep.subr.bf16.mxu0 %v13485_v62  ;;  %v13471_v62 = vcombine.high %v497_v53, %v505_v55  ;;  %v13230_v9 = vcombine.low %v257_v59, %v265_v60  ;;  %v369_v55 = vld [vmem:[#allocation6 + $0x590] sm:$0xff] }
  0xe5   :  { %2600 = vmatpush1.bf16.msra.mxu1 %v13340_v61  ;;  %v513_v61 = vld [vmem:[#allocation6 + $0xa10] sm:$0xff] }
  0xe6   :  { %2601 = vmatprep.subr.bf16.mxu1 %v13357_v3  ;;  %v13231_v3 = vcombine.high %v257_v59, %v265_v60  ;;  %v13486_v10 = vcombine.low %v513_v61, %v521_v63  ;;  %v250_v59 = vld [vmem:[#allocation6 + $0x1d8] sm:$0xff] }
  0xe7   :  { %2627 = vmatpush1.bf16.msra.mxu0 %v13484_v5  ;;  %v281_v5 = vld [vmem:[#allocation6 + $0x2d0] sm:$0xff] }
  0xe8   :  { %2628 = vmatprep.subr.bf16.mxu0 %v13501_v7  ;;  %v13487_v7 = vcombine.high %v513_v61, %v521_v63  ;;  %v13246_v17 = vcombine.low %v273_v4, %v281_v5  ;;  %v385_v63 = vld [vmem:[#allocation6 + $0x610] sm:$0xff] }
  0xe9   :  { %2602 = vmatpush1.bf16.msra.mxu1 %v13356_v6  ;;  %v529_v6 = vld [vmem:[#allocation6 + $0xa90] sm:$0xff] }
  0xea   :  { %2603 = vmatprep.subr.bf16.mxu1 %v13373_v11  ;;  %v13247_v11 = vcombine.high %v273_v4, %v281_v5  ;;  %v13502_v18 = vcombine.low %v529_v6, %v537_v8  ;;  %v266_v4 = vld [vmem:[#allocation6 + $0x258] sm:$0xff] }
  0xeb   :  { %2629 = vmatpush1.bf16.msra.mxu0 %v13500_v13  ;;  %v297_v13 = vld [vmem:[#allocation6 + $0x350] sm:$0xff] }
  0xec   :  { %2630 = vmatprep.subr.bf16.mxu0 %v13517_v15  ;;  %v13503_v15 = vcombine.high %v529_v6, %v537_v8  ;;  %v13262_v26 = vcombine.low %v289_v12, %v297_v13  ;;  %v401_v8 = vld [vmem:[#allocation6 + $0x690] sm:$0xff] }
  0xed   :  { %2604 = vmatpush1.bf16.msra.mxu1 %v13372_v14  ;;  %v545_v14 = vld [vmem:[#allocation6 + $0xb10] sm:$0xff] }
  0xee   :  { %2605 = vmatprep.subr.bf16.mxu1 %v13389_v19  ;;  %v13263_v19 = vcombine.high %v289_v12, %v297_v13  ;;  %v13518_v27 = vcombine.low %v545_v14, %v553_v16  ;;  %v282_v12 = vld [vmem:[#allocation6 + $0x2d8] sm:$0xff] }
  0xef   :  { %2631 = vmatpush1.bf16.msra.mxu0 %v13516_v21  ;;  %v313_v21 = vld [vmem:[#allocation6 + $0x3d0] sm:$0xff] }
  0xf0   :  { %2632 = vmatprep.subr.bf16.mxu0 %v13533_v24  ;;  %v13519_v24 = vcombine.high %v545_v14, %v553_v16  ;;  %v13278_v35 = vcombine.low %v305_v20, %v313_v21  ;;  %v417_v16 = vld [vmem:[#allocation6 + $0x710] sm:$0xff] }
  0xf1   :  { %2606 = vmatpush1.bf16.msra.mxu1 %v13388_v22  ;;  %v561_v22 = vld [vmem:[#allocation6 + $0xb90] sm:$0xff] }
  0xf2   :  { %2607 = vmatprep.subr.bf16.mxu1 %v13405_v28  ;;  %v13279_v28 = vcombine.high %v305_v20, %v313_v21  ;;  %v13534_v36 = vcombine.low %v561_v22, %v569_v25  ;;  %v298_v20 = vld [vmem:[#allocation6 + $0x358] sm:$0xff] }
  0xf3   :  { %2633 = vmatpush1.bf16.msra.mxu0 %v13532_v30  ;;  %v329_v30 = vld [vmem:[#allocation6 + $0x450] sm:$0xff] }
  0xf4   :  { %2659 = vmatprep.subr.bf16.mxu0 %v13167_v33  ;;  %v13535_v33 = vcombine.high %v561_v22, %v569_v25  ;;  %v13294_v43 = vcombine.low %v321_v29, %v329_v30  ;;  %v433_v25 = vld [vmem:[#allocation6 + $0x790] sm:$0xff] }
  0xf5   :  { %2608 = vmatpush1.bf16.msra.mxu1 %v13404_v31  ;;  %v194_v31 = vld [vmem:[#allocation6 + $0x18] sm:$0xff] }
  0xf6   :  { %2700 = vmatprep.subr.bf16.mxu1 %v13423_v37  ;;  %2651 = vmatmul.mubr.bf16.vlgmr.msra.gmra.mrb[4].mxu0 %v15865_v23  ;;  %v13295_v37 = vcombine.high %v321_v29, %v329_v30  ;;  %v13168_v44 = vcombine.low %v194_v31, %v202_v34  ;;  %v314_v29 = vld [vmem:[#allocation6 + $0x3d8] sm:$0xff] }
  0xf7   :  { %2660 = vmatpush1.bf16.msra.mxu0 %v13166_v39  ;;  %2691 = vmatprep.mubr.bf16.mxu0 %v15868_v47  ;;  %v345_v39 = vld [vmem:[#allocation6 + $0x4d0] sm:$0xff] }
  0xf8   :  { %2610 = vmatmul.mubr.bf16.vlgmr.msra.gmra.mrb[4].mxu1 %v15872_v32  ;;  %2661 = vmatprep.subr.bf16.mxu0 %v13183_v41  ;;  %v13169_v41 = vcombine.high %v194_v31, %v202_v34  ;;  %v13310_v52 = vcombine.low %v337_v38, %v345_v39  ;;  %v322_v34 = vld [vmem:[#allocation6 + $0x418] sm:$0xff] }
  0xf9   :  { %2701 = vmatpush1.bf16.msra.mxu1 %v13422_v40  ;;  %2732 = vmatprep.mubr.bf16.mxu1 %v15716_v0  ;;  %v210_v40 = vld [vmem:[#allocation6 + $0x98] sm:$0xff] }
  0xfa   :  { %2702 = vmatprep.subr.bf16.mxu1 %v13439_v45  ;;  %v13311_v45 = vcombine.high %v337_v38, %v345_v39  ;;  %v13184_v53 = vcombine.low %v210_v40, %v218_v42  ;;  %v458_v38 = vld [vmem:[#allocation6 + $0x858] sm:$0xff] }
  0xfb   :  { %2662 = vmatpush1.bf16.msra.mxu0 %v13182_v48  ;;  %v361_v48 = vld [vmem:[#allocation6 + $0x550] sm:$0xff] }
  0xfc   :  { %2663 = vmatprep.subr.bf16.mxu0 %v13199_v50  ;;  %v13185_v50 = vcombine.high %v210_v40, %v218_v42  ;;  %v13326_v60 = vcombine.low %v353_v46, %v361_v48  ;;  %v338_v42 = vld [vmem:[#allocation6 + $0x498] sm:$0xff] }
  0xfd   :  { %2703 = vmatpush1.bf16.msra.mxu1 %v13438_v49  ;;  %v226_v49 = vld [vmem:[#allocation6 + $0x118] sm:$0xff] }
  0xfe   :  { %2704 = vmatprep.subr.bf16.mxu1 %v13455_v54  ;;  %v13327_v54 = vcombine.high %v353_v46, %v361_v48  ;;  %v13200_v61 = vcombine.low %v226_v49, %v234_v51  ;;  %v474_v46 = vld [vmem:[#allocation6 + $0x8d8] sm:$0xff] }
  0xff   :  { %2664 = vmatpush1.bf16.msra.mxu0 %v13198_v56  ;;  %v377_v56 = vld [vmem:[#allocation6 + $0x5d0] sm:$0xff] }
 0x100   :  { %2665 = vmatprep.subr.bf16.mxu0 %v13215_v58  ;;  %v13201_v58 = vcombine.high %v226_v49, %v234_v51  ;;  %v13342_v5 = vcombine.low %v369_v55, %v377_v56  ;;  %v354_v51 = vld [vmem:[#allocation6 + $0x518] sm:$0xff] }
 0x101   :  { %2705 = vmatpush1.bf16.msra.mxu1 %v13454_v57  ;;  %v242_v57 = vld [vmem:[#allocation6 + $0x198] sm:$0xff] }
 0x102   :  { %2706 = vmatprep.subr.bf16.mxu1 %v13471_v62  ;;  %v13343_v62 = vcombine.high %v369_v55, %v377_v56  ;;  %v13216_v6 = vcombine.low %v242_v57, %v250_v59  ;;  %v490_v55 = vld [vmem:[#allocation6 + $0x958] sm:$0xff] }
 0x103   :  { %2666 = vmatpush1.bf16.msra.mxu0 %v13214_v1  ;;  %v393_v1 = vld [vmem:[#allocation6 + $0x650] sm:$0xff] }
 0x104   :  { %2667 = vmatprep.subr.bf16.mxu0 %v13231_v3  ;;  %v13217_v3 = vcombine.high %v242_v57, %v250_v59  ;;  %v13358_v13 = vcombine.low %v385_v63, %v393_v1  ;;  %v370_v59 = vld [vmem:[#allocation6 + $0x598] sm:$0xff] }
 0x105   :  { %2707 = vmatpush1.bf16.msra.mxu1 %v13470_v2  ;;  %v258_v2 = vld [vmem:[#allocation6 + $0x218] sm:$0xff] }
 0x106   :  { %2708 = vmatprep.subr.bf16.mxu1 %v13487_v7  ;;  %v13359_v7 = vcombine.high %v385_v63, %v393_v1  ;;  %v13232_v14 = vcombine.low %v258_v2, %v266_v4  ;;  %v506_v63 = vld [vmem:[#allocation6 + $0x9d8] sm:$0xff] }
 0x107   :  { %2668 = vmatpush1.bf16.msra.mxu0 %v13230_v9  ;;  %v409_v9 = vld [vmem:[#allocation6 + $0x6d0] sm:$0xff] }
 0x108   :  { %2669 = vmatprep.subr.bf16.mxu0 %v13247_v11  ;;  %v13233_v11 = vcombine.high %v258_v2, %v266_v4  ;;  %v13374_v21 = vcombine.low %v401_v8, %v409_v9  ;;  %v386_v4 = vld [vmem:[#allocation6 + $0x618] sm:$0xff] }
 0x109   :  { %2709 = vmatpush1.bf16.msra.mxu1 %v13486_v10  ;;  %v274_v10 = vld [vmem:[#allocation6 + $0x298] sm:$0xff] }
 0x10a   :  { %2710 = vmatprep.subr.bf16.mxu1 %v13503_v15  ;;  %v13375_v15 = vcombine.high %v401_v8, %v409_v9  ;;  %v13248_v22 = vcombine.low %v274_v10, %v282_v12  ;;  %v522_v8 = vld [vmem:[#allocation6 + $0xa58] sm:$0xff] }
 0x10b   :  { %2670 = vmatpush1.bf16.msra.mxu0 %v13246_v17  ;;  %v425_v17 = vld [vmem:[#allocation6 + $0x750] sm:$0xff] }
 0x10c   :  { %2671 = vmatprep.subr.bf16.mxu0 %v13263_v19  ;;  %v13249_v19 = vcombine.high %v274_v10, %v282_v12  ;;  %v13390_v30 = vcombine.low %v417_v16, %v425_v17  ;;  %v402_v12 = vld [vmem:[#allocation6 + $0x698] sm:$0xff] }
 0x10d   :  { %2711 = vmatpush1.bf16.msra.mxu1 %v13502_v18  ;;  %v290_v18 = vld [vmem:[#allocation6 + $0x318] sm:$0xff] }
 0x10e   :  { %2712 = vmatprep.subr.bf16.mxu1 %v13519_v24  ;;  %v13391_v24 = vcombine.high %v417_v16, %v425_v17  ;;  %v13264_v31 = vcombine.low %v290_v18, %v298_v20  ;;  %v538_v16 = vld [vmem:[#allocation6 + $0xad8] sm:$0xff] }
 0x10f   :  { %2672 = vmatpush1.bf16.msra.mxu0 %v13262_v26  ;;  %v441_v26 = vld [vmem:[#allocation6 + $0x7d0] sm:$0xff] }
 0x110   :  { %2673 = vmatprep.subr.bf16.mxu0 %v13279_v28  ;;  %v306_v28 = vld [vmem:[#allocation6 + $0x398] sm:$0xff]  ;;  %v13406_v39 = vcombine.low %v433_v25, %v441_v26 }
 0x111   :  { %2713 = vmatpush1.bf16.msra.mxu1 %v13518_v27  ;;  %v13265_v27 = vcombine.high %v290_v18, %v298_v20  ;;  %v13280_v40 = vcombine.low %v306_v28, %v314_v29  ;;  %v418_v20 = vld [vmem:[#allocation6 + $0x718] sm:$0xff] }
 0x112   :  { %2714 = vmatprep.subr.bf16.mxu1 %v13535_v33  ;;  %v13407_v33 = vcombine.high %v433_v25, %v441_v26  ;;  %v554_v25 = vld [vmem:[#allocation6 + $0xb58] sm:$0xff] }
 0x113   :  { %2674 = vmatpush1.bf16.msra.mxu0 %v13278_v35  ;;  %v330_v35 = vld [vmem:[#allocation6 + $0x458] sm:$0xff] }
 0x114   :  { %2675 = vmatprep.subr.bf16.mxu0 %v13295_v37  ;;  %v13281_v37 = vcombine.high %v306_v28, %v314_v29  ;;  %v13296_v49 = vcombine.low %v322_v34, %v330_v35  ;;  %v434_v29 = vld [vmem:[#allocation6 + $0x798] sm:$0xff] }
 0x115   :  { %2715 = vmatpush1.bf16.msra.mxu1 %v13534_v36  ;;  %v450_v36 = vld [vmem:[#allocation6 + $0x818] sm:$0xff] }
 0x116   :  { %2741 = vmatprep.subr.bf16.mxu1 %v13169_v41  ;;  %v13425_v41 = vcombine.high %v450_v36, %v458_v38  ;;  %v13424_v48 = vcombine.low %v450_v36, %v458_v38  ;;  %v195_v38 = vld [vmem:[#allocation6 + $0x20] sm:$0xff] }
 0x117   :  { %2676 = vmatpush1.bf16.msra.mxu0 %v13294_v43  ;;  %v346_v43 = vld [vmem:[#allocation6 + $0x4d8] sm:$0xff] }
 0x118   :  { %2733 = vmatmul.mubr.bf16.vlgmr.msra.gmra.mrb[8].mxu1 %v15865_v23  ;;  %2677 = vmatprep.subr.bf16.mxu0 %v13311_v45  ;;  %v13297_v45 = vcombine.high %v322_v34, %v330_v35  ;;  %v13312_v57 = vcombine.low %v338_v42, %v346_v43  ;;  %v570_v34 = vld [vmem:[#allocation6 + $0xbd8] sm:$0xff] }
 0x119   :  { %2742 = vmatpush1.bf16.msra.mxu1 %v13168_v44  ;;  %2773 = vmatprep.mubr.bf16.mxu1 %v15868_v47  ;;  %v466_v44 = vld [vmem:[#allocation6 + $0x898] sm:$0xff] }
 0x11a   :  { %2743 = vmatprep.subr.bf16.mxu1 %v13185_v50  ;;  %v13441_v50 = vcombine.high %v466_v44, %v474_v46  ;;  %v13440_v56 = vcombine.low %v466_v44, %v474_v46  ;;  %v211_v46 = vld [vmem:[#allocation6 + $0xa0] sm:$0xff] }
 0x11b   :  { %2678 = vmatpush1.bf16.msra.mxu0 %v13310_v52  ;;  %v362_v52 = vld [vmem:[#allocation6 + $0x558] sm:$0xff] }
 0x11c   :  { %2679 = vmatprep.subr.bf16.mxu0 %v13327_v54  ;;  %v13313_v54 = vcombine.high %v338_v42, %v346_v43  ;;  %v13328_v2 = vcombine.low %v354_v51, %v362_v52  ;;  %v459_v42 = vld [vmem:[#allocation6 + $0x860] sm:$0xff] }
 0x11d   :  { %2744 = vmatpush1.bf16.msra.mxu1 %v13184_v53  ;;  %v482_v53 = vld [vmem:[#allocation6 + $0x918] sm:$0xff] }
 0x11e   :  { %2745 = vmatprep.subr.bf16.mxu1 %v13201_v58  ;;  %v13457_v58 = vcombine.high %v482_v53, %v490_v55  ;;  %v13456_v1 = vcombine.low %v482_v53, %v490_v55  ;;  %v227_v55 = vld [vmem:[#allocation6 + $0x120] sm:$0xff] }
 0x11f   :  { %2680 = vmatpush1.bf16.msra.mxu0 %v13326_v60  ;;  %v378_v60 = vld [vmem:[#allocation6 + $0x5d8] sm:$0xff] }
 0x120   :  { %2681 = vmatprep.subr.bf16.mxu0 %v13343_v62  ;;  %v13329_v62 = vcombine.high %v354_v51, %v362_v52  ;;  %v13344_v10 = vcombine.low %v370_v59, %v378_v60  ;;  %v475_v51 = vld [vmem:[#allocation6 + $0x8e0] sm:$0xff] }
 0x121   :  { %2746 = vmatpush1.bf16.msra.mxu1 %v13200_v61  ;;  %v498_v61 = vld [vmem:[#allocation6 + $0x998] sm:$0xff] }
 0x122   :  { %2747 = vmatprep.subr.bf16.mxu1 %v13217_v3  ;;  %v13473_v3 = vcombine.high %v498_v61, %v506_v63  ;;  %v13472_v9 = vcombine.low %v498_v61, %v506_v63  ;;  %v243_v63 = vld [vmem:[#allocation6 + $0x1a0] sm:$0xff] }
 0x123   :  { %2682 = vmatpush1.bf16.msra.mxu0 %v13342_v5  ;;  %v394_v5 = vld [vmem:[#allocation6 + $0x658] sm:$0xff] }
 0x124   :  { %2683 = vmatprep.subr.bf16.mxu0 %v13359_v7  ;;  %v13345_v7 = vcombine.high %v370_v59, %v378_v60  ;;  %v13360_v18 = vcombine.low %v386_v4, %v394_v5  ;;  %v491_v59 = vld [vmem:[#allocation6 + $0x960] sm:$0xff] }
 0x125   :  { %2748 = vmatpush1.bf16.msra.mxu1 %v13216_v6  ;;  %v514_v6 = vld [vmem:[#allocation6 + $0xa18] sm:$0xff] }
 0x126   :  { %2749 = vmatprep.subr.bf16.mxu1 %v13233_v11  ;;  %v13489_v11 = vcombine.high %v514_v6, %v522_v8  ;;  %v13488_v17 = vcombine.low %v514_v6, %v522_v8  ;;  %v259_v8 = vld [vmem:[#allocation6 + $0x220] sm:$0xff] }
 0x127   :  { %2684 = vmatpush1.bf16.msra.mxu0 %v13358_v13  ;;  %v410_v13 = vld [vmem:[#allocation6 + $0x6d8] sm:$0xff] }
 0x128   :  { %2685 = vmatprep.subr.bf16.mxu0 %v13375_v15  ;;  %v13361_v15 = vcombine.high %v386_v4, %v394_v5  ;;  %v507_v4 = vld [vmem:[#allocation6 + $0x9e0] sm:$0xff] }
 0x129   :  { %2750 = vmatpush1.bf16.msra.mxu1 %v13232_v14  ;;  %v530_v14 = vld [vmem:[#allocation6 + $0xa98] sm:$0xff] }
 0x12a   :  { %2751 = vmatprep.subr.bf16.mxu1 %v13249_v19  ;;  %v13505_v19 = vcombine.high %v530_v14, %v538_v16  ;;  %v13504_v26 = vcombine.low %v530_v14, %v538_v16  ;;  %v275_v16 = vld [vmem:[#allocation6 + $0x2a0] sm:$0xff] }
 0x12b   :  { %2686 = vmatpush1.bf16.msra.mxu0 %v13374_v21  ;;  %v426_v21 = vld [vmem:[#allocation6 + $0x758] sm:$0xff] }
 0x12c   :  { %2687 = vmatprep.subr.bf16.mxu0 %v13391_v24  ;;  %v13377_v24 = vcombine.high %v402_v12, %v410_v13  ;;  %v13392_v36 = vcombine.low %v418_v20, %v426_v21 }
 0x12d   :  { %2752 = vmatpush1.bf16.msra.mxu1 %v13248_v22  ;;  %v546_v22 = vld [vmem:[#allocation6 + $0xb18] sm:$0xff] }
 0x12e   :  { %2753 = vmatprep.subr.bf16.mxu1 %v13265_v27  ;;  %v13376_v27 = vcombine.low %v402_v12, %v410_v13  ;;  %v13521_v28 = vcombine.high %v546_v22, %v554_v25  ;;  %v13520_v35 = vcombine.low %v546_v22, %v554_v25  ;;  %v523_v12 = vld [vmem:[#allocation6 + $0xa60] sm:$0xff] }
 0x12f   :  { %2688 = vmatpush1.bf16.msra.mxu0 %v13390_v30  ;;  %v442_v30 = vld [vmem:[#allocation6 + $0x7d8] sm:$0xff]  ;;  %v291_v25 = vld [vmem:[#allocation6 + $0x320] sm:$0xff] }
 0x130   :  { %2689 = vmatprep.subr.bf16.mxu0 %v13407_v33  ;;  %v13393_v33 = vcombine.high %v418_v20, %v426_v21  ;;  %v13408_v44 = vcombine.low %v434_v29, %v442_v30  ;;  %v539_v20 = vld [vmem:[#allocation6 + $0xae0] sm:$0xff] }
 0x131   :  { %2754 = vmatpush1.bf16.msra.mxu1 %v13264_v31  ;;  %v562_v31 = vld [vmem:[#allocation6 + $0xb98] sm:$0xff] }
 0x132   :  { %2755 = vmatprep.subr.bf16.mxu1 %v13281_v37  ;;  %v13537_v37 = vcombine.high %v562_v31, %v570_v34  ;;  %v13536_v43 = vcombine.low %v562_v31, %v570_v34  ;;  %v307_v34 = vld [vmem:[#allocation6 + $0x3a0] sm:$0xff] }
 0x133   :  { %2690 = vmatpush1.bf16.msra.mxu0 %v13406_v39  ;;  %v203_v39 = vld [vmem:[#allocation6 + $0x60] sm:$0xff] }
 0x134   :  { %2782 = vmatprep.subr.bf16.mxu0 %v13425_v41  ;;  %v13409_v41 = vcombine.high %v434_v29, %v442_v30  ;;  %v13170_v52 = vcombine.low %v195_v38, %v203_v39  ;;  %v555_v29 = vld [vmem:[#allocation6 + $0xb60] sm:$0xff] }
 0x135   :  { %2756 = vmatpush1.bf16.msra.mxu1 %v13280_v40  ;;  %v451_v40 = vld [vmem:[#allocation6 + $0x820] sm:$0xff] }
 0x136   :  { %2757 = vmatprep.subr.bf16.mxu1 %v13297_v45  ;;  %2692 = vmatmul.mubr.bf16.vlgmr.msra.gmra.mrb[8].mxu0 %v15872_v32  ;;  %v13171_v45 = vcombine.high %v195_v38, %v203_v39  ;;  %v13426_v53 = vcombine.low %v451_v40, %v459_v42  ;;  %v571_v38 = vld [vmem:[#allocation6 + $0xbe0] sm:$0xff] }
 0x137   :  { %2783 = vmatpush1.bf16.msra.mxu0 %v13424_v48  ;;  %2814 = vmatprep.mubr.bf16.mxu0 %v15716_v0  ;;  %v219_v48 = vld [vmem:[#allocation6 + $0xe0] sm:$0xff] }
 0x138   :  { %2784 = vmatprep.subr.bf16.mxu0 %v13441_v50  ;;  %v13427_v50 = vcombine.high %v451_v40, %v459_v42  ;;  %v13186_v60 = vcombine.low %v211_v46, %v219_v48  ;;  %v323_v42 = vld [vmem:[#allocation6 + $0x420] sm:$0xff] }
 0x139   :  { %2758 = vmatpush1.bf16.msra.mxu1 %v13296_v49  ;;  %v467_v49 = vld [vmem:[#allocation6 + $0x8a0] sm:$0xff] }
 0x13a   :  { %2759 = vmatprep.subr.bf16.mxu1 %v13313_v54  ;;  %v13187_v54 = vcombine.high %v211_v46, %v219_v48  ;;  %v13442_v61 = vcombine.low %v467_v49, %v475_v51  ;;  %v204_v46 = vld [vmem:[#allocation6 + $0x68] sm:$0xff] }
 0x13b   :  { %2785 = vmatpush1.bf16.msra.mxu0 %v13440_v56  ;;  %v235_v56 = vld [vmem:[#allocation6 + $0x160] sm:$0xff] }
 0x13c   :  { %2786 = vmatprep.subr.bf16.mxu0 %v13457_v58  ;;  %v13443_v58 = vcombine.high %v467_v49, %v475_v51  ;;  %v13202_v5 = vcombine.low %v227_v55, %v235_v56  ;;  %v339_v51 = vld [vmem:[#allocation6 + $0x4a0] sm:$0xff] }
 0x13d   :  { %2760 = vmatpush1.bf16.msra.mxu1 %v13312_v57  ;;  %v483_v57 = vld [vmem:[#allocation6 + $0x920] sm:$0xff] }
 0x13e   :  { %2761 = vmatprep.subr.bf16.mxu1 %v13329_v62  ;;  %v13203_v62 = vcombine.high %v227_v55, %v235_v56  ;;  %v13458_v6 = vcombine.low %v483_v57, %v491_v59  ;;  %v220_v55 = vld [vmem:[#allocation6 + $0xe8] sm:$0xff] }
 0x13f   :  { %2787 = vmatpush1.bf16.msra.mxu0 %v13456_v1  ;;  %v251_v1 = vld [vmem:[#allocation6 + $0x1e0] sm:$0xff] }
 0x140   :  { %2788 = vmatprep.subr.bf16.mxu0 %v13473_v3  ;;  %v13459_v3 = vcombine.high %v483_v57, %v491_v59  ;;  %v13218_v13 = vcombine.low %v243_v63, %v251_v1 }
 0x141   :  { %2762 = vmatpush1.bf16.msra.mxu1 %v13328_v2  ;;  %v499_v2 = vld [vmem:[#allocation6 + $0x9a0] sm:$0xff] }
 0x142   :  { %2763 = vmatprep.subr.bf16.mxu1 %v13345_v7  ;;  %v13219_v7 = vcombine.high %v243_v63, %v251_v1  ;;  %v13474_v14 = vcombine.low %v499_v2, %v507_v4  ;;  %v236_v63 = vld [vmem:[#allocation6 + $0x168] sm:$0xff] }
 0x143   :  { %2789 = vmatpush1.bf16.msra.mxu0 %v13472_v9  ;;  %v267_v9 = vld [vmem:[#allocation6 + $0x260] sm:$0xff] }
 0x144   :  { %2790 = vmatprep.subr.bf16.mxu0 %v13489_v11  ;;  %v13475_v11 = vcombine.high %v499_v2, %v507_v4  ;;  %v13234_v21 = vcombine.low %v259_v8, %v267_v9 }
 0x145   :  { %2764 = vmatpush1.bf16.msra.mxu1 %v13344_v10  ;;  %v515_v10 = vld [vmem:[#allocation6 + $0xa20] sm:$0xff] }
 0x146   :  { %2765 = vmatprep.subr.bf16.mxu1 %v13361_v15  ;;  %v13235_v15 = vcombine.high %v259_v8, %v267_v9  ;;  %v13490_v22 = vcombine.low %v515_v10, %v523_v12  ;;  %v252_v8 = vld [vmem:[#allocation6 + $0x1e8] sm:$0xff] }
 0x147   :  { %2791 = vmatpush1.bf16.msra.mxu0 %v13488_v17  ;;  %v283_v17 = vld [vmem:[#allocation6 + $0x2e0] sm:$0xff] }
 0x148   :  { %2792 = vmatprep.subr.bf16.mxu0 %v13505_v19  ;;  %v13491_v19 = vcombine.high %v515_v10, %v523_v12  ;;  %v13250_v30 = vcombine.low %v275_v16, %v283_v17 }
 0x149   :  { %2766 = vmatpush1.bf16.msra.mxu1 %v13360_v18  ;;  %v531_v18 = vld [vmem:[#allocation6 + $0xaa0] sm:$0xff] }
 0x14a   :  { %2767 = vmatprep.subr.bf16.mxu1 %v13377_v24  ;;  %v13251_v24 = vcombine.high %v275_v16, %v283_v17  ;;  %v13506_v31 = vcombine.low %v531_v18, %v539_v20  ;;  %v268_v16 = vld [vmem:[#allocation6 + $0x268] sm:$0xff] }
 0x14b   :  { %2793 = vmatpush1.bf16.msra.mxu0 %v13504_v26  ;;  %v299_v26 = vld [vmem:[#allocation6 + $0x360] sm:$0xff] }
 0x14c   :  { %2794 = vmatprep.subr.bf16.mxu0 %v13521_v28  ;;  %v13507_v28 = vcombine.high %v531_v18, %v539_v20  ;;  %v13266_v39 = vcombine.low %v291_v25, %v299_v26 }
 0x14d   :  { %2768 = vmatpush1.bf16.msra.mxu1 %v13376_v27  ;;  %v547_v27 = vld [vmem:[#allocation6 + $0xb20] sm:$0xff] }
 0x14e   :  { %2769 = vmatprep.subr.bf16.mxu1 %v13393_v33  ;;  %v13267_v33 = vcombine.high %v291_v25, %v299_v26  ;;  %v13522_v40 = vcombine.low %v547_v27, %v555_v29  ;;  %v284_v25 = vld [vmem:[#allocation6 + $0x2e8] sm:$0xff] }
 0x14f   :  { %2795 = vmatpush1.bf16.msra.mxu0 %v13520_v35  ;;  %v315_v35 = vld [vmem:[#allocation6 + $0x3e0] sm:$0xff] }
 0x150   :  { %2796 = vmatprep.subr.bf16.mxu0 %v13537_v37  ;;  %v13523_v37 = vcombine.high %v547_v27, %v555_v29  ;;  %v13282_v48 = vcombine.low %v307_v34, %v315_v35 }
 0x151   :  { %2770 = vmatpush1.bf16.msra.mxu1 %v13392_v36  ;;  %v563_v36 = vld [vmem:[#allocation6 + $0xba0] sm:$0xff] }
 0x152   :  { %2771 = vmatprep.subr.bf16.mxu1 %v13409_v41  ;;  %v13283_v41 = vcombine.high %v307_v34, %v315_v35  ;;  %v13538_v49 = vcombine.low %v563_v36, %v571_v38  ;;  %v300_v34 = vld [vmem:[#allocation6 + $0x368] sm:$0xff] }
 0x153   :  { %2797 = vmatpush1.bf16.msra.mxu0 %v13536_v43  ;;  %v331_v43 = vld [vmem:[#allocation6 + $0x460] sm:$0xff] }
 0x154   :  { %2823 = vmatprep.subr.bf16.mxu0 %v13171_v45  ;;  %v13539_v45 = vcombine.high %v563_v36, %v571_v38  ;;  %v13298_v56 = vcombine.low %v323_v42, %v331_v43 }
 0x155   :  { %2772 = vmatpush1.bf16.msra.mxu1 %v13408_v44  ;;  %v196_v44 = vld [vmem:[#allocation6 + $0x28] sm:$0xff] }
 0x156   :  { %2864 = vmatprep.subr.bf16.mxu1 %v13427_v50  ;;  %2815 = vmatmul.mubr.bf16.vlgmr.msra.gmra.mrb[12].mxu0 %v15865_v23  ;;  %v13299_v50 = vcombine.high %v323_v42, %v331_v43  ;;  %v13172_v57 = vcombine.low %v196_v44, %v204_v46  ;;  %v316_v42 = vld [vmem:[#allocation6 + $0x3e8] sm:$0xff] }
 0x157   :  { %2824 = vmatpush1.bf16.msra.mxu0 %v13170_v52  ;;  %2855 = vmatprep.mubr.bf16.mxu0 %v15868_v47  ;;  %v347_v52 = vld [vmem:[#allocation6 + $0x4e0] sm:$0xff] }
 0x158   :  { %2774 = vmatmul.mubr.bf16.vlgmr.msra.gmra.mrb[12].mxu1 %v15872_v32  ;;  %2825 = vmatprep.subr.bf16.mxu0 %v13187_v54  ;;  %v13173_v54 = vcombine.high %v196_v44, %v204_v46  ;;  %v13314_v1 = vcombine.low %v339_v51, %v347_v52 }
 0x159   :  { %2865 = vmatpush1.bf16.msra.mxu1 %v13426_v53  ;;  %2896 = vmatprep.mubr.bf16.mxu1 %v15716_v0  ;;  %v212_v53 = vld [vmem:[#allocation6 + $0xa8] sm:$0xff] }
 0x15a   :  { %2866 = vmatprep.subr.bf16.mxu1 %v13443_v58  ;;  %v13315_v58 = vcombine.high %v339_v51, %v347_v52  ;;  %v13189_v59 = vcombine.high %v212_v53, %v220_v55  ;;  %v13188_v2 = vcombine.low %v212_v53, %v220_v55  ;;  %v452_v51 = vld [vmem:[#allocation6 + $0x828] sm:$0xff] }
 0x15b   :  { %2826 = vmatpush1.bf16.msra.mxu0 %v13186_v60  ;;  %v355_v60 = vld [vmem:[#allocation6 + $0x520] sm:$0xff]  ;;  %v460_v52 = vld [vmem:[#allocation6 + $0x868] sm:$0xff] }
 0x15c   :  { %2827 = vmatprep.subr.bf16.mxu0 %v13203_v62  ;;  %v228_v62 = vld [vmem:[#allocation6 + $0x128] sm:$0xff] }
 0x15d   :  { %2867 = vmatpush1.bf16.msra.mxu1 %v13442_v61  ;;  %v363_v61 = vld [vmem:[#allocation6 + $0x560] sm:$0xff]  ;;  %v13205_v4 = vcombine.high %v228_v62, %v236_v63  ;;  %v13204_v10 = vcombine.low %v228_v62, %v236_v63  ;;  %v332_v55 = vld [vmem:[#allocation6 + $0x468] sm:$0xff] }
 0x15e   :  { %2868 = vmatprep.subr.bf16.mxu1 %v13459_v3  ;;  %v13331_v3 = vcombine.high %v355_v60, %v363_v61  ;;  %v13330_v9 = vcombine.low %v355_v60, %v363_v61  ;;  %v468_v60 = vld [vmem:[#allocation6 + $0x8a8] sm:$0xff] }
 0x15f   :  { %2828 = vmatpush1.bf16.msra.mxu0 %v13202_v5  ;;  %v371_v5 = vld [vmem:[#allocation6 + $0x5a0] sm:$0xff]  ;;  %v476_v61 = vld [vmem:[#allocation6 + $0x8e8] sm:$0xff] }
 0x160   :  { %2829 = vmatprep.subr.bf16.mxu0 %v13219_v7  ;;  %v244_v7 = vld [vmem:[#allocation6 + $0x1a8] sm:$0xff] }
 0x161   :  { %2869 = vmatpush1.bf16.msra.mxu1 %v13458_v6  ;;  %v379_v6 = vld [vmem:[#allocation6 + $0x5e0] sm:$0xff]  ;;  %v13221_v12 = vcombine.high %v244_v7, %v252_v8  ;;  %v13220_v18 = vcombine.low %v244_v7, %v252_v8  ;;  %v340_v62 = vld [vmem:[#allocation6 + $0x4a8] sm:$0xff] }
 0x162   :  { %2870 = vmatprep.subr.bf16.mxu1 %v13475_v11  ;;  %v13347_v11 = vcombine.high %v371_v5, %v379_v6  ;;  %v13346_v17 = vcombine.low %v371_v5, %v379_v6  ;;  %v348_v63 = vld [vmem:[#allocation6 + $0x4e8] sm:$0xff] }
 0x163   :  { %2830 = vmatpush1.bf16.msra.mxu0 %v13218_v13  ;;  %v387_v13 = vld [vmem:[#allocation6 + $0x620] sm:$0xff]  ;;  %v484_v5 = vld [vmem:[#allocation6 + $0x928] sm:$0xff] }
 0x164   :  { %2831 = vmatprep.subr.bf16.mxu0 %v13235_v15  ;;  %v260_v15 = vld [vmem:[#allocation6 + $0x228] sm:$0xff] }
 0x165   :  { %2871 = vmatpush1.bf16.msra.mxu1 %v13474_v14  ;;  %v395_v14 = vld [vmem:[#allocation6 + $0x660] sm:$0xff]  ;;  %v13237_v20 = vcombine.high %v260_v15, %v268_v16  ;;  %v13236_v27 = vcombine.low %v260_v15, %v268_v16  ;;  %v492_v6 = vld [vmem:[#allocation6 + $0x968] sm:$0xff] }
 0x166   :  { %2872 = vmatprep.subr.bf16.mxu1 %v13491_v19  ;;  %v13363_v19 = vcombine.high %v387_v13, %v395_v14  ;;  %v13362_v26 = vcombine.low %v387_v13, %v395_v14  ;;  %v356_v7 = vld [vmem:[#allocation6 + $0x528] sm:$0xff] }
 0x167   :  { %2832 = vmatpush1.bf16.msra.mxu0 %v13234_v21  ;;  %v403_v21 = vld [vmem:[#allocation6 + $0x6a0] sm:$0xff]  ;;  %v364_v8 = vld [vmem:[#allocation6 + $0x568] sm:$0xff] }
 0x168   :  { %2833 = vmatprep.subr.bf16.mxu0 %v13251_v24  ;;  %v276_v24 = vld [vmem:[#allocation6 + $0x2a8] sm:$0xff] }
 0x169   :  { %2873 = vmatpush1.bf16.msra.mxu1 %v13490_v22  ;;  %v411_v22 = vld [vmem:[#allocation6 + $0x6e0] sm:$0xff]  ;;  %v13253_v29 = vcombine.high %v276_v24, %v284_v25  ;;  %v13252_v36 = vcombine.low %v276_v24, %v284_v25  ;;  %v500_v13 = vld [vmem:[#allocation6 + $0x9a8] sm:$0xff] }
 0x16a   :  { %2874 = vmatprep.subr.bf16.mxu1 %v13507_v28  ;;  %v13379_v28 = vcombine.high %v403_v21, %v411_v22  ;;  %v13378_v35 = vcombine.low %v403_v21, %v411_v22  ;;  %v508_v14 = vld [vmem:[#allocation6 + $0x9e8] sm:$0xff] }
 0x16b   :  { %2834 = vmatpush1.bf16.msra.mxu0 %v13250_v30  ;;  %v419_v30 = vld [vmem:[#allocation6 + $0x720] sm:$0xff]  ;;  %v372_v15 = vld [vmem:[#allocation6 + $0x5a8] sm:$0xff] }
 0x16c   :  { %2835 = vmatprep.subr.bf16.mxu0 %v13267_v33  ;;  %v292_v33 = vld [vmem:[#allocation6 + $0x328] sm:$0xff] }
 0x16d   :  { %2875 = vmatpush1.bf16.msra.mxu1 %v13506_v31  ;;  %v427_v31 = vld [vmem:[#allocation6 + $0x760] sm:$0xff]  ;;  %v13269_v38 = vcombine.high %v292_v33, %v300_v34  ;;  %v13268_v46 = vcombine.low %v292_v33, %v300_v34  ;;  %v380_v16 = vld [vmem:[#allocation6 + $0x5e8] sm:$0xff] }
 0x16e   :  { %2876 = vmatprep.subr.bf16.mxu1 %v13523_v37  ;;  %v13395_v37 = vcombine.high %v419_v30, %v427_v31  ;;  %v13394_v44 = vcombine.low %v419_v30, %v427_v31  ;;  %v516_v21 = vld [vmem:[#allocation6 + $0xa28] sm:$0xff] }
 0x16f   :  { %2836 = vmatpush1.bf16.msra.mxu0 %v13266_v39  ;;  %v435_v39 = vld [vmem:[#allocation6 + $0x7a0] sm:$0xff]  ;;  %v524_v22 = vld [vmem:[#allocation6 + $0xa68] sm:$0xff] }
 0x170   :  { %2837 = vmatprep.subr.bf16.mxu0 %v13283_v41  ;;  %v308_v41 = vld [vmem:[#allocation6 + $0x3a8] sm:$0xff] }
 0x171   :  { %2877 = vmatpush1.bf16.msra.mxu1 %v13522_v40  ;;  %v443_v40 = vld [vmem:[#allocation6 + $0x7e0] sm:$0xff]  ;;  %v388_v24 = vld [vmem:[#allocation6 + $0x628] sm:$0xff] }
 0x172   :  { %2878 = vmatprep.subr.bf16.mxu1 %v13539_v45  ;;  %v396_v25 = vld [vmem:[#allocation6 + $0x668] sm:$0xff] }
 0x173   :  { %2838 = vmatpush1.bf16.msra.mxu0 %v13282_v48  ;;  %v13411_v48 = vcombine.high %v435_v39, %v443_v40  ;;  %v532_v30 = vld [vmem:[#allocation6 + $0xaa8] sm:$0xff] }
 0x174   :  { %2839 = vmatprep.subr.bf16.mxu0 %v13299_v50  ;;  %v13285_v50 = vcombine.high %v308_v41, %v316_v42  ;;  %v540_v31 = vld [vmem:[#allocation6 + $0xae8] sm:$0xff] }
 0x175   :  { %2879 = vmatpush1.bf16.msra.mxu1 %v13538_v49  ;;  %v404_v33 = vld [vmem:[#allocation6 + $0x6a8] sm:$0xff] }
 0x176   :  { %2905 = vmatprep.subr.bf16.mxu1 %v13173_v54  ;;  %v324_v54 = vld [vmem:[#allocation6 + $0x428] sm:$0xff] }
 0x177   :  { %2840 = vmatpush1.bf16.msra.mxu0 %v13298_v56  ;;  %v13410_v56 = vcombine.low %v435_v39, %v443_v40  ;;  %v412_v34 = vld [vmem:[#allocation6 + $0x6e8] sm:$0xff] }
 0x178   :  { %2897 = vmatmul.mubr.bf16.vlgmr.msra.gmra.mrb[16].mxu1 %v15865_v23  ;;  %2841 = vmatprep.subr.bf16.mxu0 %v13315_v58  ;;  %v13429_v58 = vcombine.high %v452_v51, %v460_v52  ;;  %v548_v39 = vld [vmem:[#allocation6 + $0xb28] sm:$0xff] }
 0x179   :  { %2906 = vmatpush1.bf16.msra.mxu1 %v13172_v57  ;;  %2937 = vmatprep.mubr.bf16.mxu1 %v15868_v47  ;;  %v13284_v57 = vcombine.low %v308_v41, %v316_v42  ;;  %v556_v40 = vld [vmem:[#allocation6 + $0xb68] sm:$0xff] }
 0x17a   :  { %2907 = vmatprep.subr.bf16.mxu1 %v13189_v59  ;;  %v13301_v59 = vcombine.high %v324_v54, %v332_v55  ;;  %v420_v41 = vld [vmem:[#allocation6 + $0x728] sm:$0xff] }
 0x17b   :  { %2842 = vmatpush1.bf16.msra.mxu0 %v13314_v1  ;;  %v13428_v1 = vcombine.low %v452_v51, %v460_v52  ;;  %v428_v42 = vld [vmem:[#allocation6 + $0x768] sm:$0xff] }
 0x17c   :  { %2843 = vmatprep.subr.bf16.mxu0 %v13331_v3  ;;  %v13445_v3 = vcombine.high %v468_v60, %v476_v61  ;;  %v564_v51 = vld [vmem:[#allocation6 + $0xba8] sm:$0xff] }
 0x17d   :  { %2908 = vmatpush1.bf16.msra.mxu1 %v13188_v2  ;;  %v13300_v2 = vcombine.low %v324_v54, %v332_v55  ;;  %v572_v52 = vld [vmem:[#allocation6 + $0xbe8] sm:$0xff] }
 0x17e   :  { %2909 = vmatprep.subr.bf16.mxu1 %v13205_v4  ;;  %v13317_v4 = vcombine.high %v340_v62, %v348_v63  ;;  %v436_v55 = vld [vmem:[#allocation6 + $0x7a8] sm:$0xff] }
 0x17f   :  { %2844 = vmatpush1.bf16.msra.mxu0 %v13330_v9  ;;  %v13444_v9 = vcombine.low %v468_v60, %v476_v61  ;;  %v13396_v61 = vcombine.low %v420_v41, %v428_v42 }
 0x180   :  { %2845 = vmatprep.subr.bf16.mxu0 %v13347_v11  ;;  %v13461_v11 = vcombine.high %v484_v5, %v492_v6 }
 0x181   :  { %2910 = vmatpush1.bf16.msra.mxu1 %v13204_v10  ;;  %v13316_v10 = vcombine.low %v340_v62, %v348_v63  ;;  %v13541_v62 = vcombine.high %v564_v51, %v572_v52 }
 0x182   :  { %2911 = vmatprep.subr.bf16.mxu1 %v13221_v12  ;;  %v13333_v12 = vcombine.high %v356_v7, %v364_v8 }
 0x183   :  { %2846 = vmatpush1.bf16.msra.mxu0 %v13346_v17  ;;  %v13460_v17 = vcombine.low %v484_v5, %v492_v6 }
 0x184   :  { %2847 = vmatprep.subr.bf16.mxu0 %v13363_v19  ;;  %v13477_v19 = vcombine.high %v500_v13, %v508_v14 }
 0x185   :  { %2912 = vmatpush1.bf16.msra.mxu1 %v13220_v18  ;;  %v13332_v18 = vcombine.low %v356_v7, %v364_v8  ;;  %v213_v7 = vld [vmem:[#allocation6 + $0xb0] sm:$0xff] }
 0x186   :  { %2913 = vmatprep.subr.bf16.mxu1 %v13237_v20  ;;  %v13349_v20 = vcombine.high %v372_v15, %v380_v16  ;;  %v221_v8 = vld [vmem:[#allocation6 + $0xf0] sm:$0xff] }
 0x187   :  { %2848 = vmatpush1.bf16.msra.mxu0 %v13362_v26  ;;  %v13476_v26 = vcombine.low %v500_v13, %v508_v14  ;;  %v13191_v13 = vcombine.high %v213_v7, %v221_v8 }
 0x188   :  { %2849 = vmatprep.subr.bf16.mxu0 %v13379_v28  ;;  %v13493_v28 = vcombine.high %v516_v21, %v524_v22 }
 0x189   :  { %2914 = vmatpush1.bf16.msra.mxu1 %v13236_v27  ;;  %v13348_v27 = vcombine.low %v372_v15, %v380_v16  ;;  %v229_v15 = vld [vmem:[#allocation6 + $0x130] sm:$0xff] }
 0x18a   :  { %2915 = vmatprep.subr.bf16.mxu1 %v13253_v29  ;;  %v13365_v29 = vcombine.high %v388_v24, %v396_v25  ;;  %v237_v16 = vld [vmem:[#allocation6 + $0x170] sm:$0xff] }
 0x18b   :  { %v15890_v43 = vpop.f32.mrb[0].mxu1  ;;  %2850 = vmatpush1.bf16.msra.mxu0 %v13378_v35  ;;  %v13492_v35 = vcombine.low %v516_v21, %v524_v22  ;;  %v13207_v21 = vcombine.high %v229_v15, %v237_v16 }
 0x18c   :  { %v15892_v45 = vpop.f32.mrb[1].mxu1  ;;  %2851 = vmatprep.subr.bf16.mxu0 %v13395_v37  ;;  %v13509_v37 = vcombine.high %v532_v30, %v540_v31 }
 0x18d   :  { %2916 = vmatpush1.bf16.msra.mxu1 %v13252_v36  ;;  %v2574_v49 = vpop.f32.mrb[2].mxu1  ;;  %v13364_v36 = vcombine.low %v388_v24, %v396_v25  ;;  %v245_v24 = vld [vmem:[#allocation6 + $0x1b0] sm:$0xff] }
 0x18e   :  { %2917 = vmatprep.subr.bf16.mxu1 %v13269_v38  ;;  %v2575_v53 = vpop.f32.mrb[3].mxu1  ;;  %v13381_v38 = vcombine.high %v404_v33, %v412_v34  ;;  %v253_v25 = vld [vmem:[#allocation6 + $0x1f0] sm:$0xff] }
 0x18f   :  { %2852 = vmatpush1.bf16.msra.mxu0 %v13394_v44  ;;  %v13508_v44 = vcombine.low %v532_v30, %v540_v31  ;;  %v13223_v30 = vcombine.high %v245_v24, %v253_v25 }
 0x190   :  { %2853 = vmatprep.subr.bf16.mxu0 %v13411_v48  ;;  %v13525_v48 = vcombine.high %v548_v39, %v556_v40 }
 0x191   :  { %2918 = vmatpush1.bf16.msra.mxu1 %v13268_v46  ;;  %v13380_v46 = vcombine.low %v404_v33, %v412_v34  ;;  %v261_v33 = vld [vmem:[#allocation6 + $0x230] sm:$0xff] }
 0x192   :  { %2919 = vmatprep.subr.bf16.mxu1 %v13285_v50  ;;  %v13397_v50 = vcombine.high %v420_v41, %v428_v42  ;;  %v269_v34 = vld [vmem:[#allocation6 + $0x270] sm:$0xff] }
 0x193   :  { %2854 = vmatpush1.bf16.msra.mxu0 %v13410_v56  ;;  %v444_v56 = vld [vmem:[#allocation6 + $0x7e8] sm:$0xff]  ;;  %v277_v41 = vld [vmem:[#allocation6 + $0x2b0] sm:$0xff] }
 0x194   :  { %2946 = vmatprep.subr.bf16.mxu0 %v13429_v58  ;;  %v13413_v63 = vcombine.high %v436_v55, %v444_v56  ;;  %v13412_v5 = vcombine.low %v436_v55, %v444_v56  ;;  %v285_v42 = vld [vmem:[#allocation6 + $0x2f0] sm:$0xff] }
 0x195   :  { %2920 = vmatpush1.bf16.msra.mxu1 %v13284_v57  ;;  %v549_v55 = vld [vmem:[#allocation6 + $0xb30] sm:$0xff] }
 0x196   :  { %2921 = vmatprep.subr.bf16.mxu1 %v13301_v59  ;;  %2856 = vmatmul.mubr.bf16.vlgmr.msra.gmra.mrb[16].mxu0 %v15872_v32  ;;  %v13524_v59 = vcombine.low %v548_v39, %v556_v40  ;;  %v13239_v39 = vcombine.high %v261_v33, %v269_v34  ;;  %v557_v56 = vld [vmem:[#allocation6 + $0xb70] sm:$0xff] }
 0x197   :  { %2947 = vmatpush1.bf16.msra.mxu0 %v13428_v1  ;;  %2978 = vmatprep.mubr.bf16.mxu0 %v15716_v0  ;;  %v197_v1 = vld [vmem:[#allocation6 + $0x30] sm:$0xff] }
 0x198   :  { %2948 = vmatprep.subr.bf16.mxu0 %v13445_v3  ;;  %v461_v3 = vld [vmem:[#allocation6 + $0x870] sm:$0xff] }
 0x199   :  { %2922 = vmatpush1.bf16.msra.mxu1 %v13300_v2  ;;  %v205_v2 = vld [vmem:[#allocation6 + $0x70] sm:$0xff] }
 0x19a   :  { %2923 = vmatprep.subr.bf16.mxu1 %v13317_v4  ;;  %v13540_v4 = vcombine.low %v564_v51, %v572_v52  ;;  %v293_v52 = vld [vmem:[#allocation6 + $0x330] sm:$0xff] }
 0x19b   :  { %2949 = vmatpush1.bf16.msra.mxu0 %v13444_v9  ;;  %v469_v9 = vld [vmem:[#allocation6 + $0x8b0] sm:$0xff] }
 0x19c   :  { %2950 = vmatprep.subr.bf16.mxu0 %v13461_v11  ;;  %v13174_v11 = vcombine.low %v197_v1, %v205_v2 }
 0x19d   :  { %2924 = vmatpush1.bf16.msra.mxu1 %v13316_v10  ;;  %v477_v10 = vld [vmem:[#allocation6 + $0x8f0] sm:$0xff] }
 0x19e   :  { %2925 = vmatprep.subr.bf16.mxu1 %v13333_v12  ;;  %v13447_v14 = vcombine.high %v469_v9, %v477_v10 }
 0x19f   :  { %2951 = vmatpush1.bf16.msra.mxu0 %v13460_v17  ;;  %v485_v17 = vld [vmem:[#allocation6 + $0x930] sm:$0xff] }
 0x1a0   :  { %2952 = vmatprep.subr.bf16.mxu0 %v13477_v19  ;;  %v13190_v19 = vcombine.low %v213_v7, %v221_v8 }
 0x1a1   :  { %2926 = vmatpush1.bf16.msra.mxu1 %v13332_v18  ;;  %v493_v18 = vld [vmem:[#allocation6 + $0x970] sm:$0xff] }
 0x1a2   :  { %2927 = vmatprep.subr.bf16.mxu1 %v13349_v20  ;;  %v13446_v20 = vcombine.low %v469_v9, %v477_v10  ;;  %v13463_v22 = vcombine.high %v485_v17, %v493_v18  ;;  %v13526_v10 = vcombine.low %v549_v55, %v557_v56 }
 0x1a3   :  { %2953 = vmatpush1.bf16.msra.mxu0 %v13476_v26  ;;  %v501_v26 = vld [vmem:[#allocation6 + $0x9b0] sm:$0xff] }
 0x1a4   :  { %2954 = vmatprep.subr.bf16.mxu0 %v13493_v28  ;;  %v13206_v28 = vcombine.low %v229_v15, %v237_v16  ;;  %v333_v15 = vld [vmem:[#allocation6 + $0x470] sm:$0xff] }
 0x1a5   :  { %2928 = vmatpush1.bf16.msra.mxu1 %v13348_v27  ;;  %v509_v27 = vld [vmem:[#allocation6 + $0x9f0] sm:$0xff] }
 0x1a6   :  { %2929 = vmatprep.subr.bf16.mxu1 %v13365_v29  ;;  %v13462_v29 = vcombine.low %v485_v17, %v493_v18  ;;  %v13479_v31 = vcombine.high %v501_v26, %v509_v27  ;;  %v198_v17 = vld [vmem:[#allocation6 + $0x38] sm:$0xff] }
 0x1a7   :  { %2955 = vmatpush1.bf16.msra.mxu0 %v13492_v35  ;;  %v517_v35 = vld [vmem:[#allocation6 + $0xa30] sm:$0xff]  ;;  %v206_v18 = vld [vmem:[#allocation6 + $0x78] sm:$0xff] }
 0x1a8   :  { %2956 = vmatprep.subr.bf16.mxu0 %v13509_v37  ;;  %v13222_v37 = vcombine.low %v245_v24, %v253_v25  ;;  %v341_v24 = vld [vmem:[#allocation6 + $0x4b0] sm:$0xff] }
 0x1a9   :  { %2930 = vmatpush1.bf16.msra.mxu1 %v13364_v36  ;;  %v2529_v49 = vpop.f32.mrb[0].mxu0  ;;  %v525_v36 = vld [vmem:[#allocation6 + $0xa70] sm:$0xff] }
 0x1aa   :  { %2931 = vmatprep.subr.bf16.mxu1 %v13381_v38  ;;  %v15897_v53 = vadd.f32 %v15890_v43, %v2529_v49  ;;  %v2531_v54 = vpop.f32.mrb[1].mxu0  ;;  %v453_v43 = vld [vmem:[#allocation6 + $0x830] sm:$0xff]  ;;  %v13478_v38 = vcombine.low %v501_v26, %v509_v27  ;;  %v13495_v40 = vcombine.high %v517_v35, %v525_v36  ;;  %v13494_v49 = vcombine.low %v517_v35, %v525_v36  ;;  %v214_v26 = vld [vmem:[#allocation6 + $0xb8] sm:$0xff] }
 0x1ab   :  { %v15900_v57 = vadd.f32 %v15892_v45, %v2531_v54  ;;  %v2533_v58 = vpop.f32.mrb[2].mxu0  ;;  %2957 = vmatpush1.bf16.msra.mxu0 %v13508_v44  ;;  %v13175_v45 = vcombine.high %v197_v1, %v205_v2  ;;  %v13431_v6 = vcombine.high %v453_v43, %v461_v3  ;;  %v13430_v12 = vcombine.low %v453_v43, %v461_v3  ;;  %v533_v44 = vld [vmem:[#allocation6 + $0xab0] sm:$0xff]  ;;  %v222_v27 = vld [vmem:[#allocation6 + $0xf8] sm:$0xff] }
 0x1ac   :  { %v2534_v60 = vpop.f32.mrb[3].mxu0  ;;  %2958 = vmatprep.subr.bf16.mxu0 %v13525_v48  ;;  %v13238_v48 = vcombine.low %v261_v33, %v269_v34  ;;  %v301_v54 = vld [vmem:[#allocation6 + $0x370] sm:$0xff]  ;;  %v13254_v58 = vcombine.low %v277_v41, %v285_v42  ;;  %v230_v35 = vld [vmem:[#allocation6 + $0x138] sm:$0xff] }
 0x1ad   :  { %2932 = vmatpush1.bf16.msra.mxu1 %v13380_v46  ;;  %v541_v46 = vld [vmem:[#allocation6 + $0xaf0] sm:$0xff]  ;;  %v13271_v60 = vcombine.high %v293_v52, %v301_v54  ;;  %v13270_v7 = vcombine.low %v293_v52, %v301_v54  ;;  %v238_v36 = vld [vmem:[#allocation6 + $0x178] sm:$0xff] }
 0x1ae   :  { %2933 = vmatprep.subr.bf16.mxu1 %v13397_v50  ;;  %v13255_v50 = vcombine.high %v277_v41, %v285_v42  ;;  %v13511_v51 = vcombine.high %v533_v44, %v541_v46  ;;  %v317_v1 = vld [vmem:[#allocation6 + $0x3f0] sm:$0xff] }
 0x1af   :  { %2959 = vmatpush1.bf16.msra.mxu0 %v13524_v59  ;;  %v13510_v59 = vcombine.low %v533_v44, %v541_v46  ;;  %v565_v3 = vld [vmem:[#allocation6 + $0xbb0] sm:$0xff]  ;;  %v246_v44 = vld [vmem:[#allocation6 + $0x1b8] sm:$0xff] }
 0x1b0   :  { %2960 = vmatprep.subr.bf16.mxu0 %v13541_v62  ;;  %v13527_v62 = vcombine.high %v549_v55, %v557_v56  ;;  %v349_v25 = vld [vmem:[#allocation6 + $0x4f0] sm:$0xff]  ;;  %v254_v46 = vld [vmem:[#allocation6 + $0x1f8] sm:$0xff] }
 0x1b1   :  { %2934 = vmatpush1.bf16.msra.mxu1 %v13396_v61  ;;  %v357_v33 = vld [vmem:[#allocation6 + $0x530] sm:$0xff]  ;;  %v262_v55 = vld [vmem:[#allocation6 + $0x238] sm:$0xff] }
 0x1b2   :  { %2935 = vmatprep.subr.bf16.mxu1 %v13413_v63  ;;  %v309_v63 = vld [vmem:[#allocation6 + $0x3b0] sm:$0xff]  ;;  %v270_v56 = vld [vmem:[#allocation6 + $0x278] sm:$0xff] }
 0x1b3   :  { %2961 = vmatpush1.bf16.msra.mxu0 %v13540_v4  ;;  %v573_v4 = vld [vmem:[#allocation6 + $0xbf0] sm:$0xff] }
 0x1b4   :  { %2987 = vmatprep.subr.bf16.mxu0 %v13175_v45  ;;  %v365_v34 = vld [vmem:[#allocation6 + $0x570] sm:$0xff] }
 0x1b5   :  { %2936 = vmatpush1.bf16.msra.mxu1 %v13412_v5  ;;  %v373_v41 = vld [vmem:[#allocation6 + $0x5b0] sm:$0xff] }
 0x1b6   :  { %3028 = vmatprep.subr.bf16.mxu1 %v13431_v6  ;;  %2979 = vmatmul.mubr.bf16.vlgmr.msra.gmra.mrb[20].mxu0 %v15865_v23  ;;  %v381_v42 = vld [vmem:[#allocation6 + $0x5f0] sm:$0xff] }
 0x1b7   :  { %2988 = vmatpush1.bf16.msra.mxu0 %v13174_v11  ;;  %3019 = vmatprep.mubr.bf16.mxu0 %v15868_v47  ;;  %v13287_v11 = vcombine.high %v309_v63, %v317_v1  ;;  %v389_v52 = vld [vmem:[#allocation6 + $0x630] sm:$0xff] }
 0x1b8   :  { %2938 = vmatmul.mubr.bf16.vlgmr.msra.gmra.mrb[20].mxu1 %v15872_v32  ;;  %2989 = vmatprep.subr.bf16.mxu0 %v13191_v13  ;;  %v13543_v13 = vcombine.high %v565_v3, %v573_v4  ;;  %v397_v54 = vld [vmem:[#allocation6 + $0x670] sm:$0xff] }
 0x1b9   :  { %3029 = vmatpush1.bf16.msra.mxu1 %v13430_v12  ;;  %3060 = vmatprep.mubr.bf16.mxu1 %v15716_v0 }
 0x1ba   :  { %3030 = vmatprep.subr.bf16.mxu1 %v13447_v14  ;;  %v325_v14 = vld [vmem:[#allocation6 + $0x430] sm:$0xff] }
 0x1bb   :  { %2990 = vmatpush1.bf16.msra.mxu0 %v13190_v19  ;;  %v13286_v19 = vcombine.low %v309_v63, %v317_v1  ;;  %v278_v63 = vld [vmem:[#allocation6 + $0x2b8] sm:$0xff] }
 0x1bc   :  { %2991 = vmatprep.subr.bf16.mxu0 %v13207_v21  ;;  %v13303_v21 = vcombine.high %v325_v14, %v333_v15  ;;  %v286_v1 = vld [vmem:[#allocation6 + $0x2f8] sm:$0xff] }
 0x1bd   :  { %3031 = vmatpush1.bf16.msra.mxu1 %v13446_v20  ;;  %v13542_v20 = vcombine.low %v565_v3, %v573_v4  ;;  %v13257_v4 = vcombine.high %v278_v63, %v286_v1 }
 0x1be   :  { %3032 = vmatprep.subr.bf16.mxu1 %v13463_v22  ;;  %v13177_v22 = vcombine.high %v198_v17, %v206_v18 }
 0x1bf   :  { %2992 = vmatpush1.bf16.msra.mxu0 %v13206_v28  ;;  %v13302_v28 = vcombine.low %v325_v14, %v333_v15  ;;  %v437_v14 = vld [vmem:[#allocation6 + $0x7b0] sm:$0xff] }
 0x1c0   :  { %2993 = vmatprep.subr.bf16.mxu0 %v13223_v30  ;;  %v13319_v30 = vcombine.high %v341_v24, %v349_v25  ;;  %v445_v15 = vld [vmem:[#allocation6 + $0x7f0] sm:$0xff] }
 0x1c1   :  { %3033 = vmatpush1.bf16.msra.mxu1 %v13462_v29  ;;  %v13176_v29 = vcombine.low %v198_v17, %v206_v18  ;;  %v318_v17 = vld [vmem:[#allocation6 + $0x3f8] sm:$0xff] }
 0x1c2   :  { %3034 = vmatprep.subr.bf16.mxu1 %v13479_v31  ;;  %v13193_v31 = vcombine.high %v214_v26, %v222_v27 }
 0x1c3   :  { %2994 = vmatpush1.bf16.msra.mxu0 %v13222_v37  ;;  %v13318_v37 = vcombine.low %v341_v24, %v349_v25 }
 0x1c4   :  { %2995 = vmatprep.subr.bf16.mxu0 %v13239_v39  ;;  %v13335_v39 = vcombine.high %v357_v33, %v365_v34 }
 0x1c5   :  { %3035 = vmatpush1.bf16.msra.mxu1 %v13478_v38  ;;  %v13192_v38 = vcombine.low %v214_v26, %v222_v27  ;;  %v454_v26 = vld [vmem:[#allocation6 + $0x838] sm:$0xff] }
 0x1c6   :  { %3036 = vmatprep.subr.bf16.mxu1 %v13495_v40  ;;  %v13209_v40 = vcombine.high %v230_v35, %v238_v36  ;;  %v462_v27 = vld [vmem:[#allocation6 + $0x878] sm:$0xff] }
 0x1c7   :  { %2996 = vmatpush1.bf16.msra.mxu0 %v13238_v48  ;;  %v13334_v48 = vcombine.low %v357_v33, %v365_v34  ;;  %v13433_v34 = vcombine.high %v454_v26, %v462_v27 }
 0x1c8   :  { %2997 = vmatprep.subr.bf16.mxu0 %v13255_v50  ;;  %v13351_v50 = vcombine.high %v373_v41, %v381_v42 }
 0x1c9   :  { %3037 = vmatpush1.bf16.msra.mxu1 %v13494_v49  ;;  %v2652_v61 = vpop.f32.mrb[4].mxu0  ;;  %v13208_v49 = vcombine.low %v230_v35, %v238_v36  ;;  %v470_v36 = vld [vmem:[#allocation6 + $0x8b8] sm:$0xff] }
 0x1ca   :  { %3038 = vmatprep.subr.bf16.mxu1 %v13511_v51  ;;  %v2654_v43 = vpop.f32.mrb[5].mxu0  ;;  %v13225_v51 = vcombine.high %v246_v44, %v254_v46 }
 0x1cb   :  { %v2611_v2 = vpop.f32.mrb[4].mxu1  ;;  %v2656_v6 = vpop.f32.mrb[6].mxu0  ;;  %2998 = vmatpush1.bf16.msra.mxu0 %v13254_v58  ;;  %v13350_v58 = vcombine.low %v373_v41, %v381_v42 }
 0x1cc   :  { %v15906_v5 = vadd.f32 %v2652_v61, %v2611_v2  ;;  %v2613_v45 = vpop.f32.mrb[5].mxu1  ;;  %v2657_v9 = vpop.f32.mrb[7].mxu0  ;;  %2999 = vmatprep.subr.bf16.mxu0 %v13271_v60  ;;  %v13241_v60 = vcombine.high %v262_v55, %v270_v56  ;;  %v405_v61 = vld [vmem:[#allocation6 + $0x6b0] sm:$0xff]  ;;  %v13366_v2 = vcombine.low %v389_v52, %v397_v54 }
 0x1cd   :  { %v15908_v8 = vadd.f32 %v2654_v43, %v2613_v45  ;;  %3039 = vmatpush1.bf16.msra.mxu1 %v13510_v59  ;;  %v2615_v12 = vpop.f32.mrb[6].mxu1  ;;  %v13224_v59 = vcombine.low %v246_v44, %v254_v46  ;;  %v13240_v43 = vcombine.low %v262_v55, %v270_v56  ;;  %v421_v45 = vld [vmem:[#allocation6 + $0x730] sm:$0xff]  ;;  %v302_v9 = vld [vmem:[#allocation6 + $0x378] sm:$0xff] }
 0x1ce   :  { %3040 = vmatprep.subr.bf16.mxu1 %v13527_v62  ;;  %v2616_v16 = vpop.f32.mrb[7].mxu1  ;;  %v413_v62 = vld [vmem:[#allocation6 + $0x6f0] sm:$0xff]  ;;  %v486_v46 = vld [vmem:[#allocation6 + $0x938] sm:$0xff] }
 0x1cf   :  { %3000 = vmatpush1.bf16.msra.mxu0 %v13270_v7  ;;  %v13383_v3 = vcombine.high %v405_v61, %v413_v62  ;;  %v429_v6 = vld [vmem:[#allocation6 + $0x770] sm:$0xff]  ;;  %v294_v7 = vld [vmem:[#allocation6 + $0x338] sm:$0xff] }
 0x1d0   :  { %3001 = vmatprep.subr.bf16.mxu0 %v13287_v11  ;;  %v13256_v11 = vcombine.low %v278_v63, %v286_v1  ;;  %v13399_v12 = vcombine.high %v421_v45, %v429_v6  ;;  %v310_v16 = vld [vmem:[#allocation6 + $0x3b8] sm:$0xff] }
 0x1d1   :  { %3041 = vmatpush1.bf16.msra.mxu1 %v13526_v10  ;;  %v13382_v10 = vcombine.low %v405_v61, %v413_v62  ;;  %v13289_v25 = vcombine.high %v310_v16, %v318_v17  ;;  %v13288_v33 = vcombine.low %v310_v16, %v318_v17  ;;  %v502_v56 = vld [vmem:[#allocation6 + $0x9b8] sm:$0xff]  ;;  %v15923_v16 = vld [vmem:[#allocation8] sm:$0xff] }
 0x1d2   :  { %3042 = vmatprep.subr.bf16.mxu1 %v13543_v13  ;;  %v13273_v13 = vcombine.high %v294_v7, %v302_v9 }
 0x1d3   :  { %3002 = vmatpush1.bf16.msra.mxu0 %v13286_v19  ;;  %v13398_v19 = vcombine.low %v421_v45, %v429_v6 }
 0x1d4   :  { %3003 = vmatprep.subr.bf16.mxu0 %v13303_v21  ;;  %v13272_v21 = vcombine.low %v294_v7, %v302_v9 }
 0x1d5   :  { %3043 = vmatpush1.bf16.msra.mxu1 %v13542_v20 }
 0x1d6   :  { %3069 = vmatprep.subr.bf16.mxu1 %v13177_v22  ;;  %v13415_v22 = vcombine.high %v437_v14, %v445_v15 }
 0x1d7   :  { %3004 = vmatpush1.bf16.msra.mxu0 %v13302_v28 }
 0x1d8   :  { %3061 = vmatmul.mubr.bf16.vlgmr.msra.gmra.mrb[24].mxu1 %v15865_v23  ;;  %3005 = vmatprep.subr.bf16.mxu0 %v13319_v30  ;;  %v334_v30 = vld [vmem:[#allocation6 + $0x478] sm:$0xff] }
 0x1d9   :  { %3070 = vmatpush1.bf16.msra.mxu1 %v13176_v29  ;;  %3101 = vmatprep.mubr.bf16.mxu1 %v15868_v47  ;;  %v13367_v47 = vcombine.high %v389_v52, %v397_v54  ;;  %v326_v29 = vld [vmem:[#allocation6 + $0x438] sm:$0xff] }
 0x1da   :  { %3071 = vmatprep.subr.bf16.mxu1 %v13193_v31  ;;  %v13414_v31 = vcombine.low %v437_v14, %v445_v15  ;;  %v13305_v35 = vcombine.high %v326_v29, %v334_v30  ;;  %v13304_v41 = vcombine.low %v326_v29, %v334_v30 }
 0x1db   :  { %3006 = vmatpush1.bf16.msra.mxu0 %v13318_v37  ;;  %v478_v37 = vld [vmem:[#allocation6 + $0x8f8] sm:$0xff] }
 0x1dc   :  { %3007 = vmatprep.subr.bf16.mxu0 %v13335_v39  ;;  %v350_v39 = vld [vmem:[#allocation6 + $0x4f8] sm:$0xff]  ;;  %v13449_v42 = vcombine.high %v470_v36, %v478_v37 }
 0x1dd   :  { %3072 = vmatpush1.bf16.msra.mxu1 %v13192_v38  ;;  %v342_v38 = vld [vmem:[#allocation6 + $0x4b8] sm:$0xff] }
 0x1de   :  { %3073 = vmatprep.subr.bf16.mxu1 %v13209_v40  ;;  %v13432_v40 = vcombine.low %v454_v26, %v462_v27  ;;  %v13321_v44 = vcombine.high %v342_v38, %v350_v39  ;;  %v13320_v52 = vcombine.low %v342_v38, %v350_v39  ;;  %v430_v26 = vld [vmem:[#allocation6 + $0x778] sm:$0xff] }
 0x1df   :  { %3008 = vmatpush1.bf16.msra.mxu0 %v13334_v48  ;;  %v494_v48 = vld [vmem:[#allocation6 + $0x978] sm:$0xff] }
 0x1e0   :  { %3009 = vmatprep.subr.bf16.mxu0 %v13351_v50  ;;  %v366_v50 = vld [vmem:[#allocation6 + $0x578] sm:$0xff]  ;;  %v13465_v54 = vcombine.high %v486_v46, %v494_v48  ;;  %v13464_v61 = vcombine.low %v486_v46, %v494_v48 }
 0x1e1   :  { %3074 = vmatpush1.bf16.msra.mxu1 %v13208_v49  ;;  %v358_v49 = vld [vmem:[#allocation6 + $0x538] sm:$0xff] }
 0x1e2   :  { %3075 = vmatprep.subr.bf16.mxu1 %v13225_v51  ;;  %v13448_v51 = vcombine.low %v470_v36, %v478_v37  ;;  %v13337_v55 = vcombine.high %v358_v49, %v366_v50  ;;  %v13336_v62 = vcombine.low %v358_v49, %v366_v50  ;;  %v438_v38 = vld [vmem:[#allocation6 + $0x7b8] sm:$0xff] }
 0x1e3   :  { %3010 = vmatpush1.bf16.msra.mxu0 %v13350_v58  ;;  %v510_v58 = vld [vmem:[#allocation6 + $0x9f8] sm:$0xff] }
 0x1e4   :  { %3011 = vmatprep.subr.bf16.mxu0 %v13367_v47  ;;  %v382_v47 = vld [vmem:[#allocation6 + $0x5f8] sm:$0xff]  ;;  %v13481_v63 = vcombine.high %v502_v56, %v510_v58  ;;  %v13480_v45 = vcombine.low %v502_v56, %v510_v58 }
 0x1e5   :  { %3076 = vmatpush1.bf16.msra.mxu1 %v13224_v59  ;;  %v374_v59 = vld [vmem:[#allocation6 + $0x5b8] sm:$0xff] }
 0x1e6   :  { %3077 = vmatprep.subr.bf16.mxu1 %v13241_v60  ;;  %v3206_v60 = vlaneseq  ;;  %v13353_v1 = vcombine.high %v374_v59, %v382_v47  ;;  %v13352_v6 = vcombine.low %v374_v59, %v382_v47  ;;  %v446_v39 = vld [vmem:[#allocation6 + $0x7f8] sm:$0xff]  ;;  %v3374_v59 = vld [vmem:[#allocation9 + $0x40] sm:$0xff] }
 0x1e7   :  { %3012 = vmatpush1.bf16.msra.mxu0 %v13366_v2  ;;  %v526_v2 = vld [vmem:[#allocation6 + $0xa78] sm:$0xff]  ;;  %v13417_v50 = vcombine.high %v438_v38, %v446_v39  ;;  %v3378_v47 = vld [vmem:[#allocation9 + $0x60] sm:$0xff] }
 0x1e8   :  { %3013 = vmatprep.subr.bf16.mxu0 %v13383_v3  ;;  %v398_v3 = vld [vmem:[#allocation6 + $0x678] sm:$0xff] }
 0x1e9   :  { %3078 = vmatpush1.bf16.msra.mxu1 %v13240_v43  ;;  %v390_v43 = vld [vmem:[#allocation6 + $0x638] sm:$0xff] }
 0x1ea   :  { %3079 = vmatprep.subr.bf16.mxu1 %v13257_v4  ;;  %v15918_v4 = vshrl.u32 %v3206_v60, 7  ;;  %v13369_v9 = vcombine.high %v390_v43, %v398_v3  ;;  %v13368_v17 = vcombine.low %v390_v43, %v398_v3  ;;  %v3386_v43 = vld [vmem:[#allocation9 + $0xa0] sm:$0xff] }
 0x1eb   :  { %v15912_v18 = vpop.f32.mrb[8].mxu1  ;;  %3014 = vmatpush1.bf16.msra.mxu0 %v13382_v10  ;;  %v534_v10 = vld [vmem:[#allocation6 + $0xab8] sm:$0xff] }
 0x1ec   :  { %v15914_v20 = vpop.f32.mrb[9].mxu1  ;;  %3015 = vmatprep.subr.bf16.mxu0 %v13399_v12  ;;  %v406_v12 = vld [vmem:[#allocation6 + $0x6b8] sm:$0xff]  ;;  %v15921_v14 = vsub.s32 1, %v15918_v4 }
 0x1ed   :  { %3080 = vmatpush1.bf16.msra.mxu1 %v13256_v11  ;;  %v2738_v24 = vpop.f32.mrb[10].mxu1  ;;  %v542_v11 = vld [vmem:[#allocation6 + $0xaf8] sm:$0xff] }
 0x1ee   :  { %3081 = vmatprep.subr.bf16.mxu1 %v13273_v13  ;;  %v2739_v28 = vpop.f32.mrb[11].mxu1  ;;  %v414_v13 = vld [vmem:[#allocation6 + $0x6f8] sm:$0xff]  ;;  %v3213_v27 = vrot.slane %v15923_v16, %v15921_v14 }
 0x1ef   :  { %3016 = vmatpush1.bf16.msra.mxu0 %v13398_v19  ;;  %v13513_v19 = vcombine.high %v534_v10, %v542_v11  ;;  %v558_v24 = vld [vmem:[#allocation6 + $0xb78] sm:$0xff]  ;;  %v13512_v28 = vcombine.low %v534_v10, %v542_v11  ;;  %v13384_v29 = vcombine.low %v406_v12, %v414_v13 }
 0x1f0   :  { %3017 = vmatprep.subr.bf16.mxu0 %v13415_v22  ;;  %v550_v22 = vld [vmem:[#allocation6 + $0xb38] sm:$0xff] }
 0x1f1   :  { %3082 = vmatpush1.bf16.msra.mxu1 %v13272_v21  ;;  %v13385_v21 = vcombine.high %v406_v12, %v414_v13  ;;  %v13529_v30 = vcombine.high %v550_v22, %v558_v24  ;;  %v3390_v13 = vld [vmem:[#allocation9 + $0xc0] sm:$0xff] }
 0x1f2   :  { %3083 = vmatprep.subr.bf16.mxu1 %v13289_v25  ;;  %v422_v25 = vld [vmem:[#allocation6 + $0x738] sm:$0xff] }
 0x1f3   :  { %3018 = vmatpush1.bf16.msra.mxu0 %v13414_v31  ;;  %v13400_v48 = vcombine.low %v422_v25, %v430_v26 }
 0x1f4   :  { %3110 = vmatprep.subr.bf16.mxu0 %v13433_v34  ;;  %v566_v34 = vld [vmem:[#allocation6 + $0xbb8] sm:$0xff] }
 0x1f5   :  { %3084 = vmatpush1.bf16.msra.mxu1 %v13288_v33  ;;  %v13401_v33 = vcombine.high %v422_v25, %v430_v26  ;;  %v3402_v25 = vld [vmem:[#allocation9 + $0x120] sm:$0xff]  ;;  %v3399_v26 = vld [vmem:[#allocation9 + $0x108] sm:$0xff] }
 0x1f6   :  { %3085 = vmatprep.subr.bf16.mxu1 %v13305_v35  ;;  %3020 = vmatmul.mubr.bf16.vlgmr.msra.gmra.mrb[24].mxu0 %v15872_v32  ;;  %v574_v35 = vld [vmem:[#allocation6 + $0xbf8] sm:$0xff] }
 0x1f7   :  { %3111 = vmatpush1.bf16.msra.mxu0 %v13432_v40  ;;  %3142 = vmatprep.mubr.bf16.mxu0 %v15716_v0  ;;  %v518_v0 = vld [vmem:[#allocation6 + $0xa38] sm:$0xff]  ;;  %v3287_v40 = vadd.f32 %v3213_v27, %v15900_v57  ;;  %v13545_v49 = vcombine.high %v566_v34, %v574_v35  ;;  %v13544_v57 = vcombine.low %v566_v34, %v574_v35  ;;  %v3410_v34 = vld [vmem:[#allocation9 + $0x160] sm:$0xff] }
 0x1f8   :  { %3112 = vmatprep.subr.bf16.mxu0 %v13449_v42  ;;  %v13497_v7 = vcombine.high %v518_v0, %v526_v2  ;;  %v13496_v15 = vcombine.low %v518_v0, %v526_v2  ;;  %v13555_v0 = vcombine.high %v3374_v59, %v3378_v47  ;;  %v3382_v2 = vld [vmem:[#allocation9 + $0x80] sm:$0xff]  ;;  %v3403_v27 = vld [vmem:[#allocation9 + $0x128] sm:$0xff] }
 0x1f9   :  { %3086 = vmatpush1.bf16.msra.mxu1 %v13304_v41  ;;  %vm3303_vm0 = vcmp.gt.f32.partialorder %v3287_v40, 0.0  ;;  %v13563_v11 = vcombine.high %v3382_v2, %v3386_v43  ;;  %v3407_v35 = vld [vmem:[#allocation9 + $0x148] sm:$0xff] }
 0x1fa   :  { %3087 = vmatprep.subr.bf16.mxu1 %v13321_v44  ;;  %v13528_v44 = vcombine.low %v550_v22, %v558_v24  ;;  %v3398_v24 = vld [vmem:[#allocation9 + $0x100] sm:$0xff] }
 0x1fb   :  { %3113 = vmatpush1.bf16.msra.mxu0 %v13448_v51  ;;  %v3370_v51 = vld [vmem:[#allocation9 + $0x20] sm:$0xff] }
 0x1fc   :  { %3114 = vmatprep.subr.bf16.mxu0 %v13465_v54  ;;  %v3371_v54 = vld [vmem:[#allocation9 + $0x28] sm:$0xff] }
 0x1fd   :  { %3088 = vmatpush1.bf16.msra.mxu1 %v13320_v52  ;;  %v3367_v52 = vld [vmem:[#allocation9 + $0x8] sm:$0xff] }
 0x1fe   :  { %3089 = vmatprep.subr.bf16.mxu1 %v13337_v55  ;;  %v3319_v55 = vmul.f32 0.01, %v3287_v40  ;;  %v13549_v58 = vcombine.high %v3367_v52, %v3371_v54 }
 0x1ff   :  { %3115 = vmatpush1.bf16.msra.mxu0 %v13464_v61 }
 0x200   :  { %3116 = vmatprep.subr.bf16.mxu0 %v13481_v63  ;;  %v3335_v60 = vsel %vm3303_vm0, %v3287_v40, %v3319_v55  ;;  %v3379_v63 = vld [vmem:[#allocation9 + $0x68] sm:$0xff]  ;;  %v3422_v55 = vld [vmem:[#allocation9 + $0x1c0] sm:$0xff] }
 0x201   :  { %3090 = vmatpush1.bf16.msra.mxu1 %v13336_v62  ;;  %v3375_v62 = vld [vmem:[#allocation9 + $0x48] sm:$0xff]  ;;  %v15934_v3 = vpack.c.bf16 %v3335_v60, %v3335_v60 }
 0x202   :  { %3091 = vmatprep.subr.bf16.mxu1 %v13353_v1  ;;  %v13548_v1 = vcombine.low %v3367_v52, %v3371_v54  ;;  %v13556_v10 = vcombine.low %v3375_v62, %v3379_v63 }
 0x203   :  { %3117 = vmatpush1.bf16.msra.mxu0 %v13480_v45  ;;  %v13557_v45 = vcombine.high %v3375_v62, %v3379_v63 }
 0x204   :  { %3118 = vmatprep.subr.bf16.mxu0 %v13497_v7  ;;  %v3387_v7 = vld [vmem:[#allocation9 + $0xa8] sm:$0xff] }
 0x205   :  { %3092 = vmatpush1.bf16.msra.mxu1 %v13352_v6  ;;  %v3383_v6 = vld [vmem:[#allocation9 + $0x88] sm:$0xff] }
 0x206   :  { %3093 = vmatprep.subr.bf16.mxu1 %v13369_v9  ;;  %v13554_v9 = vcombine.low %v3374_v59, %v3378_v47  ;;  %v13565_v12 = vcombine.high %v3383_v6, %v3387_v7  ;;  %v3427_v59 = vld [vmem:[#allocation9 + $0x1e8] sm:$0xff] }
 0x207   :  { %3119 = vmatpush1.bf16.msra.mxu0 %v13496_v15  ;;  %v3394_v15 = vld [vmem:[#allocation9 + $0xe0] sm:$0xff] }
 0x208   :  { %3120 = vmatprep.subr.bf16.mxu0 %v13513_v19  ;;  %v13562_v19 = vcombine.low %v3382_v2, %v3386_v43 }
 0x209   :  { %3094 = vmatpush1.bf16.msra.mxu1 %v13368_v17  ;;  %v2693_v31 = vpop.f32.mrb[8].mxu0  ;;  %v3395_v17 = vld [vmem:[#allocation9 + $0xe8] sm:$0xff] }
 0x20a   :  { %3095 = vmatprep.subr.bf16.mxu1 %v13385_v21  ;;  %v15928_v36 = vadd.f32 %v15912_v18, %v2693_v31  ;;  %v2695_v37 = vpop.f32.mrb[9].mxu0  ;;  %v3366_v18 = vld [vmem:[#allocation9] sm:$0xff]  ;;  %v13571_v21 = vcombine.high %v3390_v13, %v3394_v15  ;;  %v13581_v31 = vcombine.high %v3399_v26, %v3403_v27 }
 0x20b   :  { %v15932_v41 = vadd.f32 %v15914_v20, %v2695_v37  ;;  %v2697_v42 = vpop.f32.mrb[10].mxu0  ;;  %3121 = vmatpush1.bf16.msra.mxu0 %v13512_v28  ;;  %v13416_v20 = vcombine.low %v438_v38, %v446_v39  ;;  %v13547_v56 = vcombine.high %v3366_v18, %v3370_v51  ;;  %v13546_v61 = vcombine.low %v3366_v18, %v3370_v51  ;;  %v3411_v37 = vld [vmem:[#allocation9 + $0x168] sm:$0xff] }
 0x20c   :  { %v2698_v46 = vpop.f32.mrb[11].mxu0  ;;  %3122 = vmatprep.subr.bf16.mxu0 %v13529_v30  ;;  %v13570_v28 = vcombine.low %v3390_v13, %v3394_v15  ;;  %v13579_v30 = vcombine.high %v3398_v24, %v3402_v25  ;;  %v13578_v38 = vcombine.low %v3398_v24, %v3402_v25  ;;  %v13580_v39 = vcombine.low %v3399_v26, %v3403_v27  ;;  %v3446_v27 = vld [vmem:[#allocation9 + $0x280] sm:$0xff] }
 0x20d   :  { %3096 = vmatpush1.bf16.msra.mxu1 %v13384_v29  ;;  %v13589_v42 = vcombine.high %v3407_v35, %v3411_v37  ;;  %v3418_v46 = vld [vmem:[#allocation9 + $0x1a0] sm:$0xff]  ;;  %v13588_v18 = vcombine.low %v3407_v35, %v3411_v37 }
 0x20e   :  { %3097 = vmatprep.subr.bf16.mxu1 %v13401_v33  ;;  %v3406_v33 = vld [vmem:[#allocation9 + $0x140] sm:$0xff] }
 0x20f   :  { %3123 = vmatpush1.bf16.msra.mxu0 %v13528_v44  ;;  %v13587_v40 = vcombine.high %v3406_v33, %v3410_v34  ;;  %v3414_v44 = vld [vmem:[#allocation9 + $0x180] sm:$0xff] }
 0x210   :  { %3124 = vmatprep.subr.bf16.mxu0 %v13545_v49  ;;  %v3419_v49 = vld [vmem:[#allocation9 + $0x1a8] sm:$0xff]  ;;  %v13595_v51 = vcombine.high %v3414_v44, %v3418_v46  ;;  %v13594_v62 = vcombine.low %v3414_v44, %v3418_v46  ;;  %v3454_v37 = vld [vmem:[#allocation9 + $0x2c0] sm:$0xff] }
 0x211   :  { %3098 = vmatpush1.bf16.msra.mxu1 %v13400_v48  ;;  %v3415_v48 = vld [vmem:[#allocation9 + $0x188] sm:$0xff] }
 0x212   :  { %3099 = vmatprep.subr.bf16.mxu1 %v13417_v50  ;;  %v13586_v50 = vcombine.low %v3406_v33, %v3410_v34  ;;  %v13597_v54 = vcombine.high %v3415_v48, %v3419_v49 }
 0x213   :  { %3125 = vmatpush1.bf16.msra.mxu0 %v13544_v57  ;;  %v3426_v57 = vld [vmem:[#allocation9 + $0x1e0] sm:$0xff] }
 0x214   :  { %9552 = vmatprep.subr.bf16.mxu0 %v13547_v56  ;;  %v13603_v2 = vcombine.high %v3422_v55, %v3426_v57 }
 0x215   :  { %3100 = vmatpush1.bf16.msra.mxu1 %v13416_v20 }
 0x216   :  { %9880 = vmatprep.subr.bf16.mxu1 %v13549_v58  ;;  %3143 = vmatmul.mubr.bf16.vlgmr.msra.gmra.mrb[28].mxu0 %v15865_v23  ;;  %v3391_v23 = vld [vmem:[#allocation9 + $0xc8] sm:$0xff] }
 0x217   :  { %9553 = vmatpush1.bf16.msra.mxu0 %v13546_v61  ;;  %9584 = vmatprep.mubr.bf16.mxu0 %v15934_v3  ;;  %v13573_v22 = vcombine.high %v3391_v23, %v3395_v17  ;;  %v13572_v29 = vcombine.low %v3391_v23, %v3395_v17  ;;  %v3423_v58 = vld [vmem:[#allocation9 + $0x1c8] sm:$0xff]  ;;  %v3438_v17 = vld [vmem:[#allocation9 + $0x240] sm:$0xff] }
 0x218   :  { %3102 = vmatmul.mubr.bf16.vlgmr.msra.gmra.mrb[28].mxu1 %v15872_v32  ;;  %9554 = vmatprep.subr.bf16.mxu0 %v13555_v0  ;;  %v13564_v32 = vcombine.low %v3383_v6, %v3387_v7  ;;  %v13596_v0 = vcombine.low %v3415_v48, %v3419_v49  ;;  %v3430_v6 = vld [vmem:[#allocation9 + $0x200] sm:$0xff]  ;;  %v13604_v13 = vcombine.low %v3423_v58, %v3427_v59 }
 0x219   :  { %9881 = vmatpush1.bf16.msra.mxu1 %v13548_v1  ;;  %9912 = vmatprep.mubr.bf16.mxu1 %v15934_v3  ;;  %v3434_v7 = vld [vmem:[#allocation9 + $0x220] sm:$0xff] }
 0x21a   :  { %9882 = vmatprep.subr.bf16.mxu1 %v13557_v45  ;;  %v13605_v45 = vcombine.high %v3423_v58, %v3427_v59  ;;  %v13611_v15 = vcombine.high %v3430_v6, %v3434_v7  ;;  %v3462_v49 = vld [vmem:[#allocation9 + $0x300] sm:$0xff]  ;;  %v3471_v59 = vld [vmem:[#allocation9 + $0x348] sm:$0xff] }
 0x21b   :  { %9555 = vmatpush1.bf16.msra.mxu0 %v13554_v9  ;;  %v3474_v58 = vld [vmem:[#allocation9 + $0x360] sm:$0xff] }
 0x21c   :  { %9556 = vmatprep.subr.bf16.mxu0 %v13563_v11  ;;  %v3435_v11 = vld [vmem:[#allocation9 + $0x228] sm:$0xff] }
 0x21d   :  { %9883 = vmatpush1.bf16.msra.mxu1 %v13556_v10  ;;  %v3431_v10 = vld [vmem:[#allocation9 + $0x208] sm:$0xff] }
 0x21e   :  { %9884 = vmatprep.subr.bf16.mxu1 %v13565_v12  ;;  %v13602_v12 = vcombine.low %v3422_v55, %v3426_v57  ;;  %v13613_v23 = vcombine.high %v3431_v10, %v3435_v11  ;;  %v13612_v24 = vcombine.low %v3431_v10, %v3435_v11  ;;  %v15945_v57 = vsub.s32 0, %v15918_v4 }
 0x21f   :  { %9557 = vmatpush1.bf16.msra.mxu0 %v13562_v19  ;;  %v3442_v19 = vld [vmem:[#allocation9 + $0x260] sm:$0xff] }
 0x220   :  { %9558 = vmatprep.subr.bf16.mxu0 %v13571_v21  ;;  %v3443_v21 = vld [vmem:[#allocation9 + $0x268] sm:$0xff]  ;;  %v13619_v25 = vcombine.high %v3438_v17, %v3442_v19 }
 0x221   :  { %9885 = vmatpush1.bf16.msra.mxu1 %v13564_v32  ;;  %v3439_v32 = vld [vmem:[#allocation9 + $0x248] sm:$0xff] }
 0x222   :  { %9886 = vmatprep.subr.bf16.mxu1 %v13573_v22  ;;  %v13610_v22 = vcombine.low %v3430_v6, %v3434_v7  ;;  %v13621_v26 = vcombine.high %v3439_v32, %v3443_v21  ;;  %v13620_v33 = vcombine.low %v3439_v32, %v3443_v21  ;;  %v3482_v6 = vld [vmem:[#allocation9 + $0x3a0] sm:$0xff]  ;;  %v3479_v7 = vld [vmem:[#allocation9 + $0x388] sm:$0xff] }
 0x223   :  { %9559 = vmatpush1.bf16.msra.mxu0 %v13570_v28  ;;  %v3450_v28 = vld [vmem:[#allocation9 + $0x2a0] sm:$0xff]  ;;  %v3487_v32 = vld [vmem:[#allocation9 + $0x3c8] sm:$0xff] }
 0x224   :  { %9560 = vmatprep.subr.bf16.mxu0 %v13579_v30  ;;  %v3451_v30 = vld [vmem:[#allocation9 + $0x2a8] sm:$0xff]  ;;  %v13627_v34 = vcombine.high %v3446_v27, %v3450_v28 }
 0x225   :  { %9887 = vmatpush1.bf16.msra.mxu1 %v13572_v29  ;;  %v3447_v29 = vld [vmem:[#allocation9 + $0x288] sm:$0xff] }
 0x226   :  { %9888 = vmatprep.subr.bf16.mxu1 %v13581_v31  ;;  %v13618_v31 = vcombine.low %v3438_v17, %v3442_v19  ;;  %v13629_v35 = vcombine.high %v3447_v29, %v3451_v30  ;;  %v13628_v44 = vcombine.low %v3447_v29, %v3451_v30  ;;  %v3486_v17 = vld [vmem:[#allocation9 + $0x3c0] sm:$0xff]  ;;  %v3491_v21 = vld [vmem:[#allocation9 + $0x3e8] sm:$0xff] }
 0x227   :  { %9561 = vmatpush1.bf16.msra.mxu0 %v13578_v38  ;;  %v3458_v38 = vld [vmem:[#allocation9 + $0x2e0] sm:$0xff]  ;;  %v13669_v30 = vcombine.high %v3487_v32, %v3491_v21 }
 0x228   :  { %9562 = vmatprep.subr.bf16.mxu0 %v13587_v40  ;;  %v3459_v40 = vld [vmem:[#allocation9 + $0x2e8] sm:$0xff]  ;;  %v13635_v46 = vcombine.high %v3454_v37, %v3458_v38  ;;  %v3490_v19 = vld [vmem:[#allocation9 + $0x3e0] sm:$0xff] }
 0x229   :  { %9889 = vmatpush1.bf16.msra.mxu1 %v13580_v39  ;;  %v2816_v52 = vpop.f32.mrb[12].mxu0  ;;  %v3455_v39 = vld [vmem:[#allocation9 + $0x2c8] sm:$0xff] }
 0x22a   :  { %9890 = vmatprep.subr.bf16.mxu1 %v13589_v42  ;;  %v2818_v56 = vpop.f32.mrb[13].mxu0  ;;  %v13626_v42 = vcombine.low %v3446_v27, %v3450_v28  ;;  %v13637_v48 = vcombine.high %v3455_v39, %v3459_v40  ;;  %v13667_v28 = vcombine.high %v3486_v17, %v3490_v19 }
 0x22b   :  { %v2775_v20 = vpop.f32.mrb[12].mxu1  ;;  %v2820_v61 = vpop.f32.mrb[14].mxu0  ;;  %9563 = vmatpush1.bf16.msra.mxu0 %v13586_v50  ;;  %v3466_v50 = vld [vmem:[#allocation9 + $0x320] sm:$0xff] }
 0x22c   :  { %v15940_v47 = vadd.f32 %v2816_v52, %v2775_v20  ;;  %v2777_v60 = vpop.f32.mrb[13].mxu1  ;;  %v2821_v1 = vpop.f32.mrb[15].mxu0  ;;  %9564 = vmatprep.subr.bf16.mxu0 %v13595_v51  ;;  %v3467_v51 = vld [vmem:[#allocation9 + $0x328] sm:$0xff]  ;;  %v13634_v52 = vcombine.low %v3454_v37, %v3458_v38  ;;  %v13643_v55 = vcombine.high %v3462_v49, %v3466_v50  ;;  %v15948_v61 = vsub.s32 3, %v15918_v4 }
 0x22d   :  { %v15942_v63 = vadd.f32 %v2818_v56, %v2777_v60  ;;  %9891 = vmatpush1.bf16.msra.mxu1 %v13588_v18  ;;  %v2779_v43 = vpop.f32.mrb[14].mxu1  ;;  %v3463_v18 = vld [vmem:[#allocation9 + $0x308] sm:$0xff]  ;;  %v3470_v56 = vld [vmem:[#allocation9 + $0x340] sm:$0xff] }
 0x22e   :  { %9892 = vmatprep.subr.bf16.mxu1 %v13597_v54  ;;  %v2780_v9 = vpop.f32.mrb[15].mxu1  ;;  %v13636_v54 = vcombine.low %v3455_v39, %v3459_v40  ;;  %v13645_v20 = vcombine.high %v3463_v18, %v3467_v51  ;;  %v3475_v60 = vld [vmem:[#allocation9 + $0x368] sm:$0xff]  ;;  %v13644_v1 = vcombine.low %v3463_v18, %v3467_v51  ;;  %v3221_v10 = vrot.slane %v15923_v16, %v15948_v61 }
 0x22f   :  { %9565 = vmatpush1.bf16.msra.mxu0 %v13594_v62  ;;  %v13642_v62 = vcombine.low %v3462_v49, %v3466_v50  ;;  %v13653_v43 = vcombine.high %v3471_v59, %v3475_v60  ;;  %v3483_v9 = vld [vmem:[#allocation9 + $0x3a8] sm:$0xff]  ;;  %v13650_v11 = vcombine.low %v3470_v56, %v3474_v58  ;;  %v13668_v39 = vcombine.low %v3487_v32, %v3491_v21 }
 0x230   :  { %9566 = vmatprep.subr.bf16.mxu0 %v13603_v2  ;;  %v3209_v2 = vrot.slane %v15923_v16, %v15945_v57  ;;  %v13660_v27 = vcombine.low %v3479_v7, %v3483_v9  ;;  %v3499_v37 = vld [vmem:[#allocation9 + $0x428] sm:$0xff] }
 0x231   :  { %9893 = vmatpush1.bf16.msra.mxu1 %v13596_v0  ;;  %v13651_v0 = vcombine.high %v3470_v56, %v3474_v58  ;;  %v3503_v18 = vld [vmem:[#allocation9 + $0x448] sm:$0xff]  ;;  %v3514_v56 = vld [vmem:[#allocation9 + $0x4a0] sm:$0xff] }
 0x232   :  { %9894 = vmatprep.subr.bf16.mxu1 %v13605_v45  ;;  %v3478_v45 = vld [vmem:[#allocation9 + $0x380] sm:$0xff]  ;;  %v3507_v51 = vld [vmem:[#allocation9 + $0x468] sm:$0xff] }
 0x233   :  { %9567 = vmatpush1.bf16.msra.mxu0 %v13602_v12  ;;  %v13652_v12 = vcombine.low %v3471_v59, %v3475_v60  ;;  %v13685_v59 = vcombine.high %v3503_v18, %v3507_v51  ;;  %v3511_v60 = vld [vmem:[#allocation9 + $0x488] sm:$0xff] }
 0x234   :  { %9568 = vmatprep.subr.bf16.mxu0 %v13611_v15  ;;  %v3286_v15 = vadd.f32 %v3209_v2, %v15897_v53 }
 0x235   :  { %9895 = vmatpush1.bf16.msra.mxu1 %v13604_v13  ;;  %v13659_v13 = vcombine.high %v3478_v45, %v3482_v6 }
 0x236   :  { %9896 = vmatprep.subr.bf16.mxu1 %v13613_v23  ;;  %v13661_v23 = vcombine.high %v3479_v7, %v3483_v9  ;;  %v3318_v53 = vmul.f32 0.01, %v3286_v15  ;;  %vm3302_vm1 = vcmp.gt.f32.partialorder %v3286_v15, 0.0  ;;  %v3519_v7 = vld [vmem:[#allocation9 + $0x4c8] sm:$0xff] }
 0x237   :  { %9569 = vmatpush1.bf16.msra.mxu0 %v13610_v22  ;;  %v3523_v9 = vld [vmem:[#allocation9 + $0x4e8] sm:$0xff] }
 0x238   :  { %9570 = vmatprep.subr.bf16.mxu0 %v13619_v25  ;;  %v13658_v25 = vcombine.low %v3478_v45, %v3482_v6  ;;  %v3518_v45 = vld [vmem:[#allocation9 + $0x4c0] sm:$0xff]  ;;  %v13700_v21 = vcombine.low %v3519_v7, %v3523_v9 }
 0x239   :  { %9897 = vmatpush1.bf16.msra.mxu1 %v13612_v24  ;;  %v3289_v24 = vadd.f32 %v3221_v10, %v15908_v8  ;;  %v13666_v8 = vcombine.low %v3486_v17, %v3490_v19  ;;  %v3522_v6 = vld [vmem:[#allocation9 + $0x4e0] sm:$0xff]  ;;  %v3527_v17 = vld [vmem:[#allocation9 + $0x508] sm:$0xff] }
 0x23a   :  { %9898 = vmatprep.subr.bf16.mxu1 %v13621_v26  ;;  %v3531_v19 = vld [vmem:[#allocation9 + $0x528] sm:$0xff]  ;;  %v13698_v32 = vcombine.low %v3518_v45, %v3522_v6 }
 0x23b   :  { %9571 = vmatpush1.bf16.msra.mxu0 %v13618_v31  ;;  %v3494_v31 = vld [vmem:[#allocation9 + $0x400] sm:$0xff]  ;;  %v3321_v38 = vmul.f32 0.01, %v3289_v24  ;;  %vm3305_vm2 = vcmp.gt.f32.partialorder %v3289_v24, 0.0 }
 0x23c   :  { %9572 = vmatprep.subr.bf16.mxu0 %v13627_v34 }
 0x23d   :  { %9899 = vmatpush1.bf16.msra.mxu1 %v13620_v33  ;;  %v3498_v33 = vld [vmem:[#allocation9 + $0x420] sm:$0xff]  ;;  %v3337_v49 = vsel %vm3305_vm2, %v3289_v24, %v3321_v38  ;;  %v3543_v38 = vld [vmem:[#allocation9 + $0x588] sm:$0xff] }
 0x23e   :  { %9900 = vmatprep.subr.bf16.mxu1 %v13629_v35  ;;  %v3495_v35 = vld [vmem:[#allocation9 + $0x408] sm:$0xff]  ;;  %v13675_v40 = vcombine.high %v3494_v31, %v3498_v33  ;;  %v13674_v50 = vcombine.low %v3494_v31, %v3498_v33  ;;  %v15962_v58 = vpack.c.bf16 %v3337_v49, %v3337_v49  ;;  %v13708_v31 = vcombine.low %v3527_v17, %v3531_v19  ;;  %v3554_v49 = vld [vmem:[#allocation9 + $0x5e0] sm:$0xff] }
 0x23f   :  { %9573 = vmatpush1.bf16.msra.mxu0 %v13626_v42  ;;  %v3334_v42 = vsel %vm3302_vm1, %v3286_v15, %v3318_v53  ;;  %v3526_v15 = vld [vmem:[#allocation9 + $0x500] sm:$0xff]  ;;  %v3539_v53 = vld [vmem:[#allocation9 + $0x568] sm:$0xff] }
 0x240   :  { %9574 = vmatprep.subr.bf16.mxu0 %v13635_v46  ;;  %v3502_v46 = vld [vmem:[#allocation9 + $0x440] sm:$0xff] }
 0x241   :  { %9901 = vmatpush1.bf16.msra.mxu1 %v13628_v44  ;;  %v13677_v44 = vcombine.high %v3495_v35, %v3499_v37 }
 0x242   :  { %9902 = vmatprep.subr.bf16.mxu1 %v13637_v48  ;;  %v3506_v48 = vld [vmem:[#allocation9 + $0x460] sm:$0xff] }
 0x243   :  { %9575 = vmatpush1.bf16.msra.mxu0 %v13634_v52  ;;  %v15960_v52 = vpack.c.bf16 %v3334_v42, %v3334_v42 }
 0x244   :  { %9576 = vmatprep.subr.bf16.mxu0 %v13643_v55  ;;  %v13683_v55 = vcombine.high %v3502_v46, %v3506_v48 }
 0x245   :  { %9903 = vmatpush1.bf16.msra.mxu1 %v13636_v54  ;;  %v13676_v54 = vcombine.low %v3495_v35, %v3499_v37  ;;  %v3542_v35 = vld [vmem:[#allocation9 + $0x580] sm:$0xff] }
 0x246   :  { %9904 = vmatprep.subr.bf16.mxu1 %v13645_v20  ;;  %v3510_v20 = vld [vmem:[#allocation9 + $0x480] sm:$0xff] }
 0x247   :  { %9577 = vmatpush1.bf16.msra.mxu0 %v13642_v62  ;;  %v3515_v62 = vld [vmem:[#allocation9 + $0x4a8] sm:$0xff]  ;;  %v13691_v2 = vcombine.high %v3510_v20, %v3514_v56  ;;  %v13690_v10 = vcombine.low %v3510_v20, %v3514_v56  ;;  %v3546_v37 = vld [vmem:[#allocation9 + $0x5a0] sm:$0xff] }
 0x248   :  { %9578 = vmatprep.subr.bf16.mxu0 %v13651_v0  ;;  %v13684_v0 = vcombine.low %v3503_v18, %v3507_v51  ;;  %v13723_v42 = vcombine.high %v3542_v35, %v3546_v37  ;;  %v3551_v51 = vld [vmem:[#allocation9 + $0x5c8] sm:$0xff]  ;;  %v13722_v56 = vcombine.low %v3542_v35, %v3546_v37 }
 0x249   :  { %9905 = vmatpush1.bf16.msra.mxu1 %v13644_v1  ;;  %v13682_v1 = vcombine.low %v3502_v46, %v3506_v48  ;;  %v3550_v48 = vld [vmem:[#allocation9 + $0x5c0] sm:$0xff] }
 0x24a   :  { %9906 = vmatprep.subr.bf16.mxu1 %v13653_v43  ;;  %v13693_v43 = vcombine.high %v3511_v60, %v3515_v62 }
 0x24b   :  { %v15955_v22 = vpop.f32.mrb[16].mxu1  ;;  %9579 = vmatpush1.bf16.msra.mxu0 %v13650_v11  ;;  %v13692_v11 = vcombine.low %v3511_v60, %v3515_v62  ;;  %v13731_v62 = vcombine.high %v3550_v48, %v3554_v49 }
 0x24c   :  { %v15958_v26 = vpop.f32.mrb[17].mxu1  ;;  %9580 = vmatprep.subr.bf16.mxu0 %v13659_v13  ;;  %v13701_v13 = vcombine.high %v3519_v7, %v3523_v9  ;;  %v3566_v9 = vld [vmem:[#allocation9 + $0x640] sm:$0xff] }
 0x24d   :  { %9907 = vmatpush1.bf16.msra.mxu1 %v13652_v12  ;;  %v2902_v29 = vpop.f32.mrb[18].mxu1  ;;  %v13699_v12 = vcombine.high %v3518_v45, %v3522_v6  ;;  %v13730_v45 = vcombine.low %v3550_v48, %v3554_v49  ;;  %v15975_v49 = vsub.s32 2, %v15918_v4 }
 0x24e   :  { %9908 = vmatprep.subr.bf16.mxu1 %v13661_v23  ;;  %v2903_v34 = vpop.f32.mrb[19].mxu1  ;;  %v3530_v23 = vld [vmem:[#allocation9 + $0x520] sm:$0xff]  ;;  %v3535_v29 = vld [vmem:[#allocation9 + $0x548] sm:$0xff] }
 0x24f   :  { %9581 = vmatpush1.bf16.msra.mxu0 %v13658_v25  ;;  %v13707_v24 = vcombine.high %v3526_v15, %v3530_v23  ;;  %v13709_v25 = vcombine.high %v3527_v17, %v3531_v19  ;;  %v13717_v34 = vcombine.high %v3535_v29, %v3539_v53  ;;  %v3574_v19 = vld [vmem:[#allocation9 + $0x680] sm:$0xff] }
 0x250   :  { %9582 = vmatprep.subr.bf16.mxu0 %v13667_v28  ;;  %v3538_v28 = vld [vmem:[#allocation9 + $0x560] sm:$0xff] }
 0x251   :  { %9909 = vmatpush1.bf16.msra.mxu1 %v13660_v27  ;;  %v3534_v27 = vld [vmem:[#allocation9 + $0x540] sm:$0xff] }
 0x252   :  { %9910 = vmatprep.subr.bf16.mxu1 %v13669_v30  ;;  %v13706_v30 = vcombine.low %v3526_v15, %v3530_v23  ;;  %v13715_v33 = vcombine.high %v3534_v27, %v3538_v28 }
 0x253   :  { %9583 = vmatpush1.bf16.msra.mxu0 %v13666_v8  ;;  %v3547_v8 = vld [vmem:[#allocation9 + $0x5a8] sm:$0xff] }
 0x254   :  { %9593 = vmatprep.subr.bf16.mxu0 %v13675_v40  ;;  %v13716_v40 = vcombine.low %v3535_v29, %v3539_v53  ;;  %v13725_v46 = vcombine.high %v3543_v38, %v3547_v8  ;;  %v13724_v60 = vcombine.low %v3543_v38, %v3547_v8  ;;  %v3582_v53 = vld [vmem:[#allocation9 + $0x6c0] sm:$0xff] }
 0x255   :  { %9911 = vmatpush1.bf16.msra.mxu1 %v13668_v39  ;;  %v13714_v39 = vcombine.low %v3534_v27, %v3538_v28  ;;  %v3590_v8 = vld [vmem:[#allocation9 + $0x700] sm:$0xff] }
 0x256   :  { %9921 = vmatprep.subr.bf16.mxu1 %v13677_v44  ;;  %9585 = vmatmul.mubr.bf16.vlgmr.msra.gmra.mrb[32].mxu0 %v15960_v52 }
 0x257   :  { %9594 = vmatpush1.bf16.msra.mxu0 %v13674_v50  ;;  %9625 = vmatprep.mubr.bf16.mxu0 %v15962_v58 }
 0x258   :  { %9913 = vmatmul.mubr.bf16.vlgmr.msra.gmra.mrb[32].mxu1 %v15960_v52  ;;  %9595 = vmatprep.subr.bf16.mxu0 %v13683_v55 }
 0x259   :  { %9922 = vmatpush1.bf16.msra.mxu1 %v13676_v54  ;;  %9953 = vmatprep.mubr.bf16.mxu1 %v15962_v58  ;;  %v3555_v54 = vld [vmem:[#allocation9 + $0x5e8] sm:$0xff] }
 0x25a   :  { %9923 = vmatprep.subr.bf16.mxu1 %v13685_v59 }
 0x25b   :  { %9596 = vmatpush1.bf16.msra.mxu0 %v13682_v1  ;;  %v13733_v1 = vcombine.high %v3551_v51, %v3555_v54 }
 0x25c   :  { %9597 = vmatprep.subr.bf16.mxu0 %v13691_v2  ;;  %v3562_v2 = vld [vmem:[#allocation9 + $0x620] sm:$0xff] }
 0x25d   :  { %9924 = vmatpush1.bf16.msra.mxu1 %v13684_v0  ;;  %v3558_v0 = vld [vmem:[#allocation9 + $0x600] sm:$0xff] }
 0x25e   :  { %9925 = vmatprep.subr.bf16.mxu1 %v13693_v43  ;;  %v3563_v43 = vld [vmem:[#allocation9 + $0x628] sm:$0xff]  ;;  %v13739_v6 = vcombine.high %v3558_v0, %v3562_v2 }
 0x25f   :  { %9598 = vmatpush1.bf16.msra.mxu0 %v13690_v10  ;;  %v3570_v10 = vld [vmem:[#allocation9 + $0x660] sm:$0xff] }
 0x260   :  { %9599 = vmatprep.subr.bf16.mxu0 %v13699_v12  ;;  %v3571_v12 = vld [vmem:[#allocation9 + $0x668] sm:$0xff]  ;;  %v13747_v23 = vcombine.high %v3566_v9, %v3570_v10 }
 0x261   :  { %9926 = vmatpush1.bf16.msra.mxu1 %v13692_v11  ;;  %v3567_v11 = vld [vmem:[#allocation9 + $0x648] sm:$0xff] }
 0x262   :  { %9927 = vmatprep.subr.bf16.mxu1 %v13701_v13  ;;  %v13738_v13 = vcombine.low %v3558_v0, %v3562_v2  ;;  %v13749_v17 = vcombine.high %v3567_v11, %v3571_v12  ;;  %v13748_v27 = vcombine.low %v3567_v11, %v3571_v12  ;;  %v3217_v0 = vrot.slane %v15923_v16, %v15975_v49 }
 0x263   :  { %9600 = vmatpush1.bf16.msra.mxu0 %v13698_v32  ;;  %v3578_v32 = vld [vmem:[#allocation9 + $0x6a0] sm:$0xff] }
 0x264   :  { %9601 = vmatprep.subr.bf16.mxu0 %v13707_v24  ;;  %v3579_v24 = vld [vmem:[#allocation9 + $0x6a8] sm:$0xff]  ;;  %v13755_v28 = vcombine.high %v3574_v19, %v3578_v32  ;;  %v3288_v11 = vadd.f32 %v3217_v0, %v15906_v5 }
 0x265   :  { %9928 = vmatpush1.bf16.msra.mxu1 %v13700_v21  ;;  %v3575_v21 = vld [vmem:[#allocation9 + $0x688] sm:$0xff] }
 0x266   :  { %9929 = vmatprep.subr.bf16.mxu1 %v13709_v25  ;;  %v13746_v25 = vcombine.low %v3566_v9, %v3570_v10  ;;  %v13757_v29 = vcombine.high %v3575_v21, %v3579_v24  ;;  %v13756_v35 = vcombine.low %v3575_v21, %v3579_v24  ;;  %v3619_v21 = vld [vmem:[#allocation9 + $0x7e8] sm:$0xff]  ;;  %vm3304_vm3 = vcmp.gt.f32.partialorder %v3288_v11, 0.0 }
 0x267   :  { %9602 = vmatpush1.bf16.msra.mxu0 %v13706_v30  ;;  %v3586_v30 = vld [vmem:[#allocation9 + $0x6e0] sm:$0xff] }
 0x268   :  { %9603 = vmatprep.subr.bf16.mxu0 %v13715_v33  ;;  %v3587_v33 = vld [vmem:[#allocation9 + $0x6e8] sm:$0xff]  ;;  %v13763_v37 = vcombine.high %v3582_v53, %v3586_v30 }
 0x269   :  { %9930 = vmatpush1.bf16.msra.mxu1 %v13708_v31  ;;  %v2857_v44 = vpop.f32.mrb[16].mxu0  ;;  %v3583_v31 = vld [vmem:[#allocation9 + $0x6c8] sm:$0xff] }
 0x26a   :  { %9931 = vmatprep.subr.bf16.mxu1 %v13717_v34  ;;  %v15969_v50 = vadd.f32 %v15955_v22, %v2857_v44  ;;  %v2859_v18 = vpop.f32.mrb[17].mxu0  ;;  %v3559_v22 = vld [vmem:[#allocation9 + $0x608] sm:$0xff]  ;;  %v13754_v34 = vcombine.low %v3574_v19, %v3578_v32  ;;  %v13765_v38 = vcombine.high %v3583_v31, %v3587_v33  ;;  %v13762_v44 = vcombine.low %v3582_v53, %v3586_v30 }
 0x26b   :  { %v15972_v55 = vadd.f32 %v15958_v26, %v2859_v18  ;;  %v2861_v20 = vpop.f32.mrb[18].mxu0  ;;  %9604 = vmatpush1.bf16.msra.mxu0 %v13714_v39  ;;  %v13732_v26 = vcombine.low %v3551_v51, %v3555_v54  ;;  %v13741_v7 = vcombine.high %v3559_v22, %v3563_v43  ;;  %v13740_v15 = vcombine.low %v3559_v22, %v3563_v43  ;;  %v3594_v39 = vld [vmem:[#allocation9 + $0x720] sm:$0xff]  ;;  %v3615_v32 = vld [vmem:[#allocation9 + $0x7c8] sm:$0xff] }
 0x26c   :  { %v2862_v59 = vpop.f32.mrb[19].mxu0  ;;  %9605 = vmatprep.subr.bf16.mxu0 %v13723_v42  ;;  %v3595_v42 = vld [vmem:[#allocation9 + $0x728] sm:$0xff]  ;;  %v13771_v48 = vcombine.high %v3590_v8, %v3594_v39  ;;  %v3598_v51 = vld [vmem:[#allocation9 + $0x740] sm:$0xff] }
 0x26d   :  { %9932 = vmatpush1.bf16.msra.mxu1 %v13716_v40  ;;  %v3591_v40 = vld [vmem:[#allocation9 + $0x708] sm:$0xff]  ;;  %v3602_v54 = vld [vmem:[#allocation9 + $0x760] sm:$0xff]  ;;  %v15978_v59 = vsub.s32 5, %v15918_v4 }
 0x26e   :  { %9933 = vmatprep.subr.bf16.mxu1 %v13725_v46  ;;  %v13764_v46 = vcombine.low %v3583_v31, %v3587_v33  ;;  %v13773_v18 = vcombine.high %v3591_v40, %v3595_v42  ;;  %v3599_v20 = vld [vmem:[#allocation9 + $0x748] sm:$0xff]  ;;  %v3606_v22 = vld [vmem:[#allocation9 + $0x780] sm:$0xff]  ;;  %v3320_v33 = vmul.f32 0.01, %v3288_v11 }
 0x26f   :  { %9606 = vmatpush1.bf16.msra.mxu0 %v13722_v56  ;;  %v3603_v56 = vld [vmem:[#allocation9 + $0x768] sm:$0xff]  ;;  %v3610_v43 = vld [vmem:[#allocation9 + $0x7a0] sm:$0xff] }
 0x270   :  { %9607 = vmatprep.subr.bf16.mxu0 %v13731_v62  ;;  %v13772_v62 = vcombine.low %v3591_v40, %v3595_v42  ;;  %v13781_v2 = vcombine.high %v3599_v20, %v3603_v56  ;;  %v13780_v9 = vcombine.low %v3599_v20, %v3603_v56  ;;  %v13787_v10 = vcombine.high %v3606_v22, %v3610_v43  ;;  %v3631_v56 = vld [vmem:[#allocation9 + $0x848] sm:$0xff] }
 0x271   :  { %9934 = vmatpush1.bf16.msra.mxu1 %v13724_v60  ;;  %v13770_v60 = vcombine.low %v3590_v8, %v3594_v39  ;;  %v3627_v8 = vld [vmem:[#allocation9 + $0x828] sm:$0xff]  ;;  %v13796_v42 = vcombine.low %v3615_v32, %v3619_v21 }
 0x272   :  { %9935 = vmatprep.subr.bf16.mxu1 %v13733_v1  ;;  %v13779_v1 = vcombine.high %v3598_v51, %v3602_v54 }
 0x273   :  { %9608 = vmatpush1.bf16.msra.mxu0 %v13730_v45  ;;  %v3607_v45 = vld [vmem:[#allocation9 + $0x788] sm:$0xff] }
 0x274   :  { %9609 = vmatprep.subr.bf16.mxu0 %v13739_v6  ;;  %v3229_v6 = vrot.slane %v15923_v16, %v15978_v59 }
 0x275   :  { %9936 = vmatpush1.bf16.msra.mxu1 %v13732_v26  ;;  %v3611_v26 = vld [vmem:[#allocation9 + $0x7a8] sm:$0xff] }
 0x276   :  { %9937 = vmatprep.subr.bf16.mxu1 %v13741_v7  ;;  %v13778_v7 = vcombine.low %v3598_v51, %v3602_v54  ;;  %v3291_v24 = vadd.f32 %v3229_v6, %v15932_v41  ;;  %v13788_v53 = vcombine.low %v3607_v45, %v3611_v26  ;;  %v3634_v51 = vld [vmem:[#allocation9 + $0x860] sm:$0xff]  ;;  %v3643_v6 = vld [vmem:[#allocation9 + $0x8a8] sm:$0xff] }
 0x277   :  { %9610 = vmatpush1.bf16.msra.mxu0 %v13738_v13  ;;  %v13789_v13 = vcombine.high %v3607_v45, %v3611_v26  ;;  %v3639_v26 = vld [vmem:[#allocation9 + $0x888] sm:$0xff] }
 0x278   :  { %9611 = vmatprep.subr.bf16.mxu0 %v13747_v23  ;;  %v3618_v23 = vld [vmem:[#allocation9 + $0x7e0] sm:$0xff]  ;;  %v3323_v39 = vmul.f32 0.01, %v3291_v24  ;;  %vm3307_vm4 = vcmp.gt.f32.partialorder %v3291_v24, 0.0 }
 0x279   :  { %9938 = vmatpush1.bf16.msra.mxu1 %v13740_v15  ;;  %v3614_v15 = vld [vmem:[#allocation9 + $0x7c0] sm:$0xff] }
 0x27a   :  { %9939 = vmatprep.subr.bf16.mxu1 %v13749_v17  ;;  %v13795_v30 = vcombine.high %v3614_v15, %v3618_v23  ;;  %v13794_v40 = vcombine.low %v3614_v15, %v3618_v23  ;;  %v3339_v54 = vsel %vm3307_vm4, %v3291_v24, %v3323_v39  ;;  %v3647_v15 = vld [vmem:[#allocation9 + $0x8c8] sm:$0xff]  ;;  %v3654_v24 = vld [vmem:[#allocation9 + $0x900] sm:$0xff] }
 0x27b   :  { %9612 = vmatpush1.bf16.msra.mxu0 %v13746_v25  ;;  %v3651_v23 = vld [vmem:[#allocation9 + $0x8e8] sm:$0xff] }
 0x27c   :  { %9613 = vmatprep.subr.bf16.mxu0 %v13755_v28  ;;  %v13786_v28 = vcombine.low %v3606_v22, %v3610_v43  ;;  %v3642_v22 = vld [vmem:[#allocation9 + $0x8a0] sm:$0xff]  ;;  %v15992_v43 = vpack.c.bf16 %v3339_v54, %v3339_v54 }
 0x27d   :  { %9940 = vmatpush1.bf16.msra.mxu1 %v13748_v27 }
 0x27e   :  { %9941 = vmatprep.subr.bf16.mxu1 %v13757_v29 }
 0x27f   :  { %9614 = vmatpush1.bf16.msra.mxu0 %v13754_v34  ;;  %v13797_v34 = vcombine.high %v3615_v32, %v3619_v21  ;;  %v13829_v21 = vcombine.high %v3647_v15, %v3651_v23 }
 0x280   :  { %9615 = vmatprep.subr.bf16.mxu0 %v13763_v37  ;;  %v3626_v37 = vld [vmem:[#allocation9 + $0x820] sm:$0xff] }
 0x281   :  { %9942 = vmatpush1.bf16.msra.mxu1 %v13756_v35  ;;  %v3622_v35 = vld [vmem:[#allocation9 + $0x800] sm:$0xff] }
 0x282   :  { %9943 = vmatprep.subr.bf16.mxu1 %v13765_v38  ;;  %v3623_v38 = vld [vmem:[#allocation9 + $0x808] sm:$0xff]  ;;  %v13802_v20 = vcombine.low %v3622_v35, %v3626_v37 }
 0x283   :  { %9616 = vmatpush1.bf16.msra.mxu0 %v13762_v44  ;;  %v13803_v44 = vcombine.high %v3622_v35, %v3626_v37  ;;  %v3663_v35 = vld [vmem:[#allocation9 + $0x948] sm:$0xff] }
 0x284   :  { %9617 = vmatprep.subr.bf16.mxu0 %v13771_v48  ;;  %v13805_v48 = vcombine.high %v3623_v38, %v3627_v8  ;;  %v3667_v37 = vld [vmem:[#allocation9 + $0x968] sm:$0xff] }
 0x285   :  { %9944 = vmatpush1.bf16.msra.mxu1 %v13764_v46  ;;  %v3336_v46 = vsel %vm3304_vm3, %v3288_v11, %v3320_v33  ;;  %v13821_v11 = vcombine.high %v3639_v26, %v3643_v6  ;;  %v3662_v33 = vld [vmem:[#allocation9 + $0x940] sm:$0xff]  ;;  %v13845_v39 = vcombine.high %v3663_v35, %v3667_v37 }
 0x286   :  { %9945 = vmatprep.subr.bf16.mxu1 %v13773_v18  ;;  %v3630_v18 = vld [vmem:[#allocation9 + $0x840] sm:$0xff] }
 0x287   :  { %9618 = vmatpush1.bf16.msra.mxu0 %v13770_v60  ;;  %v3635_v60 = vld [vmem:[#allocation9 + $0x868] sm:$0xff]  ;;  %v13811_v0 = vcombine.high %v3630_v18, %v3634_v51 }
 0x288   :  { %9619 = vmatprep.subr.bf16.mxu0 %v13779_v1  ;;  %v13804_v1 = vcombine.low %v3623_v38, %v3627_v8  ;;  %v13813_v45 = vcombine.high %v3631_v56, %v3635_v60 }
 0x289   :  { %9946 = vmatpush1.bf16.msra.mxu1 %v13772_v62  ;;  %v2980_v12 = vpop.f32.mrb[20].mxu0  ;;  %v15990_v62 = vpack.c.bf16 %v3336_v46, %v3336_v46  ;;  %v3675_v46 = vld [vmem:[#allocation9 + $0x9a8] sm:$0xff] }
 0x28a   :  { %9947 = vmatprep.subr.bf16.mxu1 %v13781_v2  ;;  %v2982_v19 = vpop.f32.mrb[21].mxu0  ;;  %v3638_v2 = vld [vmem:[#allocation9 + $0x880] sm:$0xff] }
 0x28b   :  { %v2939_v17 = vpop.f32.mrb[20].mxu1  ;;  %v2984_v27 = vpop.f32.mrb[22].mxu0  ;;  %9620 = vmatpush1.bf16.msra.mxu0 %v13778_v7  ;;  %v13810_v7 = vcombine.low %v3630_v18, %v3634_v51  ;;  %v13844_v18 = vcombine.low %v3663_v35, %v3667_v37 }
 0x28c   :  { %v15986_v16 = vadd.f32 %v2980_v12, %v2939_v17  ;;  %v2941_v25 = vpop.f32.mrb[21].mxu1  ;;  %v2985_v5 = vpop.f32.mrb[23].mxu0  ;;  %9621 = vmatprep.subr.bf16.mxu0 %v13787_v10  ;;  %v13819_v10 = vcombine.high %v3638_v2, %v3642_v22  ;;  %v3646_v12 = vld [vmem:[#allocation9 + $0x8c0] sm:$0xff]  ;;  %v13818_v17 = vcombine.low %v3638_v2, %v3642_v22  ;;  %v3655_v27 = vld [vmem:[#allocation9 + $0x908] sm:$0xff] }
 0x28d   :  { %v15988_v29 = vadd.f32 %v2982_v19, %v2941_v25  ;;  %9948 = vmatpush1.bf16.msra.mxu1 %v13780_v9  ;;  %v2943_v31 = vpop.f32.mrb[22].mxu1  ;;  %v13812_v9 = vcombine.low %v3631_v56, %v3635_v60  ;;  %v13820_v19 = vcombine.low %v3639_v26, %v3643_v6  ;;  %v3658_v25 = vld [vmem:[#allocation9 + $0x920] sm:$0xff]  ;;  %v3679_v60 = vld [vmem:[#allocation9 + $0x9c8] sm:$0xff] }
 0x28e   :  { %9949 = vmatprep.subr.bf16.mxu1 %v13789_v13  ;;  %v2944_v41 = vpop.f32.mrb[23].mxu1  ;;  %v3650_v13 = vld [vmem:[#allocation9 + $0x8e0] sm:$0xff] }
 0x28f   :  { %9622 = vmatpush1.bf16.msra.mxu0 %v13786_v28  ;;  %v13827_v32 = vcombine.high %v3646_v12, %v3650_v13  ;;  %v3659_v28 = vld [vmem:[#allocation9 + $0x928] sm:$0xff]  ;;  %v13826_v5 = vcombine.low %v3646_v12, %v3650_v13  ;;  %v13834_v41 = vcombine.low %v3654_v24, %v3658_v25  ;;  %v3682_v56 = vld [vmem:[#allocation9 + $0x9e0] sm:$0xff] }
 0x290   :  { %9623 = vmatprep.subr.bf16.mxu0 %v13795_v30  ;;  %v13835_v30 = vcombine.high %v3654_v24, %v3658_v25  ;;  %v13837_v31 = vcombine.high %v3655_v27, %v3659_v28  ;;  %v13836_v38 = vcombine.low %v3655_v27, %v3659_v28  ;;  %v3687_v12 = vld [vmem:[#allocation9 + $0xa08] sm:$0xff] }
 0x291   :  { %9950 = vmatpush1.bf16.msra.mxu1 %v13788_v53  ;;  %v13828_v53 = vcombine.low %v3647_v15, %v3651_v23  ;;  %v3691_v13 = vld [vmem:[#allocation9 + $0xa28] sm:$0xff] }
 0x292   :  { %9951 = vmatprep.subr.bf16.mxu1 %v13797_v34  ;;  %v3666_v34 = vld [vmem:[#allocation9 + $0x960] sm:$0xff]  ;;  %v3695_v24 = vld [vmem:[#allocation9 + $0xa48] sm:$0xff]  ;;  %v13868_v28 = vcombine.low %v3687_v12, %v3691_v13 }
 0x293   :  { %9624 = vmatpush1.bf16.msra.mxu0 %v13794_v40  ;;  %v13843_v8 = vcombine.high %v3662_v33, %v3666_v34  ;;  %v3670_v40 = vld [vmem:[#allocation9 + $0x980] sm:$0xff]  ;;  %v3699_v25 = vld [vmem:[#allocation9 + $0xa68] sm:$0xff] }
 0x294   :  { %9634 = vmatprep.subr.bf16.mxu0 %v13803_v44  ;;  %v3671_v44 = vld [vmem:[#allocation9 + $0x988] sm:$0xff]  ;;  %v13876_v37 = vcombine.low %v3695_v24, %v3699_v25 }
 0x295   :  { %9952 = vmatpush1.bf16.msra.mxu1 %v13796_v42  ;;  %v3674_v42 = vld [vmem:[#allocation9 + $0x9a0] sm:$0xff]  ;;  %v13853_v54 = vcombine.high %v3671_v44, %v3675_v46 }
 0x296   :  { %9962 = vmatprep.subr.bf16.mxu1 %v13805_v48  ;;  %9626 = vmatmul.mubr.bf16.vlgmr.msra.gmra.mrb[32].mxu0 %v15990_v62  ;;  %v13842_v48 = vcombine.low %v3662_v33, %v3666_v34  ;;  %v13851_v51 = vcombine.high %v3670_v40, %v3674_v42  ;;  %v13850_v2 = vcombine.low %v3670_v40, %v3674_v42  ;;  %v3703_v33 = vld [vmem:[#allocation9 + $0xa88] sm:$0xff] }
 0x297   :  { %9635 = vmatpush1.bf16.msra.mxu0 %v13802_v20  ;;  %9666 = vmatprep.mubr.bf16.mxu0 %v15992_v43  ;;  %v3678_v20 = vld [vmem:[#allocation9 + $0x9c0] sm:$0xff]  ;;  %v3707_v34 = vld [vmem:[#allocation9 + $0xaa8] sm:$0xff] }
 0x298   :  { %9954 = vmatmul.mubr.bf16.vlgmr.msra.gmra.mrb[32].mxu1 %v15990_v62  ;;  %9636 = vmatprep.subr.bf16.mxu0 %v13811_v0  ;;  %v13859_v26 = vcombine.high %v3678_v20, %v3682_v56  ;;  %v13858_v15 = vcombine.low %v3678_v20, %v3682_v56  ;;  %v3711_v40 = vld [vmem:[#allocation9 + $0xac8] sm:$0xff] }
 0x299   :  { %9963 = vmatpush1.bf16.msra.mxu1 %v13804_v1  ;;  %9994 = vmatprep.mubr.bf16.mxu1 %v15992_v43  ;;  %v3683_v1 = vld [vmem:[#allocation9 + $0x9e8] sm:$0xff] }
 0x29a   :  { %9964 = vmatprep.subr.bf16.mxu1 %v13813_v45  ;;  %v13852_v45 = vcombine.low %v3671_v44, %v3675_v46  ;;  %v13860_v23 = vcombine.low %v3679_v60, %v3683_v1  ;;  %v3715_v42 = vld [vmem:[#allocation9 + $0xae8] sm:$0xff]  ;;  %v13884_v46 = vcombine.low %v3703_v33, %v3707_v34 }
 0x29b   :  { %9637 = vmatpush1.bf16.msra.mxu0 %v13810_v7  ;;  %v13861_v7 = vcombine.high %v3679_v60, %v3683_v1  ;;  %v3719_v20 = vld [vmem:[#allocation9 + $0xb08] sm:$0xff]  ;;  %v13892_v1 = vcombine.low %v3711_v40, %v3715_v42 }
 0x29c   :  { %9638 = vmatprep.subr.bf16.mxu0 %v13819_v10  ;;  %v3690_v10 = vld [vmem:[#allocation9 + $0xa20] sm:$0xff]  ;;  %v3723_v56 = vld [vmem:[#allocation9 + $0xb28] sm:$0xff] }
 0x29d   :  { %9965 = vmatpush1.bf16.msra.mxu1 %v13812_v9  ;;  %v3686_v9 = vld [vmem:[#allocation9 + $0xa00] sm:$0xff] }
 0x29e   :  { %9966 = vmatprep.subr.bf16.mxu1 %v13821_v11  ;;  %v13866_v27 = vcombine.low %v3686_v9, %v3690_v10 }
 0x29f   :  { %9639 = vmatpush1.bf16.msra.mxu0 %v13818_v17  ;;  %v13867_v17 = vcombine.high %v3686_v9, %v3690_v10  ;;  %v3727_v9 = vld [vmem:[#allocation9 + $0xb48] sm:$0xff] }
 0x2a0   :  { %9640 = vmatprep.subr.bf16.mxu0 %v13827_v32  ;;  %v3694_v32 = vld [vmem:[#allocation9 + $0xa40] sm:$0xff]  ;;  %v3731_v10 = vld [vmem:[#allocation9 + $0xb68] sm:$0xff] }
 0x2a1   :  { %9967 = vmatpush1.bf16.msra.mxu1 %v13820_v19  ;;  %v13869_v19 = vcombine.high %v3687_v12, %v3691_v13  ;;  %v13900_v13 = vcombine.low %v3719_v20, %v3723_v56 }
 0x2a2   :  { %9968 = vmatprep.subr.bf16.mxu1 %v13829_v21  ;;  %v3698_v21 = vld [vmem:[#allocation9 + $0xa60] sm:$0xff] }
 0x2a3   :  { %9641 = vmatpush1.bf16.msra.mxu0 %v13826_v5  ;;  %v13875_v5 = vcombine.high %v3694_v32, %v3698_v21  ;;  %v13874_v35 = vcombine.low %v3694_v32, %v3698_v21  ;;  %v3734_v32 = vld [vmem:[#allocation9 + $0xb80] sm:$0xff] }
 0x2a4   :  { %9642 = vmatprep.subr.bf16.mxu0 %v13835_v30  ;;  %v3702_v30 = vld [vmem:[#allocation9 + $0xa80] sm:$0xff] }
 0x2a5   :  { %9969 = vmatpush1.bf16.msra.mxu1 %v13828_v53  ;;  %v13877_v53 = vcombine.high %v3695_v24, %v3699_v25  ;;  %v3738_v21 = vld [vmem:[#allocation9 + $0xba0] sm:$0xff]  ;;  %v3735_v24 = vld [vmem:[#allocation9 + $0xb88] sm:$0xff] }
 0x2a6   :  { %9970 = vmatprep.subr.bf16.mxu1 %v13837_v31  ;;  %v3706_v31 = vld [vmem:[#allocation9 + $0xaa0] sm:$0xff]  ;;  %v3739_v25 = vld [vmem:[#allocation9 + $0xba8] sm:$0xff] }
 0x2a7   :  { %9643 = vmatpush1.bf16.msra.mxu0 %v13834_v41  ;;  %v13883_v41 = vcombine.high %v3702_v30, %v3706_v31  ;;  %v13882_v44 = vcombine.low %v3702_v30, %v3706_v31 }
 0x2a8   :  { %9644 = vmatprep.subr.bf16.mxu0 %v13843_v8  ;;  %v3710_v8 = vld [vmem:[#allocation9 + $0xac0] sm:$0xff] }
 0x2a9   :  { %9971 = vmatpush1.bf16.msra.mxu1 %v13836_v38  ;;  %v13885_v38 = vcombine.high %v3703_v33, %v3707_v34  ;;  %v13917_v33 = vcombine.high %v3735_v24, %v3739_v25  ;;  %v3742_v34 = vld [vmem:[#allocation9 + $0xbc0] sm:$0xff] }
 0x2aa   :  { %9972 = vmatprep.subr.bf16.mxu1 %v13845_v39  ;;  %v3714_v39 = vld [vmem:[#allocation9 + $0xae0] sm:$0xff] }
 0x2ab   :  { %v15998_v0 = vpop.f32.mrb[24].mxu1  ;;  %9645 = vmatpush1.bf16.msra.mxu0 %v13842_v48  ;;  %v13891_v48 = vcombine.high %v3710_v8, %v3714_v39  ;;  %v13890_v60 = vcombine.low %v3710_v8, %v3714_v39  ;;  %v3747_v8 = vld [vmem:[#allocation9 + $0xbe8] sm:$0xff] }
 0x2ac   :  { %v16000_v22 = vpop.f32.mrb[25].mxu1  ;;  %9646 = vmatprep.subr.bf16.mxu0 %v13851_v51  ;;  %v3718_v51 = vld [vmem:[#allocation9 + $0xb00] sm:$0xff] }
 0x2ad   :  { %9973 = vmatpush1.bf16.msra.mxu1 %v13844_v18  ;;  %v3066_v6 = vpop.f32.mrb[26].mxu1  ;;  %v13893_v18 = vcombine.high %v3711_v40, %v3715_v42 }
 0x2ae   :  { %9974 = vmatprep.subr.bf16.mxu1 %v13853_v54  ;;  %v3067_v11 = vpop.f32.mrb[27].mxu1  ;;  %v3722_v54 = vld [vmem:[#allocation9 + $0xb20] sm:$0xff] }
 0x2af   :  { %9647 = vmatpush1.bf16.msra.mxu0 %v13850_v2  ;;  %v13899_v2 = vcombine.high %v3718_v51, %v3722_v54  ;;  %v3726_v6 = vld [vmem:[#allocation9 + $0xb40] sm:$0xff]  ;;  %v16006_v11 = vsub.s32 7, %v15918_v4  ;;  %v13898_v12 = vcombine.low %v3718_v51, %v3722_v54 }
 0x2b0   :  { %9648 = vmatprep.subr.bf16.mxu0 %v13859_v26  ;;  %v13901_v26 = vcombine.high %v3719_v20, %v3723_v56  ;;  %v3750_v51 = vld [vmem:[#allocation9 + $0xc00] sm:$0xff]  ;;  %v3751_v20 = vld [vmem:[#allocation9 + $0xc08] sm:$0xff] }
 0x2b1   :  { %9975 = vmatpush1.bf16.msra.mxu1 %v13852_v45  ;;  %v16003_v45 = vsub.s32 4, %v15918_v4  ;;  %v3754_v54 = vld [vmem:[#allocation9 + $0xc20] sm:$0xff]  ;;  %v3755_v56 = vld [vmem:[#allocation9 + $0xc28] sm:$0xff] }
 0x2b2   :  { %9976 = vmatprep.subr.bf16.mxu1 %v13861_v7  ;;  %v3730_v7 = vld [vmem:[#allocation9 + $0xb60] sm:$0xff] }
 0x2b3   :  { %9649 = vmatpush1.bf16.msra.mxu0 %v13858_v15  ;;  %v13907_v15 = vcombine.high %v3726_v6, %v3730_v7 }
 0x2b4   :  { %9650 = vmatprep.subr.bf16.mxu0 %v13867_v17 }
 0x2b5   :  { %9977 = vmatpush1.bf16.msra.mxu1 %v13860_v23  ;;  %v16008_v23 = vld [vmem:[#allocation8] sm:$0xff] }
 0x2b6   :  { %9978 = vmatprep.subr.bf16.mxu1 %v13869_v19  ;;  %v3225_v17 = vrot.slane %v16008_v23, %v16003_v45  ;;  %v13909_v19 = vcombine.high %v3727_v9, %v3731_v10 }
 0x2b7   :  { %9651 = vmatpush1.bf16.msra.mxu0 %v13866_v27  ;;  %v3237_v27 = vrot.slane %v16008_v23, %v16006_v11 }
 0x2b8   :  { %9652 = vmatprep.subr.bf16.mxu0 %v13875_v5  ;;  %v13908_v5 = vcombine.low %v3727_v9, %v3731_v10  ;;  %v3290_v30 = vadd.f32 %v3225_v17, %v15928_v36  ;;  %v13930_v10 = vcombine.low %v3750_v51, %v3754_v54  ;;  %v13932_v17 = vcombine.low %v3751_v20, %v3755_v56 }
 0x2b9   :  { %9979 = vmatpush1.bf16.msra.mxu1 %v13868_v28  ;;  %v13906_v28 = vcombine.low %v3726_v6, %v3730_v7  ;;  %v3293_v39 = vadd.f32 %v3237_v27, %v15942_v63  ;;  %v3758_v6 = vld [vmem:[#allocation9 + $0xc40] sm:$0xff]  ;;  %v3767_v27 = vld [vmem:[#allocation9 + $0xc88] sm:$0xff] }
 0x2ba   :  { %9980 = vmatprep.subr.bf16.mxu1 %v13877_v53  ;;  %v13915_v53 = vcombine.high %v3734_v32, %v3738_v21  ;;  %vm3306_vm5 = vcmp.gt.f32.partialorder %v3290_v30, 0.0  ;;  %v3762_v7 = vld [vmem:[#allocation9 + $0xc60] sm:$0xff] }
 0x2bb   :  { %9653 = vmatpush1.bf16.msra.mxu0 %v13874_v35  ;;  %v3746_v35 = vld [vmem:[#allocation9 + $0xbe0] sm:$0xff]  ;;  %v3325_v63 = vmul.f32 0.01, %v3293_v39  ;;  %vm3309_vm6 = vcmp.gt.f32.partialorder %v3293_v39, 0.0 }
 0x2bc   :  { %9654 = vmatprep.subr.bf16.mxu0 %v13883_v41 }
 0x2bd   :  { %9981 = vmatpush1.bf16.msra.mxu1 %v13876_v37  ;;  %v3341_v9 = vsel %vm3309_vm6, %v3293_v39, %v3325_v63  ;;  %v3791_v63 = vld [vmem:[#allocation9 + $0xd48] sm:$0xff] }
 0x2be   :  { %9982 = vmatprep.subr.bf16.mxu1 %v13885_v38  ;;  %v3743_v38 = vld [vmem:[#allocation9 + $0xbc8] sm:$0xff] }
 0x2bf   :  { %9655 = vmatpush1.bf16.msra.mxu0 %v13882_v44  ;;  %v13914_v44 = vcombine.low %v3734_v32, %v3738_v21  ;;  %v3766_v32 = vld [vmem:[#allocation9 + $0xc80] sm:$0xff] }
 0x2c0   :  { %9656 = vmatprep.subr.bf16.mxu0 %v13891_v48  ;;  %v13923_v48 = vcombine.high %v3742_v34, %v3746_v35  ;;  %v3770_v21 = vld [vmem:[#allocation9 + $0xca0] sm:$0xff] }
 0x2c1   :  { %9983 = vmatpush1.bf16.msra.mxu1 %v13884_v46  ;;  %v13916_v46 = vcombine.low %v3735_v24, %v3739_v25  ;;  %v16024_v24 = vpack.c.bf16 %v3341_v9, %v3341_v9  ;;  %v3799_v9 = vld [vmem:[#allocation9 + $0xd88] sm:$0xff] }
 0x2c2   :  { %9984 = vmatprep.subr.bf16.mxu1 %v13893_v18  ;;  %v3322_v18 = vmul.f32 0.01, %v3290_v30 }
 0x2c3   :  { %9657 = vmatpush1.bf16.msra.mxu0 %v13890_v60  ;;  %v13924_v60 = vcombine.low %v3743_v38, %v3747_v8 }
 0x2c4   :  { %9658 = vmatprep.subr.bf16.mxu0 %v13899_v2  ;;  %v3338_v2 = vsel %vm3306_vm5, %v3290_v30, %v3322_v18  ;;  %v13947_v30 = vcombine.high %v3766_v32, %v3770_v21 }
 0x2c5   :  { %9985 = vmatpush1.bf16.msra.mxu1 %v13892_v1  ;;  %v13931_v1 = vcombine.high %v3750_v51, %v3754_v54 }
 0x2c6   :  { %9986 = vmatprep.subr.bf16.mxu1 %v13901_v26  ;;  %v13933_v26 = vcombine.high %v3751_v20, %v3755_v56  ;;  %v3790_v20 = vld [vmem:[#allocation9 + $0xd40] sm:$0xff] }
 0x2c7   :  { %9659 = vmatpush1.bf16.msra.mxu0 %v13898_v12  ;;  %v3759_v12 = vld [vmem:[#allocation9 + $0xc48] sm:$0xff]  ;;  %v3794_v56 = vld [vmem:[#allocation9 + $0xd60] sm:$0xff] }
 0x2c8   :  { %9660 = vmatprep.subr.bf16.mxu0 %v13907_v15  ;;  %v16022_v15 = vpack.c.bf16 %v3338_v2, %v3338_v2  ;;  %v13971_v2 = vcombine.high %v3790_v20, %v3794_v56 }
 0x2c9   :  { %9987 = vmatpush1.bf16.msra.mxu1 %v13900_v13  ;;  %v3021_v31 = vpop.f32.mrb[24].mxu0  ;;  %v3763_v13 = vld [vmem:[#allocation9 + $0xc68] sm:$0xff] }
 0x2ca   :  { %9988 = vmatprep.subr.bf16.mxu1 %v13909_v19  ;;  %v16016_v37 = vadd.f32 %v15998_v0, %v3021_v31  ;;  %v3023_v41 = vpop.f32.mrb[25].mxu0  ;;  %v13925_v0 = vcombine.high %v3743_v38, %v3747_v8  ;;  %v13939_v19 = vcombine.high %v3758_v6, %v3762_v7  ;;  %v13941_v25 = vcombine.high %v3759_v12, %v3763_v13 }
 0x2cb   :  { %v16020_v40 = vadd.f32 %v16000_v22, %v3023_v41  ;;  %v3025_v42 = vpop.f32.mrb[26].mxu0  ;;  %9661 = vmatpush1.bf16.msra.mxu0 %v13906_v28  ;;  %v13922_v22 = vcombine.low %v3742_v34, %v3746_v35  ;;  %v3771_v28 = vld [vmem:[#allocation9 + $0xca8] sm:$0xff]  ;;  %v3778_v34 = vld [vmem:[#allocation9 + $0xce0] sm:$0xff]  ;;  %v13946_v38 = vcombine.low %v3766_v32, %v3770_v21 }
 0x2cc   :  { %v3026_v36 = vpop.f32.mrb[27].mxu0  ;;  %9662 = vmatprep.subr.bf16.mxu0 %v13915_v53  ;;  %v13940_v53 = vcombine.low %v3759_v12, %v3763_v13  ;;  %v13949_v31 = vcombine.high %v3767_v27, %v3771_v28  ;;  %v3775_v35 = vld [vmem:[#allocation9 + $0xcc8] sm:$0xff]  ;;  %v13948_v8 = vcombine.low %v3767_v27, %v3771_v28  ;;  %v13970_v12 = vcombine.low %v3790_v20, %v3794_v56  ;;  %v3806_v21 = vld [vmem:[#allocation9 + $0xdc0] sm:$0xff] }
 0x2cd   :  { %9989 = vmatpush1.bf16.msra.mxu1 %v13908_v5  ;;  %v13938_v5 = vcombine.low %v3758_v6, %v3762_v7  ;;  %v3779_v41 = vld [vmem:[#allocation9 + $0xce8] sm:$0xff]  ;;  %v3786_v36 = vld [vmem:[#allocation9 + $0xd20] sm:$0xff] }
 0x2ce   :  { %9990 = vmatprep.subr.bf16.mxu1 %v13917_v33  ;;  %v3774_v33 = vld [vmem:[#allocation9 + $0xcc0] sm:$0xff]  ;;  %v13957_v42 = vcombine.high %v3775_v35, %v3779_v41 }
 0x2cf   :  { %9663 = vmatpush1.bf16.msra.mxu0 %v13914_v44  ;;  %v13955_v39 = vcombine.high %v3774_v33, %v3778_v34  ;;  %v3782_v44 = vld [vmem:[#allocation9 + $0xd00] sm:$0xff]  ;;  %v13954_v18 = vcombine.low %v3774_v33, %v3778_v34 }
 0x2d0   :  { %9664 = vmatprep.subr.bf16.mxu0 %v13923_v48  ;;  %v3787_v48 = vld [vmem:[#allocation9 + $0xd28] sm:$0xff]  ;;  %v13963_v51 = vcombine.high %v3782_v44, %v3786_v36  ;;  %v3798_v6 = vld [vmem:[#allocation9 + $0xd80] sm:$0xff] }
 0x2d1   :  { %9991 = vmatpush1.bf16.msra.mxu1 %v13916_v46  ;;  %v3783_v46 = vld [vmem:[#allocation9 + $0xd08] sm:$0xff]  ;;  %v3802_v7 = vld [vmem:[#allocation9 + $0xda0] sm:$0xff] }
 0x2d2   :  { %9992 = vmatprep.subr.bf16.mxu1 %v13925_v0  ;;  %v13956_v0 = vcombine.low %v3775_v35, %v3779_v41  ;;  %v13965_v54 = vcombine.high %v3783_v46, %v3787_v48  ;;  %v13978_v34 = vcombine.low %v3798_v6, %v3802_v7  ;;  %v3822_v56 = vld [vmem:[#allocation9 + $0xe40] sm:$0xff] }
 0x2d3   :  { %9665 = vmatpush1.bf16.msra.mxu0 %v13922_v22  ;;  %v3795_v22 = vld [vmem:[#allocation9 + $0xd68] sm:$0xff] }
 0x2d4   :  { %9675 = vmatprep.subr.bf16.mxu0 %v13931_v1  ;;  %v13964_v1 = vcombine.low %v3783_v46, %v3787_v48  ;;  %v13972_v13 = vcombine.low %v3791_v63, %v3795_v22  ;;  %v3815_v48 = vld [vmem:[#allocation9 + $0xe08] sm:$0xff] }
 0x2d5   :  { %9993 = vmatpush1.bf16.msra.mxu1 %v13924_v60  ;;  %v13962_v60 = vcombine.low %v3782_v44, %v3786_v36  ;;  %v3814_v44 = vld [vmem:[#allocation9 + $0xe00] sm:$0xff] }
 0x2d6   :  { %10003 = vmatprep.subr.bf16.mxu1 %v13933_v26  ;;  %9667 = vmatmul.mubr.bf16.vlgmr.msra.gmra.mrb[32].mxu0 %v16022_v15  ;;  %v13973_v26 = vcombine.high %v3791_v63, %v3795_v22  ;;  %v3818_v36 = vld [vmem:[#allocation9 + $0xe20] sm:$0xff]  ;;  %v3823_v22 = vld [vmem:[#allocation9 + $0xe48] sm:$0xff] }
 0x2d7   :  { %9676 = vmatpush1.bf16.msra.mxu0 %v13930_v10  ;;  %9707 = vmatprep.mubr.bf16.mxu0 %v16024_v24  ;;  %v3803_v10 = vld [vmem:[#allocation9 + $0xda8] sm:$0xff]  ;;  %v3826_v63 = vld [vmem:[#allocation9 + $0xe60] sm:$0xff] }
 0x2d8   :  { %9995 = vmatmul.mubr.bf16.vlgmr.msra.gmra.mrb[32].mxu1 %v16022_v15  ;;  %9677 = vmatprep.subr.bf16.mxu0 %v13939_v19  ;;  %v13981_v32 = vcombine.high %v3799_v9, %v3803_v10 }
 0x2d9   :  { %10004 = vmatpush1.bf16.msra.mxu1 %v13932_v17  ;;  %10035 = vmatprep.mubr.bf16.mxu1 %v16024_v24  ;;  %v13979_v17 = vcombine.high %v3798_v6, %v3802_v7  ;;  %v3830_v7 = vld [vmem:[#allocation9 + $0xe80] sm:$0xff] }
 0x2da   :  { %10005 = vmatprep.subr.bf16.mxu1 %v13941_v25  ;;  %v3810_v25 = vld [vmem:[#allocation9 + $0xde0] sm:$0xff] }
 0x2db   :  { %9678 = vmatpush1.bf16.msra.mxu0 %v13938_v5  ;;  %v3807_v5 = vld [vmem:[#allocation9 + $0xdc8] sm:$0xff] }
 0x2dc   :  { %9679 = vmatprep.subr.bf16.mxu0 %v13947_v30 }
 0x2dd   :  { %10006 = vmatpush1.bf16.msra.mxu1 %v13940_v53  ;;  %v3811_v53 = vld [vmem:[#allocation9 + $0xde8] sm:$0xff] }
 0x2de   :  { %10007 = vmatprep.subr.bf16.mxu1 %v13949_v31 }
 0x2df   :  { %9680 = vmatpush1.bf16.msra.mxu0 %v13946_v38  ;;  %v13980_v38 = vcombine.low %v3799_v9, %v3803_v10  ;;  %v3834_v9 = vld [vmem:[#allocation9 + $0xea0] sm:$0xff]  ;;  %v3831_v10 = vld [vmem:[#allocation9 + $0xe88] sm:$0xff] }
 0x2e0   :  { %9681 = vmatprep.subr.bf16.mxu0 %v13955_v39 }
 0x2e1   :  { %10008 = vmatpush1.bf16.msra.mxu1 %v13948_v8  ;;  %v13987_v8 = vcombine.high %v3806_v21, %v3810_v25 }
 0x2e2   :  { %10009 = vmatprep.subr.bf16.mxu1 %v13957_v42  ;;  %v13989_v42 = vcombine.high %v3807_v5, %v3811_v53 }
 0x2e3   :  { %9682 = vmatpush1.bf16.msra.mxu0 %v13954_v18  ;;  %v3819_v18 = vld [vmem:[#allocation9 + $0xe28] sm:$0xff] }
 0x2e4   :  { %9683 = vmatprep.subr.bf16.mxu0 %v13963_v51  ;;  %v13988_v51 = vcombine.low %v3807_v5, %v3811_v53  ;;  %v13997_v20 = vcombine.high %v3815_v48, %v3819_v18  ;;  %v14010_v5 = vcombine.low %v3830_v7, %v3834_v9 }
 0x2e5   :  { %10010 = vmatpush1.bf16.msra.mxu1 %v13956_v0  ;;  %v13986_v0 = vcombine.low %v3806_v21, %v3810_v25  ;;  %v3838_v21 = vld [vmem:[#allocation9 + $0xec0] sm:$0xff] }
 0x2e6   :  { %10011 = vmatprep.subr.bf16.mxu1 %v13965_v54  ;;  %v13995_v54 = vcombine.high %v3814_v44, %v3818_v36  ;;  %v3842_v25 = vld [vmem:[#allocation9 + $0xee0] sm:$0xff] }
 0x2e7   :  { %9684 = vmatpush1.bf16.msra.mxu0 %v13962_v60  ;;  %v3827_v60 = vld [vmem:[#allocation9 + $0xe68] sm:$0xff] }
 0x2e8   :  { %9685 = vmatprep.subr.bf16.mxu0 %v13971_v2  ;;  %v13996_v2 = vcombine.low %v3815_v48, %v3819_v18  ;;  %v14005_v6 = vcombine.high %v3823_v22, %v3827_v60  ;;  %v3854_v48 = vld [vmem:[#allocation9 + $0xf40] sm:$0xff] }
 0x2e9   :  { %10012 = vmatpush1.bf16.msra.mxu1 %v13964_v1  ;;  %v3144_v19 = vpop.f32.mrb[28].mxu0  ;;  %v13994_v1 = vcombine.low %v3814_v44, %v3818_v36  ;;  %v16035_v36 = vsub.s32 6, %v15918_v4  ;;  %v3858_v18 = vld [vmem:[#allocation9 + $0xf60] sm:$0xff] }
 0x2ea   :  { %10013 = vmatprep.subr.bf16.mxu1 %v13973_v26  ;;  %v3146_v28 = vpop.f32.mrb[29].mxu0  ;;  %v14003_v26 = vcombine.high %v3822_v56, %v3826_v63 }
 0x2eb   :  { %v3103_v27 = vpop.f32.mrb[28].mxu1  ;;  %v3148_v33 = vpop.f32.mrb[30].mxu0  ;;  %9686 = vmatpush1.bf16.msra.mxu0 %v13970_v12  ;;  %v3835_v12 = vld [vmem:[#allocation9 + $0xea8] sm:$0xff] }
 0x2ec   :  { %v16030_v30 = vadd.f32 %v3144_v19, %v3103_v27  ;;  %v3105_v31 = vpop.f32.mrb[29].mxu1  ;;  %v3149_v41 = vpop.f32.mrb[31].mxu0  ;;  %9687 = vmatprep.subr.bf16.mxu0 %v13979_v17  ;;  %v14004_v17 = vcombine.low %v3823_v22, %v3827_v60  ;;  %v14011_v19 = vcombine.high %v3830_v7, %v3834_v9  ;;  %v3839_v27 = vld [vmem:[#allocation9 + $0xec8] sm:$0xff]  ;;  %v14012_v53 = vcombine.low %v3831_v10, %v3835_v12  ;;  %v3862_v60 = vld [vmem:[#allocation9 + $0xf80] sm:$0xff] }
 0x2ed   :  { %v16032_v35 = vadd.f32 %v3146_v28, %v3105_v31  ;;  %10014 = vmatpush1.bf16.msra.mxu1 %v13972_v13  ;;  %v3107_v39 = vpop.f32.mrb[30].mxu1  ;;  %v14002_v13 = vcombine.low %v3822_v56, %v3826_v63  ;;  %v3843_v28 = vld [vmem:[#allocation9 + $0xee8] sm:$0xff]  ;;  %v14019_v31 = vcombine.high %v3838_v21, %v3842_v25  ;;  %v3850_v41 = vld [vmem:[#allocation9 + $0xf20] sm:$0xff]  ;;  %v14035_v63 = vcombine.high %v3854_v48, %v3858_v18 }
 0x2ee   :  { %10015 = vmatprep.subr.bf16.mxu1 %v13981_v32  ;;  %v3108_v46 = vpop.f32.mrb[31].mxu1  ;;  %v14013_v32 = vcombine.high %v3831_v10, %v3835_v12  ;;  %v14021_v33 = vcombine.high %v3839_v27, %v3843_v28  ;;  %v14018_v39 = vcombine.low %v3838_v21, %v3842_v25  ;;  %v3233_v22 = vrot.slane %v16008_v23, %v16035_v36  ;;  %v3870_v23 = vld [vmem:[#allocation9 + $0xfc0] sm:$0xff] }
 0x2ef   :  { %9688 = vmatpush1.bf16.msra.mxu0 %v13978_v34  ;;  %v3846_v34 = vld [vmem:[#allocation9 + $0xf00] sm:$0xff]  ;;  %v14034_v7 = vcombine.low %v3854_v48, %v3858_v18 }
 0x2f0   :  { %9689 = vmatprep.subr.bf16.mxu0 %v13987_v8  ;;  %v3851_v8 = vld [vmem:[#allocation9 + $0xf28] sm:$0xff]  ;;  %v14027_v44 = vcombine.high %v3846_v34, %v3850_v41  ;;  %v3292_v12 = vadd.f32 %v3233_v22, %v15940_v47  ;;  %v3894_v22 = vld [vmem:[#allocation9 + $0x1080] sm:$0xff] }
 0x2f1   :  { %10016 = vmatpush1.bf16.msra.mxu1 %v13980_v38  ;;  %v3847_v38 = vld [vmem:[#allocation9 + $0xf08] sm:$0xff] }
 0x2f2   :  { %10017 = vmatprep.subr.bf16.mxu1 %v13989_v42  ;;  %v14020_v42 = vcombine.low %v3839_v27, %v3843_v28  ;;  %v14029_v46 = vcombine.high %v3847_v38, %v3851_v8  ;;  %v14028_v56 = vcombine.low %v3847_v38, %v3851_v8  ;;  %vm3308_vm7 = vcmp.gt.f32.partialorder %v3292_v12, 0.0  ;;  %v3879_v47 = vld [vmem:[#allocation9 + $0x1008] sm:$0xff] }
 0x2f3   :  { %9690 = vmatpush1.bf16.msra.mxu0 %v13986_v0  ;;  %v3855_v0 = vld [vmem:[#allocation9 + $0xf48] sm:$0xff] }
 0x2f4   :  { %9691 = vmatprep.subr.bf16.mxu0 %v13995_v54  ;;  %v14026_v54 = vcombine.low %v3846_v34, %v3850_v41  ;;  %v3883_v34 = vld [vmem:[#allocation9 + $0x1028] sm:$0xff] }
 0x2f5   :  { %10018 = vmatpush1.bf16.msra.mxu1 %v13988_v51  ;;  %v3859_v51 = vld [vmem:[#allocation9 + $0xf68] sm:$0xff] }
 0x2f6   :  { %10019 = vmatprep.subr.bf16.mxu1 %v13997_v20  ;;  %v16037_v20 = vld [vmem:[#allocation8 + $0x8] sm:$0xff]  ;;  %v14037_v4 = vcombine.high %v3855_v0, %v3859_v51  ;;  %v14036_v9 = vcombine.low %v3855_v0, %v3859_v51  ;;  %v3887_v0 = vld [vmem:[#allocation9 + $0x1048] sm:$0xff] }
 0x2f7   :  { %9692 = vmatpush1.bf16.msra.mxu0 %v13994_v1  ;;  %v3866_v1 = vld [vmem:[#allocation9 + $0xfa0] sm:$0xff]  ;;  %v3891_v51 = vld [vmem:[#allocation9 + $0x1068] sm:$0xff] }
 0x2f8   :  { %9693 = vmatprep.subr.bf16.mxu0 %v14003_v26  ;;  %v3867_v26 = vld [vmem:[#allocation9 + $0xfa8] sm:$0xff]  ;;  %v14043_v10 = vcombine.high %v3862_v60, %v3866_v1  ;;  %v14042_v25 = vcombine.low %v3862_v60, %v3866_v1  ;;  %v14069_v1 = vcombine.high %v3887_v0, %v3891_v51 }
 0x2f9   :  { %10020 = vmatpush1.bf16.msra.mxu1 %v13996_v2  ;;  %v3863_v2 = vld [vmem:[#allocation9 + $0xf88] sm:$0xff] }
 0x2fa   :  { %10021 = vmatprep.subr.bf16.mxu1 %v14005_v6  ;;  %v3245_v6 = vrot.slane %v16037_v20, %v15921_v14  ;;  %v14044_v27 = vcombine.low %v3863_v2, %v3867_v26 }
 0x2fb   :  { %9694 = vmatpush1.bf16.msra.mxu0 %v14002_v13  ;;  %v14045_v13 = vcombine.high %v3863_v2, %v3867_v26  ;;  %v3895_v2 = vld [vmem:[#allocation9 + $0x1088] sm:$0xff] }
 0x2fc   :  { %9695 = vmatprep.subr.bf16.mxu0 %v14011_v19  ;;  %v3871_v19 = vld [vmem:[#allocation9 + $0xfc8] sm:$0xff]  ;;  %v3295_v21 = vadd.f32 %v3245_v6, %v15972_v55 }
 0x2fd   :  { %10022 = vmatpush1.bf16.msra.mxu1 %v14004_v17  ;;  %v3874_v17 = vld [vmem:[#allocation9 + $0xfe0] sm:$0xff]  ;;  %v3899_v26 = vld [vmem:[#allocation9 + $0x10a8] sm:$0xff] }
 0x2fe   :  { %10023 = vmatprep.subr.bf16.mxu1 %v14013_v32  ;;  %v3875_v32 = vld [vmem:[#allocation9 + $0xfe8] sm:$0xff]  ;;  %v14051_v28 = vcombine.high %v3870_v23, %v3874_v17  ;;  %v3327_v41 = vmul.f32 0.01, %v3295_v21  ;;  %v14050_v38 = vcombine.low %v3870_v23, %v3874_v17  ;;  %vm3311_vm8 = vcmp.gt.f32.partialorder %v3295_v21, 0.0 }
 0x2ff   :  { %9696 = vmatpush1.bf16.msra.mxu0 %v14010_v5  ;;  %v3324_v5 = vmul.f32 0.01, %v3292_v12  ;;  %v14052_v55 = vcombine.low %v3871_v19, %v3875_v32  ;;  %v3903_v23 = vld [vmem:[#allocation9 + $0x10c8] sm:$0xff] }
 0x300   :  { %9697 = vmatprep.subr.bf16.mxu0 %v14019_v31  ;;  %v3878_v31 = vld [vmem:[#allocation9 + $0x1000] sm:$0xff]  ;;  %v3343_v48 = vsel %vm3311_vm8, %v3295_v21, %v3327_v41  ;;  %v3907_v17 = vld [vmem:[#allocation9 + $0x10e8] sm:$0xff] }
 0x301   :  { %10024 = vmatpush1.bf16.msra.mxu1 %v14012_v53  ;;  %v14053_v53 = vcombine.high %v3871_v19, %v3875_v32  ;;  %v16047_v60 = vpack.c.bf16 %v3343_v48, %v3343_v48  ;;  %v14076_v32 = vcombine.low %v3895_v2, %v3899_v26  ;;  %v3918_v41 = vld [vmem:[#allocation9 + $0x1140] sm:$0xff] }
 0x302   :  { %10025 = vmatprep.subr.bf16.mxu1 %v14021_v33  ;;  %v3882_v33 = vld [vmem:[#allocation9 + $0x1020] sm:$0xff] }
 0x303   :  { %9698 = vmatpush1.bf16.msra.mxu0 %v14018_v39  ;;  %v14059_v8 = vcombine.high %v3878_v31, %v3882_v33  ;;  %v3340_v39 = vsel %vm3308_vm7, %v3292_v12, %v3324_v5  ;;  %v14058_v18 = vcombine.low %v3878_v31, %v3882_v33  ;;  %v3902_v12 = vld [vmem:[#allocation9 + $0x10c0] sm:$0xff]  ;;  %v3911_v5 = vld [vmem:[#allocation9 + $0x1108] sm:$0xff]  ;;  %v14084_v33 = vcombine.low %v3903_v23, %v3907_v17 }
 0x304   :  { %9699 = vmatprep.subr.bf16.mxu0 %v14027_v44  ;;  %v3886_v44 = vld [vmem:[#allocation9 + $0x1040] sm:$0xff] }
 0x305   :  { %10026 = vmatpush1.bf16.msra.mxu1 %v14020_v42  ;;  %v14061_v42 = vcombine.high %v3879_v47, %v3883_v34  ;;  %v3926_v48 = vld [vmem:[#allocation9 + $0x1180] sm:$0xff] }
 0x306   :  { %10027 = vmatprep.subr.bf16.mxu1 %v14029_v46  ;;  %v3890_v46 = vld [vmem:[#allocation9 + $0x1060] sm:$0xff] }
 0x307   :  { %9700 = vmatpush1.bf16.msra.mxu0 %v14026_v54  ;;  %v16045_v54 = vpack.c.bf16 %v3340_v39, %v3340_v39  ;;  %v14066_v6 = vcombine.low %v3886_v44, %v3890_v46 }
 0x308   :  { %9701 = vmatprep.subr.bf16.mxu0 %v14035_v63  ;;  %v14067_v63 = vcombine.high %v3886_v44, %v3890_v46 }
 0x309   :  { %10028 = vmatpush1.bf16.msra.mxu1 %v14028_v56  ;;  %v14060_v56 = vcombine.low %v3879_v47, %v3883_v34 }
 0x30a   :  { %10029 = vmatprep.subr.bf16.mxu1 %v14037_v4  ;;  %v3898_v4 = vld [vmem:[#allocation9 + $0x10a0] sm:$0xff] }
 0x30b   :  { %9702 = vmatpush1.bf16.msra.mxu0 %v14034_v7  ;;  %v14068_v7 = vcombine.low %v3887_v0, %v3891_v51  ;;  %v14074_v19 = vcombine.low %v3894_v22, %v3898_v4  ;;  %v3927_v0 = vld [vmem:[#allocation9 + $0x1188] sm:$0xff] }
 0x30c   :  { %9703 = vmatprep.subr.bf16.mxu0 %v14043_v10  ;;  %v14077_v10 = vcombine.high %v3895_v2, %v3899_v26  ;;  %v3931_v51 = vld [vmem:[#allocation9 + $0x11a8] sm:$0xff]  ;;  %v3938_v2 = vld [vmem:[#allocation9 + $0x11e0] sm:$0xff] }
 0x30d   :  { %10030 = vmatpush1.bf16.msra.mxu1 %v14036_v9  ;;  %v14075_v9 = vcombine.high %v3894_v22, %v3898_v4  ;;  %v14109_v4 = vcombine.high %v3927_v0, %v3931_v51  ;;  %v3935_v26 = vld [vmem:[#allocation9 + $0x11c8] sm:$0xff] }
 0x30e   :  { %10031 = vmatprep.subr.bf16.mxu1 %v14045_v13  ;;  %v3906_v13 = vld [vmem:[#allocation9 + $0x10e0] sm:$0xff] }
 0x30f   :  { %9704 = vmatpush1.bf16.msra.mxu0 %v14042_v25  ;;  %v14083_v21 = vcombine.high %v3902_v12, %v3906_v13  ;;  %v14085_v25 = vcombine.high %v3903_v23, %v3907_v17  ;;  %v14082_v31 = vcombine.low %v3902_v12, %v3906_v13  ;;  %v3942_v13 = vld [vmem:[#allocation9 + $0x1200] sm:$0xff]  ;;  %v3943_v17 = vld [vmem:[#allocation9 + $0x1208] sm:$0xff] }
 0x310   :  { %9705 = vmatprep.subr.bf16.mxu0 %v14051_v28  ;;  %v3914_v28 = vld [vmem:[#allocation9 + $0x1120] sm:$0xff] }
 0x311   :  { %10032 = vmatpush1.bf16.msra.mxu1 %v14044_v27  ;;  %v3910_v27 = vld [vmem:[#allocation9 + $0x1100] sm:$0xff] }
 0x312   :  { %10033 = vmatprep.subr.bf16.mxu1 %v14053_v53  ;;  %v3915_v53 = vld [vmem:[#allocation9 + $0x1128] sm:$0xff]  ;;  %v14091_v47 = vcombine.high %v3910_v27, %v3914_v28  ;;  %v14090_v39 = vcombine.low %v3910_v27, %v3914_v28  ;;  %v3946_v23 = vld [vmem:[#allocation9 + $0x1220] sm:$0xff] }
 0x313   :  { %9706 = vmatpush1.bf16.msra.mxu0 %v14050_v38  ;;  %v14093_v34 = vcombine.high %v3911_v5, %v3915_v53  ;;  %v3922_v38 = vld [vmem:[#allocation9 + $0x1160] sm:$0xff] }
 0x314   :  { %9716 = vmatprep.subr.bf16.mxu0 %v14059_v8  ;;  %v3923_v8 = vld [vmem:[#allocation9 + $0x1168] sm:$0xff]  ;;  %v14099_v44 = vcombine.high %v3918_v41, %v3922_v38  ;;  %v3950_v28 = vld [vmem:[#allocation9 + $0x1240] sm:$0xff] }
 0x315   :  { %10034 = vmatpush1.bf16.msra.mxu1 %v14052_v55  ;;  %v3919_v55 = vld [vmem:[#allocation9 + $0x1148] sm:$0xff] }
 0x316   :  { %10044 = vmatprep.subr.bf16.mxu1 %v14061_v42  ;;  %9708 = vmatmul.mubr.bf16.vlgmr.msra.gmra.mrb[32].mxu0 %v16045_v54  ;;  %v14092_v42 = vcombine.low %v3911_v5, %v3915_v53  ;;  %v14101_v46 = vcombine.high %v3919_v55, %v3923_v8  ;;  %v3954_v5 = vld [vmem:[#allocation9 + $0x1260] sm:$0xff]  ;;  %v3951_v53 = vld [vmem:[#allocation9 + $0x1248] sm:$0xff] }
 0x317   :  { %9717 = vmatpush1.bf16.msra.mxu0 %v14058_v18  ;;  %9748 = vmatprep.mubr.bf16.mxu0 %v16047_v60  ;;  %v3930_v18 = vld [vmem:[#allocation9 + $0x11a0] sm:$0xff] }
 0x318   :  { %10036 = vmatmul.mubr.bf16.vlgmr.msra.gmra.mrb[32].mxu1 %v16045_v54  ;;  %9718 = vmatprep.subr.bf16.mxu0 %v14067_v63  ;;  %v14100_v63 = vcombine.low %v3919_v55, %v3923_v8  ;;  %v14107_v22 = vcombine.high %v3926_v48, %v3930_v18  ;;  %v3962_v55 = vld [vmem:[#allocation9 + $0x12a0] sm:$0xff]  ;;  %v3959_v8 = vld [vmem:[#allocation9 + $0x1288] sm:$0xff] }
 0x319   :  { %10045 = vmatpush1.bf16.msra.mxu1 %v14060_v56  ;;  %10076 = vmatprep.mubr.bf16.mxu1 %v16047_v60  ;;  %v14098_v56 = vcombine.low %v3918_v41, %v3922_v38  ;;  %v3958_v38 = vld [vmem:[#allocation9 + $0x1280] sm:$0xff] }
 0x31a   :  { %10046 = vmatprep.subr.bf16.mxu1 %v14069_v1  ;;  %v3934_v1 = vld [vmem:[#allocation9 + $0x11c0] sm:$0xff] }
 0x31b   :  { %9719 = vmatpush1.bf16.msra.mxu0 %v14066_v6  ;;  %v3939_v6 = vld [vmem:[#allocation9 + $0x11e8] sm:$0xff] }
 0x31c   :  { %9720 = vmatprep.subr.bf16.mxu0 %v14075_v9  ;;  %v14108_v9 = vcombine.low %v3927_v0, %v3931_v51  ;;  %v14117_v12 = vcombine.high %v3935_v26, %v3939_v6  ;;  %v3970_v0 = vld [vmem:[#allocation9 + $0x12e0] sm:$0xff]  ;;  %v3967_v51 = vld [vmem:[#allocation9 + $0x12c8] sm:$0xff] }
 0x31d   :  { %10047 = vmatpush1.bf16.msra.mxu1 %v14068_v7  ;;  %v14106_v7 = vcombine.low %v3926_v48, %v3930_v18  ;;  %v3966_v18 = vld [vmem:[#allocation9 + $0x12c0] sm:$0xff] }
 0x31e   :  { %10048 = vmatprep.subr.bf16.mxu1 %v14077_v10  ;;  %v14115_v10 = vcombine.high %v3934_v1, %v3938_v2 }
 0x31f   :  { %9721 = vmatpush1.bf16.msra.mxu0 %v14074_v19  ;;  %v3947_v19 = vld [vmem:[#allocation9 + $0x1228] sm:$0xff] }
 0x320   :  { %9722 = vmatprep.subr.bf16.mxu0 %v14083_v21  ;;  %v14116_v21 = vcombine.low %v3935_v26, %v3939_v6  ;;  %v14125_v27 = vcombine.high %v3943_v17, %v3947_v19  ;;  %v3978_v26 = vld [vmem:[#allocation9 + $0x1320] sm:$0xff]  ;;  %v3975_v6 = vld [vmem:[#allocation9 + $0x1308] sm:$0xff] }
 0x321   :  { %10049 = vmatpush1.bf16.msra.mxu1 %v14076_v32  ;;  %v14114_v32 = vcombine.low %v3934_v1, %v3938_v2  ;;  %v3974_v2 = vld [vmem:[#allocation9 + $0x1300] sm:$0xff] }
 0x322   :  { %10050 = vmatprep.subr.bf16.mxu1 %v14085_v25  ;;  %v14123_v25 = vcombine.high %v3942_v13, %v3946_v23 }
 0x323   :  { %9723 = vmatpush1.bf16.msra.mxu0 %v14082_v31  ;;  %v3955_v31 = vld [vmem:[#allocation9 + $0x1268] sm:$0xff] }
 0x324   :  { %9724 = vmatprep.subr.bf16.mxu0 %v14091_v47  ;;  %v14124_v47 = vcombine.low %v3943_v17, %v3947_v19  ;;  %v14133_v41 = vcombine.high %v3951_v53, %v3955_v31  ;;  %v3986_v17 = vld [vmem:[#allocation9 + $0x1360] sm:$0xff]  ;;  %v3983_v19 = vld [vmem:[#allocation9 + $0x1348] sm:$0xff] }
 0x325   :  { %10051 = vmatpush1.bf16.msra.mxu1 %v14084_v33  ;;  %v14122_v33 = vcombine.low %v3942_v13, %v3946_v23  ;;  %v3982_v23 = vld [vmem:[#allocation9 + $0x1340] sm:$0xff] }
 0x326   :  { %10052 = vmatprep.subr.bf16.mxu1 %v14093_v34  ;;  %v14131_v34 = vcombine.high %v3950_v28, %v3954_v5 }
 0x327   :  { %9725 = vmatpush1.bf16.msra.mxu0 %v14090_v39  ;;  %v3963_v39 = vld [vmem:[#allocation9 + $0x12a8] sm:$0xff] }
 0x328   :  { %9726 = vmatprep.subr.bf16.mxu0 %v14099_v44  ;;  %v14132_v44 = vcombine.low %v3951_v53, %v3955_v31  ;;  %v14141_v48 = vcombine.high %v3959_v8, %v3963_v39  ;;  %v3990_v53 = vld [vmem:[#allocation9 + $0x1380] sm:$0xff] }
 0x329   :  { %10053 = vmatpush1.bf16.msra.mxu1 %v14092_v42  ;;  %v14130_v42 = vcombine.low %v3950_v28, %v3954_v5  ;;  %v3241_v28 = vrot.slane %v16037_v20, %v15945_v57  ;;  %v3994_v31 = vld [vmem:[#allocation9 + $0x13a0] sm:$0xff] }
 0x32a   :  { %10054 = vmatprep.subr.bf16.mxu1 %v14101_v46  ;;  %v14139_v46 = vcombine.high %v3958_v38, %v3962_v55 }
 0x32b   :  { %9727 = vmatpush1.bf16.msra.mxu0 %v14098_v56  ;;  %v3971_v56 = vld [vmem:[#allocation9 + $0x12e8] sm:$0xff] }
 0x32c   :  { %9728 = vmatprep.subr.bf16.mxu0 %v14107_v22  ;;  %v14140_v22 = vcombine.low %v3959_v8, %v3963_v39  ;;  %v14149_v1 = vcombine.high %v3967_v51, %v3971_v56  ;;  %v3294_v8 = vadd.f32 %v3241_v28, %v15969_v50  ;;  %v4007_v50 = vld [vmem:[#allocation9 + $0x1408] sm:$0xff]  ;;  %v4022_v28 = vld [vmem:[#allocation9 + $0x1480] sm:$0xff] }
 0x32d   :  { %10055 = vmatpush1.bf16.msra.mxu1 %v14100_v63  ;;  %v14138_v63 = vcombine.low %v3958_v38, %v3962_v55  ;;  %v14171_v55 = vcombine.high %v3990_v53, %v3994_v31 }
 0x32e   :  { %10056 = vmatprep.subr.bf16.mxu1 %v14109_v4  ;;  %v14147_v4 = vcombine.high %v3966_v18, %v3970_v0  ;;  %vm3310_vm9 = vcmp.gt.f32.partialorder %v3294_v8, 0.0 }
 0x32f   :  { %9729 = vmatpush1.bf16.msra.mxu0 %v14106_v7  ;;  %v3979_v7 = vld [vmem:[#allocation9 + $0x1328] sm:$0xff] }
 0x330   :  { %9730 = vmatprep.subr.bf16.mxu0 %v14115_v10  ;;  %v14148_v10 = vcombine.low %v3967_v51, %v3971_v56  ;;  %v14157_v13 = vcombine.high %v3975_v6, %v3979_v7 }
 0x331   :  { %10057 = vmatpush1.bf16.msra.mxu1 %v14108_v9  ;;  %v14146_v9 = vcombine.low %v3966_v18, %v3970_v0  ;;  %v14170_v0 = vcombine.low %v3990_v53, %v3994_v31 }
 0x332   :  { %10058 = vmatprep.subr.bf16.mxu1 %v14117_v12  ;;  %v14155_v12 = vcombine.high %v3974_v2, %v3978_v26 }
 0x333   :  { %9731 = vmatpush1.bf16.msra.mxu0 %v14114_v32  ;;  %v3987_v32 = vld [vmem:[#allocation9 + $0x1368] sm:$0xff] }
 0x334   :  { %9732 = vmatprep.subr.bf16.mxu0 %v14123_v25  ;;  %v14156_v25 = vcombine.low %v3975_v6, %v3979_v7  ;;  %v14165_v5 = vcombine.high %v3983_v19, %v3987_v32  ;;  %v14164_v38 = vcombine.low %v3983_v19, %v3987_v32  ;;  %v4015_v19 = vld [vmem:[#allocation9 + $0x1448] sm:$0xff] }
 0x335   :  { %10059 = vmatpush1.bf16.msra.mxu1 %v14116_v21  ;;  %v14154_v21 = vcombine.low %v3974_v2, %v3978_v26  ;;  %v4011_v2 = vld [vmem:[#allocation9 + $0x1428] sm:$0xff] }
 0x336   :  { %10060 = vmatprep.subr.bf16.mxu1 %v14125_v27  ;;  %v14163_v27 = vcombine.high %v3982_v23, %v3986_v17  ;;  %v4019_v32 = vld [vmem:[#allocation9 + $0x1468] sm:$0xff] }
 0x337   :  { %9733 = vmatpush1.bf16.msra.mxu0 %v14122_v33  ;;  %v3991_v33 = vld [vmem:[#allocation9 + $0x1388] sm:$0xff]  ;;  %v14197_v31 = vcombine.high %v4015_v19, %v4019_v32 }
 0x338   :  { %9734 = vmatprep.subr.bf16.mxu0 %v14131_v34  ;;  %v3253_v34 = vrot.slane %v16037_v20, %v15948_v61 }
 0x339   :  { %10061 = vmatpush1.bf16.msra.mxu1 %v14124_v47  ;;  %v3995_v47 = vld [vmem:[#allocation9 + $0x13a8] sm:$0xff] }
 0x33a   :  { %10062 = vmatprep.subr.bf16.mxu1 %v14133_v41  ;;  %v14162_v41 = vcombine.low %v3982_v23, %v3986_v17  ;;  %v14173_v39 = vcombine.high %v3991_v33, %v3995_v47  ;;  %v3297_v18 = vadd.f32 %v3253_v34, %v15988_v29  ;;  %v14172_v51 = vcombine.low %v3991_v33, %v3995_v47  ;;  %v4023_v33 = vld [vmem:[#allocation9 + $0x1488] sm:$0xff] }
 0x33b   :  { %9735 = vmatpush1.bf16.msra.mxu0 %v14130_v42  ;;  %v3998_v42 = vld [vmem:[#allocation9 + $0x13c0] sm:$0xff]  ;;  %v4027_v47 = vld [vmem:[#allocation9 + $0x14a8] sm:$0xff] }
 0x33c   :  { %9736 = vmatprep.subr.bf16.mxu0 %v14139_v46  ;;  %v3999_v46 = vld [vmem:[#allocation9 + $0x13c8] sm:$0xff]  ;;  %v3329_v26 = vmul.f32 0.01, %v3297_v18  ;;  %vm3313_vm10 = vcmp.gt.f32.partialorder %v3297_v18, 0.0 }
 0x33d   :  { %10063 = vmatpush1.bf16.msra.mxu1 %v14132_v44  ;;  %v4002_v44 = vld [vmem:[#allocation9 + $0x13e0] sm:$0xff] }
 0x33e   :  { %10064 = vmatprep.subr.bf16.mxu1 %v14141_v48  ;;  %v4003_v48 = vld [vmem:[#allocation9 + $0x13e8] sm:$0xff]  ;;  %v14179_v56 = vcombine.high %v3998_v42, %v4002_v44  ;;  %v14178_v6 = vcombine.low %v3998_v42, %v4002_v44  ;;  %v3345_v23 = vsel %vm3313_vm10, %v3297_v18, %v3329_v26  ;;  %v4046_v26 = vld [vmem:[#allocation9 + $0x1540] sm:$0xff] }
 0x33f   :  { %9737 = vmatpush1.bf16.msra.mxu0 %v14138_v63  ;;  %v3326_v63 = vmul.f32 0.01, %v3294_v8  ;;  %v14180_v29 = vcombine.low %v3999_v46, %v4003_v48  ;;  %v16061_v53 = vpack.c.bf16 %v3345_v23, %v3345_v23  ;;  %v4031_v42 = vld [vmem:[#allocation9 + $0x14c8] sm:$0xff]  ;;  %v4054_v23 = vld [vmem:[#allocation9 + $0x1580] sm:$0xff] }
 0x340   :  { %9738 = vmatprep.subr.bf16.mxu0 %v14147_v4  ;;  %v4006_v4 = vld [vmem:[#allocation9 + $0x1400] sm:$0xff]  ;;  %v4035_v44 = vld [vmem:[#allocation9 + $0x14e8] sm:$0xff] }
 0x341   :  { %10065 = vmatpush1.bf16.msra.mxu1 %v14140_v22  ;;  %v14181_v22 = vcombine.high %v3999_v46, %v4003_v48  ;;  %v14204_v48 = vcombine.low %v4023_v33, %v4027_v47 }
 0x342   :  { %10066 = vmatprep.subr.bf16.mxu1 %v14149_v1  ;;  %v4010_v1 = vld [vmem:[#allocation9 + $0x1420] sm:$0xff] }
 0x343   :  { %9739 = vmatpush1.bf16.msra.mxu0 %v14146_v9  ;;  %v14187_v7 = vcombine.high %v4006_v4, %v4010_v1  ;;  %v3342_v9 = vsel %vm3310_vm9, %v3294_v8, %v3326_v63  ;;  %v14186_v17 = vcombine.low %v4006_v4, %v4010_v1  ;;  %v4030_v8 = vld [vmem:[#allocation9 + $0x14c0] sm:$0xff]  ;;  %v4039_v63 = vld [vmem:[#allocation9 + $0x1508] sm:$0xff]  ;;  %v14212_v1 = vcombine.low %v4031_v42, %v4035_v44 }
 0x344   :  { %9740 = vmatprep.subr.bf16.mxu0 %v14155_v12  ;;  %v4014_v12 = vld [vmem:[#allocation9 + $0x1440] sm:$0xff] }
 0x345   :  { %10067 = vmatpush1.bf16.msra.mxu1 %v14148_v10  ;;  %v14189_v10 = vcombine.high %v4007_v50, %v4011_v2 }
 0x346   :  { %10068 = vmatprep.subr.bf16.mxu1 %v14157_v13  ;;  %v4018_v13 = vld [vmem:[#allocation9 + $0x1460] sm:$0xff] }
 0x347   :  { %9741 = vmatpush1.bf16.msra.mxu0 %v14154_v21  ;;  %v16059_v21 = vpack.c.bf16 %v3342_v9, %v3342_v9  ;;  %v14194_v34 = vcombine.low %v4014_v12, %v4018_v13 }
 0x348   :  { %9742 = vmatprep.subr.bf16.mxu0 %v14163_v27  ;;  %v14195_v27 = vcombine.high %v4014_v12, %v4018_v13 }
 0x349   :  { %10069 = vmatpush1.bf16.msra.mxu1 %v14156_v25  ;;  %v14188_v25 = vcombine.low %v4007_v50, %v4011_v2 }
 0x34a   :  { %10070 = vmatprep.subr.bf16.mxu1 %v14165_v5  ;;  %v4026_v5 = vld [vmem:[#allocation9 + $0x14a0] sm:$0xff] }
 0x34b   :  { %9743 = vmatpush1.bf16.msra.mxu0 %v14162_v41  ;;  %v14196_v41 = vcombine.low %v4015_v19, %v4019_v32  ;;  %v14202_v46 = vcombine.low %v4022_v28, %v4026_v5  ;;  %v4055_v19 = vld [vmem:[#allocation9 + $0x1588] sm:$0xff] }
 0x34c   :  { %9744 = vmatprep.subr.bf16.mxu0 %v14171_v55  ;;  %v14205_v55 = vcombine.high %v4023_v33, %v4027_v47  ;;  %v4059_v32 = vld [vmem:[#allocation9 + $0x15a8] sm:$0xff]  ;;  %v4066_v33 = vld [vmem:[#allocation9 + $0x15e0] sm:$0xff] }
 0x34d   :  { %10071 = vmatpush1.bf16.msra.mxu1 %v14164_v38  ;;  %v14203_v38 = vcombine.high %v4022_v28, %v4026_v5  ;;  %v14237_v5 = vcombine.high %v4055_v19, %v4059_v32  ;;  %v4063_v47 = vld [vmem:[#allocation9 + $0x15c8] sm:$0xff] }
 0x34e   :  { %10072 = vmatprep.subr.bf16.mxu1 %v14173_v39  ;;  %v4034_v39 = vld [vmem:[#allocation9 + $0x14e0] sm:$0xff] }
 0x34f   :  { %9745 = vmatpush1.bf16.msra.mxu0 %v14170_v0  ;;  %v14211_v18 = vcombine.high %v4030_v8, %v4034_v39  ;;  %v14213_v0 = vcombine.high %v4031_v42, %v4035_v44  ;;  %v14210_v4 = vcombine.low %v4030_v8, %v4034_v39  ;;  %v4070_v39 = vld [vmem:[#allocation9 + $0x1600] sm:$0xff]  ;;  %v4071_v44 = vld [vmem:[#allocation9 + $0x1608] sm:$0xff] }
 0x350   :  { %9746 = vmatprep.subr.bf16.mxu0 %v14179_v56  ;;  %v4042_v56 = vld [vmem:[#allocation9 + $0x1520] sm:$0xff] }
 0x351   :  { %10073 = vmatpush1.bf16.msra.mxu1 %v14172_v51  ;;  %v4038_v51 = vld [vmem:[#allocation9 + $0x1500] sm:$0xff] }
 0x352   :  { %10074 = vmatprep.subr.bf16.mxu1 %v14181_v22  ;;  %v4043_v22 = vld [vmem:[#allocation9 + $0x1528] sm:$0xff]  ;;  %v14219_v50 = vcombine.high %v4038_v51, %v4042_v56  ;;  %v14218_v9 = vcombine.low %v4038_v51, %v4042_v56  ;;  %v4074_v42 = vld [vmem:[#allocation9 + $0x1620] sm:$0xff] }
 0x353   :  { %9747 = vmatpush1.bf16.msra.mxu0 %v14178_v6  ;;  %v14221_v2 = vcombine.high %v4039_v63, %v4043_v22  ;;  %v4050_v6 = vld [vmem:[#allocation9 + $0x1560] sm:$0xff] }
 0x354   :  { %9757 = vmatprep.subr.bf16.mxu0 %v14187_v7  ;;  %v4051_v7 = vld [vmem:[#allocation9 + $0x1568] sm:$0xff]  ;;  %v14227_v12 = vcombine.high %v4046_v26, %v4050_v6  ;;  %v4078_v56 = vld [vmem:[#allocation9 + $0x1640] sm:$0xff] }
 0x355   :  { %10075 = vmatpush1.bf16.msra.mxu1 %v14180_v29  ;;  %v4047_v29 = vld [vmem:[#allocation9 + $0x1548] sm:$0xff] }
 0x356   :  { %10085 = vmatprep.subr.bf16.mxu1 %v14189_v10  ;;  %9749 = vmatmul.mubr.bf16.vlgmr.msra.gmra.mrb[32].mxu0 %v16059_v21  ;;  %v14220_v10 = vcombine.low %v4039_v63, %v4043_v22  ;;  %v14229_v13 = vcombine.high %v4047_v29, %v4051_v7  ;;  %v4082_v63 = vld [vmem:[#allocation9 + $0x1660] sm:$0xff]  ;;  %v4079_v22 = vld [vmem:[#allocation9 + $0x1648] sm:$0xff] }
 0x357   :  { %9758 = vmatpush1.bf16.msra.mxu0 %v14186_v17  ;;  %9789 = vmatprep.mubr.bf16.mxu0 %v16061_v53  ;;  %v4058_v17 = vld [vmem:[#allocation9 + $0x15a0] sm:$0xff] }
 0x358   :  { %10077 = vmatmul.mubr.bf16.vlgmr.msra.gmra.mrb[32].mxu1 %v16059_v21  ;;  %9759 = vmatprep.subr.bf16.mxu0 %v14195_v27  ;;  %v14228_v27 = vcombine.low %v4047_v29, %v4051_v7  ;;  %v14235_v28 = vcombine.high %v4054_v23, %v4058_v17  ;;  %v4090_v29 = vld [vmem:[#allocation9 + $0x16a0] sm:$0xff]  ;;  %v4087_v7 = vld [vmem:[#allocation9 + $0x1688] sm:$0xff] }
 0x359   :  { %10086 = vmatpush1.bf16.msra.mxu1 %v14188_v25  ;;  %10117 = vmatprep.mubr.bf16.mxu1 %v16061_v53  ;;  %v14226_v25 = vcombine.low %v4046_v26, %v4050_v6  ;;  %v4086_v6 = vld [vmem:[#allocation9 + $0x1680] sm:$0xff] }
 0x35a   :  { %10087 = vmatprep.subr.bf16.mxu1 %v14197_v31  ;;  %v4062_v31 = vld [vmem:[#allocation9 + $0x15c0] sm:$0xff] }
 0x35b   :  { %9760 = vmatpush1.bf16.msra.mxu0 %v14194_v34  ;;  %v4067_v34 = vld [vmem:[#allocation9 + $0x15e8] sm:$0xff] }
 0x35c   :  { %9761 = vmatprep.subr.bf16.mxu0 %v14203_v38  ;;  %v14236_v38 = vcombine.low %v4055_v19, %v4059_v32  ;;  %v14245_v8 = vcombine.high %v4063_v47, %v4067_v34  ;;  %v4098_v19 = vld [vmem:[#allocation9 + $0x16e0] sm:$0xff]  ;;  %v4095_v32 = vld [vmem:[#allocation9 + $0x16c8] sm:$0xff] }
 0x35d   :  { %10088 = vmatpush1.bf16.msra.mxu1 %v14196_v41  ;;  %v14234_v41 = vcombine.low %v4054_v23, %v4058_v17  ;;  %v4094_v17 = vld [vmem:[#allocation9 + $0x16c0] sm:$0xff] }
 0x35e   :  { %10089 = vmatprep.subr.bf16.mxu1 %v14205_v55  ;;  %v14243_v55 = vcombine.high %v4062_v31, %v4066_v33 }
 0x35f   :  { %9762 = vmatpush1.bf16.msra.mxu0 %v14202_v46  ;;  %v4075_v46 = vld [vmem:[#allocation9 + $0x1628] sm:$0xff] }
 0x360   :  { %9763 = vmatprep.subr.bf16.mxu0 %v14211_v18  ;;  %v14244_v18 = vcombine.low %v4063_v47, %v4067_v34  ;;  %v14253_v51 = vcombine.high %v4071_v44, %v4075_v46  ;;  %v4106_v47 = vld [vmem:[#allocation9 + $0x1720] sm:$0xff]  ;;  %v4103_v34 = vld [vmem:[#allocation9 + $0x1708] sm:$0xff] }
 0x361   :  { %10090 = vmatpush1.bf16.msra.mxu1 %v14204_v48  ;;  %v14242_v48 = vcombine.low %v4062_v31, %v4066_v33  ;;  %v4102_v33 = vld [vmem:[#allocation9 + $0x1700] sm:$0xff] }
 0x362   :  { %10091 = vmatprep.subr.bf16.mxu1 %v14213_v0  ;;  %v14251_v0 = vcombine.high %v4070_v39, %v4074_v42 }
 0x363   :  { %9764 = vmatpush1.bf16.msra.mxu0 %v14210_v4  ;;  %v4083_v4 = vld [vmem:[#allocation9 + $0x1668] sm:$0xff] }
 0x364   :  { %9765 = vmatprep.subr.bf16.mxu0 %v14219_v50  ;;  %v14252_v50 = vcombine.low %v4071_v44, %v4075_v46  ;;  %v14261_v26 = vcombine.high %v4079_v22, %v4083_v4  ;;  %v4114_v44 = vld [vmem:[#allocation9 + $0x1760] sm:$0xff]  ;;  %v4111_v46 = vld [vmem:[#allocation9 + $0x1748] sm:$0xff] }
 0x365   :  { %10092 = vmatpush1.bf16.msra.mxu1 %v14212_v1  ;;  %v14250_v1 = vcombine.low %v4070_v39, %v4074_v42  ;;  %v4110_v42 = vld [vmem:[#allocation9 + $0x1740] sm:$0xff] }
 0x366   :  { %10093 = vmatprep.subr.bf16.mxu1 %v14221_v2  ;;  %v14259_v2 = vcombine.high %v4078_v56, %v4082_v63 }
 0x367   :  { %9766 = vmatpush1.bf16.msra.mxu0 %v14218_v9  ;;  %v4091_v9 = vld [vmem:[#allocation9 + $0x16a8] sm:$0xff] }
 0x368   :  { %9767 = vmatprep.subr.bf16.mxu0 %v14227_v12  ;;  %v14260_v12 = vcombine.low %v4079_v22, %v4083_v4  ;;  %v14269_v23 = vcombine.high %v4087_v7, %v4091_v9  ;;  %v4118_v22 = vld [vmem:[#allocation9 + $0x1780] sm:$0xff] }
 0x369   :  { %10094 = vmatpush1.bf16.msra.mxu1 %v14220_v10  ;;  %v14258_v10 = vcombine.low %v4078_v56, %v4082_v63  ;;  %v3249_v56 = vrot.slane %v16037_v20, %v15975_v49  ;;  %v4122_v4 = vld [vmem:[#allocation9 + $0x17a0] sm:$0xff] }
 0x36a   :  { %10095 = vmatprep.subr.bf16.mxu1 %v14229_v13  ;;  %v14267_v13 = vcombine.high %v4086_v6, %v4090_v29 }
 0x36b   :  { %9768 = vmatpush1.bf16.msra.mxu0 %v14226_v25  ;;  %v4099_v25 = vld [vmem:[#allocation9 + $0x16e8] sm:$0xff] }
 0x36c   :  { %9769 = vmatprep.subr.bf16.mxu0 %v14235_v28  ;;  %v14268_v28 = vcombine.low %v4087_v7, %v4091_v9  ;;  %v14277_v31 = vcombine.high %v4095_v32, %v4099_v25  ;;  %v3296_v7 = vadd.f32 %v3249_v56, %v15986_v16  ;;  %v4135_v16 = vld [vmem:[#allocation9 + $0x1808] sm:$0xff]  ;;  %v4154_v56 = vld [vmem:[#allocation9 + $0x18a0] sm:$0xff] }
 0x36d   :  { %10096 = vmatpush1.bf16.msra.mxu1 %v14228_v27  ;;  %v14266_v27 = vcombine.low %v4086_v6, %v4090_v29  ;;  %v14299_v29 = vcombine.high %v4118_v22, %v4122_v4 }
 0x36e   :  { %10097 = vmatprep.subr.bf16.mxu1 %v14237_v5  ;;  %v14275_v5 = vcombine.high %v4094_v17, %v4098_v19  ;;  %vm3312_vm11 = vcmp.gt.f32.partialorder %v3296_v7, 0.0 }
 0x36f   :  { %9770 = vmatpush1.bf16.msra.mxu0 %v14234_v41  ;;  %v4107_v41 = vld [vmem:[#allocation9 + $0x1728] sm:$0xff] }
 0x370   :  { %9771 = vmatprep.subr.bf16.mxu0 %v14243_v55  ;;  %v14276_v55 = vcombine.low %v4095_v32, %v4099_v25  ;;  %v14285_v39 = vcombine.high %v4103_v34, %v4107_v41  ;;  %v3328_v25 = vmul.f32 0.01, %v3296_v7 }
 0x371   :  { %10098 = vmatpush1.bf16.msra.mxu1 %v14236_v38  ;;  %v14274_v38 = vcombine.low %v4094_v17, %v4098_v19  ;;  %v14298_v19 = vcombine.low %v4118_v22, %v4122_v4  ;;  %v4151_v4 = vld [vmem:[#allocation9 + $0x1888] sm:$0xff] }
 0x372   :  { %10099 = vmatprep.subr.bf16.mxu1 %v14245_v8  ;;  %v14283_v8 = vcombine.high %v4102_v33, %v4106_v47 }
 0x373   :  { %9772 = vmatpush1.bf16.msra.mxu0 %v14242_v48  ;;  %v4115_v48 = vld [vmem:[#allocation9 + $0x1768] sm:$0xff] }
 0x374   :  { %9773 = vmatprep.subr.bf16.mxu0 %v14251_v0  ;;  %v14284_v0 = vcombine.low %v4103_v34, %v4107_v41  ;;  %v14293_v63 = vcombine.high %v4111_v46, %v4115_v48  ;;  %v14292_v6 = vcombine.low %v4111_v46, %v4115_v48  ;;  %v3344_v41 = vsel %vm3312_vm11, %v3296_v7, %v3328_v25  ;;  %v4147_v46 = vld [vmem:[#allocation9 + $0x1868] sm:$0xff]  ;;  %v4162_v7 = vld [vmem:[#allocation9 + $0x18e0] sm:$0xff] }
 0x375   :  { %10100 = vmatpush1.bf16.msra.mxu1 %v14244_v18  ;;  %v14282_v18 = vcombine.low %v4102_v33, %v4106_v47  ;;  %v16073_v48 = vpack.c.bf16 %v3344_v41, %v3344_v41  ;;  %v4171_v25 = vld [vmem:[#allocation9 + $0x1928] sm:$0xff] }
 0x376   :  { %10101 = vmatprep.subr.bf16.mxu1 %v14253_v51  ;;  %v14291_v51 = vcombine.high %v4110_v42, %v4114_v44 }
 0x377   :  { %9774 = vmatpush1.bf16.msra.mxu0 %v14250_v1  ;;  %v4119_v1 = vld [vmem:[#allocation9 + $0x1788] sm:$0xff] }
 0x378   :  { %9775 = vmatprep.subr.bf16.mxu0 %v14259_v2  ;;  %v3261_v2 = vrot.slane %v16037_v20, %v15978_v59 }
 0x379   :  { %10102 = vmatpush1.bf16.msra.mxu1 %v14252_v50  ;;  %v4123_v50 = vld [vmem:[#allocation9 + $0x17a8] sm:$0xff] }
 0x37a   :  { %10103 = vmatprep.subr.bf16.mxu1 %v14261_v26  ;;  %v14290_v26 = vcombine.low %v4110_v42, %v4114_v44  ;;  %v14301_v9 = vcombine.high %v4119_v1, %v4123_v50  ;;  %v3299_v17 = vadd.f32 %v3261_v2, %v16020_v40  ;;  %v14300_v20 = vcombine.low %v4119_v1, %v4123_v50  ;;  %v4143_v44 = vld [vmem:[#allocation9 + $0x1848] sm:$0xff] }
 0x37b   :  { %9776 = vmatpush1.bf16.msra.mxu0 %v14258_v10  ;;  %v4126_v10 = vld [vmem:[#allocation9 + $0x17c0] sm:$0xff]  ;;  %v14325_v22 = vcombine.high %v4143_v44, %v4147_v46  ;;  %v4155_v1 = vld [vmem:[#allocation9 + $0x18a8] sm:$0xff]  ;;  %v14324_v2 = vcombine.low %v4143_v44, %v4147_v46 }
 0x37c   :  { %9777 = vmatprep.subr.bf16.mxu0 %v14267_v13  ;;  %v4127_v13 = vld [vmem:[#allocation9 + $0x17c8] sm:$0xff]  ;;  %v3331_v33 = vmul.f32 0.01, %v3299_v17  ;;  %vm3315_vm12 = vcmp.gt.f32.partialorder %v3299_v17, 0.0 }
 0x37d   :  { %10104 = vmatpush1.bf16.msra.mxu1 %v14260_v12  ;;  %v4130_v12 = vld [vmem:[#allocation9 + $0x17e0] sm:$0xff]  ;;  %v4187_v44 = vld [vmem:[#allocation9 + $0x19a8] sm:$0xff] }
 0x37e   :  { %10105 = vmatprep.subr.bf16.mxu1 %v14269_v23  ;;  %v4131_v23 = vld [vmem:[#allocation9 + $0x17e8] sm:$0xff]  ;;  %v14307_v32 = vcombine.high %v4126_v10, %v4130_v12  ;;  %v14306_v47 = vcombine.low %v4126_v10, %v4130_v12 }
 0x37f   :  { %9778 = vmatpush1.bf16.msra.mxu0 %v14266_v27  ;;  %v14309_v27 = vcombine.high %v4127_v13, %v4131_v23  ;;  %v14308_v40 = vcombine.low %v4127_v13, %v4131_v23  ;;  %v4163_v10 = vld [vmem:[#allocation9 + $0x18e8] sm:$0xff]  ;;  %v14332_v13 = vcombine.low %v4151_v4, %v4155_v1 }
 0x380   :  { %9779 = vmatprep.subr.bf16.mxu0 %v14275_v5  ;;  %v4138_v5 = vld [vmem:[#allocation9 + $0x1820] sm:$0xff] }
 0x381   :  { %10106 = vmatpush1.bf16.msra.mxu1 %v14268_v28  ;;  %v4134_v28 = vld [vmem:[#allocation9 + $0x1800] sm:$0xff] }
 0x382   :  { %10107 = vmatprep.subr.bf16.mxu1 %v14277_v31  ;;  %v4139_v31 = vld [vmem:[#allocation9 + $0x1828] sm:$0xff]  ;;  %v14315_v34 = vcombine.high %v4134_v28, %v4138_v5  ;;  %v14314_v42 = vcombine.low %v4134_v28, %v4138_v5 }
 0x383   :  { %9780 = vmatpush1.bf16.msra.mxu0 %v14274_v38  ;;  %v14317_v38 = vcombine.high %v4135_v16, %v4139_v31 }
 0x384   :  { %9781 = vmatprep.subr.bf16.mxu0 %v14283_v8  ;;  %v4146_v8 = vld [vmem:[#allocation9 + $0x1860] sm:$0xff] }
 0x385   :  { %10108 = vmatpush1.bf16.msra.mxu1 %v14276_v55  ;;  %v4142_v55 = vld [vmem:[#allocation9 + $0x1840] sm:$0xff] }
 0x386   :  { %10109 = vmatprep.subr.bf16.mxu1 %v14285_v39  ;;  %v3347_v39 = vsel %vm3315_vm12, %v3299_v17, %v3331_v33  ;;  %v14322_v50 = vcombine.low %v4142_v55, %v4146_v8  ;;  %v4178_v33 = vld [vmem:[#allocation9 + $0x1960] sm:$0xff]  ;;  %vm13141_vm12 = vcmask 818176  }
 0x387   :  { %9782 = vmatpush1.bf16.msra.mxu0 %v14282_v18  ;;  %v14316_v18 = vcombine.low %v4135_v16, %v4139_v31  ;;  %v4174_v31 = vld [vmem:[#allocation9 + $0x1940] sm:$0xff] }
 0x388   :  { %9783 = vmatprep.subr.bf16.mxu0 %v14291_v51  ;;  %v4150_v51 = vld [vmem:[#allocation9 + $0x1880] sm:$0xff]  ;;  %v14354_v46 = vcombine.low %v4174_v31, %v4178_v33 }
 0x389   :  { %10110 = vmatpush1.bf16.msra.mxu1 %v14284_v0  ;;  %v14323_v0 = vcombine.high %v4142_v55, %v4146_v8  ;;  %v14330_v12 = vcombine.low %v4150_v51, %v4154_v56  ;;  %v4182_v8 = vld [vmem:[#allocation9 + $0x1980] sm:$0xff] }
 0x38a   :  { %10111 = vmatprep.subr.bf16.mxu1 %v14293_v63  ;;  %v16075_v63 = vpack.c.bf16 %v3347_v39, %v3347_v39  ;;  %v4186_v39 = vld [vmem:[#allocation9 + $0x19a0] sm:$0xff] }
 0x38b   :  { %9784 = vmatpush1.bf16.msra.mxu0 %v14290_v26  ;;  %v14331_v26 = vcombine.high %v4150_v51, %v4154_v56  ;;  %v4190_v56 = vld [vmem:[#allocation9 + $0x19c0] sm:$0xff] }
 0x38c   :  { %9785 = vmatprep.subr.bf16.mxu0 %v14299_v29  ;;  %v4158_v29 = vld [vmem:[#allocation9 + $0x18c0] sm:$0xff] }
 0x38d   :  { %10112 = vmatpush1.bf16.msra.mxu1 %v14292_v6  ;;  %v14333_v6 = vcombine.high %v4151_v4, %v4155_v1  ;;  %v14339_v23 = vcombine.high %v4158_v29, %v4162_v7  ;;  %v4191_v4 = vld [vmem:[#allocation9 + $0x19c8] sm:$0xff] }
 0x38e   :  { %10113 = vmatprep.subr.bf16.mxu1 %v14301_v9  ;;  %v4159_v9 = vld [vmem:[#allocation9 + $0x18c8] sm:$0xff] }
 0x38f   :  { %9786 = vmatpush1.bf16.msra.mxu0 %v14298_v19  ;;  %v14341_v17 = vcombine.high %v4159_v9, %v4163_v10  ;;  %v4166_v19 = vld [vmem:[#allocation9 + $0x1900] sm:$0xff]  ;;  %v14340_v28 = vcombine.low %v4159_v9, %v4163_v10  ;;  %v4195_v1 = vld [vmem:[#allocation9 + $0x19e8] sm:$0xff] }
 0x390   :  { %9787 = vmatprep.subr.bf16.mxu0 %v14307_v32  ;;  %v4167_v32 = vld [vmem:[#allocation9 + $0x1908] sm:$0xff] }
 0x391   :  { %10114 = vmatpush1.bf16.msra.mxu1 %v14300_v20  ;;  %v4170_v20 = vld [vmem:[#allocation9 + $0x1920] sm:$0xff]  ;;  %v14349_v16 = vcombine.high %v4167_v32, %v4171_v25  ;;  %v14348_v41 = vcombine.low %v4167_v32, %v4171_v25  ;;  %v4199_v9 = vld [vmem:[#allocation9 + $0x1a08] sm:$0xff] }
 0x392   :  { %10115 = vmatprep.subr.bf16.mxu1 %v14309_v27  ;;  %v14338_v27 = vcombine.low %v4158_v29, %v4162_v7  ;;  %v14347_v5 = vcombine.high %v4166_v19, %v4170_v20  ;;  %v4198_v29 = vld [vmem:[#allocation9 + $0x1a00] sm:$0xff]  ;;  %v4203_v10 = vld [vmem:[#allocation9 + $0x1a28] sm:$0xff] }
 0x393   :  { %9788 = vmatpush1.bf16.msra.mxu0 %v14306_v47  ;;  %v4175_v47 = vld [vmem:[#allocation9 + $0x1948] sm:$0xff]  ;;  %v4202_v7 = vld [vmem:[#allocation9 + $0x1a20] sm:$0xff] }
 0x394   :  { %9798 = vmatprep.subr.bf16.mxu0 %v14315_v34  ;;  %v14346_v34 = vcombine.low %v4166_v19, %v4170_v20  ;;  %v4206_v19 = vld [vmem:[#allocation9 + $0x1a40] sm:$0xff]  ;;  %v4207_v32 = vld [vmem:[#allocation9 + $0x1a48] sm:$0xff] }
 0x395   :  { %10116 = vmatpush1.bf16.msra.mxu1 %v14308_v40  ;;  %v4179_v40 = vld [vmem:[#allocation9 + $0x1968] sm:$0xff]  ;;  %v4210_v20 = vld [vmem:[#allocation9 + $0x1a60] sm:$0xff] }
 0x396   :  { %10126 = vmatprep.subr.bf16.mxu1 %v14317_v38  ;;  %9790 = vmatmul.mubr.bf16.vlgmr.msra.gmra.mrb[32].mxu0 %v16073_v48  ;;  %v14355_v38 = vcombine.high %v4174_v31, %v4178_v33  ;;  %v14357_v55 = vcombine.high %v4175_v47, %v4179_v40  ;;  %v4211_v25 = vld [vmem:[#allocation9 + $0x1a68] sm:$0xff]  ;;  %v4214_v31 = vld [vmem:[#allocation9 + $0x1a80] sm:$0xff] }
 0x397   :  { %9799 = vmatpush1.bf16.msra.mxu0 %v14314_v42  ;;  %9830 = vmatprep.mubr.bf16.mxu0 %v16075_v63  ;;  %v4183_v42 = vld [vmem:[#allocation9 + $0x1988] sm:$0xff]  ;;  %v4218_v33 = vld [vmem:[#allocation9 + $0x1aa0] sm:$0xff] }
 0x398   :  { %10118 = vmatmul.mubr.bf16.vlgmr.msra.gmra.mrb[32].mxu1 %v16073_v48  ;;  %9800 = vmatprep.subr.bf16.mxu0 %v14323_v0  ;;  %v14363_v0 = vcombine.high %v4182_v8, %v4186_v39  ;;  %v14365_v51 = vcombine.high %v4183_v42, %v4187_v44 }
 0x399   :  { %10127 = vmatpush1.bf16.msra.mxu1 %v14316_v18  ;;  %10158 = vmatprep.mubr.bf16.mxu1 %v16075_v63  ;;  %v14356_v18 = vcombine.low %v4175_v47, %v4179_v40  ;;  %v4215_v47 = vld [vmem:[#allocation9 + $0x1a88] sm:$0xff] }
 0x39a   :  { %10128 = vmatprep.subr.bf16.mxu1 %v14325_v22  ;;  %v4194_v22 = vld [vmem:[#allocation9 + $0x19e0] sm:$0xff]  ;;  %v4219_v40 = vld [vmem:[#allocation9 + $0x1aa8] sm:$0xff] }
 0x39b   :  { %9801 = vmatpush1.bf16.msra.mxu0 %v14322_v50  ;;  %v14362_v50 = vcombine.low %v4182_v8, %v4186_v39  ;;  %v4222_v8 = vld [vmem:[#allocation9 + $0x1ac0] sm:$0xff] }
 0x39c   :  { %9802 = vmatprep.subr.bf16.mxu0 %v14331_v26  ;;  %v14371_v26 = vcombine.high %v4190_v56, %v4194_v22  ;;  %v4226_v39 = vld [vmem:[#allocation9 + $0x1ae0] sm:$0xff] }
 0x39d   :  { %10129 = vmatpush1.bf16.msra.mxu1 %v14324_v2  ;;  %v14364_v2 = vcombine.low %v4183_v42, %v4187_v44  ;;  %v4223_v42 = vld [vmem:[#allocation9 + $0x1ac8] sm:$0xff] }
 0x39e   :  { %10130 = vmatprep.subr.bf16.mxu1 %v14333_v6  ;;  %v14373_v6 = vcombine.high %v4191_v4, %v4195_v1  ;;  %v4227_v44 = vld [vmem:[#allocation9 + $0x1ae8] sm:$0xff] }
 0x39f   :  { %9803 = vmatpush1.bf16.msra.mxu0 %v14330_v12  ;;  %v14370_v12 = vcombine.low %v4190_v56, %v4194_v22  ;;  %v4230_v56 = vld [vmem:[#allocation9 + $0x1b00] sm:$0xff] }
 0x3a0   :  { %9804 = vmatprep.subr.bf16.mxu0 %v14339_v23  ;;  %v14379_v23 = vcombine.high %v4198_v29, %v4202_v7  ;;  %v4234_v22 = vld [vmem:[#allocation9 + $0x1b20] sm:$0xff] }
 0x3a1   :  { %10131 = vmatpush1.bf16.msra.mxu1 %v14332_v13  ;;  %v14372_v13 = vcombine.low %v4191_v4, %v4195_v1  ;;  %v4231_v4 = vld [vmem:[#allocation9 + $0x1b08] sm:$0xff] }
 0x3a2   :  { %10132 = vmatprep.subr.bf16.mxu1 %v14341_v17  ;;  %v14381_v17 = vcombine.high %v4199_v9, %v4203_v10  ;;  %v4235_v1 = vld [vmem:[#allocation9 + $0x1b28] sm:$0xff] }
 0x3a3   :  { %9805 = vmatpush1.bf16.msra.mxu0 %v14338_v27  ;;  %v14378_v27 = vcombine.low %v4198_v29, %v4202_v7  ;;  %v4238_v29 = vld [vmem:[#allocation9 + $0x1b40] sm:$0xff] }
 0x3a4   :  { %9806 = vmatprep.subr.bf16.mxu0 %v14347_v5  ;;  %v14387_v5 = vcombine.high %v4206_v19, %v4210_v20  ;;  %v4242_v7 = vld [vmem:[#allocation9 + $0x1b60] sm:$0xff] }
 0x3a5   :  { %10133 = vmatpush1.bf16.msra.mxu1 %v14340_v28  ;;  %v14380_v28 = vcombine.low %v4199_v9, %v4203_v10  ;;  %v4239_v9 = vld [vmem:[#allocation9 + $0x1b48] sm:$0xff] }
 0x3a6   :  { %10134 = vmatprep.subr.bf16.mxu1 %v14349_v16  ;;  %v14389_v16 = vcombine.high %v4207_v32, %v4211_v25  ;;  %v4243_v10 = vld [vmem:[#allocation9 + $0x1b68] sm:$0xff] }
 0x3a7   :  { %9807 = vmatpush1.bf16.msra.mxu0 %v14346_v34  ;;  %v14386_v34 = vcombine.low %v4206_v19, %v4210_v20  ;;  %v14421_v20 = vcombine.high %v4239_v9, %v4243_v10 }
 0x3a8   :  { %9808 = vmatprep.subr.bf16.mxu0 %v14355_v38  ;;  %v14395_v38 = vcombine.high %v4214_v31, %v4218_v33 }
 0x3a9   :  { %10135 = vmatpush1.bf16.msra.mxu1 %v14348_v41  ;;  %v14388_v41 = vcombine.low %v4207_v32, %v4211_v25  ;;  %v4246_v32 = vld [vmem:[#allocation9 + $0x1b80] sm:$0xff] }
 0x3aa   :  { %10136 = vmatprep.subr.bf16.mxu1 %v14357_v55  ;;  %v14397_v55 = vcombine.high %v4215_v47, %v4219_v40  ;;  %v4250_v25 = vld [vmem:[#allocation9 + $0x1ba0] sm:$0xff] }
 0x3ab   :  { %9809 = vmatpush1.bf16.msra.mxu0 %v14354_v46  ;;  %v14394_v46 = vcombine.low %v4214_v31, %v4218_v33  ;;  %v14420_v31 = vcombine.low %v4239_v9, %v4243_v10  ;;  %v14427_v33 = vcombine.high %v4246_v32, %v4250_v25  ;;  %v4271_v9 = vld [vmem:[#allocation9 + $0x1c48] sm:$0xff] }
 0x3ac   :  { %9810 = vmatprep.subr.bf16.mxu0 %v14363_v0  ;;  %v14403_v0 = vcombine.high %v4222_v8, %v4226_v39  ;;  %v4275_v10 = vld [vmem:[#allocation9 + $0x1c68] sm:$0xff] }
 0x3ad   :  { %10137 = vmatpush1.bf16.msra.mxu1 %v14356_v18  ;;  %v14396_v18 = vcombine.low %v4215_v47, %v4219_v40 }
 0x3ae   :  { %10138 = vmatprep.subr.bf16.mxu1 %v14365_v51  ;;  %v14405_v51 = vcombine.high %v4223_v42, %v4227_v44 }
 0x3af   :  { %9811 = vmatpush1.bf16.msra.mxu0 %v14362_v50  ;;  %v14402_v50 = vcombine.low %v4222_v8, %v4226_v39  ;;  %v14426_v39 = vcombine.low %v4246_v32, %v4250_v25  ;;  %v14453_v25 = vcombine.high %v4271_v9, %v4275_v10 }
 0x3b0   :  { %9812 = vmatprep.subr.bf16.mxu0 %v14371_v26  ;;  %v14411_v26 = vcombine.high %v4230_v56, %v4234_v22 }
 0x3b1   :  { %10139 = vmatpush1.bf16.msra.mxu1 %v14364_v2  ;;  %v14404_v2 = vcombine.low %v4223_v42, %v4227_v44 }
 0x3b2   :  { %10140 = vmatprep.subr.bf16.mxu1 %v14373_v6  ;;  %v14413_v6 = vcombine.high %v4231_v4, %v4235_v1 }
 0x3b3   :  { %9813 = vmatpush1.bf16.msra.mxu0 %v14370_v12  ;;  %v14410_v12 = vcombine.low %v4230_v56, %v4234_v22  ;;  %v4267_v56 = vld [vmem:[#allocation9 + $0x1c28] sm:$0xff] }
 0x3b4   :  { %9814 = vmatprep.subr.bf16.mxu0 %v14379_v23  ;;  %v14419_v23 = vcombine.high %v4238_v29, %v4242_v7 }
 0x3b5   :  { %10141 = vmatpush1.bf16.msra.mxu1 %v14372_v13  ;;  %v14412_v13 = vcombine.low %v4231_v4, %v4235_v1 }
 0x3b6   :  { %10142 = vmatprep.subr.bf16.mxu1 %v14381_v17  ;;  %v16081_v17 = vld [vmem:[#allocation8 + $0x8] sm:$0xff] }
 0x3b7   :  { %9815 = vmatpush1.bf16.msra.mxu0 %v14378_v27  ;;  %v3257_v19 = vrot.slane %v16081_v17, %v16003_v45  ;;  %v4247_v27 = vld [vmem:[#allocation9 + $0x1b88] sm:$0xff] }
 0x3b8   :  { %9816 = vmatprep.subr.bf16.mxu0 %v14387_v5  ;;  %v3269_v5 = vrot.slane %v16081_v17, %v16006_v11 }
 0x3b9   :  { %10143 = vmatpush1.bf16.msra.mxu1 %v14380_v28  ;;  %v4251_v28 = vld [vmem:[#allocation9 + $0x1ba8] sm:$0xff]  ;;  %v3298_v47 = vadd.f32 %v3257_v19, %v16016_v37  ;;  %v4278_v19 = vld [vmem:[#allocation9 + $0x1c80] sm:$0xff] }
 0x3ba   :  { %10144 = vmatprep.subr.bf16.mxu1 %v14389_v16  ;;  %v14418_v16 = vcombine.low %v4238_v29, %v4242_v7  ;;  %v14429_v40 = vcombine.high %v4247_v27, %v4251_v28  ;;  %v3301_v8 = vadd.f32 %v3269_v5, %v16032_v35  ;;  %v14428_v42 = vcombine.low %v4247_v27, %v4251_v28  ;;  %v4263_v37 = vld [vmem:[#allocation9 + $0x1c08] sm:$0xff] }
 0x3bb   :  { %9817 = vmatpush1.bf16.msra.mxu0 %v14386_v34  ;;  %v4254_v34 = vld [vmem:[#allocation9 + $0x1bc0] sm:$0xff]  ;;  %vm3314_vm13 = vcmp.gt.f32.partialorder %v3298_v47, 0.0  ;;  %v4279_v27 = vld [vmem:[#allocation9 + $0x1c88] sm:$0xff] }
 0x3bc   :  { %9818 = vmatprep.subr.bf16.mxu0 %v14395_v38  ;;  %v4255_v38 = vld [vmem:[#allocation9 + $0x1bc8] sm:$0xff]  ;;  %v3333_v22 = vmul.f32 0.01, %v3301_v8  ;;  %vm3317_vm14 = vcmp.gt.f32.partialorder %v3301_v8, 0.0 }
 0x3bd   :  { %10145 = vmatpush1.bf16.msra.mxu1 %v14388_v41  ;;  %v4258_v41 = vld [vmem:[#allocation9 + $0x1be0] sm:$0xff]  ;;  %v4283_v28 = vld [vmem:[#allocation9 + $0x1ca8] sm:$0xff] }
 0x3be   :  { %10146 = vmatprep.subr.bf16.mxu1 %v14397_v55  ;;  %v4259_v55 = vld [vmem:[#allocation9 + $0x1be8] sm:$0xff]  ;;  %v14435_v44 = vcombine.high %v4254_v34, %v4258_v41  ;;  %v14434_v4 = vcombine.low %v4254_v34, %v4258_v41  ;;  %v3349_v29 = vsel %vm3317_vm14, %v3301_v8, %v3333_v22  ;;  %v4302_v22 = vld [vmem:[#allocation9 + $0x1d40] sm:$0xff] }
 0x3bf   :  { %9819 = vmatpush1.bf16.msra.mxu0 %v14394_v46  ;;  %v3330_v46 = vmul.f32 0.01, %v3298_v47  ;;  %v14436_v35 = vcombine.low %v4255_v38, %v4259_v55  ;;  %v16091_v32 = vpack.c.bf16 %v3349_v29, %v3349_v29  ;;  %v4287_v34 = vld [vmem:[#allocation9 + $0x1cc8] sm:$0xff]  ;;  %v4310_v29 = vld [vmem:[#allocation9 + $0x1d80] sm:$0xff] }
 0x3c0   :  { %9820 = vmatprep.subr.bf16.mxu0 %v14403_v0  ;;  %v4262_v0 = vld [vmem:[#allocation9 + $0x1c00] sm:$0xff]  ;;  %v4291_v41 = vld [vmem:[#allocation9 + $0x1ce8] sm:$0xff] }
 0x3c1   :  { %10147 = vmatpush1.bf16.msra.mxu1 %v14396_v18  ;;  %v14437_v18 = vcombine.high %v4255_v38, %v4259_v55  ;;  %v14460_v55 = vcombine.low %v4279_v27, %v4283_v28 }
 0x3c2   :  { %10148 = vmatprep.subr.bf16.mxu1 %v14405_v51  ;;  %v4266_v51 = vld [vmem:[#allocation9 + $0x1c20] sm:$0xff] }
 0x3c3   :  { %9821 = vmatpush1.bf16.msra.mxu0 %v14402_v50  ;;  %v14443_v1 = vcombine.high %v4262_v0, %v4266_v51  ;;  %v3346_v50 = vsel %vm3314_vm13, %v3298_v47, %v3330_v46  ;;  %v14442_v7 = vcombine.low %v4262_v0, %v4266_v51  ;;  %v4286_v47 = vld [vmem:[#allocation9 + $0x1cc0] sm:$0xff]  ;;  %v4295_v46 = vld [vmem:[#allocation9 + $0x1d08] sm:$0xff]  ;;  %v14468_v51 = vcombine.low %v4287_v34, %v4291_v41 }
 0x3c4   :  { %9822 = vmatprep.subr.bf16.mxu0 %v14411_v26  ;;  %v4270_v26 = vld [vmem:[#allocation9 + $0x1c40] sm:$0xff] }
 0x3c5   :  { %10149 = vmatpush1.bf16.msra.mxu1 %v14404_v2  ;;  %v14445_v2 = vcombine.high %v4263_v37, %v4267_v56 }
 0x3c6   :  { %10150 = vmatprep.subr.bf16.mxu1 %v14413_v6  ;;  %v4274_v6 = vld [vmem:[#allocation9 + $0x1c60] sm:$0xff] }
 0x3c7   :  { %9823 = vmatpush1.bf16.msra.mxu0 %v14410_v12  ;;  %v16089_v12 = vpack.c.bf16 %v3346_v50, %v3346_v50  ;;  %v14450_v5 = vcombine.low %v4270_v26, %v4274_v6 }
 0x3c8   :  { %9824 = vmatprep.subr.bf16.mxu0 %v14419_v23  ;;  %v14451_v23 = vcombine.high %v4270_v26, %v4274_v6 }
 0x3c9   :  { %10151 = vmatpush1.bf16.msra.mxu1 %v14412_v13  ;;  %v14444_v13 = vcombine.low %v4263_v37, %v4267_v56 }
 0x3ca   :  { %10152 = vmatprep.subr.bf16.mxu1 %v14421_v20  ;;  %v4282_v20 = vld [vmem:[#allocation9 + $0x1ca0] sm:$0xff] }
 0x3cb   :  { %9825 = vmatpush1.bf16.msra.mxu0 %v14418_v16  ;;  %v14452_v16 = vcombine.low %v4271_v9, %v4275_v10  ;;  %v14458_v38 = vcombine.low %v4278_v19, %v4282_v20  ;;  %v4311_v9 = vld [vmem:[#allocation9 + $0x1d88] sm:$0xff] }
 0x3cc   :  { %9826 = vmatprep.subr.bf16.mxu0 %v14427_v33  ;;  %v14461_v33 = vcombine.high %v4279_v27, %v4283_v28  ;;  %v4315_v10 = vld [vmem:[#allocation9 + $0x1da8] sm:$0xff]  ;;  %v4322_v27 = vld [vmem:[#allocation9 + $0x1de0] sm:$0xff] }
 0x3cd   :  { %10153 = vmatpush1.bf16.msra.mxu1 %v14420_v31  ;;  %v14459_v31 = vcombine.high %v4278_v19, %v4282_v20  ;;  %v14493_v20 = vcombine.high %v4311_v9, %v4315_v10  ;;  %v4319_v28 = vld [vmem:[#allocation9 + $0x1dc8] sm:$0xff] }
 0x3ce   :  { %10154 = vmatprep.subr.bf16.mxu1 %v14429_v40  ;;  %v4290_v40 = vld [vmem:[#allocation9 + $0x1ce0] sm:$0xff] }
 0x3cf   :  { %9827 = vmatpush1.bf16.msra.mxu0 %v14426_v39  ;;  %v14467_v8 = vcombine.high %v4286_v47, %v4290_v40  ;;  %v14469_v39 = vcombine.high %v4287_v34, %v4291_v41  ;;  %v14466_v0 = vcombine.low %v4286_v47, %v4290_v40  ;;  %v4326_v40 = vld [vmem:[#allocation9 + $0x1e00] sm:$0xff]  ;;  %v4327_v41 = vld [vmem:[#allocation9 + $0x1e08] sm:$0xff] }
 0x3d0   :  { %9828 = vmatprep.subr.bf16.mxu0 %v14435_v44  ;;  %v4298_v44 = vld [vmem:[#allocation9 + $0x1d20] sm:$0xff] }
 0x3d1   :  { %10155 = vmatpush1.bf16.msra.mxu1 %v14428_v42  ;;  %v4294_v42 = vld [vmem:[#allocation9 + $0x1d00] sm:$0xff] }
 0x3d2   :  { %10156 = vmatprep.subr.bf16.mxu1 %v14437_v18  ;;  %v4299_v18 = vld [vmem:[#allocation9 + $0x1d28] sm:$0xff]  ;;  %v14475_v37 = vcombine.high %v4294_v42, %v4298_v44  ;;  %v14474_v50 = vcombine.low %v4294_v42, %v4298_v44  ;;  %v4330_v34 = vld [vmem:[#allocation9 + $0x1e20] sm:$0xff] }
 0x3d3   :  { %9829 = vmatpush1.bf16.msra.mxu0 %v14434_v4  ;;  %v14477_v56 = vcombine.high %v4295_v46, %v4299_v18  ;;  %v4306_v4 = vld [vmem:[#allocation9 + $0x1d60] sm:$0xff] }
 0x3d4   :  { %9839 = vmatprep.subr.bf16.mxu0 %v14443_v1  ;;  %v4307_v1 = vld [vmem:[#allocation9 + $0x1d68] sm:$0xff]  ;;  %v14483_v26 = vcombine.high %v4302_v22, %v4306_v4  ;;  %v4334_v44 = vld [vmem:[#allocation9 + $0x1e40] sm:$0xff] }
 0x3d5   :  { %10157 = vmatpush1.bf16.msra.mxu1 %v14436_v35  ;;  %v4303_v35 = vld [vmem:[#allocation9 + $0x1d48] sm:$0xff] }
 0x3d6   :  { %10167 = vmatprep.subr.bf16.mxu1 %v14445_v2  ;;  %9831 = vmatmul.mubr.bf16.vlgmr.msra.gmra.mrb[32].mxu0 %v16089_v12  ;;  %v14476_v2 = vcombine.low %v4295_v46, %v4299_v18  ;;  %v14485_v6 = vcombine.high %v4303_v35, %v4307_v1  ;;  %v4338_v46 = vld [vmem:[#allocation9 + $0x1e60] sm:$0xff]  ;;  %v4335_v18 = vld [vmem:[#allocation9 + $0x1e48] sm:$0xff] }
 0x3d7   :  { %9840 = vmatpush1.bf16.msra.mxu0 %v14442_v7  ;;  %9871 = vmatprep.mubr.bf16.mxu0 %v16091_v32  ;;  %v4314_v7 = vld [vmem:[#allocation9 + $0x1da0] sm:$0xff] }
 0x3d8   :  { %10159 = vmatmul.mubr.bf16.vlgmr.msra.gmra.mrb[32].mxu1 %v16089_v12  ;;  %9841 = vmatprep.subr.bf16.mxu0 %v14451_v23  ;;  %v14484_v23 = vcombine.low %v4303_v35, %v4307_v1  ;;  %v14491_v19 = vcombine.high %v4310_v29, %v4314_v7  ;;  %v4346_v35 = vld [vmem:[#allocation9 + $0x1ea0] sm:$0xff]  ;;  %v4343_v1 = vld [vmem:[#allocation9 + $0x1e88] sm:$0xff] }
 0x3d9   :  { %10168 = vmatpush1.bf16.msra.mxu1 %v14444_v13  ;;  %10199 = vmatprep.mubr.bf16.mxu1 %v16091_v32  ;;  %v14482_v13 = vcombine.low %v4302_v22, %v4306_v4  ;;  %v4342_v4 = vld [vmem:[#allocation9 + $0x1e80] sm:$0xff] }
 0x3da   :  { %10169 = vmatprep.subr.bf16.mxu1 %v14453_v25  ;;  %v4318_v25 = vld [vmem:[#allocation9 + $0x1dc0] sm:$0xff] }
 0x3db   :  { %9842 = vmatpush1.bf16.msra.mxu0 %v14450_v5  ;;  %v4323_v5 = vld [vmem:[#allocation9 + $0x1de8] sm:$0xff] }
 0x3dc   :  { %9843 = vmatprep.subr.bf16.mxu0 %v14459_v31  ;;  %v14492_v31 = vcombine.low %v4311_v9, %v4315_v10  ;;  %v14501_v47 = vcombine.high %v4319_v28, %v4323_v5  ;;  %v4354_v9 = vld [vmem:[#allocation9 + $0x1ee0] sm:$0xff]  ;;  %v4351_v10 = vld [vmem:[#allocation9 + $0x1ec8] sm:$0xff] }
 0x3dd   :  { %10170 = vmatpush1.bf16.msra.mxu1 %v14452_v16  ;;  %v14490_v16 = vcombine.low %v4310_v29, %v4314_v7  ;;  %v4350_v7 = vld [vmem:[#allocation9 + $0x1ec0] sm:$0xff] }
 0x3de   :  { %10171 = vmatprep.subr.bf16.mxu1 %v14461_v33  ;;  %v14499_v33 = vcombine.high %v4318_v25, %v4322_v27 }
 0x3df   :  { %9844 = vmatpush1.bf16.msra.mxu0 %v14458_v38  ;;  %v4331_v38 = vld [vmem:[#allocation9 + $0x1e28] sm:$0xff] }
 0x3e0   :  { %9845 = vmatprep.subr.bf16.mxu0 %v14467_v8  ;;  %v14500_v8 = vcombine.low %v4319_v28, %v4323_v5  ;;  %v14509_v42 = vcombine.high %v4327_v41, %v4331_v38  ;;  %v4362_v28 = vld [vmem:[#allocation9 + $0x1f20] sm:$0xff]  ;;  %v4359_v5 = vld [vmem:[#allocation9 + $0x1f08] sm:$0xff] }
 0x3e1   :  { %10172 = vmatpush1.bf16.msra.mxu1 %v14460_v55  ;;  %v14498_v55 = vcombine.low %v4318_v25, %v4322_v27  ;;  %v4358_v27 = vld [vmem:[#allocation9 + $0x1f00] sm:$0xff] }
 0x3e2   :  { %10173 = vmatprep.subr.bf16.mxu1 %v14469_v39  ;;  %v14507_v39 = vcombine.high %v4326_v40, %v4330_v34 }
 0x3e3   :  { %9846 = vmatpush1.bf16.msra.mxu0 %v14466_v0  ;;  %v4339_v0 = vld [vmem:[#allocation9 + $0x1e68] sm:$0xff] }
 0x3e4   :  { %9847 = vmatprep.subr.bf16.mxu0 %v14475_v37  ;;  %v14508_v37 = vcombine.low %v4327_v41, %v4331_v38  ;;  %v14517_v22 = vcombine.high %v4335_v18, %v4339_v0  ;;  %v4370_v41 = vld [vmem:[#allocation9 + $0x1f60] sm:$0xff]  ;;  %v4367_v38 = vld [vmem:[#allocation9 + $0x1f48] sm:$0xff] }
 0x3e5   :  { %10174 = vmatpush1.bf16.msra.mxu1 %v14468_v51  ;;  %v14506_v51 = vcombine.low %v4326_v40, %v4330_v34  ;;  %v4366_v34 = vld [vmem:[#allocation9 + $0x1f40] sm:$0xff] }
 0x3e6   :  { %10175 = vmatprep.subr.bf16.mxu1 %v14477_v56  ;;  %v14515_v56 = vcombine.high %v4334_v44, %v4338_v46 }
 0x3e7   :  { %9848 = vmatpush1.bf16.msra.mxu0 %v14474_v50  ;;  %v4347_v50 = vld [vmem:[#allocation9 + $0x1ea8] sm:$0xff] }
 0x3e8   :  { %9849 = vmatprep.subr.bf16.mxu0 %v14483_v26  ;;  %v14516_v26 = vcombine.low %v4335_v18, %v4339_v0  ;;  %v14525_v29 = vcombine.high %v4343_v1, %v4347_v50  ;;  %v4374_v18 = vld [vmem:[#allocation9 + $0x1f80] sm:$0xff] }
 0x3e9   :  { %10176 = vmatpush1.bf16.msra.mxu1 %v14476_v2  ;;  %v14514_v2 = vcombine.low %v4334_v44, %v4338_v46  ;;  %v3265_v44 = vrot.slane %v16081_v17, %v16035_v36  ;;  %v4378_v0 = vld [vmem:[#allocation9 + $0x1fa0] sm:$0xff]  ;;  %v4387_v17 = vld [vmem:[#allocation9 + $0x1fe8] sm:$0xff] }
 0x3ea   :  { %10177 = vmatprep.subr.bf16.mxu1 %v14485_v6  ;;  %v14523_v6 = vcombine.high %v4342_v4, %v4346_v35 }
 0x3eb   :  { %9850 = vmatpush1.bf16.msra.mxu0 %v14482_v13  ;;  %v4355_v13 = vld [vmem:[#allocation9 + $0x1ee8] sm:$0xff] }
 0x3ec   :  { %9851 = vmatprep.subr.bf16.mxu0 %v14491_v19  ;;  %v14524_v19 = vcombine.low %v4343_v1, %v4347_v50  ;;  %v14533_v25 = vcombine.high %v4351_v10, %v4355_v13  ;;  %v4382_v50 = vld [vmem:[#allocation9 + $0x1fc0] sm:$0xff] }
 0x3ed   :  { %10178 = vmatpush1.bf16.msra.mxu1 %v14484_v23  ;;  %v14522_v23 = vcombine.low %v4342_v4, %v4346_v35  ;;  %v14555_v4 = vcombine.high %v4374_v18, %v4378_v0  ;;  %v3300_v35 = vadd.f32 %v3265_v44, %v16030_v30  ;;  %v3373_v30 = vld [vmem:[#allocation9 + $0x38] sm:$0xff] }
 0x3ee   :  { %10179 = vmatprep.subr.bf16.mxu1 %v14493_v20  ;;  %v14531_v20 = vcombine.high %v4350_v7, %v4354_v9  ;;  %v3389_v44 = vld [vmem:[#allocation9 + $0xb8] sm:$0xff] }
 0x3ef   :  { %9852 = vmatpush1.bf16.msra.mxu0 %v14490_v16  ;;  %v4363_v16 = vld [vmem:[#allocation9 + $0x1f28] sm:$0xff]  ;;  %vm3316_vm15 = vcmp.gt.f32.partialorder %v3300_v35, 0.0 }
 0x3f0   :  { %9853 = vmatprep.subr.bf16.mxu0 %v14499_v33  ;;  %v14532_v33 = vcombine.low %v4351_v10, %v4355_v13  ;;  %v14541_v40 = vcombine.high %v4359_v5, %v4363_v16  ;;  %v3368_v13 = vld [vmem:[#allocation9 + $0x10] sm:$0xff] }
 0x3f1   :  { %10180 = vmatpush1.bf16.msra.mxu1 %v14492_v31  ;;  %v14530_v31 = vcombine.low %v4350_v7, %v4354_v9  ;;  %v3332_v9 = vmul.f32 0.01, %v3300_v35 }
 0x3f2   :  { %10181 = vmatprep.subr.bf16.mxu1 %v14501_v47  ;;  %v14539_v47 = vcombine.high %v4358_v27, %v4362_v28 }
 0x3f3   :  { %9854 = vmatpush1.bf16.msra.mxu0 %v14498_v55  ;;  %v4371_v55 = vld [vmem:[#allocation9 + $0x1f68] sm:$0xff] }
 0x3f4   :  { %9855 = vmatprep.subr.bf16.mxu0 %v14507_v39  ;;  %v14540_v39 = vcombine.low %v4359_v5, %v4363_v16  ;;  %v14549_v46 = vcombine.high %v4367_v38, %v4371_v55  ;;  %v3376_v16 = vld [vmem:[#allocation9 + $0x50] sm:$0xff] }
 0x3f5   :  { %10182 = vmatpush1.bf16.msra.mxu1 %v14500_v8  ;;  %v14538_v8 = vcombine.low %v4358_v27, %v4362_v28  ;;  %v3348_v28 = vsel %vm3316_vm15, %v3300_v35, %v3332_v9 }
 0x3f6   :  { %10183 = vmatprep.subr.bf16.mxu1 %v14509_v42  ;;  %v14547_v42 = vcombine.high %v4366_v34, %v4370_v41 }
 0x3f7   :  { %9856 = vmatpush1.bf16.msra.mxu0 %v14506_v51  ;;  %v4375_v51 = vld [vmem:[#allocation9 + $0x1f88] sm:$0xff] }
 0x3f8   :  { %9857 = vmatprep.subr.bf16.mxu0 %v14515_v56  ;;  %v14546_v56 = vcombine.low %v4366_v34, %v4370_v41  ;;  %v16100_v34 = vpack.c.bf16 %v3348_v28, %v3348_v28 }
 0x3f9   :  { %10184 = vmatpush1.bf16.msra.mxu1 %v14508_v37  ;;  %v4379_v37 = vld [vmem:[#allocation9 + $0x1fa8] sm:$0xff] }
 0x3fa   :  { %10185 = vmatprep.subr.bf16.mxu1 %v14517_v22  ;;  %v14548_v22 = vcombine.low %v4367_v38, %v4371_v55  ;;  %v14557_v1 = vcombine.high %v4375_v51, %v4379_v37  ;;  %v3384_v55 = vld [vmem:[#allocation9 + $0x90] sm:$0xff] }
 0x3fb   :  { %9858 = vmatpush1.bf16.msra.mxu0 %v14514_v2  ;;  %v4386_v2 = vld [vmem:[#allocation9 + $0x1fe0] sm:$0xff] }
 0x3fc   :  { %9859 = vmatprep.subr.bf16.mxu0 %v14523_v6  ;;  %v14554_v6 = vcombine.low %v4374_v18, %v4378_v0  ;;  %v14563_v7 = vcombine.high %v4382_v50, %v4386_v2 }
 0x3fd   :  { %10186 = vmatpush1.bf16.msra.mxu1 %v14516_v26  ;;  %v4383_v26 = vld [vmem:[#allocation9 + $0x1fc8] sm:$0xff] }
 0x3fe   :  { %10187 = vmatprep.subr.bf16.mxu1 %v14525_v29  ;;  %v14556_v29 = vcombine.low %v4375_v51, %v4379_v37  ;;  %v14565_v10 = vcombine.high %v4383_v26, %v4387_v17  ;;  %v3392_v37 = vld [vmem:[#allocation9 + $0xd0] sm:$0xff] }
 0x3ff   :  { %9860 = vmatpush1.bf16.msra.mxu0 %v14522_v23  ;;  %v3372_v23 = vld [vmem:[#allocation9 + $0x30] sm:$0xff] }
 0x400   :  { %9861 = vmatprep.subr.bf16.mxu0 %v14531_v20  ;;  %v14562_v20 = vcombine.low %v4382_v50, %v4386_v2  ;;  %v13551_v27 = vcombine.high %v3368_v13, %v3372_v23 }
 0x401   :  { %10188 = vmatpush1.bf16.msra.mxu1 %v14524_v19  ;;  %v3369_v19 = vld [vmem:[#allocation9 + $0x18] sm:$0xff] }
 0x402   :  { %10189 = vmatprep.subr.bf16.mxu1 %v14533_v25  ;;  %v14564_v25 = vcombine.low %v4383_v26, %v4387_v17  ;;  %v13553_v5 = vcombine.high %v3369_v19, %v3373_v30  ;;  %v13552_v41 = vcombine.low %v3369_v19, %v3373_v30  ;;  %v3400_v26 = vld [vmem:[#allocation9 + $0x110] sm:$0xff]  ;;  %v3409_v19 = vld [vmem:[#allocation9 + $0x158] sm:$0xff] }
 0x403   :  { %9862 = vmatpush1.bf16.msra.mxu0 %v14530_v31  ;;  %v3380_v31 = vld [vmem:[#allocation9 + $0x70] sm:$0xff]  ;;  %v3413_v30 = vld [vmem:[#allocation9 + $0x178] sm:$0xff] }
 0x404   :  { %9863 = vmatprep.subr.bf16.mxu0 %v14539_v47  ;;  %v3377_v47 = vld [vmem:[#allocation9 + $0x58] sm:$0xff]  ;;  %v13559_v38 = vcombine.high %v3376_v16, %v3380_v31  ;;  %v3404_v17 = vld [vmem:[#allocation9 + $0x130] sm:$0xff]  ;;  %v13593_v28 = vcombine.high %v3409_v19, %v3413_v30 }
 0x405   :  { %10190 = vmatpush1.bf16.msra.mxu1 %v14532_v33  ;;  %v13550_v33 = vcombine.low %v3368_v13, %v3372_v23  ;;  %v13583_v9 = vcombine.high %v3400_v26, %v3404_v17  ;;  %v3408_v13 = vld [vmem:[#allocation9 + $0x150] sm:$0xff] }
 0x406   :  { %10191 = vmatprep.subr.bf16.mxu1 %v14541_v40  ;;  %v3381_v40 = vld [vmem:[#allocation9 + $0x78] sm:$0xff]  ;;  %v3412_v23 = vld [vmem:[#allocation9 + $0x170] sm:$0xff] }
 0x407   :  { %9864 = vmatpush1.bf16.msra.mxu0 %v14538_v8  ;;  %v3388_v8 = vld [vmem:[#allocation9 + $0xb0] sm:$0xff]  ;;  %v13560_v18 = vcombine.low %v3377_v47, %v3381_v40 }
 0x408   :  { %9865 = vmatprep.subr.bf16.mxu0 %v14547_v42  ;;  %v3385_v42 = vld [vmem:[#allocation9 + $0x98] sm:$0xff]  ;;  %v13567_v0 = vcombine.high %v3384_v55, %v3388_v8  ;;  %v13566_v35 = vcombine.low %v3384_v55, %v3388_v8  ;;  %v3424_v55 = vld [vmem:[#allocation9 + $0x1d0] sm:$0xff] }
 0x409   :  { %10192 = vmatpush1.bf16.msra.mxu1 %v14540_v39  ;;  %v13561_v39 = vcombine.high %v3377_v47, %v3381_v40  ;;  %v13569_v51 = vcombine.high %v3385_v42, %v3389_v44  ;;  %v13590_v47 = vcombine.low %v3408_v13, %v3412_v23  ;;  %v13592_v40 = vcombine.low %v3409_v19, %v3413_v30  ;;  %v3428_v8 = vld [vmem:[#allocation9 + $0x1f0] sm:$0xff]  ;;  %v3453_v19 = vld [vmem:[#allocation9 + $0x2b8] sm:$0xff] }
 0x40a   :  { %10193 = vmatprep.subr.bf16.mxu1 %v14549_v46  ;;  %v13558_v46 = vcombine.low %v3376_v16, %v3380_v31  ;;  %v3420_v16 = vld [vmem:[#allocation9 + $0x1b0] sm:$0xff]  ;;  %v3417_v31 = vld [vmem:[#allocation9 + $0x198] sm:$0xff] }
 0x40b   :  { %9866 = vmatpush1.bf16.msra.mxu0 %v14546_v56  ;;  %v3396_v56 = vld [vmem:[#allocation9 + $0xf0] sm:$0xff] }
 0x40c   :  { %9867 = vmatprep.subr.bf16.mxu0 %v14555_v4  ;;  %v3397_v4 = vld [vmem:[#allocation9 + $0xf8] sm:$0xff]  ;;  %v13575_v50 = vcombine.high %v3392_v37, %v3396_v56 }
 0x40d   :  { %10194 = vmatpush1.bf16.msra.mxu1 %v14548_v22  ;;  %v3393_v22 = vld [vmem:[#allocation9 + $0xd8] sm:$0xff] }
 0x40e   :  { %10195 = vmatprep.subr.bf16.mxu1 %v14557_v1  ;;  %v13568_v1 = vcombine.low %v3385_v42, %v3389_v44  ;;  %v13577_v2 = vcombine.high %v3393_v22, %v3397_v4  ;;  %v3429_v42 = vld [vmem:[#allocation9 + $0x1f8] sm:$0xff] }
 0x40f   :  { %9868 = vmatpush1.bf16.msra.mxu0 %v14554_v6  ;;  %v3401_v6 = vld [vmem:[#allocation9 + $0x118] sm:$0xff] }
 0x410   :  { %9869 = vmatprep.subr.bf16.mxu0 %v14563_v7  ;;  %v13576_v7 = vcombine.low %v3393_v22, %v3397_v4  ;;  %v3437_v22 = vld [vmem:[#allocation9 + $0x238] sm:$0xff]  ;;  %v13606_v4 = vcombine.low %v3424_v55, %v3428_v8 }
 0x411   :  { %10196 = vmatpush1.bf16.msra.mxu1 %v14556_v29  ;;  %v3405_v29 = vld [vmem:[#allocation9 + $0x138] sm:$0xff] }
 0x412   :  { %10197 = vmatprep.subr.bf16.mxu1 %v14565_v10  ;;  %v13585_v10 = vcombine.high %v3401_v6, %v3405_v29 }
 0x413   :  { %9870 = vmatpush1.bf16.msra.mxu0 %v14562_v20  ;;  %v13582_v20 = vcombine.low %v3400_v26, %v3404_v17  ;;  %v3444_v26 = vld [vmem:[#allocation9 + $0x270] sm:$0xff]  ;;  %v3441_v17 = vld [vmem:[#allocation9 + $0x258] sm:$0xff] }
 0x414   :  { %10208 = vmatprep.subr.bf16.mxu0 %v13551_v27  ;;  %v13591_v27 = vcombine.high %v3408_v13, %v3412_v23  ;;  %v3452_v13 = vld [vmem:[#allocation9 + $0x2b0] sm:$0xff]  ;;  %v3449_v23 = vld [vmem:[#allocation9 + $0x298] sm:$0xff] }
 0x415   :  { %10198 = vmatpush1.bf16.msra.mxu1 %v14564_v25  ;;  %v13584_v25 = vcombine.low %v3401_v6, %v3405_v29  ;;  %v3445_v6 = vld [vmem:[#allocation9 + $0x278] sm:$0xff] }
 0x416   :  { %10536 = vmatprep.subr.bf16.mxu1 %v13553_v5  ;;  %9872 = vmatmul.mubr.bf16.vlgmr.msra.gmra.mrb[32].mxu0 %v16100_v34  ;;  %v3416_v5 = vld [vmem:[#allocation9 + $0x190] sm:$0xff] }
 0x417   :  { %10209 = vmatpush1.bf16.msra.mxu0 %v13550_v33  ;;  %10240 = vmatprep.mubr.bf16.mxu0 %v15934_v3  ;;  %v3421_v33 = vld [vmem:[#allocation9 + $0x1b8] sm:$0xff]  ;;  %v13598_v44 = vcombine.low %v3416_v5, %v3420_v16 }
 0x418   :  { %10200 = vmatmul.mubr.bf16.vlgmr.msra.gmra.mrb[32].mxu1 %v16100_v34  ;;  %10210 = vmatprep.subr.bf16.mxu0 %v13559_v38  ;;  %v13601_v38 = vcombine.high %v3417_v31, %v3421_v33 }
 0x419   :  { %10537 = vmatpush1.bf16.msra.mxu1 %v13552_v41  ;;  %10568 = vmatprep.mubr.bf16.mxu1 %v15934_v3  ;;  %v13574_v3 = vcombine.low %v3392_v37, %v3396_v56  ;;  %v13599_v41 = vcombine.high %v3416_v5, %v3420_v16  ;;  %v3436_v37 = vld [vmem:[#allocation9 + $0x230] sm:$0xff]  ;;  %v3433_v56 = vld [vmem:[#allocation9 + $0x218] sm:$0xff] }
 0x41a   :  { %10538 = vmatprep.subr.bf16.mxu1 %v13561_v39  ;;  %v3425_v39 = vld [vmem:[#allocation9 + $0x1d8] sm:$0xff]  ;;  %v3460_v5 = vld [vmem:[#allocation9 + $0x2f0] sm:$0xff] }
 0x41b   :  { %10211 = vmatpush1.bf16.msra.mxu0 %v13558_v46  ;;  %v13600_v46 = vcombine.low %v3417_v31, %v3421_v33  ;;  %v3457_v16 = vld [vmem:[#allocation9 + $0x2d8] sm:$0xff] }
 0x41c   :  { %10212 = vmatprep.subr.bf16.mxu0 %v13567_v0  ;;  %v13609_v0 = vcombine.high %v3425_v39, %v3429_v42  ;;  %v3461_v31 = vld [vmem:[#allocation9 + $0x2f8] sm:$0xff] }
 0x41d   :  { %10539 = vmatpush1.bf16.msra.mxu1 %v13560_v18  ;;  %v13607_v18 = vcombine.high %v3424_v55, %v3428_v8  ;;  %v3468_v55 = vld [vmem:[#allocation9 + $0x330] sm:$0xff]  ;;  %v3465_v8 = vld [vmem:[#allocation9 + $0x318] sm:$0xff] }
 0x41e   :  { %10540 = vmatprep.subr.bf16.mxu1 %v13569_v51  ;;  %v3432_v51 = vld [vmem:[#allocation9 + $0x210] sm:$0xff] }
 0x41f   :  { %10213 = vmatpush1.bf16.msra.mxu0 %v13566_v35  ;;  %v13608_v35 = vcombine.low %v3425_v39, %v3429_v42  ;;  %v13614_v29 = vcombine.low %v3432_v51, %v3436_v37  ;;  %v3469_v39 = vld [vmem:[#allocation9 + $0x338] sm:$0xff] }
 0x420   :  { %10214 = vmatprep.subr.bf16.mxu0 %v13575_v50  ;;  %v13617_v50 = vcombine.high %v3433_v56, %v3437_v22 }
 0x421   :  { %10541 = vmatpush1.bf16.msra.mxu1 %v13568_v1  ;;  %v13615_v1 = vcombine.high %v3432_v51, %v3436_v37  ;;  %v3476_v51 = vld [vmem:[#allocation9 + $0x370] sm:$0xff]  ;;  %v3473_v37 = vld [vmem:[#allocation9 + $0x358] sm:$0xff] }
 0x422   :  { %10542 = vmatprep.subr.bf16.mxu1 %v13577_v2  ;;  %v3440_v2 = vld [vmem:[#allocation9 + $0x250] sm:$0xff] }
 0x423   :  { %10215 = vmatpush1.bf16.msra.mxu0 %v13574_v3  ;;  %v13616_v3 = vcombine.low %v3433_v56, %v3437_v22  ;;  %v13622_v30 = vcombine.low %v3440_v2, %v3444_v26  ;;  %v3477_v56 = vld [vmem:[#allocation9 + $0x378] sm:$0xff] }
 0x424   :  { %10216 = vmatprep.subr.bf16.mxu0 %v13583_v9  ;;  %v13625_v9 = vcombine.high %v3441_v17, %v3445_v6 }
 0x425   :  { %10543 = vmatpush1.bf16.msra.mxu1 %v13576_v7  ;;  %v13623_v7 = vcombine.high %v3440_v2, %v3444_v26  ;;  %v3484_v2 = vld [vmem:[#allocation9 + $0x3b0] sm:$0xff]  ;;  %v3481_v26 = vld [vmem:[#allocation9 + $0x398] sm:$0xff] }
 0x426   :  { %10544 = vmatprep.subr.bf16.mxu1 %v13585_v10  ;;  %v3448_v10 = vld [vmem:[#allocation9 + $0x290] sm:$0xff] }
 0x427   :  { %10217 = vmatpush1.bf16.msra.mxu0 %v13582_v20  ;;  %v13624_v20 = vcombine.low %v3441_v17, %v3445_v6  ;;  %v13630_v33 = vcombine.low %v3448_v10, %v3452_v13  ;;  %v3485_v17 = vld [vmem:[#allocation9 + $0x3b8] sm:$0xff] }
 0x428   :  { %10218 = vmatprep.subr.bf16.mxu0 %v13591_v27  ;;  %v13633_v27 = vcombine.high %v3449_v23, %v3453_v19 }
 0x429   :  { %10545 = vmatpush1.bf16.msra.mxu1 %v13584_v25  ;;  %v13631_v25 = vcombine.high %v3448_v10, %v3452_v13  ;;  %v3492_v10 = vld [vmem:[#allocation9 + $0x3f0] sm:$0xff]  ;;  %v3489_v13 = vld [vmem:[#allocation9 + $0x3d8] sm:$0xff] }
 0x42a   :  { %10546 = vmatprep.subr.bf16.mxu1 %v13593_v28  ;;  %v3456_v28 = vld [vmem:[#allocation9 + $0x2d0] sm:$0xff] }
 0x42b   :  { %10219 = vmatpush1.bf16.msra.mxu0 %v13590_v47  ;;  %v13632_v47 = vcombine.low %v3449_v23, %v3453_v19  ;;  %v13638_v42 = vcombine.low %v3456_v28, %v3460_v5  ;;  %v3493_v23 = vld [vmem:[#allocation9 + $0x3f8] sm:$0xff] }
 0x42c   :  { %10220 = vmatprep.subr.bf16.mxu0 %v13599_v41  ;;  %v13641_v41 = vcombine.high %v3457_v16, %v3461_v31 }
 0x42d   :  { %10547 = vmatpush1.bf16.msra.mxu1 %v13592_v40  ;;  %v13639_v40 = vcombine.high %v3456_v28, %v3460_v5  ;;  %v3500_v28 = vld [vmem:[#allocation9 + $0x430] sm:$0xff]  ;;  %v3497_v5 = vld [vmem:[#allocation9 + $0x418] sm:$0xff] }
 0x42e   :  { %10548 = vmatprep.subr.bf16.mxu1 %v13601_v38  ;;  %v3464_v38 = vld [vmem:[#allocation9 + $0x310] sm:$0xff] }
 0x42f   :  { %10221 = vmatpush1.bf16.msra.mxu0 %v13598_v44  ;;  %v13640_v44 = vcombine.low %v3457_v16, %v3461_v31  ;;  %v13646_v22 = vcombine.low %v3464_v38, %v3468_v55  ;;  %v3501_v16 = vld [vmem:[#allocation9 + $0x438] sm:$0xff] }
 0x430   :  { %10222 = vmatprep.subr.bf16.mxu0 %v13607_v18  ;;  %v13649_v18 = vcombine.high %v3465_v8, %v3469_v39 }
 0x431   :  { %10549 = vmatpush1.bf16.msra.mxu1 %v13600_v46  ;;  %v13647_v46 = vcombine.high %v3464_v38, %v3468_v55  ;;  %v3508_v38 = vld [vmem:[#allocation9 + $0x470] sm:$0xff] }
 0x432   :  { %10550 = vmatprep.subr.bf16.mxu1 %v13609_v0  ;;  %v3472_v0 = vld [vmem:[#allocation9 + $0x350] sm:$0xff] }
 0x433   :  { %10223 = vmatpush1.bf16.msra.mxu0 %v13606_v4  ;;  %v13648_v4 = vcombine.low %v3465_v8, %v3469_v39  ;;  %v13654_v6 = vcombine.low %v3472_v0, %v3476_v51  ;;  %v3505_v8 = vld [vmem:[#allocation9 + $0x458] sm:$0xff] }
 0x434   :  { %10224 = vmatprep.subr.bf16.mxu0 %v13615_v1  ;;  %v13657_v1 = vcombine.high %v3473_v37, %v3477_v56  ;;  %v3509_v39 = vld [vmem:[#allocation9 + $0x478] sm:$0xff] }
 0x435   :  { %10551 = vmatpush1.bf16.msra.mxu1 %v13608_v35  ;;  %v13655_v35 = vcombine.high %v3472_v0, %v3476_v51  ;;  %v13689_v0 = vcombine.high %v3505_v8, %v3509_v39  ;;  %v3513_v51 = vld [vmem:[#allocation9 + $0x498] sm:$0xff] }
 0x436   :  { %10552 = vmatprep.subr.bf16.mxu1 %v13617_v50  ;;  %v3480_v50 = vld [vmem:[#allocation9 + $0x390] sm:$0xff] }
 0x437   :  { %10225 = vmatpush1.bf16.msra.mxu0 %v13614_v29  ;;  %v13656_v29 = vcombine.low %v3473_v37, %v3477_v56  ;;  %v13662_v19 = vcombine.low %v3480_v50, %v3484_v2  ;;  %v3517_v37 = vld [vmem:[#allocation9 + $0x4b8] sm:$0xff] }
 0x438   :  { %10226 = vmatprep.subr.bf16.mxu0 %v13623_v7  ;;  %v13665_v7 = vcombine.high %v3481_v26, %v3485_v17 }
 0x439   :  { %10553 = vmatpush1.bf16.msra.mxu1 %v13616_v3  ;;  %v13663_v3 = vcombine.high %v3480_v50, %v3484_v2  ;;  %v3524_v50 = vld [vmem:[#allocation9 + $0x4f0] sm:$0xff]  ;;  %v3521_v2 = vld [vmem:[#allocation9 + $0x4d8] sm:$0xff] }
 0x43a   :  { %10554 = vmatprep.subr.bf16.mxu1 %v13625_v9  ;;  %v3488_v9 = vld [vmem:[#allocation9 + $0x3d0] sm:$0xff] }
 0x43b   :  { %10227 = vmatpush1.bf16.msra.mxu0 %v13622_v30  ;;  %v13664_v30 = vcombine.low %v3481_v26, %v3485_v17  ;;  %v13670_v31 = vcombine.low %v3488_v9, %v3492_v10  ;;  %v3525_v26 = vld [vmem:[#allocation9 + $0x4f8] sm:$0xff] }
 0x43c   :  { %10228 = vmatprep.subr.bf16.mxu0 %v13631_v25  ;;  %v13673_v25 = vcombine.high %v3489_v13, %v3493_v23 }
 0x43d   :  { %10555 = vmatpush1.bf16.msra.mxu1 %v13624_v20  ;;  %v13671_v20 = vcombine.high %v3488_v9, %v3492_v10  ;;  %v3529_v9 = vld [vmem:[#allocation9 + $0x518] sm:$0xff] }
 0x43e   :  { %10556 = vmatprep.subr.bf16.mxu1 %v13633_v27  ;;  %v3496_v27 = vld [vmem:[#allocation9 + $0x410] sm:$0xff]  ;;  %v3533_v10 = vld [vmem:[#allocation9 + $0x538] sm:$0xff] }
 0x43f   :  { %10229 = vmatpush1.bf16.msra.mxu0 %v13630_v33  ;;  %v13672_v33 = vcombine.low %v3489_v13, %v3493_v23  ;;  %v13678_v55 = vcombine.low %v3496_v27, %v3500_v28  ;;  %v13704_v13 = vcombine.low %v3521_v2, %v3525_v26 }
 0x440   :  { %10230 = vmatprep.subr.bf16.mxu0 %v13639_v40  ;;  %v13681_v40 = vcombine.high %v3497_v5, %v3501_v16 }
 0x441   :  { %10557 = vmatpush1.bf16.msra.mxu1 %v13632_v47  ;;  %v13679_v47 = vcombine.high %v3496_v27, %v3500_v28  ;;  %v3541_v27 = vld [vmem:[#allocation9 + $0x578] sm:$0xff] }
 0x442   :  { %10558 = vmatprep.subr.bf16.mxu1 %v13641_v41  ;;  %v3504_v41 = vld [vmem:[#allocation9 + $0x450] sm:$0xff] }
 0x443   :  { %10231 = vmatpush1.bf16.msra.mxu0 %v13638_v42  ;;  %v13680_v42 = vcombine.low %v3497_v5, %v3501_v16  ;;  %v13686_v56 = vcombine.low %v3504_v41, %v3508_v38  ;;  %v13712_v5 = vcombine.low %v3529_v9, %v3533_v10 }
 0x444   :  { %10232 = vmatprep.subr.bf16.mxu0 %v13647_v46  ;;  %v3512_v46 = vld [vmem:[#allocation9 + $0x490] sm:$0xff] }
 0x445   :  { %10559 = vmatpush1.bf16.msra.mxu1 %v13640_v44  ;;  %v13687_v44 = vcombine.high %v3504_v41, %v3508_v38  ;;  %v3549_v41 = vld [vmem:[#allocation9 + $0x5b8] sm:$0xff] }
 0x446   :  { %10560 = vmatprep.subr.bf16.mxu1 %v13649_v18  ;;  %v3516_v18 = vld [vmem:[#allocation9 + $0x4b0] sm:$0xff] }
 0x447   :  { %10233 = vmatpush1.bf16.msra.mxu0 %v13646_v22  ;;  %v13688_v22 = vcombine.low %v3505_v8, %v3509_v39  ;;  %v13694_v17 = vcombine.low %v3512_v46, %v3516_v18 }
 0x448   :  { %10234 = vmatprep.subr.bf16.mxu0 %v13655_v35  ;;  %v13697_v35 = vcombine.high %v3513_v51, %v3517_v37 }
 0x449   :  { %10561 = vmatpush1.bf16.msra.mxu1 %v13648_v4  ;;  %v13695_v4 = vcombine.high %v3512_v46, %v3516_v18  ;;  %v3553_v46 = vld [vmem:[#allocation9 + $0x5d8] sm:$0xff] }
 0x44a   :  { %10562 = vmatprep.subr.bf16.mxu1 %v13657_v1  ;;  %v3520_v1 = vld [vmem:[#allocation9 + $0x4d0] sm:$0xff]  ;;  %v3557_v18 = vld [vmem:[#allocation9 + $0x5f8] sm:$0xff] }
 0x44b   :  { %10235 = vmatpush1.bf16.msra.mxu0 %v13654_v6  ;;  %v13703_v6 = vcombine.high %v3520_v1, %v3524_v50 }
 0x44c   :  { %10236 = vmatprep.subr.bf16.mxu0 %v13663_v3  ;;  %v3528_v3 = vld [vmem:[#allocation9 + $0x510] sm:$0xff] }
 0x44d   :  { %10563 = vmatpush1.bf16.msra.mxu1 %v13656_v29  ;;  %v13705_v29 = vcombine.high %v3521_v2, %v3525_v26  ;;  %v13736_v2 = vcombine.low %v3553_v46, %v3557_v18 }
 0x44e   :  { %10564 = vmatprep.subr.bf16.mxu1 %v13665_v7  ;;  %v3532_v7 = vld [vmem:[#allocation9 + $0x530] sm:$0xff] }
 0x44f   :  { %10237 = vmatpush1.bf16.msra.mxu0 %v13662_v19  ;;  %v13711_v23 = vcombine.high %v3528_v3, %v3532_v7  ;;  %v13713_v19 = vcombine.high %v3529_v9, %v3533_v10  ;;  %v13710_v28 = vcombine.low %v3528_v3, %v3532_v7  ;;  %v3573_v3 = vld [vmem:[#allocation9 + $0x678] sm:$0xff] }
 0x450   :  { %10238 = vmatprep.subr.bf16.mxu0 %v13671_v20  ;;  %v3540_v20 = vld [vmem:[#allocation9 + $0x570] sm:$0xff] }
 0x451   :  { %10565 = vmatpush1.bf16.msra.mxu1 %v13664_v30  ;;  %v3536_v30 = vld [vmem:[#allocation9 + $0x550] sm:$0xff] }
 0x452   :  { %10566 = vmatprep.subr.bf16.mxu1 %v13673_v25  ;;  %v3537_v25 = vld [vmem:[#allocation9 + $0x558] sm:$0xff]  ;;  %v13719_v16 = vcombine.high %v3536_v30, %v3540_v20  ;;  %v13718_v38 = vcombine.low %v3536_v30, %v3540_v20 }
 0x453   :  { %10239 = vmatpush1.bf16.msra.mxu0 %v13670_v31  ;;  %v13721_v31 = vcombine.high %v3537_v25, %v3541_v27  ;;  %v3581_v30 = vld [vmem:[#allocation9 + $0x6b8] sm:$0xff] }
 0x454   :  { %10249 = vmatprep.subr.bf16.mxu0 %v13679_v47  ;;  %v3548_v47 = vld [vmem:[#allocation9 + $0x5b0] sm:$0xff] }
 0x455   :  { %10567 = vmatpush1.bf16.msra.mxu1 %v13672_v33  ;;  %v3544_v33 = vld [vmem:[#allocation9 + $0x590] sm:$0xff] }
 0x456   :  { %10577 = vmatprep.subr.bf16.mxu1 %v13681_v40  ;;  %10241 = vmatmul.mubr.bf16.vlgmr.msra.gmra.mrb[36].mxu0 %v15960_v52  ;;  %v3545_v40 = vld [vmem:[#allocation9 + $0x598] sm:$0xff]  ;;  %v13727_v8 = vcombine.high %v3544_v33, %v3548_v47 }
 0x457   :  { %10250 = vmatpush1.bf16.msra.mxu0 %v13678_v55  ;;  %10281 = vmatprep.mubr.bf16.mxu0 %v15962_v58  ;;  %v13720_v55 = vcombine.low %v3537_v25, %v3541_v27  ;;  %v13729_v39 = vcombine.high %v3545_v40, %v3549_v41 }
 0x458   :  { %10569 = vmatmul.mubr.bf16.vlgmr.msra.gmra.mrb[36].mxu1 %v15960_v52  ;;  %10251 = vmatprep.subr.bf16.mxu0 %v13687_v44  ;;  %v13696_v52 = vcombine.low %v3513_v51, %v3517_v37  ;;  %v3556_v44 = vld [vmem:[#allocation9 + $0x5f0] sm:$0xff]  ;;  %v13728_v51 = vcombine.low %v3545_v40, %v3549_v41 }
 0x459   :  { %10578 = vmatpush1.bf16.msra.mxu1 %v13680_v42  ;;  %10609 = vmatprep.mubr.bf16.mxu1 %v15962_v58  ;;  %v13702_v58 = vcombine.low %v3520_v1, %v3524_v50  ;;  %v3552_v42 = vld [vmem:[#allocation9 + $0x5d0] sm:$0xff]  ;;  %v3565_v1 = vld [vmem:[#allocation9 + $0x638] sm:$0xff] }
 0x45a   :  { %10579 = vmatprep.subr.bf16.mxu1 %v13689_v0  ;;  %v13726_v0 = vcombine.low %v3544_v33, %v3548_v47  ;;  %v13735_v37 = vcombine.high %v3552_v42, %v3556_v44  ;;  %v13734_v50 = vcombine.low %v3552_v42, %v3556_v44  ;;  %v3589_v33 = vld [vmem:[#allocation9 + $0x6f8] sm:$0xff] }
 0x45b   :  { %10252 = vmatpush1.bf16.msra.mxu0 %v13686_v56  ;;  %v13737_v56 = vcombine.high %v3553_v46, %v3557_v18  ;;  %v3597_v42 = vld [vmem:[#allocation9 + $0x738] sm:$0xff] }
 0x45c   :  { %10253 = vmatprep.subr.bf16.mxu0 %v13695_v4  ;;  %v3564_v4 = vld [vmem:[#allocation9 + $0x630] sm:$0xff] }
 0x45d   :  { %10580 = vmatpush1.bf16.msra.mxu1 %v13688_v22  ;;  %v3560_v22 = vld [vmem:[#allocation9 + $0x610] sm:$0xff] }
 0x45e   :  { %10581 = vmatprep.subr.bf16.mxu1 %v13697_v35  ;;  %v3561_v35 = vld [vmem:[#allocation9 + $0x618] sm:$0xff]  ;;  %v13743_v26 = vcombine.high %v3560_v22, %v3564_v4  ;;  %v13742_v7 = vcombine.low %v3560_v22, %v3564_v4 }
 0x45f   :  { %10254 = vmatpush1.bf16.msra.mxu0 %v13694_v17  ;;  %v13745_v17 = vcombine.high %v3561_v35, %v3565_v1  ;;  %v13744_v9 = vcombine.low %v3561_v35, %v3565_v1  ;;  %v3605_v22 = vld [vmem:[#allocation9 + $0x778] sm:$0xff] }
 0x460   :  { %10255 = vmatprep.subr.bf16.mxu0 %v13703_v6  ;;  %v3572_v6 = vld [vmem:[#allocation9 + $0x670] sm:$0xff] }
 0x461   :  { %10582 = vmatpush1.bf16.msra.mxu1 %v13696_v52  ;;  %v3568_v52 = vld [vmem:[#allocation9 + $0x650] sm:$0xff] }
 0x462   :  { %10583 = vmatprep.subr.bf16.mxu1 %v13705_v29  ;;  %v3569_v29 = vld [vmem:[#allocation9 + $0x658] sm:$0xff]  ;;  %v13751_v10 = vcombine.high %v3568_v52, %v3572_v6  ;;  %v13750_v20 = vcombine.low %v3568_v52, %v3572_v6 }
 0x463   :  { %10256 = vmatpush1.bf16.msra.mxu0 %v13702_v58  ;;  %v13753_v58 = vcombine.high %v3569_v29, %v3573_v3  ;;  %v13752_v25 = vcombine.low %v3569_v29, %v3573_v3  ;;  %v3613_v52 = vld [vmem:[#allocation9 + $0x7b8] sm:$0xff] }
 0x464   :  { %10257 = vmatprep.subr.bf16.mxu0 %v13711_v23  ;;  %v3580_v23 = vld [vmem:[#allocation9 + $0x6b0] sm:$0xff] }
 0x465   :  { %10584 = vmatpush1.bf16.msra.mxu1 %v13704_v13  ;;  %v3576_v13 = vld [vmem:[#allocation9 + $0x690] sm:$0xff] }
 0x466   :  { %10585 = vmatprep.subr.bf16.mxu1 %v13713_v19  ;;  %v3577_v19 = vld [vmem:[#allocation9 + $0x698] sm:$0xff]  ;;  %v13759_v27 = vcombine.high %v3576_v13, %v3580_v23  ;;  %v13758_v47 = vcombine.low %v3576_v13, %v3580_v23 }
 0x467   :  { %10258 = vmatpush1.bf16.msra.mxu0 %v13710_v28  ;;  %v13761_v28 = vcombine.high %v3577_v19, %v3581_v30  ;;  %v13760_v40 = vcombine.low %v3577_v19, %v3581_v30  ;;  %v3621_v13 = vld [vmem:[#allocation9 + $0x7f8] sm:$0xff] }
 0x468   :  { %10259 = vmatprep.subr.bf16.mxu0 %v13719_v16  ;;  %v3588_v16 = vld [vmem:[#allocation9 + $0x6f0] sm:$0xff] }
 0x469   :  { %10586 = vmatpush1.bf16.msra.mxu1 %v13712_v5  ;;  %v3584_v5 = vld [vmem:[#allocation9 + $0x6d0] sm:$0xff] }
 0x46a   :  { %10587 = vmatprep.subr.bf16.mxu1 %v13721_v31  ;;  %v3585_v31 = vld [vmem:[#allocation9 + $0x6d8] sm:$0xff]  ;;  %v13767_v41 = vcombine.high %v3584_v5, %v3588_v16  ;;  %v13766_v44 = vcombine.low %v3584_v5, %v3588_v16 }
 0x46b   :  { %10260 = vmatpush1.bf16.msra.mxu0 %v13718_v38  ;;  %v13769_v38 = vcombine.high %v3585_v31, %v3589_v33  ;;  %v13768_v46 = vcombine.low %v3585_v31, %v3589_v33  ;;  %v3629_v5 = vld [vmem:[#allocation9 + $0x838] sm:$0xff] }
 0x46c   :  { %10261 = vmatprep.subr.bf16.mxu0 %v13727_v8  ;;  %v3596_v8 = vld [vmem:[#allocation9 + $0x730] sm:$0xff] }
 0x46d   :  { %10588 = vmatpush1.bf16.msra.mxu1 %v13720_v55  ;;  %v3592_v55 = vld [vmem:[#allocation9 + $0x710] sm:$0xff] }
 0x46e   :  { %10589 = vmatprep.subr.bf16.mxu1 %v13729_v39  ;;  %v3593_v39 = vld [vmem:[#allocation9 + $0x718] sm:$0xff]  ;;  %v13775_v18 = vcombine.high %v3592_v55, %v3596_v8  ;;  %v13774_v4 = vcombine.low %v3592_v55, %v3596_v8 }
 0x46f   :  { %10262 = vmatpush1.bf16.msra.mxu0 %v13726_v0  ;;  %v13777_v0 = vcombine.high %v3593_v39, %v3597_v42  ;;  %v13776_v35 = vcombine.low %v3593_v39, %v3597_v42  ;;  %v3633_v55 = vld [vmem:[#allocation9 + $0x858] sm:$0xff] }
 0x470   :  { %10263 = vmatprep.subr.bf16.mxu0 %v13735_v37  ;;  %v3604_v37 = vld [vmem:[#allocation9 + $0x770] sm:$0xff]  ;;  %v3637_v8 = vld [vmem:[#allocation9 + $0x878] sm:$0xff] }
 0x471   :  { %10590 = vmatpush1.bf16.msra.mxu1 %v13728_v51  ;;  %v3600_v51 = vld [vmem:[#allocation9 + $0x750] sm:$0xff] }
 0x472   :  { %10591 = vmatprep.subr.bf16.mxu1 %v13737_v56  ;;  %v3601_v56 = vld [vmem:[#allocation9 + $0x758] sm:$0xff]  ;;  %v13783_v1 = vcombine.high %v3600_v51, %v3604_v37  ;;  %v13782_v6 = vcombine.low %v3600_v51, %v3604_v37 }
 0x473   :  { %10264 = vmatpush1.bf16.msra.mxu0 %v13734_v50  ;;  %v13785_v50 = vcombine.high %v3601_v56, %v3605_v22  ;;  %v13784_v29 = vcombine.low %v3601_v56, %v3605_v22  ;;  %v3645_v51 = vld [vmem:[#allocation9 + $0x8b8] sm:$0xff]  ;;  %v13816_v56 = vcombine.low %v3633_v55, %v3637_v8 }
 0x474   :  { %10265 = vmatprep.subr.bf16.mxu0 %v13743_v26  ;;  %v3612_v26 = vld [vmem:[#allocation9 + $0x7b0] sm:$0xff] }
 0x475   :  { %10592 = vmatpush1.bf16.msra.mxu1 %v13736_v2  ;;  %v3608_v2 = vld [vmem:[#allocation9 + $0x790] sm:$0xff] }
 0x476   :  { %10593 = vmatprep.subr.bf16.mxu1 %v13745_v17  ;;  %v3609_v17 = vld [vmem:[#allocation9 + $0x798] sm:$0xff]  ;;  %v13791_v3 = vcombine.high %v3608_v2, %v3612_v26  ;;  %v13790_v23 = vcombine.low %v3608_v2, %v3612_v26 }
 0x477   :  { %10266 = vmatpush1.bf16.msra.mxu0 %v13742_v7  ;;  %v13793_v7 = vcombine.high %v3609_v17, %v3613_v52  ;;  %v13792_v19 = vcombine.low %v3609_v17, %v3613_v52  ;;  %v3653_v2 = vld [vmem:[#allocation9 + $0x8f8] sm:$0xff] }
 0x478   :  { %10267 = vmatprep.subr.bf16.mxu0 %v13751_v10  ;;  %v3620_v10 = vld [vmem:[#allocation9 + $0x7f0] sm:$0xff] }
 0x479   :  { %10594 = vmatpush1.bf16.msra.mxu1 %v13744_v9  ;;  %v3616_v9 = vld [vmem:[#allocation9 + $0x7d0] sm:$0xff] }
 0x47a   :  { %10595 = vmatprep.subr.bf16.mxu1 %v13753_v58  ;;  %v3617_v58 = vld [vmem:[#allocation9 + $0x7d8] sm:$0xff]  ;;  %v13799_v30 = vcombine.high %v3616_v9, %v3620_v10  ;;  %v13798_v16 = vcombine.low %v3616_v9, %v3620_v10 }
 0x47b   :  { %10268 = vmatpush1.bf16.msra.mxu0 %v13750_v20  ;;  %v13801_v20 = vcombine.high %v3617_v58, %v3621_v13  ;;  %v13800_v31 = vcombine.low %v3617_v58, %v3621_v13  ;;  %v3664_v13 = vld [vmem:[#allocation9 + $0x950] sm:$0xff] }
 0x47c   :  { %10269 = vmatprep.subr.bf16.mxu0 %v13759_v27  ;;  %v3628_v27 = vld [vmem:[#allocation9 + $0x830] sm:$0xff] }
 0x47d   :  { %10596 = vmatpush1.bf16.msra.mxu1 %v13752_v25  ;;  %v3624_v25 = vld [vmem:[#allocation9 + $0x810] sm:$0xff] }
 0x47e   :  { %10597 = vmatprep.subr.bf16.mxu1 %v13761_v28  ;;  %v3625_v28 = vld [vmem:[#allocation9 + $0x818] sm:$0xff]  ;;  %v13807_v33 = vcombine.high %v3624_v25, %v3628_v27 }
 0x47f   :  { %10270 = vmatpush1.bf16.msra.mxu0 %v13758_v47  ;;  %v13809_v47 = vcombine.high %v3625_v28, %v3629_v5  ;;  %v13808_v39 = vcombine.low %v3625_v28, %v3629_v5  ;;  %v3672_v5 = vld [vmem:[#allocation9 + $0x990] sm:$0xff] }
 0x480   :  { %10271 = vmatprep.subr.bf16.mxu0 %v13767_v41  ;;  %v3636_v41 = vld [vmem:[#allocation9 + $0x870] sm:$0xff] }
 0x481   :  { %10598 = vmatpush1.bf16.msra.mxu1 %v13760_v40  ;;  %v3632_v40 = vld [vmem:[#allocation9 + $0x850] sm:$0xff] }
 0x482   :  { %10599 = vmatprep.subr.bf16.mxu1 %v13769_v38  ;;  %v13806_v38 = vcombine.low %v3624_v25, %v3628_v27  ;;  %v13815_v42 = vcombine.high %v3632_v40, %v3636_v41  ;;  %v13814_v37 = vcombine.low %v3632_v40, %v3636_v41 }
 0x483   :  { %10272 = vmatpush1.bf16.msra.mxu0 %v13766_v44  ;;  %v3640_v44 = vld [vmem:[#allocation9 + $0x890] sm:$0xff] }
 0x484   :  { %10273 = vmatprep.subr.bf16.mxu0 %v13775_v18  ;;  %v13817_v18 = vcombine.high %v3633_v55, %v3637_v8  ;;  %v3680_v55 = vld [vmem:[#allocation9 + $0x9d0] sm:$0xff] }
 0x485   :  { %10600 = vmatpush1.bf16.msra.mxu1 %v13768_v46  ;;  %v3644_v46 = vld [vmem:[#allocation9 + $0x8b0] sm:$0xff] }
 0x486   :  { %10601 = vmatprep.subr.bf16.mxu1 %v13777_v0  ;;  %v3641_v0 = vld [vmem:[#allocation9 + $0x898] sm:$0xff]  ;;  %v13823_v22 = vcombine.high %v3640_v44, %v3644_v46  ;;  %v13822_v26 = vcombine.low %v3640_v44, %v3644_v46  ;;  %v3684_v8 = vld [vmem:[#allocation9 + $0x9f0] sm:$0xff] }
 0x487   :  { %10274 = vmatpush1.bf16.msra.mxu0 %v13774_v4  ;;  %v13825_v4 = vcombine.high %v3641_v0, %v3645_v51 }
 0x488   :  { %10275 = vmatprep.subr.bf16.mxu0 %v13783_v1  ;;  %v3652_v1 = vld [vmem:[#allocation9 + $0x8f0] sm:$0xff] }
 0x489   :  { %10602 = vmatpush1.bf16.msra.mxu1 %v13776_v35  ;;  %v3648_v35 = vld [vmem:[#allocation9 + $0x8d0] sm:$0xff] }
 0x48a   :  { %10603 = vmatprep.subr.bf16.mxu1 %v13785_v50  ;;  %v3649_v50 = vld [vmem:[#allocation9 + $0x8d8] sm:$0xff]  ;;  %v13831_v17 = vcombine.high %v3648_v35, %v3652_v1 }
 0x48b   :  { %10276 = vmatpush1.bf16.msra.mxu0 %v13782_v6  ;;  %v13833_v52 = vcombine.high %v3649_v50, %v3653_v2  ;;  %v3656_v6 = vld [vmem:[#allocation9 + $0x910] sm:$0xff]  ;;  %v13832_v9 = vcombine.low %v3649_v50, %v3653_v2 }
 0x48c   :  { %10277 = vmatprep.subr.bf16.mxu0 %v13791_v3  ;;  %v3657_v3 = vld [vmem:[#allocation9 + $0x918] sm:$0xff]  ;;  %v3696_v2 = vld [vmem:[#allocation9 + $0xa50] sm:$0xff] }
 0x48d   :  { %10604 = vmatpush1.bf16.msra.mxu1 %v13784_v29  ;;  %v3660_v29 = vld [vmem:[#allocation9 + $0x930] sm:$0xff] }
 0x48e   :  { %10605 = vmatprep.subr.bf16.mxu1 %v13793_v7  ;;  %v3661_v7 = vld [vmem:[#allocation9 + $0x938] sm:$0xff]  ;;  %v13839_v10 = vcombine.high %v3656_v6, %v3660_v29 }
 0x48f   :  { %10278 = vmatpush1.bf16.msra.mxu0 %v13790_v23  ;;  %v13841_v58 = vcombine.high %v3657_v3, %v3661_v7  ;;  %v3668_v23 = vld [vmem:[#allocation9 + $0x970] sm:$0xff]  ;;  %v13840_v25 = vcombine.low %v3657_v3, %v3661_v7 }
 0x490   :  { %10279 = vmatprep.subr.bf16.mxu0 %v13799_v30  ;;  %v3669_v30 = vld [vmem:[#allocation9 + $0x978] sm:$0xff]  ;;  %v13847_v27 = vcombine.high %v3664_v13, %v3668_v23  ;;  %v3704_v7 = vld [vmem:[#allocation9 + $0xa90] sm:$0xff] }
 0x491   :  { %10606 = vmatpush1.bf16.msra.mxu1 %v13792_v19  ;;  %v3665_v19 = vld [vmem:[#allocation9 + $0x958] sm:$0xff] }
 0x492   :  { %10607 = vmatprep.subr.bf16.mxu1 %v13801_v20  ;;  %v13838_v20 = vcombine.low %v3656_v6, %v3660_v29  ;;  %v13849_v28 = vcombine.high %v3665_v19, %v3669_v30  ;;  %v13848_v40 = vcombine.low %v3665_v19, %v3669_v30  ;;  %v3712_v30 = vld [vmem:[#allocation9 + $0xad0] sm:$0xff] }
 0x493   :  { %10280 = vmatpush1.bf16.msra.mxu0 %v13798_v16  ;;  %v3676_v16 = vld [vmem:[#allocation9 + $0x9b0] sm:$0xff] }
 0x494   :  { %10290 = vmatprep.subr.bf16.mxu0 %v13807_v33  ;;  %v3677_v33 = vld [vmem:[#allocation9 + $0x9b8] sm:$0xff]  ;;  %v13855_v41 = vcombine.high %v3672_v5, %v3676_v16  ;;  %v13854_v44 = vcombine.low %v3672_v5, %v3676_v16 }
 0x495   :  { %10608 = vmatpush1.bf16.msra.mxu1 %v13800_v31  ;;  %v3673_v31 = vld [vmem:[#allocation9 + $0x998] sm:$0xff] }
 0x496   :  { %10618 = vmatprep.subr.bf16.mxu1 %v13809_v47  ;;  %10282 = vmatmul.mubr.bf16.vlgmr.msra.gmra.mrb[36].mxu0 %v15990_v62  ;;  %v13846_v47 = vcombine.low %v3664_v13, %v3668_v23  ;;  %v13856_v46 = vcombine.low %v3673_v31, %v3677_v33 }
 0x497   :  { %10291 = vmatpush1.bf16.msra.mxu0 %v13806_v38  ;;  %10322 = vmatprep.mubr.bf16.mxu0 %v15992_v43  ;;  %v13857_v38 = vcombine.high %v3673_v31, %v3677_v33  ;;  %v3720_v33 = vld [vmem:[#allocation9 + $0xb10] sm:$0xff] }
 0x498   :  { %10610 = vmatmul.mubr.bf16.vlgmr.msra.gmra.mrb[36].mxu1 %v15990_v62  ;;  %10292 = vmatprep.subr.bf16.mxu0 %v13815_v42  ;;  %v13824_v62 = vcombine.low %v3641_v0, %v3645_v51  ;;  %v3685_v42 = vld [vmem:[#allocation9 + $0x9f8] sm:$0xff]  ;;  %v3688_v51 = vld [vmem:[#allocation9 + $0xa10] sm:$0xff] }
 0x499   :  { %10619 = vmatpush1.bf16.msra.mxu1 %v13808_v39  ;;  %10650 = vmatprep.mubr.bf16.mxu1 %v15992_v43  ;;  %v13830_v43 = vcombine.low %v3648_v35, %v3652_v1  ;;  %v3681_v39 = vld [vmem:[#allocation9 + $0x9d8] sm:$0xff] }
 0x49a   :  { %10620 = vmatprep.subr.bf16.mxu1 %v13817_v18  ;;  %v13863_v18 = vcombine.high %v3680_v55, %v3684_v8  ;;  %v13865_v0 = vcombine.high %v3681_v39, %v3685_v42  ;;  %v13864_v35 = vcombine.low %v3681_v39, %v3685_v42  ;;  %v3728_v42 = vld [vmem:[#allocation9 + $0xb50] sm:$0xff] }
 0x49b   :  { %10293 = vmatpush1.bf16.msra.mxu0 %v13814_v37  ;;  %v3692_v37 = vld [vmem:[#allocation9 + $0xa30] sm:$0xff] }
 0x49c   :  { %10294 = vmatprep.subr.bf16.mxu0 %v13823_v22  ;;  %v3693_v22 = vld [vmem:[#allocation9 + $0xa38] sm:$0xff]  ;;  %v13871_v1 = vcombine.high %v3688_v51, %v3692_v37 }
 0x49d   :  { %10621 = vmatpush1.bf16.msra.mxu1 %v13816_v56  ;;  %v3689_v56 = vld [vmem:[#allocation9 + $0xa18] sm:$0xff] }
 0x49e   :  { %10622 = vmatprep.subr.bf16.mxu1 %v13825_v4  ;;  %v13862_v4 = vcombine.low %v3680_v55, %v3684_v8  ;;  %v13873_v50 = vcombine.high %v3689_v56, %v3693_v22  ;;  %v13872_v6 = vcombine.low %v3689_v56, %v3693_v22  ;;  %v3736_v22 = vld [vmem:[#allocation9 + $0xb90] sm:$0xff] }
 0x49f   :  { %10295 = vmatpush1.bf16.msra.mxu0 %v13822_v26  ;;  %v3700_v26 = vld [vmem:[#allocation9 + $0xa70] sm:$0xff] }
 0x4a0   :  { %10296 = vmatprep.subr.bf16.mxu0 %v13831_v17  ;;  %v3701_v17 = vld [vmem:[#allocation9 + $0xa78] sm:$0xff]  ;;  %v13879_v29 = vcombine.high %v3696_v2, %v3700_v26 }
 0x4a1   :  { %10623 = vmatpush1.bf16.msra.mxu1 %v13824_v62  ;;  %v3697_v62 = vld [vmem:[#allocation9 + $0xa58] sm:$0xff] }
 0x4a2   :  { %10624 = vmatprep.subr.bf16.mxu1 %v13833_v52  ;;  %v13870_v52 = vcombine.low %v3688_v51, %v3692_v37  ;;  %v13881_v3 = vcombine.high %v3697_v62, %v3701_v17  ;;  %v13880_v13 = vcombine.low %v3697_v62, %v3701_v17  ;;  %v3744_v17 = vld [vmem:[#allocation9 + $0xbd0] sm:$0xff] }
 0x4a3   :  { %10297 = vmatpush1.bf16.msra.mxu0 %v13830_v43  ;;  %v3708_v43 = vld [vmem:[#allocation9 + $0xab0] sm:$0xff] }
 0x4a4   :  { %10298 = vmatprep.subr.bf16.mxu0 %v13839_v10  ;;  %v3709_v10 = vld [vmem:[#allocation9 + $0xab8] sm:$0xff]  ;;  %v13887_v23 = vcombine.high %v3704_v7, %v3708_v43 }
 0x4a5   :  { %10625 = vmatpush1.bf16.msra.mxu1 %v13832_v9  ;;  %v3705_v9 = vld [vmem:[#allocation9 + $0xa98] sm:$0xff] }
 0x4a6   :  { %10626 = vmatprep.subr.bf16.mxu1 %v13841_v58  ;;  %v13878_v58 = vcombine.low %v3696_v2, %v3700_v26  ;;  %v13889_v19 = vcombine.high %v3705_v9, %v3709_v10  ;;  %v13888_v5 = vcombine.low %v3705_v9, %v3709_v10  ;;  %v3752_v10 = vld [vmem:[#allocation9 + $0xc10] sm:$0xff] }
 0x4a7   :  { %10299 = vmatpush1.bf16.msra.mxu0 %v13838_v20  ;;  %v3716_v20 = vld [vmem:[#allocation9 + $0xaf0] sm:$0xff] }
 0x4a8   :  { %10300 = vmatprep.subr.bf16.mxu0 %v13847_v27  ;;  %v3717_v27 = vld [vmem:[#allocation9 + $0xaf8] sm:$0xff]  ;;  %v13895_v16 = vcombine.high %v3712_v30, %v3716_v20 }
 0x4a9   :  { %10627 = vmatpush1.bf16.msra.mxu1 %v13840_v25  ;;  %v3713_v25 = vld [vmem:[#allocation9 + $0xad8] sm:$0xff] }
 0x4aa   :  { %10628 = vmatprep.subr.bf16.mxu1 %v13849_v28  ;;  %v13886_v28 = vcombine.low %v3704_v7, %v3708_v43  ;;  %v13897_v31 = vcombine.high %v3713_v25, %v3717_v27  ;;  %v13896_v55 = vcombine.low %v3713_v25, %v3717_v27  ;;  %v3760_v27 = vld [vmem:[#allocation9 + $0xc50] sm:$0xff] }
 0x4ab   :  { %10301 = vmatpush1.bf16.msra.mxu0 %v13846_v47  ;;  %v3724_v47 = vld [vmem:[#allocation9 + $0xb30] sm:$0xff] }
 0x4ac   :  { %10302 = vmatprep.subr.bf16.mxu0 %v13855_v41  ;;  %v3725_v41 = vld [vmem:[#allocation9 + $0xb38] sm:$0xff]  ;;  %v13903_v8 = vcombine.high %v3720_v33, %v3724_v47 }
 0x4ad   :  { %10629 = vmatpush1.bf16.msra.mxu1 %v13848_v40  ;;  %v3721_v40 = vld [vmem:[#allocation9 + $0xb18] sm:$0xff] }
 0x4ae   :  { %10630 = vmatprep.subr.bf16.mxu1 %v13857_v38  ;;  %v13894_v38 = vcombine.low %v3712_v30, %v3716_v20  ;;  %v13905_v39 = vcombine.high %v3721_v40, %v3725_v41  ;;  %v13904_v51 = vcombine.low %v3721_v40, %v3725_v41  ;;  %v3768_v40 = vld [vmem:[#allocation9 + $0xc90] sm:$0xff] }
 0x4af   :  { %10303 = vmatpush1.bf16.msra.mxu0 %v13854_v44  ;;  %v3732_v44 = vld [vmem:[#allocation9 + $0xb70] sm:$0xff] }
 0x4b0   :  { %10304 = vmatprep.subr.bf16.mxu0 %v13863_v18  ;;  %v3733_v18 = vld [vmem:[#allocation9 + $0xb78] sm:$0xff]  ;;  %v13911_v37 = vcombine.high %v3728_v42, %v3732_v44  ;;  %v3772_v41 = vld [vmem:[#allocation9 + $0xcb0] sm:$0xff] }
 0x4b1   :  { %10631 = vmatpush1.bf16.msra.mxu1 %v13856_v46  ;;  %v3729_v46 = vld [vmem:[#allocation9 + $0xb58] sm:$0xff] }
 0x4b2   :  { %10632 = vmatprep.subr.bf16.mxu1 %v13865_v0  ;;  %v13902_v0 = vcombine.low %v3720_v33, %v3724_v47  ;;  %v13913_v56 = vcombine.high %v3729_v46, %v3733_v18  ;;  %v13912_v2 = vcombine.low %v3729_v46, %v3733_v18  ;;  %v3776_v18 = vld [vmem:[#allocation9 + $0xcd0] sm:$0xff] }
 0x4b3   :  { %10305 = vmatpush1.bf16.msra.mxu0 %v13862_v4  ;;  %v3740_v4 = vld [vmem:[#allocation9 + $0xbb0] sm:$0xff] }
 0x4b4   :  { %10306 = vmatprep.subr.bf16.mxu0 %v13871_v1  ;;  %v3741_v1 = vld [vmem:[#allocation9 + $0xbb8] sm:$0xff]  ;;  %v13919_v26 = vcombine.high %v3736_v22, %v3740_v4 }
 0x4b5   :  { %10633 = vmatpush1.bf16.msra.mxu1 %v13864_v35  ;;  %v3737_v35 = vld [vmem:[#allocation9 + $0xb98] sm:$0xff] }
 0x4b6   :  { %10634 = vmatprep.subr.bf16.mxu1 %v13873_v50  ;;  %v13910_v50 = vcombine.low %v3728_v42, %v3732_v44  ;;  %v13921_v62 = vcombine.high %v3737_v35, %v3741_v1  ;;  %v13920_v7 = vcombine.low %v3737_v35, %v3741_v1  ;;  %v13951_v44 = vcombine.high %v3768_v40, %v3772_v41  ;;  %v3784_v35 = vld [vmem:[#allocation9 + $0xd10] sm:$0xff] }
 0x4b7   :  { %10307 = vmatpush1.bf16.msra.mxu0 %v13870_v52  ;;  %v3748_v52 = vld [vmem:[#allocation9 + $0xbf0] sm:$0xff] }
 0x4b8   :  { %10308 = vmatprep.subr.bf16.mxu0 %v13879_v29  ;;  %v3749_v29 = vld [vmem:[#allocation9 + $0xbf8] sm:$0xff]  ;;  %v13927_v43 = vcombine.high %v3744_v17, %v3748_v52  ;;  %v3788_v1 = vld [vmem:[#allocation9 + $0xd30] sm:$0xff] }
 0x4b9   :  { %10635 = vmatpush1.bf16.msra.mxu1 %v13872_v6  ;;  %v3745_v6 = vld [vmem:[#allocation9 + $0xbd8] sm:$0xff] }
 0x4ba   :  { %10636 = vmatprep.subr.bf16.mxu1 %v13881_v3  ;;  %v13918_v3 = vcombine.low %v3736_v22, %v3740_v4  ;;  %v13929_v9 = vcombine.high %v3745_v6, %v3749_v29  ;;  %v13928_v30 = vcombine.low %v3745_v6, %v3749_v29  ;;  %v3796_v6 = vld [vmem:[#allocation9 + $0xd70] sm:$0xff]  ;;  %v3793_v29 = vld [vmem:[#allocation9 + $0xd58] sm:$0xff] }
 0x4bb   :  { %10309 = vmatpush1.bf16.msra.mxu0 %v13878_v58  ;;  %v3756_v58 = vld [vmem:[#allocation9 + $0xc30] sm:$0xff] }
 0x4bc   :  { %10310 = vmatprep.subr.bf16.mxu0 %v13887_v23  ;;  %v3757_v23 = vld [vmem:[#allocation9 + $0xc38] sm:$0xff]  ;;  %v13935_v20 = vcombine.high %v3752_v10, %v3756_v58 }
 0x4bd   :  { %10637 = vmatpush1.bf16.msra.mxu1 %v13880_v13  ;;  %v3753_v13 = vld [vmem:[#allocation9 + $0xc18] sm:$0xff] }
 0x4be   :  { %10638 = vmatprep.subr.bf16.mxu1 %v13889_v19  ;;  %v13926_v19 = vcombine.low %v3744_v17, %v3748_v52  ;;  %v13937_v25 = vcombine.high %v3753_v13, %v3757_v23  ;;  %v13936_v33 = vcombine.low %v3753_v13, %v3757_v23  ;;  %v3792_v52 = vld [vmem:[#allocation9 + $0xd50] sm:$0xff]  ;;  %v3801_v23 = vld [vmem:[#allocation9 + $0xd98] sm:$0xff] }
 0x4bf   :  { %10311 = vmatpush1.bf16.msra.mxu0 %v13886_v28  ;;  %v3764_v28 = vld [vmem:[#allocation9 + $0xc70] sm:$0xff] }
 0x4c0   :  { %10312 = vmatprep.subr.bf16.mxu0 %v13895_v16  ;;  %v3761_v16 = vld [vmem:[#allocation9 + $0xc58] sm:$0xff]  ;;  %v13943_v47 = vcombine.high %v3760_v27, %v3764_v28  ;;  %v3804_v13 = vld [vmem:[#allocation9 + $0xdb0] sm:$0xff] }
 0x4c1   :  { %10639 = vmatpush1.bf16.msra.mxu1 %v13888_v5  ;;  %v13934_v5 = vcombine.low %v3752_v10, %v3756_v58  ;;  %v3800_v58 = vld [vmem:[#allocation9 + $0xd90] sm:$0xff] }
 0x4c2   :  { %10640 = vmatprep.subr.bf16.mxu1 %v13897_v31  ;;  %v3765_v31 = vld [vmem:[#allocation9 + $0xc78] sm:$0xff] }
 0x4c3   :  { %10313 = vmatpush1.bf16.msra.mxu0 %v13894_v38  ;;  %v13945_v38 = vcombine.high %v3761_v16, %v3765_v31  ;;  %v13944_v42 = vcombine.low %v3761_v16, %v3765_v31  ;;  %v3812_v16 = vld [vmem:[#allocation9 + $0xdf0] sm:$0xff] }
 0x4c4   :  { %10314 = vmatprep.subr.bf16.mxu0 %v13903_v8  ;;  %v3773_v8 = vld [vmem:[#allocation9 + $0xcb8] sm:$0xff] }
 0x4c5   :  { %10641 = vmatpush1.bf16.msra.mxu1 %v13896_v55  ;;  %v3769_v55 = vld [vmem:[#allocation9 + $0xc98] sm:$0xff] }
 0x4c6   :  { %10642 = vmatprep.subr.bf16.mxu1 %v13905_v39  ;;  %v13942_v39 = vcombine.low %v3760_v27, %v3764_v28  ;;  %v13953_v46 = vcombine.high %v3769_v55, %v3773_v8 }
 0x4c7   :  { %10315 = vmatpush1.bf16.msra.mxu0 %v13902_v0  ;;  %v3780_v0 = vld [vmem:[#allocation9 + $0xcf0] sm:$0xff] }
 0x4c8   :  { %10316 = vmatprep.subr.bf16.mxu0 %v13911_v37  ;;  %v3781_v37 = vld [vmem:[#allocation9 + $0xcf8] sm:$0xff]  ;;  %v13959_v22 = vcombine.high %v3776_v18, %v3780_v0 }
 0x4c9   :  { %10643 = vmatpush1.bf16.msra.mxu1 %v13904_v51  ;;  %v3777_v51 = vld [vmem:[#allocation9 + $0xcd8] sm:$0xff] }
 0x4ca   :  { %10644 = vmatprep.subr.bf16.mxu1 %v13913_v56  ;;  %v13950_v56 = vcombine.low %v3768_v40, %v3772_v41  ;;  %v13961_v4 = vcombine.high %v3777_v51, %v3781_v37  ;;  %v3813_v40 = vld [vmem:[#allocation9 + $0xdf8] sm:$0xff] }
 0x4cb   :  { %10317 = vmatpush1.bf16.msra.mxu0 %v13910_v50  ;;  %v3785_v50 = vld [vmem:[#allocation9 + $0xd18] sm:$0xff] }
 0x4cc   :  { %10318 = vmatprep.subr.bf16.mxu0 %v13919_v26  ;;  %v13960_v26 = vcombine.low %v3777_v51, %v3781_v37  ;;  %v3817_v37 = vld [vmem:[#allocation9 + $0xe18] sm:$0xff] }
 0x4cd   :  { %10645 = vmatpush1.bf16.msra.mxu1 %v13912_v2  ;;  %v3789_v2 = vld [vmem:[#allocation9 + $0xd38] sm:$0xff] }
 0x4ce   :  { %10646 = vmatprep.subr.bf16.mxu1 %v13921_v62  ;;  %v13967_v62 = vcombine.high %v3784_v35, %v3788_v1  ;;  %v13969_v17 = vcombine.high %v3785_v50, %v3789_v2 }
 0x4cf   :  { %10319 = vmatpush1.bf16.msra.mxu0 %v13918_v3  ;;  %v3797_v3 = vld [vmem:[#allocation9 + $0xd78] sm:$0xff] }
 0x4d0   :  { %10320 = vmatprep.subr.bf16.mxu0 %v13927_v43  ;;  %v13968_v43 = vcombine.low %v3785_v50, %v3789_v2  ;;  %v13977_v10 = vcombine.high %v3793_v29, %v3797_v3  ;;  %v3828_v50 = vld [vmem:[#allocation9 + $0xe70] sm:$0xff]  ;;  %v3825_v2 = vld [vmem:[#allocation9 + $0xe58] sm:$0xff] }
 0x4d1   :  { %10647 = vmatpush1.bf16.msra.mxu1 %v13920_v7  ;;  %v13966_v7 = vcombine.low %v3784_v35, %v3788_v1  ;;  %v3824_v1 = vld [vmem:[#allocation9 + $0xe50] sm:$0xff] }
 0x4d2   :  { %10648 = vmatprep.subr.bf16.mxu1 %v13929_v9  ;;  %v13975_v9 = vcombine.high %v3792_v52, %v3796_v6 }
 0x4d3   :  { %10321 = vmatpush1.bf16.msra.mxu0 %v13926_v19  ;;  %v3805_v19 = vld [vmem:[#allocation9 + $0xdb8] sm:$0xff] }
 0x4d4   :  { %10331 = vmatprep.subr.bf16.mxu0 %v13935_v20  ;;  %v13976_v20 = vcombine.low %v3793_v29, %v3797_v3  ;;  %v13985_v28 = vcombine.high %v3801_v23, %v3805_v19  ;;  %v3836_v29 = vld [vmem:[#allocation9 + $0xeb0] sm:$0xff]  ;;  %v3833_v3 = vld [vmem:[#allocation9 + $0xe98] sm:$0xff] }
 0x4d5   :  { %10649 = vmatpush1.bf16.msra.mxu1 %v13928_v30  ;;  %v13974_v30 = vcombine.low %v3792_v52, %v3796_v6  ;;  %v3832_v6 = vld [vmem:[#allocation9 + $0xe90] sm:$0xff] }
 0x4d6   :  { %10659 = vmatprep.subr.bf16.mxu1 %v13937_v25  ;;  %10323 = vmatmul.mubr.bf16.vlgmr.msra.gmra.mrb[36].mxu0 %v16022_v15  ;;  %v13983_v25 = vcombine.high %v3800_v58, %v3804_v13 }
 0x4d7   :  { %10332 = vmatpush1.bf16.msra.mxu0 %v13934_v5  ;;  %10363 = vmatprep.mubr.bf16.mxu0 %v16024_v24  ;;  %v3808_v5 = vld [vmem:[#allocation9 + $0xdd0] sm:$0xff] }
 0x4d8   :  { %10651 = vmatmul.mubr.bf16.vlgmr.msra.gmra.mrb[36].mxu1 %v16022_v15  ;;  %10333 = vmatprep.subr.bf16.mxu0 %v13943_v47  ;;  %v13952_v15 = vcombine.low %v3769_v55, %v3773_v8  ;;  %v3809_v47 = vld [vmem:[#allocation9 + $0xdd8] sm:$0xff]  ;;  %v13982_v55 = vcombine.low %v3800_v58, %v3804_v13  ;;  %v3840_v13 = vld [vmem:[#allocation9 + $0xed0] sm:$0xff] }
 0x4d9   :  { %10660 = vmatpush1.bf16.msra.mxu1 %v13936_v33  ;;  %10691 = vmatprep.mubr.bf16.mxu1 %v16024_v24  ;;  %v13958_v24 = vcombine.low %v3776_v18, %v3780_v0  ;;  %v3816_v18 = vld [vmem:[#allocation9 + $0xe10] sm:$0xff] }
 0x4da   :  { %10661 = vmatprep.subr.bf16.mxu1 %v13945_v38  ;;  %v3820_v0 = vld [vmem:[#allocation9 + $0xe30] sm:$0xff] }
 0x4db   :  { %10334 = vmatpush1.bf16.msra.mxu0 %v13942_v39 }
 0x4dc   :  { %10335 = vmatprep.subr.bf16.mxu0 %v13951_v44  ;;  %v13991_v44 = vcombine.high %v3808_v5, %v3812_v16 }
 0x4dd   :  { %10662 = vmatpush1.bf16.msra.mxu1 %v13944_v42  ;;  %v13984_v42 = vcombine.low %v3801_v23, %v3805_v19  ;;  %v3844_v23 = vld [vmem:[#allocation9 + $0xef0] sm:$0xff]  ;;  %v3841_v19 = vld [vmem:[#allocation9 + $0xed8] sm:$0xff] }
 0x4de   :  { %10663 = vmatprep.subr.bf16.mxu1 %v13953_v46  ;;  %v13993_v46 = vcombine.high %v3809_v47, %v3813_v40 }
 0x4df   :  { %10336 = vmatpush1.bf16.msra.mxu0 %v13950_v56  ;;  %v3821_v56 = vld [vmem:[#allocation9 + $0xe38] sm:$0xff] }
 0x4e0   :  { %10337 = vmatprep.subr.bf16.mxu0 %v13959_v22  ;;  %v13992_v22 = vcombine.low %v3809_v47, %v3813_v40  ;;  %v14001_v35 = vcombine.high %v3817_v37, %v3821_v56  ;;  %v3852_v47 = vld [vmem:[#allocation9 + $0xf30] sm:$0xff]  ;;  %v3849_v40 = vld [vmem:[#allocation9 + $0xf18] sm:$0xff] }
 0x4e1   :  { %10664 = vmatpush1.bf16.msra.mxu1 %v13952_v15  ;;  %v13990_v15 = vcombine.low %v3808_v5, %v3812_v16  ;;  %v3848_v16 = vld [vmem:[#allocation9 + $0xf10] sm:$0xff] }
 0x4e2   :  { %10665 = vmatprep.subr.bf16.mxu1 %v13961_v4  ;;  %v13999_v4 = vcombine.high %v3816_v18, %v3820_v0 }
 0x4e3   :  { %10338 = vmatpush1.bf16.msra.mxu0 %v13958_v24  ;;  %v3829_v24 = vld [vmem:[#allocation9 + $0xe78] sm:$0xff] }
 0x4e4   :  { %10339 = vmatprep.subr.bf16.mxu0 %v13967_v62  ;;  %v14000_v62 = vcombine.low %v3817_v37, %v3821_v56  ;;  %v14009_v52 = vcombine.high %v3825_v2, %v3829_v24 }
 0x4e5   :  { %10666 = vmatpush1.bf16.msra.mxu1 %v13960_v26  ;;  %v13998_v26 = vcombine.low %v3816_v18, %v3820_v0  ;;  %v3857_v18 = vld [vmem:[#allocation9 + $0xf58] sm:$0xff] }
 0x4e6   :  { %10667 = vmatprep.subr.bf16.mxu1 %v13969_v17  ;;  %v14007_v17 = vcombine.high %v3824_v1, %v3828_v50  ;;  %v3861_v0 = vld [vmem:[#allocation9 + $0xf78] sm:$0xff] }
 0x4e7   :  { %10340 = vmatpush1.bf16.msra.mxu0 %v13966_v7  ;;  %v3837_v7 = vld [vmem:[#allocation9 + $0xeb8] sm:$0xff] }
 0x4e8   :  { %10341 = vmatprep.subr.bf16.mxu0 %v13975_v9  ;;  %v14008_v9 = vcombine.low %v3825_v2, %v3829_v24  ;;  %v14017_v58 = vcombine.high %v3833_v3, %v3837_v7  ;;  %v14040_v2 = vcombine.low %v3857_v18, %v3861_v0 }
 0x4e9   :  { %10668 = vmatpush1.bf16.msra.mxu1 %v13968_v43  ;;  %v16118_v27 = vpop.f32.mrb[32].mxu0  ;;  %v14006_v43 = vcombine.low %v3824_v1, %v3828_v50  ;;  %v3869_v1 = vld [vmem:[#allocation9 + $0xfb8] sm:$0xff] }
 0x4ea   :  { %10669 = vmatprep.subr.bf16.mxu1 %v13977_v10  ;;  %v16122_v33 = vpop.f32.mrb[33].mxu0  ;;  %v14015_v10 = vcombine.high %v3832_v6, %v3836_v29 }
 0x4eb   :  { %v16120_v31 = vpop.f32.mrb[32].mxu1  ;;  %v9877_v38 = vpop.f32.mrb[34].mxu0  ;;  %10342 = vmatpush1.bf16.msra.mxu0 %v13974_v30  ;;  %v3845_v30 = vld [vmem:[#allocation9 + $0xef8] sm:$0xff] }
 0x4ec   :  { %v16124_v41 = vpop.f32.mrb[33].mxu1  ;;  %v9878_v39 = vpop.f32.mrb[35].mxu0  ;;  %10343 = vmatprep.subr.bf16.mxu0 %v13983_v25  ;;  %v14016_v25 = vcombine.low %v3833_v3, %v3837_v7  ;;  %v14025_v5 = vcombine.high %v3841_v19, %v3845_v30  ;;  %v3853_v38 = vld [vmem:[#allocation9 + $0xf38] sm:$0xff] }
 0x4ed   :  { %v10205_v8 = vpop.f32.mrb[34].mxu1  ;;  %10670 = vmatpush1.bf16.msra.mxu1 %v13976_v20  ;;  %v14014_v20 = vcombine.low %v3832_v6, %v3836_v29  ;;  %v14031_v39 = vcombine.high %v3848_v16, %v3852_v47  ;;  %v14032_v37 = vcombine.low %v3849_v40, %v3853_v38  ;;  %v3877_v6 = vld [vmem:[#allocation9 + $0xff8] sm:$0xff] }
 0x4ee   :  { %10671 = vmatprep.subr.bf16.mxu1 %v13985_v28  ;;  %v10206_v51 = vpop.f32.mrb[35].mxu1  ;;  %v14023_v28 = vcombine.high %v3840_v13, %v3844_v23  ;;  %v14024_v8 = vcombine.low %v3841_v19, %v3845_v30 }
 0x4ef   :  { %10344 = vmatpush1.bf16.msra.mxu0 %v13982_v55  ;;  %v14022_v55 = vcombine.low %v3840_v13, %v3844_v23  ;;  %v14030_v51 = vcombine.low %v3848_v16, %v3852_v47  ;;  %v3885_v13 = vld [vmem:[#allocation9 + $0x1038] sm:$0xff] }
 0x4f0   :  { %10345 = vmatprep.subr.bf16.mxu0 %v13991_v44  ;;  %v3856_v44 = vld [vmem:[#allocation9 + $0xf50] sm:$0xff]  ;;  %v3889_v16 = vld [vmem:[#allocation9 + $0x1058] sm:$0xff] }
 0x4f1   :  { %10672 = vmatpush1.bf16.msra.mxu1 %v13984_v42  ;;  %v14033_v42 = vcombine.high %v3849_v40, %v3853_v38  ;;  %v3893_v47 = vld [vmem:[#allocation9 + $0x1078] sm:$0xff] }
 0x4f2   :  { %10673 = vmatprep.subr.bf16.mxu1 %v13993_v46  ;;  %v3860_v46 = vld [vmem:[#allocation9 + $0xf70] sm:$0xff] }
 0x4f3   :  { %10346 = vmatpush1.bf16.msra.mxu0 %v13990_v15  ;;  %v14039_v56 = vcombine.high %v3856_v44, %v3860_v46  ;;  %v14041_v15 = vcombine.high %v3857_v18, %v3861_v0  ;;  %v14038_v50 = vcombine.low %v3856_v44, %v3860_v46  ;;  %v3901_v44 = vld [vmem:[#allocation9 + $0x10b8] sm:$0xff]  ;;  %v14072_v18 = vcombine.low %v3889_v16, %v3893_v47 }
 0x4f4   :  { %10347 = vmatprep.subr.bf16.mxu0 %v13999_v4  ;;  %v3868_v4 = vld [vmem:[#allocation9 + $0xfb0] sm:$0xff] }
 0x4f5   :  { %10674 = vmatpush1.bf16.msra.mxu1 %v13992_v22  ;;  %v3864_v22 = vld [vmem:[#allocation9 + $0xf90] sm:$0xff] }
 0x4f6   :  { %10675 = vmatprep.subr.bf16.mxu1 %v14001_v35  ;;  %v3865_v35 = vld [vmem:[#allocation9 + $0xf98] sm:$0xff]  ;;  %v14047_v24 = vcombine.high %v3864_v22, %v3868_v4  ;;  %v14046_v29 = vcombine.low %v3864_v22, %v3868_v4 }
 0x4f7   :  { %10348 = vmatpush1.bf16.msra.mxu0 %v13998_v26  ;;  %v14049_v26 = vcombine.high %v3865_v35, %v3869_v1  ;;  %v14048_v3 = vcombine.low %v3865_v35, %v3869_v1  ;;  %v3909_v22 = vld [vmem:[#allocation9 + $0x10f8] sm:$0xff] }
 0x4f8   :  { %10349 = vmatprep.subr.bf16.mxu0 %v14007_v17  ;;  %v3876_v17 = vld [vmem:[#allocation9 + $0xff0] sm:$0xff] }
 0x4f9   :  { %10676 = vmatpush1.bf16.msra.mxu1 %v14000_v62  ;;  %v3872_v62 = vld [vmem:[#allocation9 + $0xfd0] sm:$0xff] }
 0x4fa   :  { %10677 = vmatprep.subr.bf16.mxu1 %v14009_v52  ;;  %v3873_v52 = vld [vmem:[#allocation9 + $0xfd8] sm:$0xff]  ;;  %v14055_v7 = vcombine.high %v3872_v62, %v3876_v17  ;;  %v14054_v23 = vcombine.low %v3872_v62, %v3876_v17 }
 0x4fb   :  { %10350 = vmatpush1.bf16.msra.mxu0 %v14006_v43  ;;  %v14057_v43 = vcombine.high %v3873_v52, %v3877_v6  ;;  %v14056_v19 = vcombine.low %v3873_v52, %v3877_v6  ;;  %v3920_v6 = vld [vmem:[#allocation9 + $0x1150] sm:$0xff] }
 0x4fc   :  { %10351 = vmatprep.subr.bf16.mxu0 %v14015_v10  ;;  %v3884_v10 = vld [vmem:[#allocation9 + $0x1030] sm:$0xff] }
 0x4fd   :  { %10678 = vmatpush1.bf16.msra.mxu1 %v14008_v9  ;;  %v3880_v9 = vld [vmem:[#allocation9 + $0x1010] sm:$0xff] }
 0x4fe   :  { %10679 = vmatprep.subr.bf16.mxu1 %v14017_v58  ;;  %v3881_v58 = vld [vmem:[#allocation9 + $0x1018] sm:$0xff]  ;;  %v14063_v30 = vcombine.high %v3880_v9, %v3884_v10 }
 0x4ff   :  { %10352 = vmatpush1.bf16.msra.mxu0 %v14014_v20  ;;  %v14065_v20 = vcombine.high %v3881_v58, %v3885_v13  ;;  %v14064_v40 = vcombine.low %v3881_v58, %v3885_v13  ;;  %v3928_v13 = vld [vmem:[#allocation9 + $0x1190] sm:$0xff] }
 0x500   :  { %10353 = vmatprep.subr.bf16.mxu0 %v14023_v28  ;;  %v3892_v28 = vld [vmem:[#allocation9 + $0x1070] sm:$0xff] }
 0x501   :  { %10680 = vmatpush1.bf16.msra.mxu1 %v14016_v25  ;;  %v3888_v25 = vld [vmem:[#allocation9 + $0x1050] sm:$0xff] }
 0x502   :  { %10681 = vmatprep.subr.bf16.mxu1 %v14025_v5  ;;  %v14062_v5 = vcombine.low %v3880_v9, %v3884_v10  ;;  %v14071_v38 = vcombine.high %v3888_v25, %v3892_v28  ;;  %v14070_v46 = vcombine.low %v3888_v25, %v3892_v28 }
 0x503   :  { %10354 = vmatpush1.bf16.msra.mxu0 %v14022_v55  ;;  %v3896_v55 = vld [vmem:[#allocation9 + $0x1090] sm:$0xff] }
 0x504   :  { %10355 = vmatprep.subr.bf16.mxu0 %v14031_v39  ;;  %v14073_v39 = vcombine.high %v3889_v16, %v3893_v47  ;;  %v3936_v16 = vld [vmem:[#allocation9 + $0x11d0] sm:$0xff] }
 0x505   :  { %10682 = vmatpush1.bf16.msra.mxu1 %v14024_v8  ;;  %v3900_v8 = vld [vmem:[#allocation9 + $0x10b0] sm:$0xff] }
 0x506   :  { %10683 = vmatprep.subr.bf16.mxu1 %v14033_v42  ;;  %v3897_v42 = vld [vmem:[#allocation9 + $0x1098] sm:$0xff]  ;;  %v14079_v0 = vcombine.high %v3896_v55, %v3900_v8  ;;  %v14078_v4 = vcombine.low %v3896_v55, %v3900_v8  ;;  %v3940_v47 = vld [vmem:[#allocation9 + $0x11f0] sm:$0xff] }
 0x507   :  { %10356 = vmatpush1.bf16.msra.mxu0 %v14030_v51  ;;  %v14081_v51 = vcombine.high %v3897_v42, %v3901_v44 }
 0x508   :  { %10357 = vmatprep.subr.bf16.mxu0 %v14039_v56  ;;  %v3908_v56 = vld [vmem:[#allocation9 + $0x10f0] sm:$0xff] }
 0x509   :  { %10684 = vmatpush1.bf16.msra.mxu1 %v14032_v37  ;;  %v3904_v37 = vld [vmem:[#allocation9 + $0x10d0] sm:$0xff] }
 0x50a   :  { %10685 = vmatprep.subr.bf16.mxu1 %v14041_v15  ;;  %v3905_v15 = vld [vmem:[#allocation9 + $0x10d8] sm:$0xff]  ;;  %v14087_v35 = vcombine.high %v3904_v37, %v3908_v56 }
 0x50b   :  { %10358 = vmatpush1.bf16.msra.mxu0 %v14038_v50  ;;  %v14089_v1 = vcombine.high %v3905_v15, %v3909_v22  ;;  %v3912_v50 = vld [vmem:[#allocation9 + $0x1110] sm:$0xff]  ;;  %v14088_v62 = vcombine.low %v3905_v15, %v3909_v22 }
 0x50c   :  { %10359 = vmatprep.subr.bf16.mxu0 %v14047_v24  ;;  %v3913_v24 = vld [vmem:[#allocation9 + $0x1118] sm:$0xff]  ;;  %v3952_v22 = vld [vmem:[#allocation9 + $0x1250] sm:$0xff] }
 0x50d   :  { %10686 = vmatpush1.bf16.msra.mxu1 %v14040_v2  ;;  %v3916_v2 = vld [vmem:[#allocation9 + $0x1130] sm:$0xff] }
 0x50e   :  { %10687 = vmatprep.subr.bf16.mxu1 %v14049_v26  ;;  %v3917_v26 = vld [vmem:[#allocation9 + $0x1138] sm:$0xff]  ;;  %v14095_v17 = vcombine.high %v3912_v50, %v3916_v2 }
 0x50f   :  { %10360 = vmatpush1.bf16.msra.mxu0 %v14046_v29  ;;  %v14097_v52 = vcombine.high %v3913_v24, %v3917_v26  ;;  %v3924_v29 = vld [vmem:[#allocation9 + $0x1170] sm:$0xff]  ;;  %v14096_v9 = vcombine.low %v3913_v24, %v3917_v26 }
 0x510   :  { %10361 = vmatprep.subr.bf16.mxu0 %v14055_v7  ;;  %v3925_v7 = vld [vmem:[#allocation9 + $0x1178] sm:$0xff]  ;;  %v14103_v10 = vcombine.high %v3920_v6, %v3924_v29  ;;  %v3960_v26 = vld [vmem:[#allocation9 + $0x1290] sm:$0xff] }
 0x511   :  { %10688 = vmatpush1.bf16.msra.mxu1 %v14048_v3  ;;  %v3921_v3 = vld [vmem:[#allocation9 + $0x1158] sm:$0xff] }
 0x512   :  { %10689 = vmatprep.subr.bf16.mxu1 %v14057_v43  ;;  %v14094_v43 = vcombine.low %v3912_v50, %v3916_v2  ;;  %v14105_v58 = vcombine.high %v3921_v3, %v3925_v7  ;;  %v14104_v25 = vcombine.low %v3921_v3, %v3925_v7  ;;  %v3968_v7 = vld [vmem:[#allocation9 + $0x12d0] sm:$0xff] }
 0x513   :  { %10362 = vmatpush1.bf16.msra.mxu0 %v14054_v23  ;;  %v3932_v23 = vld [vmem:[#allocation9 + $0x11b0] sm:$0xff] }
 0x514   :  { %10372 = vmatprep.subr.bf16.mxu0 %v14063_v30  ;;  %v3933_v30 = vld [vmem:[#allocation9 + $0x11b8] sm:$0xff]  ;;  %v14111_v28 = vcombine.high %v3928_v13, %v3932_v23  ;;  %v14110_v55 = vcombine.low %v3928_v13, %v3932_v23 }
 0x515   :  { %10690 = vmatpush1.bf16.msra.mxu1 %v14056_v19  ;;  %v3929_v19 = vld [vmem:[#allocation9 + $0x1198] sm:$0xff] }
 0x516   :  { %10700 = vmatprep.subr.bf16.mxu1 %v14065_v20  ;;  %10364 = vmatmul.mubr.bf16.vlgmr.msra.gmra.mrb[36].mxu0 %v16045_v54  ;;  %v14102_v20 = vcombine.low %v3920_v6, %v3924_v29  ;;  %v14112_v8 = vcombine.low %v3929_v19, %v3933_v30 }
 0x517   :  { %10373 = vmatpush1.bf16.msra.mxu0 %v14062_v5  ;;  %10404 = vmatprep.mubr.bf16.mxu0 %v16047_v60  ;;  %v14113_v5 = vcombine.high %v3929_v19, %v3933_v30  ;;  %v3976_v30 = vld [vmem:[#allocation9 + $0x1310] sm:$0xff] }
 0x518   :  { %10692 = vmatmul.mubr.bf16.vlgmr.msra.gmra.mrb[36].mxu1 %v16045_v54  ;;  %10374 = vmatprep.subr.bf16.mxu0 %v14071_v38  ;;  %v14080_v54 = vcombine.low %v3897_v42, %v3901_v44  ;;  %v3941_v38 = vld [vmem:[#allocation9 + $0x11f8] sm:$0xff]  ;;  %v3944_v44 = vld [vmem:[#allocation9 + $0x1210] sm:$0xff] }
 0x519   :  { %10701 = vmatpush1.bf16.msra.mxu1 %v14064_v40  ;;  %10732 = vmatprep.mubr.bf16.mxu1 %v16047_v60  ;;  %v14086_v60 = vcombine.low %v3904_v37, %v3908_v56  ;;  %v3937_v40 = vld [vmem:[#allocation9 + $0x11d8] sm:$0xff] }
 0x51a   :  { %10702 = vmatprep.subr.bf16.mxu1 %v14073_v39  ;;  %v14119_v39 = vcombine.high %v3936_v16, %v3940_v47  ;;  %v14121_v42 = vcombine.high %v3937_v40, %v3941_v38  ;;  %v14120_v37 = vcombine.low %v3937_v40, %v3941_v38  ;;  %v3984_v38 = vld [vmem:[#allocation9 + $0x1350] sm:$0xff] }
 0x51b   :  { %10375 = vmatpush1.bf16.msra.mxu0 %v14070_v46  ;;  %v3948_v46 = vld [vmem:[#allocation9 + $0x1230] sm:$0xff] }
 0x51c   :  { %10376 = vmatprep.subr.bf16.mxu0 %v14079_v0  ;;  %v3949_v0 = vld [vmem:[#allocation9 + $0x1238] sm:$0xff]  ;;  %v14127_v56 = vcombine.high %v3944_v44, %v3948_v46 }
 0x51d   :  { %10703 = vmatpush1.bf16.msra.mxu1 %v14072_v18  ;;  %v3945_v18 = vld [vmem:[#allocation9 + $0x1218] sm:$0xff] }
 0x51e   :  { %10704 = vmatprep.subr.bf16.mxu1 %v14081_v51  ;;  %v14118_v51 = vcombine.low %v3936_v16, %v3940_v47  ;;  %v14129_v15 = vcombine.high %v3945_v18, %v3949_v0  ;;  %v14128_v50 = vcombine.low %v3945_v18, %v3949_v0  ;;  %v3992_v0 = vld [vmem:[#allocation9 + $0x1390] sm:$0xff] }
 0x51f   :  { %10377 = vmatpush1.bf16.msra.mxu0 %v14078_v4  ;;  %v3956_v4 = vld [vmem:[#allocation9 + $0x1270] sm:$0xff] }
 0x520   :  { %10378 = vmatprep.subr.bf16.mxu0 %v14087_v35  ;;  %v3957_v35 = vld [vmem:[#allocation9 + $0x1278] sm:$0xff]  ;;  %v14135_v2 = vcombine.high %v3952_v22, %v3956_v4 }
 0x521   :  { %10705 = vmatpush1.bf16.msra.mxu1 %v14080_v54  ;;  %v3953_v54 = vld [vmem:[#allocation9 + $0x1258] sm:$0xff] }
 0x522   :  { %10706 = vmatprep.subr.bf16.mxu1 %v14089_v1  ;;  %v14126_v1 = vcombine.low %v3944_v44, %v3948_v46  ;;  %v14137_v24 = vcombine.high %v3953_v54, %v3957_v35  ;;  %v14136_v6 = vcombine.low %v3953_v54, %v3957_v35  ;;  %v4000_v35 = vld [vmem:[#allocation9 + $0x13d0] sm:$0xff] }
 0x523   :  { %10379 = vmatpush1.bf16.msra.mxu0 %v14086_v60  ;;  %v3964_v60 = vld [vmem:[#allocation9 + $0x12b0] sm:$0xff] }
 0x524   :  { %10380 = vmatprep.subr.bf16.mxu0 %v14095_v17  ;;  %v3965_v17 = vld [vmem:[#allocation9 + $0x12b8] sm:$0xff]  ;;  %v14143_v29 = vcombine.high %v3960_v26, %v3964_v60 }
 0x525   :  { %10707 = vmatpush1.bf16.msra.mxu1 %v14088_v62  ;;  %v3961_v62 = vld [vmem:[#allocation9 + $0x1298] sm:$0xff] }
 0x526   :  { %10708 = vmatprep.subr.bf16.mxu1 %v14097_v52  ;;  %v14134_v52 = vcombine.low %v3952_v22, %v3956_v4  ;;  %v14145_v3 = vcombine.high %v3961_v62, %v3965_v17  ;;  %v14144_v13 = vcombine.low %v3961_v62, %v3965_v17  ;;  %v4008_v17 = vld [vmem:[#allocation9 + $0x1410] sm:$0xff] }
 0x527   :  { %10381 = vmatpush1.bf16.msra.mxu0 %v14094_v43  ;;  %v3972_v43 = vld [vmem:[#allocation9 + $0x12f0] sm:$0xff] }
 0x528   :  { %10382 = vmatprep.subr.bf16.mxu0 %v14103_v10  ;;  %v3973_v10 = vld [vmem:[#allocation9 + $0x12f8] sm:$0xff]  ;;  %v14151_v23 = vcombine.high %v3968_v7, %v3972_v43 }
 0x529   :  { %10709 = vmatpush1.bf16.msra.mxu1 %v14096_v9  ;;  %v3969_v9 = vld [vmem:[#allocation9 + $0x12d8] sm:$0xff] }
 0x52a   :  { %10710 = vmatprep.subr.bf16.mxu1 %v14105_v58  ;;  %v14142_v58 = vcombine.low %v3960_v26, %v3964_v60  ;;  %v14153_v19 = vcombine.high %v3969_v9, %v3973_v10  ;;  %v14152_v16 = vcombine.low %v3969_v9, %v3973_v10  ;;  %v4016_v10 = vld [vmem:[#allocation9 + $0x1450] sm:$0xff] }
 0x52b   :  { %10383 = vmatpush1.bf16.msra.mxu0 %v14102_v20  ;;  %v3980_v20 = vld [vmem:[#allocation9 + $0x1330] sm:$0xff] }
 0x52c   :  { %10384 = vmatprep.subr.bf16.mxu0 %v14111_v28  ;;  %v3981_v28 = vld [vmem:[#allocation9 + $0x1338] sm:$0xff]  ;;  %v14159_v47 = vcombine.high %v3976_v30, %v3980_v20 }
 0x52d   :  { %10711 = vmatpush1.bf16.msra.mxu1 %v14104_v25  ;;  %v3977_v25 = vld [vmem:[#allocation9 + $0x1318] sm:$0xff] }
 0x52e   :  { %10712 = vmatprep.subr.bf16.mxu1 %v14113_v5  ;;  %v14150_v5 = vcombine.low %v3968_v7, %v3972_v43  ;;  %v14161_v40 = vcombine.high %v3977_v25, %v3981_v28  ;;  %v14160_v44 = vcombine.low %v3977_v25, %v3981_v28  ;;  %v4024_v25 = vld [vmem:[#allocation9 + $0x1490] sm:$0xff] }
 0x52f   :  { %10385 = vmatpush1.bf16.msra.mxu0 %v14110_v55  ;;  %v3988_v55 = vld [vmem:[#allocation9 + $0x1370] sm:$0xff] }
 0x530   :  { %10386 = vmatprep.subr.bf16.mxu0 %v14119_v39  ;;  %v3989_v39 = vld [vmem:[#allocation9 + $0x1378] sm:$0xff]  ;;  %v14167_v46 = vcombine.high %v3984_v38, %v3988_v55  ;;  %v4028_v28 = vld [vmem:[#allocation9 + $0x14b0] sm:$0xff] }
 0x531   :  { %10713 = vmatpush1.bf16.msra.mxu1 %v14112_v8  ;;  %v3985_v8 = vld [vmem:[#allocation9 + $0x1358] sm:$0xff] }
 0x532   :  { %10714 = vmatprep.subr.bf16.mxu1 %v14121_v42  ;;  %v14158_v42 = vcombine.low %v3976_v30, %v3980_v20  ;;  %v14169_v18 = vcombine.high %v3985_v8, %v3989_v39  ;;  %v14168_v22 = vcombine.low %v3985_v8, %v3989_v39  ;;  %v4032_v39 = vld [vmem:[#allocation9 + $0x14d0] sm:$0xff] }
 0x533   :  { %10387 = vmatpush1.bf16.msra.mxu0 %v14118_v51  ;;  %v3996_v51 = vld [vmem:[#allocation9 + $0x13b0] sm:$0xff] }
 0x534   :  { %10388 = vmatprep.subr.bf16.mxu0 %v14127_v56  ;;  %v3997_v56 = vld [vmem:[#allocation9 + $0x13b8] sm:$0xff]  ;;  %v14175_v4 = vcombine.high %v3992_v0, %v3996_v51 }
 0x535   :  { %10715 = vmatpush1.bf16.msra.mxu1 %v14120_v37  ;;  %v3993_v37 = vld [vmem:[#allocation9 + $0x1398] sm:$0xff] }
 0x536   :  { %10716 = vmatprep.subr.bf16.mxu1 %v14129_v15  ;;  %v14166_v15 = vcombine.low %v3984_v38, %v3988_v55  ;;  %v14177_v54 = vcombine.high %v3993_v37, %v3997_v56  ;;  %v14176_v26 = vcombine.low %v3993_v37, %v3997_v56  ;;  %v14207_v55 = vcombine.high %v4024_v25, %v4028_v28  ;;  %v4040_v37 = vld [vmem:[#allocation9 + $0x1510] sm:$0xff] }
 0x537   :  { %10389 = vmatpush1.bf16.msra.mxu0 %v14126_v1  ;;  %v4004_v1 = vld [vmem:[#allocation9 + $0x13f0] sm:$0xff] }
 0x538   :  { %10390 = vmatprep.subr.bf16.mxu0 %v14135_v2  ;;  %v4005_v2 = vld [vmem:[#allocation9 + $0x13f8] sm:$0xff]  ;;  %v14183_v60 = vcombine.high %v4000_v35, %v4004_v1  ;;  %v4044_v56 = vld [vmem:[#allocation9 + $0x1530] sm:$0xff] }
 0x539   :  { %10717 = vmatpush1.bf16.msra.mxu1 %v14128_v50  ;;  %v4001_v50 = vld [vmem:[#allocation9 + $0x13d8] sm:$0xff] }
 0x53a   :  { %10718 = vmatprep.subr.bf16.mxu1 %v14137_v24  ;;  %v14174_v24 = vcombine.low %v3992_v0, %v3996_v51  ;;  %v14185_v62 = vcombine.high %v4001_v50, %v4005_v2  ;;  %v14184_v7 = vcombine.low %v4001_v50, %v4005_v2  ;;  %v4052_v50 = vld [vmem:[#allocation9 + $0x1570] sm:$0xff]  ;;  %v4049_v2 = vld [vmem:[#allocation9 + $0x1558] sm:$0xff] }
 0x53b   :  { %10391 = vmatpush1.bf16.msra.mxu0 %v14134_v52  ;;  %v4012_v52 = vld [vmem:[#allocation9 + $0x1430] sm:$0xff] }
 0x53c   :  { %10392 = vmatprep.subr.bf16.mxu0 %v14143_v29  ;;  %v4013_v29 = vld [vmem:[#allocation9 + $0x1438] sm:$0xff]  ;;  %v14191_v43 = vcombine.high %v4008_v17, %v4012_v52 }
 0x53d   :  { %10719 = vmatpush1.bf16.msra.mxu1 %v14136_v6  ;;  %v4009_v6 = vld [vmem:[#allocation9 + $0x1418] sm:$0xff] }
 0x53e   :  { %10720 = vmatprep.subr.bf16.mxu1 %v14145_v3  ;;  %v14182_v3 = vcombine.low %v4000_v35, %v4004_v1  ;;  %v14193_v9 = vcombine.high %v4009_v6, %v4013_v29  ;;  %v14192_v30 = vcombine.low %v4009_v6, %v4013_v29  ;;  %v4048_v1 = vld [vmem:[#allocation9 + $0x1550] sm:$0xff]  ;;  %v4057_v29 = vld [vmem:[#allocation9 + $0x1598] sm:$0xff] }
 0x53f   :  { %10393 = vmatpush1.bf16.msra.mxu0 %v14142_v58  ;;  %v4020_v58 = vld [vmem:[#allocation9 + $0x1470] sm:$0xff] }
 0x540   :  { %10394 = vmatprep.subr.bf16.mxu0 %v14151_v23  ;;  %v4017_v23 = vld [vmem:[#allocation9 + $0x1458] sm:$0xff]  ;;  %v14199_v20 = vcombine.high %v4016_v10, %v4020_v58  ;;  %v4060_v6 = vld [vmem:[#allocation9 + $0x15b0] sm:$0xff] }
 0x541   :  { %10721 = vmatpush1.bf16.msra.mxu1 %v14144_v13  ;;  %v14190_v13 = vcombine.low %v4008_v17, %v4012_v52  ;;  %v4056_v52 = vld [vmem:[#allocation9 + $0x1590] sm:$0xff] }
 0x542   :  { %10722 = vmatprep.subr.bf16.mxu1 %v14153_v19  ;;  %v4021_v19 = vld [vmem:[#allocation9 + $0x1478] sm:$0xff] }
 0x543   :  { %10395 = vmatpush1.bf16.msra.mxu0 %v14150_v5  ;;  %v14201_v5 = vcombine.high %v4017_v23, %v4021_v19  ;;  %v14200_v38 = vcombine.low %v4017_v23, %v4021_v19  ;;  %v4065_v23 = vld [vmem:[#allocation9 + $0x15d8] sm:$0xff] }
 0x544   :  { %10396 = vmatprep.subr.bf16.mxu0 %v14159_v47  ;;  %v4029_v47 = vld [vmem:[#allocation9 + $0x14b8] sm:$0xff] }
 0x545   :  { %10723 = vmatpush1.bf16.msra.mxu1 %v14152_v16  ;;  %v4025_v16 = vld [vmem:[#allocation9 + $0x1498] sm:$0xff] }
 0x546   :  { %10724 = vmatprep.subr.bf16.mxu1 %v14161_v40  ;;  %v14198_v40 = vcombine.low %v4016_v10, %v4020_v58  ;;  %v14209_v8 = vcombine.high %v4025_v16, %v4029_v47  ;;  %v4064_v58 = vld [vmem:[#allocation9 + $0x15d0] sm:$0xff]  ;;  %v4069_v19 = vld [vmem:[#allocation9 + $0x15f8] sm:$0xff] }
 0x547   :  { %10397 = vmatpush1.bf16.msra.mxu0 %v14158_v42  ;;  %v4036_v42 = vld [vmem:[#allocation9 + $0x14f0] sm:$0xff] }
 0x548   :  { %10398 = vmatprep.subr.bf16.mxu0 %v14167_v46  ;;  %v4037_v46 = vld [vmem:[#allocation9 + $0x14f8] sm:$0xff]  ;;  %v14215_v0 = vcombine.high %v4032_v39, %v4036_v42 }
 0x549   :  { %10725 = vmatpush1.bf16.msra.mxu1 %v14160_v44  ;;  %v4033_v44 = vld [vmem:[#allocation9 + $0x14d8] sm:$0xff] }
 0x54a   :  { %10726 = vmatprep.subr.bf16.mxu1 %v14169_v18  ;;  %v14206_v18 = vcombine.low %v4024_v25, %v4028_v28  ;;  %v14217_v51 = vcombine.high %v4033_v44, %v4037_v46  ;;  %v14249_v28 = vcombine.high %v4065_v23, %v4069_v19 }
 0x54b   :  { %10399 = vmatpush1.bf16.msra.mxu0 %v14166_v15  ;;  %v4041_v15 = vld [vmem:[#allocation9 + $0x1518] sm:$0xff] }
 0x54c   :  { %10400 = vmatprep.subr.bf16.mxu0 %v14175_v4  ;;  %v14216_v4 = vcombine.low %v4033_v44, %v4037_v46  ;;  %v4084_v44 = vld [vmem:[#allocation9 + $0x1670] sm:$0xff]  ;;  %v4081_v46 = vld [vmem:[#allocation9 + $0x1658] sm:$0xff] }
 0x54d   :  { %10727 = vmatpush1.bf16.msra.mxu1 %v14168_v22  ;;  %v4045_v22 = vld [vmem:[#allocation9 + $0x1538] sm:$0xff] }
 0x54e   :  { %10728 = vmatprep.subr.bf16.mxu1 %v14177_v54  ;;  %v14223_v54 = vcombine.high %v4040_v37, %v4044_v56  ;;  %v14225_v35 = vcombine.high %v4041_v15, %v4045_v22 }
 0x54f   :  { %10401 = vmatpush1.bf16.msra.mxu0 %v14174_v24  ;;  %v4053_v24 = vld [vmem:[#allocation9 + $0x1578] sm:$0xff] }
 0x550   :  { %10402 = vmatprep.subr.bf16.mxu0 %v14183_v60  ;;  %v14224_v60 = vcombine.low %v4041_v15, %v4045_v22  ;;  %v14233_v17 = vcombine.high %v4049_v2, %v4053_v24  ;;  %v4092_v15 = vld [vmem:[#allocation9 + $0x16b0] sm:$0xff]  ;;  %v4089_v22 = vld [vmem:[#allocation9 + $0x1698] sm:$0xff] }
 0x551   :  { %10729 = vmatpush1.bf16.msra.mxu1 %v14176_v26  ;;  %v14222_v26 = vcombine.low %v4040_v37, %v4044_v56  ;;  %v4088_v56 = vld [vmem:[#allocation9 + $0x1690] sm:$0xff] }
 0x552   :  { %10730 = vmatprep.subr.bf16.mxu1 %v14185_v62  ;;  %v14231_v62 = vcombine.high %v4048_v1, %v4052_v50 }
 0x553   :  { %10403 = vmatpush1.bf16.msra.mxu0 %v14182_v3  ;;  %v4061_v3 = vld [vmem:[#allocation9 + $0x15b8] sm:$0xff] }
 0x554   :  { %10413 = vmatprep.subr.bf16.mxu0 %v14191_v43  ;;  %v14232_v43 = vcombine.low %v4049_v2, %v4053_v24  ;;  %v14241_v10 = vcombine.high %v4057_v29, %v4061_v3  ;;  %v4100_v2 = vld [vmem:[#allocation9 + $0x16f0] sm:$0xff]  ;;  %v4097_v24 = vld [vmem:[#allocation9 + $0x16d8] sm:$0xff] }
 0x555   :  { %10731 = vmatpush1.bf16.msra.mxu1 %v14184_v7  ;;  %v14230_v7 = vcombine.low %v4048_v1, %v4052_v50  ;;  %v4096_v50 = vld [vmem:[#allocation9 + $0x16d0] sm:$0xff] }
 0x556   :  { %10741 = vmatprep.subr.bf16.mxu1 %v14193_v9  ;;  %10405 = vmatmul.mubr.bf16.vlgmr.msra.gmra.mrb[36].mxu0 %v16059_v21  ;;  %v14239_v9 = vcombine.high %v4056_v52, %v4060_v6 }
 0x557   :  { %10414 = vmatpush1.bf16.msra.mxu0 %v14190_v13  ;;  %10445 = vmatprep.mubr.bf16.mxu0 %v16061_v53  ;;  %v4068_v13 = vld [vmem:[#allocation9 + $0x15f0] sm:$0xff] }
 0x558   :  { %10733 = vmatmul.mubr.bf16.vlgmr.msra.gmra.mrb[36].mxu1 %v16059_v21  ;;  %10415 = vmatprep.subr.bf16.mxu0 %v14199_v20  ;;  %v14208_v21 = vcombine.low %v4025_v16, %v4029_v47  ;;  %v14240_v20 = vcombine.low %v4057_v29, %v4061_v3  ;;  %v14247_v25 = vcombine.high %v4064_v58, %v4068_v13  ;;  %v4076_v16 = vld [vmem:[#allocation9 + $0x1630] sm:$0xff]  ;;  %v4073_v47 = vld [vmem:[#allocation9 + $0x1618] sm:$0xff] }
 0x559   :  { %10742 = vmatpush1.bf16.msra.mxu1 %v14192_v30  ;;  %10773 = vmatprep.mubr.bf16.mxu1 %v16061_v53  ;;  %v14214_v53 = vcombine.low %v4032_v39, %v4036_v42  ;;  %v14238_v30 = vcombine.low %v4056_v52, %v4060_v6  ;;  %v4080_v42 = vld [vmem:[#allocation9 + $0x1650] sm:$0xff]  ;;  %v4105_v3 = vld [vmem:[#allocation9 + $0x1718] sm:$0xff] }
 0x55a   :  { %10743 = vmatprep.subr.bf16.mxu1 %v14201_v5  ;;  %v4072_v5 = vld [vmem:[#allocation9 + $0x1610] sm:$0xff] }
 0x55b   :  { %10416 = vmatpush1.bf16.msra.mxu0 %v14198_v40  ;;  %v4077_v40 = vld [vmem:[#allocation9 + $0x1638] sm:$0xff]  ;;  %v4104_v6 = vld [vmem:[#allocation9 + $0x1710] sm:$0xff] }
 0x55c   :  { %10417 = vmatprep.subr.bf16.mxu0 %v14207_v55  ;;  %v14248_v55 = vcombine.low %v4065_v23, %v4069_v19  ;;  %v14257_v39 = vcombine.high %v4073_v47, %v4077_v40  ;;  %v4108_v29 = vld [vmem:[#allocation9 + $0x1730] sm:$0xff]  ;;  %v4113_v19 = vld [vmem:[#allocation9 + $0x1758] sm:$0xff] }
 0x55d   :  { %10744 = vmatpush1.bf16.msra.mxu1 %v14200_v38  ;;  %v14246_v38 = vcombine.low %v4064_v58, %v4068_v13  ;;  %v4112_v13 = vld [vmem:[#allocation9 + $0x1750] sm:$0xff] }
 0x55e   :  { %10745 = vmatprep.subr.bf16.mxu1 %v14209_v8  ;;  %v14255_v8 = vcombine.high %v4072_v5, %v4076_v16  ;;  %v4116_v23 = vld [vmem:[#allocation9 + $0x1770] sm:$0xff] }
 0x55f   :  { %10418 = vmatpush1.bf16.msra.mxu0 %v14206_v18  ;;  %v4085_v18 = vld [vmem:[#allocation9 + $0x1678] sm:$0xff] }
 0x560   :  { %10419 = vmatprep.subr.bf16.mxu0 %v14215_v0  ;;  %v14256_v0 = vcombine.low %v4073_v47, %v4077_v40  ;;  %v14265_v37 = vcombine.high %v4081_v46, %v4085_v18  ;;  %v4124_v47 = vld [vmem:[#allocation9 + $0x17b0] sm:$0xff]  ;;  %v4121_v40 = vld [vmem:[#allocation9 + $0x1798] sm:$0xff] }
 0x561   :  { %10746 = vmatpush1.bf16.msra.mxu1 %v14208_v21  ;;  %v14254_v21 = vcombine.low %v4072_v5, %v4076_v16  ;;  %v4120_v16 = vld [vmem:[#allocation9 + $0x1790] sm:$0xff] }
 0x562   :  { %10747 = vmatprep.subr.bf16.mxu1 %v14217_v51  ;;  %v14263_v51 = vcombine.high %v4080_v42, %v4084_v44 }
 0x563   :  { %10420 = vmatpush1.bf16.msra.mxu0 %v14214_v53  ;;  %v4093_v53 = vld [vmem:[#allocation9 + $0x16b8] sm:$0xff] }
 0x564   :  { %10421 = vmatprep.subr.bf16.mxu0 %v14223_v54  ;;  %v14264_v54 = vcombine.low %v4081_v46, %v4085_v18  ;;  %v14273_v1 = vcombine.high %v4089_v22, %v4093_v53  ;;  %v4132_v46 = vld [vmem:[#allocation9 + $0x17f0] sm:$0xff]  ;;  %v4129_v18 = vld [vmem:[#allocation9 + $0x17d8] sm:$0xff] }
 0x565   :  { %10748 = vmatpush1.bf16.msra.mxu1 %v14216_v4  ;;  %v14262_v4 = vcombine.low %v4080_v42, %v4084_v44  ;;  %v4128_v44 = vld [vmem:[#allocation9 + $0x17d0] sm:$0xff] }
 0x566   :  { %10749 = vmatprep.subr.bf16.mxu1 %v14225_v35  ;;  %v14271_v35 = vcombine.high %v4088_v56, %v4092_v15 }
 0x567   :  { %10422 = vmatpush1.bf16.msra.mxu0 %v14222_v26  ;;  %v4101_v26 = vld [vmem:[#allocation9 + $0x16f8] sm:$0xff] }
 0x568   :  { %10423 = vmatprep.subr.bf16.mxu0 %v14231_v62  ;;  %v14272_v62 = vcombine.low %v4089_v22, %v4093_v53  ;;  %v14281_v52 = vcombine.high %v4097_v24, %v4101_v26  ;;  %v4140_v22 = vld [vmem:[#allocation9 + $0x1830] sm:$0xff]  ;;  %v4137_v53 = vld [vmem:[#allocation9 + $0x1818] sm:$0xff] }
 0x569   :  { %10750 = vmatpush1.bf16.msra.mxu1 %v14224_v60  ;;  %v14270_v60 = vcombine.low %v4088_v56, %v4092_v15  ;;  %v4136_v15 = vld [vmem:[#allocation9 + $0x1810] sm:$0xff] }
 0x56a   :  { %10751 = vmatprep.subr.bf16.mxu1 %v14233_v17  ;;  %v14279_v17 = vcombine.high %v4096_v50, %v4100_v2 }
 0x56b   :  { %10424 = vmatpush1.bf16.msra.mxu0 %v14230_v7  ;;  %v4109_v7 = vld [vmem:[#allocation9 + $0x1738] sm:$0xff] }
 0x56c   :  { %10425 = vmatprep.subr.bf16.mxu0 %v14239_v9  ;;  %v14280_v9 = vcombine.low %v4097_v24, %v4101_v26  ;;  %v14289_v58 = vcombine.high %v4105_v3, %v4109_v7  ;;  %v4148_v24 = vld [vmem:[#allocation9 + $0x1870] sm:$0xff]  ;;  %v14318_v26 = vcombine.low %v4136_v15, %v4140_v22 }
 0x56d   :  { %10752 = vmatpush1.bf16.msra.mxu1 %v14232_v43  ;;  %v14278_v43 = vcombine.low %v4096_v50, %v4100_v2  ;;  %v4144_v2 = vld [vmem:[#allocation9 + $0x1850] sm:$0xff] }
 0x56e   :  { %10753 = vmatprep.subr.bf16.mxu1 %v14241_v10  ;;  %v14287_v10 = vcombine.high %v4104_v6, %v4108_v29 }
 0x56f   :  { %10426 = vmatpush1.bf16.msra.mxu0 %v14238_v30  ;;  %v4117_v30 = vld [vmem:[#allocation9 + $0x1778] sm:$0xff] }
 0x570   :  { %10427 = vmatprep.subr.bf16.mxu0 %v14247_v25  ;;  %v14288_v25 = vcombine.low %v4105_v3, %v4109_v7  ;;  %v14297_v5 = vcombine.high %v4113_v19, %v4117_v30  ;;  %v4153_v7 = vld [vmem:[#allocation9 + $0x1898] sm:$0xff] }
 0x571   :  { %10754 = vmatpush1.bf16.msra.mxu1 %v14240_v20  ;;  %v14286_v20 = vcombine.low %v4104_v6, %v4108_v29  ;;  %v4152_v6 = vld [vmem:[#allocation9 + $0x1890] sm:$0xff] }
 0x572   :  { %10755 = vmatprep.subr.bf16.mxu1 %v14249_v28  ;;  %v14295_v28 = vcombine.high %v4112_v13, %v4116_v23  ;;  %v4156_v29 = vld [vmem:[#allocation9 + $0x18b0] sm:$0xff] }
 0x573   :  { %10428 = vmatpush1.bf16.msra.mxu0 %v14246_v38  ;;  %v4125_v38 = vld [vmem:[#allocation9 + $0x17b8] sm:$0xff] }
 0x574   :  { %10429 = vmatprep.subr.bf16.mxu0 %v14255_v8  ;;  %v14296_v8 = vcombine.low %v4113_v19, %v4117_v30  ;;  %v14305_v42 = vcombine.high %v4121_v40, %v4125_v38  ;;  %v4164_v19 = vld [vmem:[#allocation9 + $0x18f0] sm:$0xff]  ;;  %v4161_v30 = vld [vmem:[#allocation9 + $0x18d8] sm:$0xff] }
 0x575   :  { %10756 = vmatpush1.bf16.msra.mxu1 %v14248_v55  ;;  %v14294_v55 = vcombine.low %v4112_v13, %v4116_v23  ;;  %v4160_v23 = vld [vmem:[#allocation9 + $0x18d0] sm:$0xff] }
 0x576   :  { %10757 = vmatprep.subr.bf16.mxu1 %v14257_v39  ;;  %v14303_v39 = vcombine.high %v4120_v16, %v4124_v47 }
 0x577   :  { %10430 = vmatpush1.bf16.msra.mxu0 %v14254_v21  ;;  %v4133_v21 = vld [vmem:[#allocation9 + $0x17f8] sm:$0xff] }
 0x578   :  { %10431 = vmatprep.subr.bf16.mxu0 %v14263_v51  ;;  %v14304_v51 = vcombine.low %v4121_v40, %v4125_v38  ;;  %v14313_v56 = vcombine.high %v4129_v18, %v4133_v21  ;;  %v4169_v40 = vld [vmem:[#allocation9 + $0x1918] sm:$0xff] }
 0x579   :  { %10758 = vmatpush1.bf16.msra.mxu1 %v14256_v0  ;;  %v14302_v0 = vcombine.low %v4120_v16, %v4124_v47  ;;  %v4168_v16 = vld [vmem:[#allocation9 + $0x1910] sm:$0xff]  ;;  %v4173_v38 = vld [vmem:[#allocation9 + $0x1938] sm:$0xff] }
 0x57a   :  { %10759 = vmatprep.subr.bf16.mxu1 %v14265_v37  ;;  %v14311_v37 = vcombine.high %v4128_v44, %v4132_v46  ;;  %v4172_v47 = vld [vmem:[#allocation9 + $0x1930] sm:$0xff] }
 0x57b   :  { %10432 = vmatpush1.bf16.msra.mxu0 %v14262_v4  ;;  %v4141_v4 = vld [vmem:[#allocation9 + $0x1838] sm:$0xff] }
 0x57c   :  { %10433 = vmatprep.subr.bf16.mxu0 %v14271_v35  ;;  %v14312_v35 = vcombine.low %v4129_v18, %v4133_v21  ;;  %v14321_v50 = vcombine.high %v4137_v53, %v4141_v4  ;;  %v4181_v18 = vld [vmem:[#allocation9 + $0x1978] sm:$0xff]  ;;  %v14350_v21 = vcombine.low %v4168_v16, %v4172_v47 }
 0x57d   :  { %10760 = vmatpush1.bf16.msra.mxu1 %v14264_v54  ;;  %v14310_v54 = vcombine.low %v4128_v44, %v4132_v46  ;;  %v4180_v44 = vld [vmem:[#allocation9 + $0x1970] sm:$0xff]  ;;  %v4177_v46 = vld [vmem:[#allocation9 + $0x1958] sm:$0xff] }
 0x57e   :  { %10761 = vmatprep.subr.bf16.mxu1 %v14273_v1  ;;  %v14319_v1 = vcombine.high %v4136_v15, %v4140_v22  ;;  %v4188_v15 = vld [vmem:[#allocation9 + $0x19b0] sm:$0xff]  ;;  %v4185_v22 = vld [vmem:[#allocation9 + $0x1998] sm:$0xff] }
 0x57f   :  { %10434 = vmatpush1.bf16.msra.mxu0 %v14270_v60  ;;  %v4145_v60 = vld [vmem:[#allocation9 + $0x1858] sm:$0xff] }
 0x580   :  { %10435 = vmatprep.subr.bf16.mxu0 %v14279_v17  ;;  %v14320_v17 = vcombine.low %v4137_v53, %v4141_v4  ;;  %v4189_v53 = vld [vmem:[#allocation9 + $0x19b8] sm:$0xff] }
 0x581   :  { %10762 = vmatpush1.bf16.msra.mxu1 %v14272_v62  ;;  %v4149_v62 = vld [vmem:[#allocation9 + $0x1878] sm:$0xff] }
 0x582   :  { %10763 = vmatprep.subr.bf16.mxu1 %v14281_v52  ;;  %v14327_v52 = vcombine.high %v4144_v2, %v4148_v24  ;;  %v14329_v3 = vcombine.high %v4145_v60, %v4149_v62 }
 0x583   :  { %10436 = vmatpush1.bf16.msra.mxu0 %v14278_v43  ;;  %v4157_v43 = vld [vmem:[#allocation9 + $0x18b8] sm:$0xff] }
 0x584   :  { %10437 = vmatprep.subr.bf16.mxu0 %v14287_v10  ;;  %v14328_v10 = vcombine.low %v4145_v60, %v4149_v62  ;;  %v14337_v13 = vcombine.high %v4153_v7, %v4157_v43  ;;  %v14368_v62 = vcombine.low %v4185_v22, %v4189_v53 }
 0x585   :  { %10764 = vmatpush1.bf16.msra.mxu1 %v14280_v9  ;;  %v14326_v9 = vcombine.low %v4144_v2, %v4148_v24  ;;  %v4196_v2 = vld [vmem:[#allocation9 + $0x19f0] sm:$0xff]  ;;  %v4193_v24 = vld [vmem:[#allocation9 + $0x19d8] sm:$0xff] }
 0x586   :  { %10765 = vmatprep.subr.bf16.mxu1 %v14289_v58  ;;  %v14335_v58 = vcombine.high %v4152_v6, %v4156_v29 }
 0x587   :  { %10438 = vmatpush1.bf16.msra.mxu0 %v14286_v20  ;;  %v4165_v20 = vld [vmem:[#allocation9 + $0x18f8] sm:$0xff] }
 0x588   :  { %10439 = vmatprep.subr.bf16.mxu0 %v14295_v28  ;;  %v14343_v28 = vcombine.high %v4160_v23, %v4164_v19 }
 0x589   :  { %10766 = vmatpush1.bf16.msra.mxu1 %v14288_v25  ;;  %v14334_v25 = vcombine.low %v4152_v6, %v4156_v29  ;;  %v4200_v6 = vld [vmem:[#allocation9 + $0x1a10] sm:$0xff] }
 0x58a   :  { %10767 = vmatprep.subr.bf16.mxu1 %v14297_v5  ;;  %v14345_v5 = vcombine.high %v4161_v30, %v4165_v20  ;;  %v4204_v29 = vld [vmem:[#allocation9 + $0x1a30] sm:$0xff] }
 0x58b   :  { %10440 = vmatpush1.bf16.msra.mxu0 %v14294_v55  ;;  %v14344_v55 = vcombine.low %v4161_v30, %v4165_v20  ;;  %v4213_v30 = vld [vmem:[#allocation9 + $0x1a78] sm:$0xff]  ;;  %v14382_v20 = vcombine.low %v4200_v6, %v4204_v29 }
 0x58c   :  { %10441 = vmatprep.subr.bf16.mxu0 %v14303_v39  ;;  %v14353_v39 = vcombine.high %v4169_v40, %v4173_v38 }
 0x58d   :  { %10768 = vmatpush1.bf16.msra.mxu1 %v14296_v8  ;;  %v14351_v8 = vcombine.high %v4168_v16, %v4172_v47  ;;  %v4220_v16 = vld [vmem:[#allocation9 + $0x1ab0] sm:$0xff]  ;;  %v4217_v47 = vld [vmem:[#allocation9 + $0x1a98] sm:$0xff] }
 0x58e   :  { %10769 = vmatprep.subr.bf16.mxu1 %v14305_v42  ;;  %v4176_v42 = vld [vmem:[#allocation9 + $0x1950] sm:$0xff] }
 0x58f   :  { %10442 = vmatpush1.bf16.msra.mxu0 %v14302_v0  ;;  %v14352_v0 = vcombine.low %v4169_v40, %v4173_v38  ;;  %v14358_v4 = vcombine.low %v4176_v42, %v4180_v44  ;;  %v4221_v40 = vld [vmem:[#allocation9 + $0x1ab8] sm:$0xff] }
 0x590   :  { %10443 = vmatprep.subr.bf16.mxu0 %v14311_v37  ;;  %v14361_v37 = vcombine.high %v4177_v46, %v4181_v18 }
 0x591   :  { %10770 = vmatpush1.bf16.msra.mxu1 %v14304_v51  ;;  %v14359_v51 = vcombine.high %v4176_v42, %v4180_v44  ;;  %v4228_v42 = vld [vmem:[#allocation9 + $0x1af0] sm:$0xff]  ;;  %v4225_v44 = vld [vmem:[#allocation9 + $0x1ad8] sm:$0xff] }
 0x592   :  { %10771 = vmatprep.subr.bf16.mxu1 %v14313_v56  ;;  %v4184_v56 = vld [vmem:[#allocation9 + $0x1990] sm:$0xff] }
 0x593   :  { %10444 = vmatpush1.bf16.msra.mxu0 %v14310_v54  ;;  %v14360_v54 = vcombine.low %v4177_v46, %v4181_v18  ;;  %v14366_v60 = vcombine.low %v4184_v56, %v4188_v15  ;;  %v4229_v46 = vld [vmem:[#allocation9 + $0x1af8] sm:$0xff] }
 0x594   :  { %10454 = vmatprep.subr.bf16.mxu0 %v14319_v1  ;;  %v14369_v1 = vcombine.high %v4185_v22, %v4189_v53  ;;  %v4237_v22 = vld [vmem:[#allocation9 + $0x1b38] sm:$0xff] }
 0x595   :  { %10772 = vmatpush1.bf16.msra.mxu1 %v14312_v35  ;;  %v14367_v35 = vcombine.high %v4184_v56, %v4188_v15  ;;  %v4236_v56 = vld [vmem:[#allocation9 + $0x1b30] sm:$0xff]  ;;  %v4233_v15 = vld [vmem:[#allocation9 + $0x1b18] sm:$0xff] }
 0x596   :  { %10782 = vmatprep.subr.bf16.mxu1 %v14321_v50  ;;  %10446 = vmatmul.mubr.bf16.vlgmr.msra.gmra.mrb[36].mxu0 %v16073_v48  ;;  %v4192_v50 = vld [vmem:[#allocation9 + $0x19d0] sm:$0xff] }
 0x597   :  { %10455 = vmatpush1.bf16.msra.mxu0 %v14318_v26  ;;  %10486 = vmatprep.mubr.bf16.mxu0 %v16075_v63  ;;  %v4197_v26 = vld [vmem:[#allocation9 + $0x19f8] sm:$0xff] }
 0x598   :  { %10774 = vmatmul.mubr.bf16.vlgmr.msra.gmra.mrb[36].mxu1 %v16073_v48  ;;  %10456 = vmatprep.subr.bf16.mxu0 %v14327_v52  ;;  %v14336_v48 = vcombine.low %v4153_v7, %v4157_v43  ;;  %v14377_v52 = vcombine.high %v4193_v24, %v4197_v26  ;;  %v4205_v7 = vld [vmem:[#allocation9 + $0x1a38] sm:$0xff]  ;;  %v14374_v43 = vcombine.low %v4192_v50, %v4196_v2 }
 0x599   :  { %10783 = vmatpush1.bf16.msra.mxu1 %v14320_v17  ;;  %10814 = vmatprep.mubr.bf16.mxu1 %v16075_v63  ;;  %v14342_v63 = vcombine.low %v4160_v23, %v4164_v19  ;;  %v14375_v17 = vcombine.high %v4192_v50, %v4196_v2  ;;  %v4212_v23 = vld [vmem:[#allocation9 + $0x1a70] sm:$0xff]  ;;  %v4209_v19 = vld [vmem:[#allocation9 + $0x1a58] sm:$0xff] }
 0x59a   :  { %10784 = vmatprep.subr.bf16.mxu1 %v14329_v3  ;;  %v4201_v3 = vld [vmem:[#allocation9 + $0x1a18] sm:$0xff]  ;;  %v4244_v50 = vld [vmem:[#allocation9 + $0x1b70] sm:$0xff] }
 0x59b   :  { %10457 = vmatpush1.bf16.msra.mxu0 %v14326_v9  ;;  %v14376_v9 = vcombine.low %v4193_v24, %v4197_v26  ;;  %v4241_v2 = vld [vmem:[#allocation9 + $0x1b58] sm:$0xff] }
 0x59c   :  { %10458 = vmatprep.subr.bf16.mxu0 %v14335_v58  ;;  %v14385_v58 = vcombine.high %v4201_v3, %v4205_v7  ;;  %v4245_v24 = vld [vmem:[#allocation9 + $0x1b78] sm:$0xff] }
 0x59d   :  { %10785 = vmatpush1.bf16.msra.mxu1 %v14328_v10  ;;  %v14383_v10 = vcombine.high %v4200_v6, %v4204_v29  ;;  %v4252_v6 = vld [vmem:[#allocation9 + $0x1bb0] sm:$0xff]  ;;  %v4249_v29 = vld [vmem:[#allocation9 + $0x1b98] sm:$0xff] }
 0x59e   :  { %10786 = vmatprep.subr.bf16.mxu1 %v14337_v13  ;;  %v4208_v13 = vld [vmem:[#allocation9 + $0x1a50] sm:$0xff] }
 0x59f   :  { %10459 = vmatpush1.bf16.msra.mxu0 %v14334_v25  ;;  %v14384_v25 = vcombine.low %v4201_v3, %v4205_v7  ;;  %v14390_v38 = vcombine.low %v4208_v13, %v4212_v23  ;;  %v4253_v3 = vld [vmem:[#allocation9 + $0x1bb8] sm:$0xff] }
 0x5a0   :  { %10460 = vmatprep.subr.bf16.mxu0 %v14343_v28  ;;  %v14393_v28 = vcombine.high %v4209_v19, %v4213_v30 }
 0x5a1   :  { %10787 = vmatpush1.bf16.msra.mxu1 %v14336_v48  ;;  %v14391_v48 = vcombine.high %v4208_v13, %v4212_v23  ;;  %v4260_v13 = vld [vmem:[#allocation9 + $0x1bf0] sm:$0xff]  ;;  %v4257_v23 = vld [vmem:[#allocation9 + $0x1bd8] sm:$0xff] }
 0x5a2   :  { %10788 = vmatprep.subr.bf16.mxu1 %v14345_v5  ;;  %v4216_v5 = vld [vmem:[#allocation9 + $0x1a90] sm:$0xff] }
 0x5a3   :  { %10461 = vmatpush1.bf16.msra.mxu0 %v14342_v63  ;;  %v14392_v63 = vcombine.low %v4209_v19, %v4213_v30  ;;  %v14398_v18 = vcombine.low %v4216_v5, %v4220_v16  ;;  %v4261_v19 = vld [vmem:[#allocation9 + $0x1bf8] sm:$0xff] }
 0x5a4   :  { %10462 = vmatprep.subr.bf16.mxu0 %v14351_v8  ;;  %v14401_v8 = vcombine.high %v4217_v47, %v4221_v40 }
 0x5a5   :  { %10789 = vmatpush1.bf16.msra.mxu1 %v14344_v55  ;;  %v14399_v55 = vcombine.high %v4216_v5, %v4220_v16  ;;  %v4268_v5 = vld [vmem:[#allocation9 + $0x1c30] sm:$0xff]  ;;  %v4265_v16 = vld [vmem:[#allocation9 + $0x1c18] sm:$0xff] }
 0x5a6   :  { %10790 = vmatprep.subr.bf16.mxu1 %v14353_v39  ;;  %v4224_v39 = vld [vmem:[#allocation9 + $0x1ad0] sm:$0xff] }
 0x5a7   :  { %10463 = vmatpush1.bf16.msra.mxu0 %v14350_v21  ;;  %v14400_v21 = vcombine.low %v4217_v47, %v4221_v40  ;;  %v14406_v53 = vcombine.low %v4224_v39, %v4228_v42  ;;  %v4269_v47 = vld [vmem:[#allocation9 + $0x1c38] sm:$0xff] }
 0x5a8   :  { %10464 = vmatprep.subr.bf16.mxu0 %v14359_v51  ;;  %v14409_v51 = vcombine.high %v4225_v44, %v4229_v46 }
 0x5a9   :  { %10791 = vmatpush1.bf16.msra.mxu1 %v14352_v0  ;;  %v14407_v0 = vcombine.high %v4224_v39, %v4228_v42  ;;  %v4276_v39 = vld [vmem:[#allocation9 + $0x1c70] sm:$0xff] }
 0x5aa   :  { %10792 = vmatprep.subr.bf16.mxu1 %v14361_v37  ;;  %v4232_v37 = vld [vmem:[#allocation9 + $0x1b10] sm:$0xff] }
 0x5ab   :  { %10465 = vmatpush1.bf16.msra.mxu0 %v14358_v4  ;;  %v14408_v4 = vcombine.low %v4225_v44, %v4229_v46  ;;  %v14414_v26 = vcombine.low %v4232_v37, %v4236_v56  ;;  %v4273_v44 = vld [vmem:[#allocation9 + $0x1c58] sm:$0xff] }
 0x5ac   :  { %10466 = vmatprep.subr.bf16.mxu0 %v14367_v35  ;;  %v14417_v35 = vcombine.high %v4233_v15, %v4237_v22  ;;  %v4277_v46 = vld [vmem:[#allocation9 + $0x1c78] sm:$0xff] }
 0x5ad   :  { %10793 = vmatpush1.bf16.msra.mxu1 %v14360_v54  ;;  %v14415_v54 = vcombine.high %v4232_v37, %v4236_v56  ;;  %v14457_v37 = vcombine.high %v4273_v44, %v4277_v46  ;;  %v4281_v56 = vld [vmem:[#allocation9 + $0x1c98] sm:$0xff] }
 0x5ae   :  { %10794 = vmatprep.subr.bf16.mxu1 %v14369_v1  ;;  %v4240_v1 = vld [vmem:[#allocation9 + $0x1b50] sm:$0xff] }
 0x5af   :  { %10467 = vmatpush1.bf16.msra.mxu0 %v14366_v60  ;;  %v14416_v60 = vcombine.low %v4233_v15, %v4237_v22  ;;  %v14422_v7 = vcombine.low %v4240_v1, %v4244_v50  ;;  %v4285_v15 = vld [vmem:[#allocation9 + $0x1cb8] sm:$0xff] }
 0x5b0   :  { %10468 = vmatprep.subr.bf16.mxu0 %v14375_v17  ;;  %v14425_v17 = vcombine.high %v4241_v2, %v4245_v24 }
 0x5b1   :  { %10795 = vmatpush1.bf16.msra.mxu1 %v14368_v62  ;;  %v14423_v62 = vcombine.high %v4240_v1, %v4244_v50  ;;  %v4292_v1 = vld [vmem:[#allocation9 + $0x1cf0] sm:$0xff]  ;;  %v4289_v50 = vld [vmem:[#allocation9 + $0x1cd8] sm:$0xff] }
 0x5b2   :  { %10796 = vmatprep.subr.bf16.mxu1 %v14377_v52  ;;  %v4248_v52 = vld [vmem:[#allocation9 + $0x1b90] sm:$0xff] }
 0x5b3   :  { %10469 = vmatpush1.bf16.msra.mxu0 %v14374_v43  ;;  %v14424_v43 = vcombine.low %v4241_v2, %v4245_v24  ;;  %v14430_v30 = vcombine.low %v4248_v52, %v4252_v6  ;;  %v4293_v2 = vld [vmem:[#allocation9 + $0x1cf8] sm:$0xff] }
 0x5b4   :  { %10470 = vmatprep.subr.bf16.mxu0 %v14383_v10  ;;  %v14433_v10 = vcombine.high %v4249_v29, %v4253_v3 }
 0x5b5   :  { %10797 = vmatpush1.bf16.msra.mxu1 %v14376_v9  ;;  %v14431_v9 = vcombine.high %v4248_v52, %v4252_v6  ;;  %v4297_v52 = vld [vmem:[#allocation9 + $0x1d18] sm:$0xff] }
 0x5b6   :  { %10798 = vmatprep.subr.bf16.mxu1 %v14385_v58  ;;  %v4256_v58 = vld [vmem:[#allocation9 + $0x1bd0] sm:$0xff]  ;;  %v4301_v6 = vld [vmem:[#allocation9 + $0x1d38] sm:$0xff] }
 0x5b7   :  { %10471 = vmatpush1.bf16.msra.mxu0 %v14382_v20  ;;  %v14432_v20 = vcombine.low %v4249_v29, %v4253_v3  ;;  %v14438_v40 = vcombine.low %v4256_v58, %v4260_v13  ;;  %v14472_v29 = vcombine.low %v4289_v50, %v4293_v2 }
 0x5b8   :  { %10472 = vmatprep.subr.bf16.mxu0 %v14391_v48  ;;  %v14441_v48 = vcombine.high %v4257_v23, %v4261_v19 }
 0x5b9   :  { %10799 = vmatpush1.bf16.msra.mxu1 %v14384_v25  ;;  %v14439_v25 = vcombine.high %v4256_v58, %v4260_v13  ;;  %v4309_v58 = vld [vmem:[#allocation9 + $0x1d78] sm:$0xff] }
 0x5ba   :  { %10800 = vmatprep.subr.bf16.mxu1 %v14393_v28  ;;  %v4264_v28 = vld [vmem:[#allocation9 + $0x1c10] sm:$0xff] }
 0x5bb   :  { %10473 = vmatpush1.bf16.msra.mxu0 %v14390_v38  ;;  %v14440_v38 = vcombine.low %v4257_v23, %v4261_v19  ;;  %v14446_v42 = vcombine.low %v4264_v28, %v4268_v5  ;;  %v14480_v23 = vcombine.low %v4297_v52, %v4301_v6 }
 0x5bc   :  { %10474 = vmatprep.subr.bf16.mxu0 %v14399_v55  ;;  %v14449_v55 = vcombine.high %v4265_v16, %v4269_v47 }
 0x5bd   :  { %10801 = vmatpush1.bf16.msra.mxu1 %v14392_v63  ;;  %v14447_v63 = vcombine.high %v4264_v28, %v4268_v5  ;;  %v4317_v28 = vld [vmem:[#allocation9 + $0x1db8] sm:$0xff] }
 0x5be   :  { %10802 = vmatprep.subr.bf16.mxu1 %v14401_v8  ;;  %v4272_v8 = vld [vmem:[#allocation9 + $0x1c50] sm:$0xff] }
 0x5bf   :  { %10475 = vmatpush1.bf16.msra.mxu0 %v14398_v18  ;;  %v14448_v18 = vcombine.low %v4265_v16, %v4269_v47  ;;  %v14454_v22 = vcombine.low %v4272_v8, %v4276_v39 }
 0x5c0   :  { %10476 = vmatprep.subr.bf16.mxu0 %v14407_v0  ;;  %v4280_v0 = vld [vmem:[#allocation9 + $0x1c90] sm:$0xff] }
 0x5c1   :  { %10803 = vmatpush1.bf16.msra.mxu1 %v14400_v21  ;;  %v14455_v21 = vcombine.high %v4272_v8, %v4276_v39  ;;  %v4325_v8 = vld [vmem:[#allocation9 + $0x1df8] sm:$0xff] }
 0x5c2   :  { %10804 = vmatprep.subr.bf16.mxu1 %v14409_v51  ;;  %v4284_v51 = vld [vmem:[#allocation9 + $0x1cb0] sm:$0xff] }
 0x5c3   :  { %10477 = vmatpush1.bf16.msra.mxu0 %v14406_v53  ;;  %v14456_v53 = vcombine.low %v4273_v44, %v4277_v46  ;;  %v14462_v24 = vcombine.low %v4280_v0, %v4284_v51 }
 0x5c4   :  { %10478 = vmatprep.subr.bf16.mxu0 %v14415_v54  ;;  %v14465_v54 = vcombine.high %v4281_v56, %v4285_v15 }
 0x5c5   :  { %10805 = vmatpush1.bf16.msra.mxu1 %v14408_v4  ;;  %v14463_v4 = vcombine.high %v4280_v0, %v4284_v51  ;;  %v4329_v0 = vld [vmem:[#allocation9 + $0x1e18] sm:$0xff] }
 0x5c6   :  { %10806 = vmatprep.subr.bf16.mxu1 %v14417_v35  ;;  %v4288_v35 = vld [vmem:[#allocation9 + $0x1cd0] sm:$0xff]  ;;  %v4333_v51 = vld [vmem:[#allocation9 + $0x1e38] sm:$0xff] }
 0x5c7   :  { %10479 = vmatpush1.bf16.msra.mxu0 %v14414_v26  ;;  %v14471_v26 = vcombine.high %v4288_v35, %v4292_v1 }
 0x5c8   :  { %10480 = vmatprep.subr.bf16.mxu0 %v14423_v62  ;;  %v4296_v62 = vld [vmem:[#allocation9 + $0x1d10] sm:$0xff] }
 0x5c9   :  { %10807 = vmatpush1.bf16.msra.mxu1 %v14416_v60  ;;  %v14473_v60 = vcombine.high %v4289_v50, %v4293_v2  ;;  %v14512_v50 = vcombine.low %v4329_v0, %v4333_v51 }
 0x5ca   :  { %10808 = vmatprep.subr.bf16.mxu1 %v14425_v17  ;;  %v4300_v17 = vld [vmem:[#allocation9 + $0x1d30] sm:$0xff] }
 0x5cb   :  { %10481 = vmatpush1.bf16.msra.mxu0 %v14422_v7  ;;  %v14479_v3 = vcombine.high %v4296_v62, %v4300_v17  ;;  %v14481_v7 = vcombine.high %v4297_v52, %v4301_v6  ;;  %v14478_v13 = vcombine.low %v4296_v62, %v4300_v17  ;;  %v4349_v62 = vld [vmem:[#allocation9 + $0x1eb8] sm:$0xff] }
 0x5cc   :  { %10482 = vmatprep.subr.bf16.mxu0 %v14431_v9  ;;  %v4308_v9 = vld [vmem:[#allocation9 + $0x1d70] sm:$0xff] }
 0x5cd   :  { %10809 = vmatpush1.bf16.msra.mxu1 %v14424_v43  ;;  %v4304_v43 = vld [vmem:[#allocation9 + $0x1d50] sm:$0xff] }
 0x5ce   :  { %10810 = vmatprep.subr.bf16.mxu1 %v14433_v10  ;;  %v4305_v10 = vld [vmem:[#allocation9 + $0x1d58] sm:$0xff]  ;;  %v14487_v19 = vcombine.high %v4304_v43, %v4308_v9  ;;  %v14486_v5 = vcombine.low %v4304_v43, %v4308_v9 }
 0x5cf   :  { %10483 = vmatpush1.bf16.msra.mxu0 %v14430_v30  ;;  %v14489_v30 = vcombine.high %v4305_v10, %v4309_v58  ;;  %v14488_v16 = vcombine.low %v4305_v10, %v4309_v58  ;;  %v4357_v43 = vld [vmem:[#allocation9 + $0x1ef8] sm:$0xff] }
 0x5d0   :  { %10484 = vmatprep.subr.bf16.mxu0 %v14439_v25  ;;  %v4316_v25 = vld [vmem:[#allocation9 + $0x1db0] sm:$0xff] }
 0x5d1   :  { %10811 = vmatpush1.bf16.msra.mxu1 %v14432_v20  ;;  %v4312_v20 = vld [vmem:[#allocation9 + $0x1d90] sm:$0xff] }
 0x5d2   :  { %10812 = vmatprep.subr.bf16.mxu1 %v14441_v48  ;;  %v4313_v48 = vld [vmem:[#allocation9 + $0x1d98] sm:$0xff]  ;;  %v14495_v47 = vcombine.high %v4312_v20, %v4316_v25  ;;  %v14494_v39 = vcombine.low %v4312_v20, %v4316_v25 }
 0x5d3   :  { %10485 = vmatpush1.bf16.msra.mxu0 %v14438_v40  ;;  %v14497_v40 = vcombine.high %v4313_v48, %v4317_v28  ;;  %v4365_v20 = vld [vmem:[#allocation9 + $0x1f38] sm:$0xff] }
 0x5d4   :  { %10495 = vmatprep.subr.bf16.mxu0 %v14447_v63  ;;  %v4324_v63 = vld [vmem:[#allocation9 + $0x1df0] sm:$0xff] }
 0x5d5   :  { %10813 = vmatpush1.bf16.msra.mxu1 %v14440_v38  ;;  %v4320_v38 = vld [vmem:[#allocation9 + $0x1dd0] sm:$0xff] }
 0x5d6   :  { %10823 = vmatprep.subr.bf16.mxu1 %v14449_v55  ;;  %10487 = vmatmul.mubr.bf16.vlgmr.msra.gmra.mrb[36].mxu0 %v16089_v12  ;;  %v4321_v55 = vld [vmem:[#allocation9 + $0x1dd8] sm:$0xff]  ;;  %v14503_v44 = vcombine.high %v4320_v38, %v4324_v63 }
 0x5d7   :  { %10496 = vmatpush1.bf16.msra.mxu0 %v14446_v42  ;;  %10527 = vmatprep.mubr.bf16.mxu0 %v16091_v32  ;;  %v14496_v42 = vcombine.low %v4313_v48, %v4317_v28  ;;  %v14505_v46 = vcombine.high %v4321_v55, %v4325_v8 }
 0x5d8   :  { %10815 = vmatmul.mubr.bf16.vlgmr.msra.gmra.mrb[36].mxu1 %v16089_v12  ;;  %10497 = vmatprep.subr.bf16.mxu0 %v14455_v21  ;;  %v14464_v12 = vcombine.low %v4281_v56, %v4285_v15  ;;  %v4332_v21 = vld [vmem:[#allocation9 + $0x1e30] sm:$0xff]  ;;  %v14504_v56 = vcombine.low %v4321_v55, %v4325_v8  ;;  %v16142_v55 = vld [vmem:[#allocation11] sm:$0xff] }
 0x5d9   :  { %10824 = vmatpush1.bf16.msra.mxu1 %v14448_v18  ;;  %10855 = vmatprep.mubr.bf16.mxu1 %v16091_v32  ;;  %v14470_v32 = vcombine.low %v4288_v35, %v4292_v1  ;;  %v4328_v18 = vld [vmem:[#allocation9 + $0x1e10] sm:$0xff]  ;;  %v4341_v35 = vld [vmem:[#allocation9 + $0x1e78] sm:$0xff] }
 0x5da   :  { %10825 = vmatprep.subr.bf16.mxu1 %v14457_v37  ;;  %v14502_v37 = vcombine.low %v4320_v38, %v4324_v63  ;;  %v14511_v15 = vcombine.high %v4328_v18, %v4332_v21  ;;  %v14510_v1 = vcombine.low %v4328_v18, %v4332_v21  ;;  %v4373_v38 = vld [vmem:[#allocation9 + $0x1f78] sm:$0xff] }
 0x5db   :  { %10498 = vmatpush1.bf16.msra.mxu0 %v14454_v22  ;;  %v14513_v22 = vcombine.high %v4329_v0, %v4333_v51  ;;  %v4377_v18 = vld [vmem:[#allocation9 + $0x1f98] sm:$0xff]  ;;  %v4399_v0 = vrot.slane %v16142_v55, %v15921_v14 }
 0x5dc   :  { %10499 = vmatprep.subr.bf16.mxu0 %v14463_v4  ;;  %v4340_v4 = vld [vmem:[#allocation9 + $0x1e70] sm:$0xff]  ;;  %v4381_v21 = vld [vmem:[#allocation9 + $0x1fb8] sm:$0xff] }
 0x5dd   :  { %10826 = vmatpush1.bf16.msra.mxu1 %v14456_v53  ;;  %v4336_v53 = vld [vmem:[#allocation9 + $0x1e50] sm:$0xff] }
 0x5de   :  { %10827 = vmatprep.subr.bf16.mxu1 %v14465_v54  ;;  %v4337_v54 = vld [vmem:[#allocation9 + $0x1e58] sm:$0xff]  ;;  %v14519_v2 = vcombine.high %v4336_v53, %v4340_v4  ;;  %v14518_v17 = vcombine.low %v4336_v53, %v4340_v4  ;;  %v4388_v53 = vld [vmem:[#allocation9 + $0x1ff0] sm:$0xff] }
 0x5df   :  { %10500 = vmatpush1.bf16.msra.mxu0 %v14462_v24  ;;  %v14521_v24 = vcombine.high %v4337_v54, %v4341_v35  ;;  %v14520_v52 = vcombine.low %v4337_v54, %v4341_v35  ;;  %v4385_v4 = vld [vmem:[#allocation9 + $0x1fd8] sm:$0xff]  ;;  %v14904_v35 = vadd.f32 %v16122_v33, %v4399_v0  ;;  %v15120_v0 = vld [vmem:[#allocation12 + $0x10c] ss:$16 sps:$4 sm:$0xff]  }
 0x5e0   :  { %10501 = vmatprep.subr.bf16.mxu0 %v14471_v26  ;;  %v4348_v26 = vld [vmem:[#allocation9 + $0x1eb0] sm:$0xff]  ;;  %v4389_v54 = vld [vmem:[#allocation9 + $0x1ff8] sm:$0xff] }
 0x5e1   :  { %10828 = vmatpush1.bf16.msra.mxu1 %v14464_v12  ;;  %v4344_v12 = vld [vmem:[#allocation9 + $0x1e90] sm:$0xff]  ;;  %vm10865_vm0 = vcmp.gt.f32.partialorder %v14904_v35, 0.0  ;;  %v15067_v33 = vld [vmem:[#allocation12] ss:$16 sps:$4 sm:$0xff]  }
 0x5e2   :  { %10829 = vmatprep.subr.bf16.mxu1 %v14473_v60  ;;  %v4345_v60 = vld [vmem:[#allocation9 + $0x1e98] sm:$0xff]  ;;  %v14527_v6 = vcombine.high %v4344_v12, %v4348_v26  ;;  %v14526_v9 = vcombine.low %v4344_v12, %v4348_v26  ;;  %v10873_v12 = vmul.f32 0.01, %v14904_v35 }
 0x5e3   :  { %10502 = vmatpush1.bf16.msra.mxu0 %v14470_v32  ;;  %v14529_v32 = vcombine.high %v4345_v60, %v4349_v62  ;;  %v14528_v10 = vcombine.low %v4345_v60, %v4349_v62  ;;  %v14568_v60 = vcombine.low %v4385_v4, %v4389_v54  ;;  %v15069_v62 = vld [vmem:[#allocation12 + $0x4] ss:$16 sps:$4 sm:$0xff]  }
 0x5e4   :  { %10503 = vmatprep.subr.bf16.mxu0 %v14479_v3  ;;  %v4356_v3 = vld [vmem:[#allocation9 + $0x1ef0] sm:$0xff] }
 0x5e5   :  { %10830 = vmatpush1.bf16.msra.mxu1 %v14472_v29  ;;  %v4352_v29 = vld [vmem:[#allocation9 + $0x1ed0] sm:$0xff] }
 0x5e6   :  { %10831 = vmatprep.subr.bf16.mxu1 %v14481_v7  ;;  %v4353_v7 = vld [vmem:[#allocation9 + $0x1ed8] sm:$0xff]  ;;  %v14535_v58 = vcombine.high %v4352_v29, %v4356_v3  ;;  %v14534_v25 = vcombine.low %v4352_v29, %v4356_v3  ;;  %v15078_v3 = vld [vmem:[#allocation12 + $0x2c] ss:$16 sps:$4 sm:$0xff]  }
 0x5e7   :  { %10504 = vmatpush1.bf16.msra.mxu0 %v14478_v13  ;;  %v14537_v13 = vcombine.high %v4353_v7, %v4357_v43  ;;  %v14536_v48 = vcombine.low %v4353_v7, %v4357_v43  ;;  %v15073_v7 = vld [vmem:[#allocation12 + $0x20] ss:$16 sps:$4 sm:$0xff]   ;;  %v15076_v43 = vld [vmem:[#allocation12 + $0x28] ss:$16 sps:$4 sm:$0xff]  }
 0x5e8   :  { %10505 = vmatprep.subr.bf16.mxu0 %v14487_v19  ;;  %v4364_v19 = vld [vmem:[#allocation9 + $0x1f30] sm:$0xff] }
 0x5e9   :  { %10832 = vmatpush1.bf16.msra.mxu1 %v14480_v23  ;;  %v4360_v23 = vld [vmem:[#allocation9 + $0x1f10] sm:$0xff] }
 0x5ea   :  { %10833 = vmatprep.subr.bf16.mxu1 %v14489_v30  ;;  %v4361_v30 = vld [vmem:[#allocation9 + $0x1f18] sm:$0xff]  ;;  %v14543_v28 = vcombine.high %v4360_v23, %v4364_v19  ;;  %v14542_v63 = vcombine.low %v4360_v23, %v4364_v19  ;;  %v15090_v19 = vld [vmem:[#allocation12 + $0x6c] ss:$16 sps:$4 sm:$0xff]  }
 0x5eb   :  { %10506 = vmatpush1.bf16.msra.mxu0 %v14486_v5  ;;  %v14545_v5 = vcombine.high %v4361_v30, %v4365_v20  ;;  %v14544_v8 = vcombine.low %v4361_v30, %v4365_v20  ;;  %v15087_v23 = vld [vmem:[#allocation12 + $0x64] ss:$16 sps:$4 sm:$0xff]   ;;  %v15088_v30 = vld [vmem:[#allocation12 + $0x68] ss:$16 sps:$4 sm:$0xff]  }
 0x5ec   :  { %10507 = vmatprep.subr.bf16.mxu0 %v14495_v47  ;;  %v4372_v47 = vld [vmem:[#allocation9 + $0x1f70] sm:$0xff]  ;;  %v15093_v20 = vld [vmem:[#allocation12 + $0x84] ss:$16 sps:$4 sm:$0xff]  }
 0x5ed   :  { %10834 = vmatpush1.bf16.msra.mxu1 %v14488_v16  ;;  %v4368_v16 = vld [vmem:[#allocation9 + $0x1f50] sm:$0xff] }
 0x5ee   :  { %10835 = vmatprep.subr.bf16.mxu1 %v14497_v40  ;;  %v4369_v40 = vld [vmem:[#allocation9 + $0x1f58] sm:$0xff]  ;;  %v14550_v51 = vcombine.low %v4368_v16, %v4372_v47 }
 0x5ef   :  { %10508 = vmatpush1.bf16.msra.mxu0 %v14494_v39  ;;  %v14551_v39 = vcombine.high %v4368_v16, %v4372_v47  ;;  %v15102_v16 = vld [vmem:[#allocation12 + $0xac] ss:$16 sps:$4 sm:$0xff]   ;;  %v15097_v47 = vld [vmem:[#allocation12 + $0xa0] ss:$16 sps:$4 sm:$0xff]  }
 0x5f0   :  { %10509 = vmatprep.subr.bf16.mxu0 %v14503_v44  ;;  %v4376_v44 = vld [vmem:[#allocation9 + $0x1f90] sm:$0xff] }
 0x5f1   :  { %10836 = vmatpush1.bf16.msra.mxu1 %v14496_v42  ;;  %v14553_v42 = vcombine.high %v4369_v40, %v4373_v38 }
 0x5f2   :  { %10837 = vmatprep.subr.bf16.mxu1 %v14505_v46  ;;  %v4380_v46 = vld [vmem:[#allocation9 + $0x1fb0] sm:$0xff] }
 0x5f3   :  { %10510 = vmatpush1.bf16.msra.mxu0 %v14502_v37  ;;  %v14552_v37 = vcombine.low %v4369_v40, %v4373_v38  ;;  %v15100_v40 = vld [vmem:[#allocation12 + $0xa8] ss:$16 sps:$4 sm:$0xff]   ;;  %v15105_v38 = vld [vmem:[#allocation12 + $0xc4] ss:$16 sps:$4 sm:$0xff]  }
 0x5f4   :  { %10511 = vmatprep.subr.bf16.mxu0 %v14511_v15  ;;  %v14561_v15 = vcombine.high %v4377_v18, %v4381_v21 }
 0x5f5   :  { %10838 = vmatpush1.bf16.msra.mxu1 %v14504_v56  ;;  %v14559_v56 = vcombine.high %v4376_v44, %v4380_v46 }
 0x5f6   :  { %10839 = vmatprep.subr.bf16.mxu1 %v14513_v22  ;;  %v4384_v22 = vld [vmem:[#allocation9 + $0x1fd0] sm:$0xff] }
 0x5f7   :  { %10512 = vmatpush1.bf16.msra.mxu0 %v14510_v1  ;;  %v14558_v1 = vcombine.low %v4376_v44, %v4380_v46  ;;  %v14566_v26 = vcombine.low %v4384_v22, %v4388_v53  ;;  %v15114_v44 = vld [vmem:[#allocation12 + $0xec] ss:$16 sps:$4 sm:$0xff]   ;;  %v15109_v46 = vld [vmem:[#allocation12 + $0xe0] ss:$16 sps:$4 sm:$0xff]  }
 0x5f8   :  { %10513 = vmatprep.subr.bf16.mxu0 %v14519_v2  ;;  %v14567_v2 = vcombine.high %v4384_v22, %v4388_v53  ;;  %v15121_v22 = vld [vmem:[#allocation12 + $0x120] ss:$16 sps:$4 sm:$0xff]   ;;  %v15124_v53 = vld [vmem:[#allocation12 + $0x128] ss:$16 sps:$4 sm:$0xff]  }
 0x5f9   :  { %10840 = vmatpush1.bf16.msra.mxu1 %v14512_v50  ;;  %v14560_v50 = vcombine.low %v4377_v18, %v4381_v21  ;;  %v15112_v18 = vld [vmem:[#allocation12 + $0xe8] ss:$16 sps:$4 sm:$0xff]   ;;  %v15117_v21 = vld [vmem:[#allocation12 + $0x104] ss:$16 sps:$4 sm:$0xff]  }
 0x5fa   :  { %10841 = vmatprep.subr.bf16.mxu1 %v14521_v24  ;;  %v14569_v24 = vcombine.high %v4385_v4, %v4389_v54  ;;  %v15129_v4 = vld [vmem:[#allocation12 + $0x144] ss:$16 sps:$4 sm:$0xff]   ;;  %v15132_v54 = vld [vmem:[#allocation12 + $0x14c] ss:$16 sps:$4 sm:$0xff]  }
 0x5fb   :  { %10514 = vmatpush1.bf16.msra.mxu0 %v14518_v17  ;;  %v15072_v17 = vld [vmem:[#allocation12 + $0xc] ss:$16 sps:$4 sm:$0xff]  }
 0x5fc   :  { %10515 = vmatprep.subr.bf16.mxu0 %v14527_v6  ;;  %v15070_v6 = vld [vmem:[#allocation12 + $0x8] ss:$16 sps:$4 sm:$0xff]  }
 0x5fd   :  { %10842 = vmatpush1.bf16.msra.mxu1 %v14520_v52  ;;  %v10881_v52 = vsel %vm10865_vm0, %v14904_v35, %v10873_v12  ;;  %v15127_v35 = vld [vmem:[#allocation12 + $0x140] ss:$16 sps:$4 sm:$0xff]   ;;  %v15136_v12 = vld [vmem:[#allocation12 + $0x168] ss:$16 sps:$4 sm:$0xff]  }
 0x5fe   :  { %10843 = vmatprep.subr.bf16.mxu1 %v14529_v32  ;;  %v15075_v32 = vld [vmem:[#allocation12 + $0x24] ss:$16 sps:$4 sm:$0xff]   ;;  %v10889_v29 = vpack.c.bf16 %v10881_v52, %v10881_v52  ;;  %v4395_v52 = vrot.slane %v16142_v55, %v15945_v57 }
 0x5ff   :  { %10516 = vmatpush1.bf16.msra.mxu0 %v14526_v9  ;;  %v15081_v9 = vld [vmem:[#allocation12 + $0x44] ss:$16 sps:$4 sm:$0xff]  }
 0x600   :  { %10517 = vmatprep.subr.bf16.mxu0 %v14535_v58  ;;  %v15079_v58 = vld [vmem:[#allocation12 + $0x40] ss:$16 sps:$4 sm:$0xff]  }
 0x601   :  { %10844 = vmatpush1.bf16.msra.mxu1 %v14528_v10  ;;  %v15084_v10 = vld [vmem:[#allocation12 + $0x4c] ss:$16 sps:$4 sm:$0xff]  }
 0x602   :  { %10845 = vmatprep.subr.bf16.mxu1 %v14537_v13  ;;  %v15082_v13 = vld [vmem:[#allocation12 + $0x48] ss:$16 sps:$4 sm:$0xff]  }
 0x603   :  { %10518 = vmatpush1.bf16.msra.mxu0 %v14534_v25  ;;  %v15096_v25 = vld [vmem:[#allocation12 + $0x8c] ss:$16 sps:$4 sm:$0xff]  }
 0x604   :  { %10519 = vmatprep.subr.bf16.mxu0 %v14543_v28  ;;  %v15094_v28 = vld [vmem:[#allocation12 + $0x88] ss:$16 sps:$4 sm:$0xff]  }
 0x605   :  { %10846 = vmatpush1.bf16.msra.mxu1 %v14536_v48  ;;  %v15091_v48 = vld [vmem:[#allocation12 + $0x80] ss:$16 sps:$4 sm:$0xff]  }
 0x606   :  { %10847 = vmatprep.subr.bf16.mxu1 %v14545_v5  ;;  %v15099_v5 = vld [vmem:[#allocation12 + $0xa4] ss:$16 sps:$4 sm:$0xff]  }
 0x607   :  { %10520 = vmatpush1.bf16.msra.mxu0 %v14542_v63  ;;  %v15108_v63 = vld [vmem:[#allocation12 + $0xcc] ss:$16 sps:$4 sm:$0xff]  }
 0x608   :  { %10521 = vmatprep.subr.bf16.mxu0 %v14551_v39  ;;  %v15106_v39 = vld [vmem:[#allocation12 + $0xc8] ss:$16 sps:$4 sm:$0xff]  }
 0x609   :  { %10848 = vmatpush1.bf16.msra.mxu1 %v14544_v8  ;;  %v15103_v8 = vld [vmem:[#allocation12 + $0xc0] ss:$16 sps:$4 sm:$0xff]  }
 0x60a   :  { %10849 = vmatprep.subr.bf16.mxu1 %v14553_v42  ;;  %v15111_v42 = vld [vmem:[#allocation12 + $0xe4] ss:$16 sps:$4 sm:$0xff]  }
 0x60b   :  { %10522 = vmatpush1.bf16.msra.mxu0 %v14550_v51  ;;  %v15115_v51 = vld [vmem:[#allocation12 + $0x100] ss:$16 sps:$4 sm:$0xff]  }
 0x60c   :  { %10523 = vmatprep.subr.bf16.mxu0 %v14559_v56  ;;  %v15123_v56 = vld [vmem:[#allocation12 + $0x124] ss:$16 sps:$4 sm:$0xff]  }
 0x60d   :  { %10850 = vmatpush1.bf16.msra.mxu1 %v14552_v37  ;;  %v15118_v37 = vld [vmem:[#allocation12 + $0x108] ss:$16 sps:$4 sm:$0xff]  }
 0x60e   :  { %10851 = vmatprep.subr.bf16.mxu1 %v14561_v15  ;;  %v15126_v15 = vld [vmem:[#allocation12 + $0x12c] ss:$16 sps:$4 sm:$0xff]  }
 0x60f   :  { %10524 = vmatpush1.bf16.msra.mxu0 %v14558_v1  ;;  %v15130_v1 = vld [vmem:[#allocation12 + $0x148] ss:$16 sps:$4 sm:$0xff]  }
 0x610   :  { %10525 = vmatprep.subr.bf16.mxu0 %v14567_v2  ;;  %v15138_v2 = vld [vmem:[#allocation12 + $0x16c] ss:$16 sps:$4 sm:$0xff]  }
 0x611   :  { %10852 = vmatpush1.bf16.msra.mxu1 %v14560_v50  ;;  %v15135_v50 = vld [vmem:[#allocation12 + $0x164] ss:$16 sps:$4 sm:$0xff]  }
 0x612   :  { %10853 = vmatprep.subr.bf16.mxu1 %v14569_v24  ;;  %v15133_v24 = vld [vmem:[#allocation12 + $0x160] ss:$16 sps:$4 sm:$0xff]  }
 0x613   :  { %10526 = vmatpush1.bf16.msra.mxu0 %v14566_v26  ;;  %v15141_v26 = vld [vmem:[#allocation12 + $0x184] ss:$16 sps:$4 sm:$0xff]  }
 0x614   :  { %12454 = vmatprep.subr.bf16.mxu0 %v15069_v62  ;;  %v15139_v62 = vld [vmem:[#allocation12 + $0x180] ss:$16 sps:$4 sm:$0xff]  }
 0x615   :  { %10854 = vmatpush1.bf16.msra.mxu1 %v14568_v60  ;;  %v15144_v60 = vld [vmem:[#allocation12 + $0x18c] ss:$16 sps:$4 sm:$0xff]  }
 0x616   :  { %12618 = vmatprep.subr.bf16.mxu1 %v15072_v17  ;;  %10528 = vmatmul.mubr.bf16.vlgmr.msra.gmra.mrb[36].mxu0 %v16100_v34  ;;  %v15142_v17 = vld [vmem:[#allocation12 + $0x188] ss:$16 sps:$4 sm:$0xff]  }
 0x617   :  { %12455 = vmatpush1.bf16.msra.mxu0 %v15067_v33  ;;  %12486 = vmatprep.mubr.bf16.mxu0 %v10889_v29  ;;  %v15147_v33 = vld [vmem:[#allocation12 + $0x1a4] ss:$16 sps:$4 sm:$0xff]  }
 0x618   :  { %10856 = vmatmul.mubr.bf16.vlgmr.msra.gmra.mrb[36].mxu1 %v16100_v34  ;;  %12456 = vmatprep.subr.bf16.mxu0 %v15075_v32  ;;  %v15085_v34 = vld [vmem:[#allocation12 + $0x60] ss:$16 sps:$4 sm:$0xff]   ;;  %v4407_v32 = vrot.slane %v16142_v55, %v15948_v61 }
 0x619   :  { %12619 = vmatpush1.bf16.msra.mxu1 %v15070_v6  ;;  %12650 = vmatprep.mubr.bf16.mxu1 %v10889_v29  ;;  %v15150_v6 = vld [vmem:[#allocation12 + $0x1ac] ss:$16 sps:$4 sm:$0xff]   ;;  %v15145_v29 = vld [vmem:[#allocation12 + $0x1a0] ss:$16 sps:$4 sm:$0xff]  }
 0x61a   :  { %12620 = vmatprep.subr.bf16.mxu1 %v15078_v3  ;;  %v15148_v3 = vld [vmem:[#allocation12 + $0x1a8] ss:$16 sps:$4 sm:$0xff]  }
 0x61b   :  { %12457 = vmatpush1.bf16.msra.mxu0 %v15073_v7  ;;  %v15153_v7 = vld [vmem:[#allocation12 + $0x1c4] ss:$16 sps:$4 sm:$0xff]  }
 0x61c   :  { %12458 = vmatprep.subr.bf16.mxu0 %v15081_v9  ;;  %v15156_v9 = vld [vmem:[#allocation12 + $0x1cc] ss:$16 sps:$4 sm:$0xff]  }
 0x61d   :  { %12621 = vmatpush1.bf16.msra.mxu1 %v15076_v43  ;;  %v14903_v43 = vadd.f32 %v16118_v27, %v4395_v52  ;;  %v15160_v27 = vld [vmem:[#allocation12 + $0x1e8] ss:$16 sps:$4 sm:$0xff]   ;;  %v15216_v52 = vld [vmem:[#allocation12 + $0x30c] ss:$16 sps:$4 sm:$0xff]  }
 0x61e   :  { %12622 = vmatprep.subr.bf16.mxu1 %v15084_v10  ;;  %v14906_v10 = vadd.f32 %v16124_v41, %v4407_v32  ;;  %v15168_v41 = vld [vmem:[#allocation12 + $0x20c] ss:$16 sps:$4 sm:$0xff]   ;;  %v15214_v32 = vld [vmem:[#allocation12 + $0x308] ss:$16 sps:$4 sm:$0xff]  }
 0x61f   :  { %12459 = vmatpush1.bf16.msra.mxu0 %v15079_v58  ;;  %v15151_v58 = vld [vmem:[#allocation12 + $0x1c0] ss:$16 sps:$4 sm:$0xff]   ;;  %vm10864_vm1 = vcmp.gt.f32.partialorder %v14903_v43, 0.0 }
 0x620   :  { %12460 = vmatprep.subr.bf16.mxu0 %v15087_v23  ;;  %v15159_v23 = vld [vmem:[#allocation12 + $0x1e4] ss:$16 sps:$4 sm:$0xff]   ;;  %vm10867_vm2 = vcmp.gt.f32.partialorder %v14906_v10, 0.0 }
 0x621   :  { %12623 = vmatpush1.bf16.msra.mxu1 %v15082_v13  ;;  %v15154_v13 = vld [vmem:[#allocation12 + $0x1c8] ss:$16 sps:$4 sm:$0xff]  }
 0x622   :  { %12624 = vmatprep.subr.bf16.mxu1 %v15090_v19  ;;  %v10872_v19 = vmul.f32 0.01, %v14903_v43 }
 0x623   :  { %12461 = vmatpush1.bf16.msra.mxu0 %v15085_v34  ;;  %v15162_v34 = vld [vmem:[#allocation12 + $0x1ec] ss:$16 sps:$4 sm:$0xff]  }
 0x624   :  { %12462 = vmatprep.subr.bf16.mxu0 %v15093_v20  ;;  %v15157_v20 = vld [vmem:[#allocation12 + $0x1e0] ss:$16 sps:$4 sm:$0xff]  }
 0x625   :  { %12625 = vmatpush1.bf16.msra.mxu1 %v15088_v30  ;;  %v10875_v30 = vmul.f32 0.01, %v14906_v10 }
 0x626   :  { %12626 = vmatprep.subr.bf16.mxu1 %v15096_v25  ;;  %v15165_v25 = vld [vmem:[#allocation12 + $0x204] ss:$16 sps:$4 sm:$0xff]  }
 0x627   :  { %12463 = vmatpush1.bf16.msra.mxu0 %v15091_v48  ;;  %v10880_v48 = vsel %vm10864_vm1, %v14903_v43, %v10872_v19  ;;  %v15220_v43 = vld [vmem:[#allocation12 + $0x328] ss:$16 sps:$4 sm:$0xff]   ;;  %v15234_v19 = vld [vmem:[#allocation12 + $0x36c] ss:$16 sps:$4 sm:$0xff]  }
 0x628   :  { %12464 = vmatprep.subr.bf16.mxu0 %v15099_v5  ;;  %v10883_v5 = vsel %vm10867_vm2, %v14906_v10, %v10875_v30  ;;  %v15228_v10 = vld [vmem:[#allocation12 + $0x34c] ss:$16 sps:$4 sm:$0xff]   ;;  %v15232_v30 = vld [vmem:[#allocation12 + $0x368] ss:$16 sps:$4 sm:$0xff]  }
 0x629   :  { %12627 = vmatpush1.bf16.msra.mxu1 %v15094_v28  ;;  %v15163_v28 = vld [vmem:[#allocation12 + $0x200] ss:$16 sps:$4 sm:$0xff]  }
 0x62a   :  { %12628 = vmatprep.subr.bf16.mxu1 %v15102_v16  ;;  %v10888_v16 = vpack.c.bf16 %v10880_v48, %v10880_v48  ;;  %v15238_v48 = vld [vmem:[#allocation12 + $0x388] ss:$16 sps:$4 sm:$0xff]  }
 0x62b   :  { %12465 = vmatpush1.bf16.msra.mxu0 %v15097_v47  ;;  %v15166_v47 = vld [vmem:[#allocation12 + $0x208] ss:$16 sps:$4 sm:$0xff]  }
 0x62c   :  { %12466 = vmatprep.subr.bf16.mxu0 %v15105_v38  ;;  %v10891_v38 = vpack.c.bf16 %v10883_v5, %v10883_v5  ;;  %v15246_v5 = vld [vmem:[#allocation12 + $0x3ac] ss:$16 sps:$4 sm:$0xff]  }
 0x62d   :  { %12629 = vmatpush1.bf16.msra.mxu1 %v15100_v40  ;;  %v15171_v40 = vld [vmem:[#allocation12 + $0x224] ss:$16 sps:$4 sm:$0xff]  }
 0x62e   :  { %12630 = vmatprep.subr.bf16.mxu1 %v15108_v63  ;;  %v15174_v63 = vld [vmem:[#allocation12 + $0x22c] ss:$16 sps:$4 sm:$0xff]  }
 0x62f   :  { %12467 = vmatpush1.bf16.msra.mxu0 %v15103_v8  ;;  %v15169_v8 = vld [vmem:[#allocation12 + $0x220] ss:$16 sps:$4 sm:$0xff]  }
 0x630   :  { %12468 = vmatprep.subr.bf16.mxu0 %v15111_v42  ;;  %v15177_v42 = vld [vmem:[#allocation12 + $0x244] ss:$16 sps:$4 sm:$0xff]  }
 0x631   :  { %12631 = vmatpush1.bf16.msra.mxu1 %v15106_v39  ;;  %v15172_v39 = vld [vmem:[#allocation12 + $0x228] ss:$16 sps:$4 sm:$0xff]  }
 0x632   :  { %12632 = vmatprep.subr.bf16.mxu1 %v15114_v44  ;;  %v15180_v44 = vld [vmem:[#allocation12 + $0x24c] ss:$16 sps:$4 sm:$0xff]  }
 0x633   :  { %12469 = vmatpush1.bf16.msra.mxu0 %v15109_v46  ;;  %v15175_v46 = vld [vmem:[#allocation12 + $0x240] ss:$16 sps:$4 sm:$0xff]  }
 0x634   :  { %12470 = vmatprep.subr.bf16.mxu0 %v15117_v21  ;;  %v15183_v21 = vld [vmem:[#allocation12 + $0x264] ss:$16 sps:$4 sm:$0xff]  }
 0x635   :  { %12633 = vmatpush1.bf16.msra.mxu1 %v15112_v18  ;;  %v15178_v18 = vld [vmem:[#allocation12 + $0x248] ss:$16 sps:$4 sm:$0xff]  }
 0x636   :  { %12634 = vmatprep.subr.bf16.mxu1 %v15120_v0  ;;  %v15186_v0 = vld [vmem:[#allocation12 + $0x26c] ss:$16 sps:$4 sm:$0xff]  }
 0x637   :  { %12471 = vmatpush1.bf16.msra.mxu0 %v15115_v51  ;;  %v15181_v51 = vld [vmem:[#allocation12 + $0x260] ss:$16 sps:$4 sm:$0xff]  }
 0x638   :  { %12472 = vmatprep.subr.bf16.mxu0 %v15123_v56  ;;  %v15189_v56 = vld [vmem:[#allocation12 + $0x284] ss:$16 sps:$4 sm:$0xff]  }
 0x639   :  { %12635 = vmatpush1.bf16.msra.mxu1 %v15118_v37  ;;  %v15184_v37 = vld [vmem:[#allocation12 + $0x268] ss:$16 sps:$4 sm:$0xff]  }
 0x63a   :  { %12636 = vmatprep.subr.bf16.mxu1 %v15126_v15  ;;  %v15192_v15 = vld [vmem:[#allocation12 + $0x28c] ss:$16 sps:$4 sm:$0xff]  }
 0x63b   :  { %12473 = vmatpush1.bf16.msra.mxu0 %v15121_v22  ;;  %v15187_v22 = vld [vmem:[#allocation12 + $0x280] ss:$16 sps:$4 sm:$0xff]  }
 0x63c   :  { %12474 = vmatprep.subr.bf16.mxu0 %v15129_v4  ;;  %v15195_v4 = vld [vmem:[#allocation12 + $0x2a4] ss:$16 sps:$4 sm:$0xff]  }
 0x63d   :  { %12637 = vmatpush1.bf16.msra.mxu1 %v15124_v53  ;;  %v15190_v53 = vld [vmem:[#allocation12 + $0x288] ss:$16 sps:$4 sm:$0xff]  }
 0x63e   :  { %12638 = vmatprep.subr.bf16.mxu1 %v15132_v54  ;;  %v15198_v54 = vld [vmem:[#allocation12 + $0x2ac] ss:$16 sps:$4 sm:$0xff]  }
 0x63f   :  { %12475 = vmatpush1.bf16.msra.mxu0 %v15127_v35  ;;  %v15193_v35 = vld [vmem:[#allocation12 + $0x2a0] ss:$16 sps:$4 sm:$0xff]  }
 0x640   :  { %12476 = vmatprep.subr.bf16.mxu0 %v15135_v50  ;;  %v15201_v50 = vld [vmem:[#allocation12 + $0x2c4] ss:$16 sps:$4 sm:$0xff]  }
 0x641   :  { %12639 = vmatpush1.bf16.msra.mxu1 %v15130_v1  ;;  %v15196_v1 = vld [vmem:[#allocation12 + $0x2a8] ss:$16 sps:$4 sm:$0xff]  }
 0x642   :  { %12640 = vmatprep.subr.bf16.mxu1 %v15138_v2  ;;  %v15204_v2 = vld [vmem:[#allocation12 + $0x2cc] ss:$16 sps:$4 sm:$0xff]  }
 0x643   :  { %12477 = vmatpush1.bf16.msra.mxu0 %v15133_v24  ;;  %v15199_v24 = vld [vmem:[#allocation12 + $0x2c0] ss:$16 sps:$4 sm:$0xff]  }
 0x644   :  { %12478 = vmatprep.subr.bf16.mxu0 %v15141_v26  ;;  %v15207_v26 = vld [vmem:[#allocation12 + $0x2e4] ss:$16 sps:$4 sm:$0xff]  }
 0x645   :  { %12641 = vmatpush1.bf16.msra.mxu1 %v15136_v12  ;;  %v15202_v12 = vld [vmem:[#allocation12 + $0x2c8] ss:$16 sps:$4 sm:$0xff]  }
 0x646   :  { %12642 = vmatprep.subr.bf16.mxu1 %v15144_v60  ;;  %v15210_v60 = vld [vmem:[#allocation12 + $0x2ec] ss:$16 sps:$4 sm:$0xff]  }
 0x647   :  { %12479 = vmatpush1.bf16.msra.mxu0 %v15139_v62  ;;  %v15205_v62 = vld [vmem:[#allocation12 + $0x2e0] ss:$16 sps:$4 sm:$0xff]  }
 0x648   :  { %12480 = vmatprep.subr.bf16.mxu0 %v15147_v33  ;;  %v15213_v33 = vld [vmem:[#allocation12 + $0x304] ss:$16 sps:$4 sm:$0xff]  }
 0x649   :  { %12643 = vmatpush1.bf16.msra.mxu1 %v15142_v17  ;;  %v15208_v17 = vld [vmem:[#allocation12 + $0x2e8] ss:$16 sps:$4 sm:$0xff]  }
 0x64a   :  { %12644 = vmatprep.subr.bf16.mxu1 %v15150_v6  ;;  %v15211_v6 = vld [vmem:[#allocation12 + $0x300] ss:$16 sps:$4 sm:$0xff]  }
 0x64b   :  { %12481 = vmatpush1.bf16.msra.mxu0 %v15145_v29  ;;  %v15219_v29 = vld [vmem:[#allocation12 + $0x324] ss:$16 sps:$4 sm:$0xff]  }
 0x64c   :  { %12482 = vmatprep.subr.bf16.mxu0 %v15153_v7  ;;  %v15217_v7 = vld [vmem:[#allocation12 + $0x320] ss:$16 sps:$4 sm:$0xff]  }
 0x64d   :  { %12645 = vmatpush1.bf16.msra.mxu1 %v15148_v3  ;;  %v15222_v3 = vld [vmem:[#allocation12 + $0x32c] ss:$16 sps:$4 sm:$0xff]  }
 0x64e   :  { %12646 = vmatprep.subr.bf16.mxu1 %v15156_v9  ;;  %v15225_v9 = vld [vmem:[#allocation12 + $0x344] ss:$16 sps:$4 sm:$0xff]  }
 0x64f   :  { %12483 = vmatpush1.bf16.msra.mxu0 %v15151_v58  ;;  %v15223_v58 = vld [vmem:[#allocation12 + $0x340] ss:$16 sps:$4 sm:$0xff]  }
 0x650   :  { %12484 = vmatprep.subr.bf16.mxu0 %v15159_v23  ;;  %v15231_v23 = vld [vmem:[#allocation12 + $0x364] ss:$16 sps:$4 sm:$0xff]  }
 0x651   :  { %12647 = vmatpush1.bf16.msra.mxu1 %v15154_v13  ;;  %v15226_v13 = vld [vmem:[#allocation12 + $0x348] ss:$16 sps:$4 sm:$0xff]  }
 0x652   :  { %12648 = vmatprep.subr.bf16.mxu1 %v15162_v34  ;;  %v15229_v34 = vld [vmem:[#allocation12 + $0x360] ss:$16 sps:$4 sm:$0xff]  }
 0x653   :  { %12485 = vmatpush1.bf16.msra.mxu0 %v15157_v20  ;;  %v15237_v20 = vld [vmem:[#allocation12 + $0x384] ss:$16 sps:$4 sm:$0xff]  }
 0x654   :  { %12495 = vmatprep.subr.bf16.mxu0 %v15165_v25  ;;  %v15235_v25 = vld [vmem:[#allocation12 + $0x380] ss:$16 sps:$4 sm:$0xff]  }
 0x655   :  { %12649 = vmatpush1.bf16.msra.mxu1 %v15160_v27  ;;  %v15240_v27 = vld [vmem:[#allocation12 + $0x38c] ss:$16 sps:$4 sm:$0xff]  }
 0x656   :  { %12659 = vmatprep.subr.bf16.mxu1 %v15168_v41  ;;  %12487 = vmatmul.mubr.bf16.vlgmr.msra.gmra.mrb[40].mxu0 %v10888_v16  ;;  %v15243_v41 = vld [vmem:[#allocation12 + $0x3a4] ss:$16 sps:$4 sm:$0xff]  }
 0x657   :  { %12496 = vmatpush1.bf16.msra.mxu0 %v15163_v28  ;;  %12527 = vmatprep.mubr.bf16.mxu0 %v10891_v38  ;;  %v4403_v28 = vrot.slane %v16142_v55, %v15975_v49 }
 0x658   :  { %12651 = vmatmul.mubr.bf16.vlgmr.msra.gmra.mrb[40].mxu1 %v10888_v16  ;;  %12497 = vmatprep.subr.bf16.mxu0 %v15171_v40  ;;  %v15241_v16 = vld [vmem:[#allocation12 + $0x3a0] ss:$16 sps:$4 sm:$0xff]   ;;  %v15249_v40 = vld [vmem:[#allocation12 + $0x3c4] ss:$16 sps:$4 sm:$0xff]  }
 0x659   :  { %12660 = vmatpush1.bf16.msra.mxu1 %v15166_v47  ;;  %12691 = vmatprep.mubr.bf16.mxu1 %v10891_v38  ;;  %v15244_v47 = vld [vmem:[#allocation12 + $0x3a8] ss:$16 sps:$4 sm:$0xff]   ;;  %v14905_v38 = vadd.f32 %v16120_v31, %v4403_v28  ;;  %v15264_v31 = vld [vmem:[#allocation12 + $0x40c] ss:$16 sps:$4 sm:$0xff]  }
 0x65a   :  { %12661 = vmatprep.subr.bf16.mxu1 %v15174_v63  ;;  %v15252_v63 = vld [vmem:[#allocation12 + $0x3cc] ss:$16 sps:$4 sm:$0xff]   ;;  %v15316_v28 = vld [vmem:[#allocation12 + $0x528] ss:$16 sps:$4 sm:$0xff]  }
 0x65b   :  { %12498 = vmatpush1.bf16.msra.mxu0 %v15169_v8  ;;  %v15247_v8 = vld [vmem:[#allocation12 + $0x3c0] ss:$16 sps:$4 sm:$0xff]   ;;  %vm10866_vm3 = vcmp.gt.f32.partialorder %v14905_v38, 0.0 }
 0x65c   :  { %12499 = vmatprep.subr.bf16.mxu0 %v15177_v42  ;;  %v15255_v42 = vld [vmem:[#allocation12 + $0x3e4] ss:$16 sps:$4 sm:$0xff]  }
 0x65d   :  { %12662 = vmatpush1.bf16.msra.mxu1 %v15172_v39  ;;  %v15250_v39 = vld [vmem:[#allocation12 + $0x3c8] ss:$16 sps:$4 sm:$0xff]  }
 0x65e   :  { %12663 = vmatprep.subr.bf16.mxu1 %v15180_v44  ;;  %v10874_v44 = vmul.f32 0.01, %v14905_v38 }
 0x65f   :  { %12500 = vmatpush1.bf16.msra.mxu0 %v15175_v46  ;;  %v15258_v46 = vld [vmem:[#allocation12 + $0x3ec] ss:$16 sps:$4 sm:$0xff]  }
 0x660   :  { %12501 = vmatprep.subr.bf16.mxu0 %v15183_v21  ;;  %v15256_v21 = vld [vmem:[#allocation12 + $0x3e8] ss:$16 sps:$4 sm:$0xff]  }
 0x661   :  { %12664 = vmatpush1.bf16.msra.mxu1 %v15178_v18  ;;  %v15253_v18 = vld [vmem:[#allocation12 + $0x3e0] ss:$16 sps:$4 sm:$0xff]  }
 0x662   :  { %12665 = vmatprep.subr.bf16.mxu1 %v15186_v0  ;;  %v15261_v0 = vld [vmem:[#allocation12 + $0x404] ss:$16 sps:$4 sm:$0xff]  }
 0x663   :  { %12502 = vmatpush1.bf16.msra.mxu0 %v15181_v51  ;;  %v10882_v51 = vsel %vm10866_vm3, %v14905_v38, %v10874_v44  ;;  %v15327_v38 = vld [vmem:[#allocation12 + $0x564] ss:$16 sps:$4 sm:$0xff]   ;;  %v15336_v44 = vld [vmem:[#allocation12 + $0x58c] ss:$16 sps:$4 sm:$0xff]  }
 0x664   :  { %12503 = vmatprep.subr.bf16.mxu0 %v15189_v56  ;;  %v10890_v56 = vpack.c.bf16 %v10882_v51, %v10882_v51  ;;  %v15337_v51 = vld [vmem:[#allocation12 + $0x5a0] ss:$16 sps:$4 sm:$0xff]  }
 0x665   :  { %12666 = vmatpush1.bf16.msra.mxu1 %v15184_v37  ;;  %v15259_v37 = vld [vmem:[#allocation12 + $0x400] ss:$16 sps:$4 sm:$0xff]  }
 0x666   :  { %12667 = vmatprep.subr.bf16.mxu1 %v15192_v15  ;;  %v15262_v15 = vld [vmem:[#allocation12 + $0x408] ss:$16 sps:$4 sm:$0xff]  }
 0x667   :  { %12504 = vmatpush1.bf16.msra.mxu0 %v15187_v22  ;;  %v15267_v22 = vld [vmem:[#allocation12 + $0x424] ss:$16 sps:$4 sm:$0xff]  }
 0x668   :  { %12505 = vmatprep.subr.bf16.mxu0 %v15195_v4  ;;  %v15265_v4 = vld [vmem:[#allocation12 + $0x420] ss:$16 sps:$4 sm:$0xff]  }
 0x669   :  { %12668 = vmatpush1.bf16.msra.mxu1 %v15190_v53  ;;  %v15270_v53 = vld [vmem:[#allocation12 + $0x42c] ss:$16 sps:$4 sm:$0xff]  }
 0x66a   :  { %12669 = vmatprep.subr.bf16.mxu1 %v15198_v54  ;;  %v15268_v54 = vld [vmem:[#allocation12 + $0x428] ss:$16 sps:$4 sm:$0xff]  }
 0x66b   :  { %12506 = vmatpush1.bf16.msra.mxu0 %v15193_v35  ;;  %v15273_v35 = vld [vmem:[#allocation12 + $0x444] ss:$16 sps:$4 sm:$0xff]  }
 0x66c   :  { %12507 = vmatprep.subr.bf16.mxu0 %v15201_v50  ;;  %v15271_v50 = vld [vmem:[#allocation12 + $0x440] ss:$16 sps:$4 sm:$0xff]  }
 0x66d   :  { %12670 = vmatpush1.bf16.msra.mxu1 %v15196_v1  ;;  %v15276_v1 = vld [vmem:[#allocation12 + $0x44c] ss:$16 sps:$4 sm:$0xff]  }
 0x66e   :  { %12671 = vmatprep.subr.bf16.mxu1 %v15204_v2  ;;  %v15274_v2 = vld [vmem:[#allocation12 + $0x448] ss:$16 sps:$4 sm:$0xff]  }
 0x66f   :  { %12508 = vmatpush1.bf16.msra.mxu0 %v15199_v24  ;;  %v15279_v24 = vld [vmem:[#allocation12 + $0x464] ss:$16 sps:$4 sm:$0xff]  }
 0x670   :  { %12509 = vmatprep.subr.bf16.mxu0 %v15207_v26  ;;  %v15277_v26 = vld [vmem:[#allocation12 + $0x460] ss:$16 sps:$4 sm:$0xff]  }
 0x671   :  { %12672 = vmatpush1.bf16.msra.mxu1 %v15202_v12  ;;  %v15282_v12 = vld [vmem:[#allocation12 + $0x46c] ss:$16 sps:$4 sm:$0xff]  }
 0x672   :  { %12673 = vmatprep.subr.bf16.mxu1 %v15210_v60  ;;  %v15280_v60 = vld [vmem:[#allocation12 + $0x468] ss:$16 sps:$4 sm:$0xff]  }
 0x673   :  { %12510 = vmatpush1.bf16.msra.mxu0 %v15205_v62  ;;  %v15285_v62 = vld [vmem:[#allocation12 + $0x484] ss:$16 sps:$4 sm:$0xff]  }
 0x674   :  { %12511 = vmatprep.subr.bf16.mxu0 %v15213_v33  ;;  %v15283_v33 = vld [vmem:[#allocation12 + $0x480] ss:$16 sps:$4 sm:$0xff]  }
 0x675   :  { %12674 = vmatpush1.bf16.msra.mxu1 %v15208_v17  ;;  %v15288_v17 = vld [vmem:[#allocation12 + $0x48c] ss:$16 sps:$4 sm:$0xff]  }
 0x676   :  { %12675 = vmatprep.subr.bf16.mxu1 %v15216_v52  ;;  %v15286_v52 = vld [vmem:[#allocation12 + $0x488] ss:$16 sps:$4 sm:$0xff]  }
 0x677   :  { %12512 = vmatpush1.bf16.msra.mxu0 %v15211_v6  ;;  %v15291_v6 = vld [vmem:[#allocation12 + $0x4a4] ss:$16 sps:$4 sm:$0xff]  }
 0x678   :  { %12513 = vmatprep.subr.bf16.mxu0 %v15219_v29  ;;  %v15289_v29 = vld [vmem:[#allocation12 + $0x4a0] ss:$16 sps:$4 sm:$0xff]  }
 0x679   :  { %12676 = vmatpush1.bf16.msra.mxu1 %v15214_v32  ;;  %v15294_v32 = vld [vmem:[#allocation12 + $0x4ac] ss:$16 sps:$4 sm:$0xff]  }
 0x67a   :  { %12677 = vmatprep.subr.bf16.mxu1 %v15222_v3  ;;  %v15292_v3 = vld [vmem:[#allocation12 + $0x4a8] ss:$16 sps:$4 sm:$0xff]  }
 0x67b   :  { %12514 = vmatpush1.bf16.msra.mxu0 %v15217_v7  ;;  %v15297_v7 = vld [vmem:[#allocation12 + $0x4c4] ss:$16 sps:$4 sm:$0xff]  }
 0x67c   :  { %12515 = vmatprep.subr.bf16.mxu0 %v15225_v9  ;;  %v15295_v9 = vld [vmem:[#allocation12 + $0x4c0] ss:$16 sps:$4 sm:$0xff]  }
 0x67d   :  { %12678 = vmatpush1.bf16.msra.mxu1 %v15220_v43  ;;  %v15300_v43 = vld [vmem:[#allocation12 + $0x4cc] ss:$16 sps:$4 sm:$0xff]  }
 0x67e   :  { %12679 = vmatprep.subr.bf16.mxu1 %v15228_v10  ;;  %v15298_v10 = vld [vmem:[#allocation12 + $0x4c8] ss:$16 sps:$4 sm:$0xff]  }
 0x67f   :  { %12516 = vmatpush1.bf16.msra.mxu0 %v15223_v58  ;;  %v15303_v58 = vld [vmem:[#allocation12 + $0x4e4] ss:$16 sps:$4 sm:$0xff]  }
 0x680   :  { %12517 = vmatprep.subr.bf16.mxu0 %v15231_v23  ;;  %v15301_v23 = vld [vmem:[#allocation12 + $0x4e0] ss:$16 sps:$4 sm:$0xff]  }
 0x681   :  { %12680 = vmatpush1.bf16.msra.mxu1 %v15226_v13  ;;  %v15306_v13 = vld [vmem:[#allocation12 + $0x4ec] ss:$16 sps:$4 sm:$0xff]  }
 0x682   :  { %12681 = vmatprep.subr.bf16.mxu1 %v15234_v19  ;;  %v15304_v19 = vld [vmem:[#allocation12 + $0x4e8] ss:$16 sps:$4 sm:$0xff]  }
 0x683   :  { %12518 = vmatpush1.bf16.msra.mxu0 %v15229_v34  ;;  %v15309_v34 = vld [vmem:[#allocation12 + $0x504] ss:$16 sps:$4 sm:$0xff]  }
 0x684   :  { %12519 = vmatprep.subr.bf16.mxu0 %v15237_v20  ;;  %v15307_v20 = vld [vmem:[#allocation12 + $0x500] ss:$16 sps:$4 sm:$0xff]  }
 0x685   :  { %12682 = vmatpush1.bf16.msra.mxu1 %v15232_v30  ;;  %v15312_v30 = vld [vmem:[#allocation12 + $0x50c] ss:$16 sps:$4 sm:$0xff]  }
 0x686   :  { %12683 = vmatprep.subr.bf16.mxu1 %v15240_v27  ;;  %v15310_v27 = vld [vmem:[#allocation12 + $0x508] ss:$16 sps:$4 sm:$0xff]  }
 0x687   :  { %12520 = vmatpush1.bf16.msra.mxu0 %v15235_v25  ;;  %v15315_v25 = vld [vmem:[#allocation12 + $0x524] ss:$16 sps:$4 sm:$0xff]  }
 0x688   :  { %12521 = vmatprep.subr.bf16.mxu0 %v15243_v41  ;;  %v15313_v41 = vld [vmem:[#allocation12 + $0x520] ss:$16 sps:$4 sm:$0xff]  }
 0x689   :  { %12684 = vmatpush1.bf16.msra.mxu1 %v15238_v48  ;;  %v15318_v48 = vld [vmem:[#allocation12 + $0x52c] ss:$16 sps:$4 sm:$0xff]  }
 0x68a   :  { %12685 = vmatprep.subr.bf16.mxu1 %v15246_v5  ;;  %v15321_v5 = vld [vmem:[#allocation12 + $0x544] ss:$16 sps:$4 sm:$0xff]  }
 0x68b   :  { %12522 = vmatpush1.bf16.msra.mxu0 %v15241_v16  ;;  %v15324_v16 = vld [vmem:[#allocation12 + $0x54c] ss:$16 sps:$4 sm:$0xff]  }
 0x68c   :  { %12523 = vmatprep.subr.bf16.mxu0 %v15249_v40  ;;  %v15322_v40 = vld [vmem:[#allocation12 + $0x548] ss:$16 sps:$4 sm:$0xff]  }
 0x68d   :  { %12686 = vmatpush1.bf16.msra.mxu1 %v15244_v47  ;;  %v15319_v47 = vld [vmem:[#allocation12 + $0x540] ss:$16 sps:$4 sm:$0xff]  }
 0x68e   :  { %12687 = vmatprep.subr.bf16.mxu1 %v15252_v63  ;;  %v15330_v63 = vld [vmem:[#allocation12 + $0x56c] ss:$16 sps:$4 sm:$0xff]  }
 0x68f   :  { %12524 = vmatpush1.bf16.msra.mxu0 %v15247_v8  ;;  %v15325_v8 = vld [vmem:[#allocation12 + $0x560] ss:$16 sps:$4 sm:$0xff]  }
 0x690   :  { %12525 = vmatprep.subr.bf16.mxu0 %v15255_v42  ;;  %v15333_v42 = vld [vmem:[#allocation12 + $0x584] ss:$16 sps:$4 sm:$0xff]  }
 0x691   :  { %12688 = vmatpush1.bf16.msra.mxu1 %v15250_v39  ;;  %v15328_v39 = vld [vmem:[#allocation12 + $0x568] ss:$16 sps:$4 sm:$0xff]  }
 0x692   :  { %12689 = vmatprep.subr.bf16.mxu1 %v15258_v46  ;;  %v15331_v46 = vld [vmem:[#allocation12 + $0x580] ss:$16 sps:$4 sm:$0xff]  }
 0x693   :  { %12526 = vmatpush1.bf16.msra.mxu0 %v15253_v18  ;;  %v15334_v18 = vld [vmem:[#allocation12 + $0x588] ss:$16 sps:$4 sm:$0xff]  }
 0x694   :  { %12536 = vmatprep.subr.bf16.mxu0 %v15261_v0  ;;  %v15342_v0 = vld [vmem:[#allocation12 + $0x5ac] ss:$16 sps:$4 sm:$0xff]  }
 0x695   :  { %12690 = vmatpush1.bf16.msra.mxu1 %v15256_v21  ;;  %v15339_v21 = vld [vmem:[#allocation12 + $0x5a4] ss:$16 sps:$4 sm:$0xff]  }
 0x696   :  { %12700 = vmatprep.subr.bf16.mxu1 %v15264_v31  ;;  %12528 = vmatmul.mubr.bf16.vlgmr.msra.gmra.mrb[40].mxu0 %v10890_v56  ;;  %v15340_v31 = vld [vmem:[#allocation12 + $0x5a8] ss:$16 sps:$4 sm:$0xff]  }
 0x697   :  { %12537 = vmatpush1.bf16.msra.mxu0 %v15259_v37  ;;  %v15345_v37 = vld [vmem:[#allocation12 + $0x5c4] ss:$16 sps:$4 sm:$0xff]  }
 0x698   :  { %12692 = vmatmul.mubr.bf16.vlgmr.msra.gmra.mrb[40].mxu1 %v10890_v56  ;;  %12538 = vmatprep.subr.bf16.mxu0 %v15267_v22  ;;  %v15348_v56 = vld [vmem:[#allocation12 + $0x5cc] ss:$16 sps:$4 sm:$0xff]   ;;  %v15346_v22 = vld [vmem:[#allocation12 + $0x5c8] ss:$16 sps:$4 sm:$0xff]  }
 0x699   :  { %12701 = vmatpush1.bf16.msra.mxu1 %v15262_v15  ;;  %v15343_v15 = vld [vmem:[#allocation12 + $0x5c0] ss:$16 sps:$4 sm:$0xff]  }
 0x69a   :  { %12702 = vmatprep.subr.bf16.mxu1 %v15270_v53  ;;  %v15351_v53 = vld [vmem:[#allocation12 + $0x5e4] ss:$16 sps:$4 sm:$0xff]  }
 0x69b   :  { %12539 = vmatpush1.bf16.msra.mxu0 %v15265_v4  ;;  %v15354_v4 = vld [vmem:[#allocation12 + $0x5ec] ss:$16 sps:$4 sm:$0xff]  }
 0x69c   :  { %12540 = vmatprep.subr.bf16.mxu0 %v15273_v35  ;;  %v15352_v35 = vld [vmem:[#allocation12 + $0x5e8] ss:$16 sps:$4 sm:$0xff]  }
 0x69d   :  { %12703 = vmatpush1.bf16.msra.mxu1 %v15268_v54  ;;  %v15349_v54 = vld [vmem:[#allocation12 + $0x5e0] ss:$16 sps:$4 sm:$0xff]  }
 0x69e   :  { %12704 = vmatprep.subr.bf16.mxu1 %v15276_v1  ;;  %v15357_v1 = vld [vmem:[#allocation12 + $0x604] ss:$16 sps:$4 sm:$0xff]  }
 0x69f   :  { %12541 = vmatpush1.bf16.msra.mxu0 %v15271_v50  ;;  %v15360_v50 = vld [vmem:[#allocation12 + $0x60c] ss:$16 sps:$4 sm:$0xff]  }
 0x6a0   :  { %12542 = vmatprep.subr.bf16.mxu0 %v15279_v24  ;;  %v4415_v24 = vrot.slane %v16142_v55, %v15978_v59 }
 0x6a1   :  { %12705 = vmatpush1.bf16.msra.mxu1 %v15274_v2  ;;  %v4411_v2 = vrot.slane %v16142_v55, %v16003_v45 }
 0x6a2   :  { %12706 = vmatprep.subr.bf16.mxu1 %v15282_v12  ;;  %v4423_v12 = vrot.slane %v16142_v55, %v16006_v11 }
 0x6a3   :  { %12543 = vmatpush1.bf16.msra.mxu0 %v15277_v26 }
 0x6a4   :  { %12544 = vmatprep.subr.bf16.mxu0 %v15285_v62 }
 0x6a5   :  { %12707 = vmatpush1.bf16.msra.mxu1 %v15280_v60 }
 0x6a6   :  { %12708 = vmatprep.subr.bf16.mxu1 %v15288_v17 }
 0x6a7   :  { %12545 = vmatpush1.bf16.msra.mxu0 %v15283_v33 }
 0x6a8   :  { %12546 = vmatprep.subr.bf16.mxu0 %v15291_v6 }
 0x6a9   :  { %12709 = vmatpush1.bf16.msra.mxu1 %v15286_v52 }
 0x6aa   :  { %12710 = vmatprep.subr.bf16.mxu1 %v15294_v32 }
 0x6ab   :  { %12547 = vmatpush1.bf16.msra.mxu0 %v15289_v29 }
 0x6ac   :  { %12548 = vmatprep.subr.bf16.mxu0 %v15297_v7 }
 0x6ad   :  { %12711 = vmatpush1.bf16.msra.mxu1 %v15292_v3 }
 0x6ae   :  { %12712 = vmatprep.subr.bf16.mxu1 %v15300_v43 }
 0x6af   :  { %12549 = vmatpush1.bf16.msra.mxu0 %v15295_v9 }
 0x6b0   :  { %12550 = vmatprep.subr.bf16.mxu0 %v15303_v58  ;;  %v15358_v58 = vld [vmem:[#allocation12 + $0x608] ss:$16 sps:$4 sm:$0xff]  }
 0x6b1   :  { %12713 = vmatpush1.bf16.msra.mxu1 %v15298_v10  ;;  %v15355_v10 = vld [vmem:[#allocation12 + $0x600] ss:$16 sps:$4 sm:$0xff]  }
 0x6b2   :  { %12714 = vmatprep.subr.bf16.mxu1 %v15306_v13 }
 0x6b3   :  { %12551 = vmatpush1.bf16.msra.mxu0 %v15301_v23 }
 0x6b4   :  { %12552 = vmatprep.subr.bf16.mxu0 %v15309_v34  ;;  %v15366_v34 = vld [vmem:[#allocation12 + $0x62c] ss:$16 sps:$4 sm:$0xff]  }
 0x6b5   :  { %12715 = vmatpush1.bf16.msra.mxu1 %v15304_v19  ;;  %v15363_v19 = vld [vmem:[#allocation12 + $0x624] ss:$16 sps:$4 sm:$0xff]  }
 0x6b6   :  { %12716 = vmatprep.subr.bf16.mxu1 %v15312_v30 }
 0x6b7   :  { %12553 = vmatpush1.bf16.msra.mxu0 %v15307_v20  ;;  %v15361_v20 = vld [vmem:[#allocation12 + $0x620] ss:$16 sps:$4 sm:$0xff]  }
 0x6b8   :  { %12554 = vmatprep.subr.bf16.mxu0 %v15315_v25  ;;  %v15369_v25 = vld [vmem:[#allocation12 + $0x644] ss:$16 sps:$4 sm:$0xff]  }
 0x6b9   :  { %12717 = vmatpush1.bf16.msra.mxu1 %v15310_v27  ;;  %v15364_v27 = vld [vmem:[#allocation12 + $0x628] ss:$16 sps:$4 sm:$0xff]  }
 0x6ba   :  { %12718 = vmatprep.subr.bf16.mxu1 %v15318_v48  ;;  %v15372_v48 = vld [vmem:[#allocation12 + $0x64c] ss:$16 sps:$4 sm:$0xff]  }
 0x6bb   :  { %12555 = vmatpush1.bf16.msra.mxu0 %v15313_v41  ;;  %v15367_v41 = vld [vmem:[#allocation12 + $0x640] ss:$16 sps:$4 sm:$0xff]  }
 0x6bc   :  { %12556 = vmatprep.subr.bf16.mxu0 %v15321_v5  ;;  %v15375_v5 = vld [vmem:[#allocation12 + $0x664] ss:$16 sps:$4 sm:$0xff]  }
 0x6bd   :  { %12719 = vmatpush1.bf16.msra.mxu1 %v15316_v28  ;;  %v15370_v28 = vld [vmem:[#allocation12 + $0x648] ss:$16 sps:$4 sm:$0xff]  }
 0x6be   :  { %12720 = vmatprep.subr.bf16.mxu1 %v15324_v16  ;;  %v15378_v16 = vld [vmem:[#allocation12 + $0x66c] ss:$16 sps:$4 sm:$0xff]  }
 0x6bf   :  { %12557 = vmatpush1.bf16.msra.mxu0 %v15319_v47  ;;  %v15373_v47 = vld [vmem:[#allocation12 + $0x660] ss:$16 sps:$4 sm:$0xff]  }
 0x6c0   :  { %12558 = vmatprep.subr.bf16.mxu0 %v15327_v38  ;;  %v15381_v38 = vld [vmem:[#allocation12 + $0x684] ss:$16 sps:$4 sm:$0xff]  }
 0x6c1   :  { %12721 = vmatpush1.bf16.msra.mxu1 %v15322_v40  ;;  %v15376_v40 = vld [vmem:[#allocation12 + $0x668] ss:$16 sps:$4 sm:$0xff]  }
 0x6c2   :  { %12722 = vmatprep.subr.bf16.mxu1 %v15330_v63  ;;  %v15384_v63 = vld [vmem:[#allocation12 + $0x68c] ss:$16 sps:$4 sm:$0xff]  }
 0x6c3   :  { %12559 = vmatpush1.bf16.msra.mxu0 %v15325_v8  ;;  %v15379_v8 = vld [vmem:[#allocation12 + $0x680] ss:$16 sps:$4 sm:$0xff]  }
 0x6c4   :  { %12560 = vmatprep.subr.bf16.mxu0 %v15333_v42  ;;  %v15387_v42 = vld [vmem:[#allocation12 + $0x6a4] ss:$16 sps:$4 sm:$0xff]  }
 0x6c5   :  { %12723 = vmatpush1.bf16.msra.mxu1 %v15328_v39  ;;  %v15382_v39 = vld [vmem:[#allocation12 + $0x688] ss:$16 sps:$4 sm:$0xff]  }
 0x6c6   :  { %12724 = vmatprep.subr.bf16.mxu1 %v15336_v44  ;;  %v15390_v44 = vld [vmem:[#allocation12 + $0x6ac] ss:$16 sps:$4 sm:$0xff]  }
 0x6c7   :  { %12561 = vmatpush1.bf16.msra.mxu0 %v15331_v46  ;;  %v15385_v46 = vld [vmem:[#allocation12 + $0x6a0] ss:$16 sps:$4 sm:$0xff]  }
 0x6c8   :  { %12562 = vmatprep.subr.bf16.mxu0 %v15339_v21  ;;  %v15393_v21 = vld [vmem:[#allocation12 + $0x6c4] ss:$16 sps:$4 sm:$0xff]  }
 0x6c9   :  { %12725 = vmatpush1.bf16.msra.mxu1 %v15334_v18  ;;  %v15388_v18 = vld [vmem:[#allocation12 + $0x6a8] ss:$16 sps:$4 sm:$0xff]  }
 0x6ca   :  { %12726 = vmatprep.subr.bf16.mxu1 %v15342_v0  ;;  %v15396_v0 = vld [vmem:[#allocation12 + $0x6cc] ss:$16 sps:$4 sm:$0xff]  }
 0x6cb   :  { %12563 = vmatpush1.bf16.msra.mxu0 %v15337_v51  ;;  %v15391_v51 = vld [vmem:[#allocation12 + $0x6c0] ss:$16 sps:$4 sm:$0xff]  }
 0x6cc   :  { %12564 = vmatprep.subr.bf16.mxu0 %v15345_v37  ;;  %v15399_v37 = vld [vmem:[#allocation12 + $0x6e4] ss:$16 sps:$4 sm:$0xff]  }
 0x6cd   :  { %12727 = vmatpush1.bf16.msra.mxu1 %v15340_v31  ;;  %v15394_v31 = vld [vmem:[#allocation12 + $0x6c8] ss:$16 sps:$4 sm:$0xff]  }
 0x6ce   :  { %12728 = vmatprep.subr.bf16.mxu1 %v15348_v56  ;;  %v15402_v56 = vld [vmem:[#allocation12 + $0x6ec] ss:$16 sps:$4 sm:$0xff]  }
 0x6cf   :  { %12565 = vmatpush1.bf16.msra.mxu0 %v15343_v15  ;;  %v15397_v15 = vld [vmem:[#allocation12 + $0x6e0] ss:$16 sps:$4 sm:$0xff]  }
 0x6d0   :  { %12566 = vmatprep.subr.bf16.mxu0 %v15351_v53  ;;  %v15405_v53 = vld [vmem:[#allocation12 + $0x704] ss:$16 sps:$4 sm:$0xff]  }
 0x6d1   :  { %12729 = vmatpush1.bf16.msra.mxu1 %v15346_v22  ;;  %v15400_v22 = vld [vmem:[#allocation12 + $0x6e8] ss:$16 sps:$4 sm:$0xff]  }
 0x6d2   :  { %12730 = vmatprep.subr.bf16.mxu1 %v15354_v4  ;;  %v15408_v4 = vld [vmem:[#allocation12 + $0x70c] ss:$16 sps:$4 sm:$0xff]  }
 0x6d3   :  { %12567 = vmatpush1.bf16.msra.mxu0 %v15349_v54  ;;  %v15403_v54 = vld [vmem:[#allocation12 + $0x700] ss:$16 sps:$4 sm:$0xff]  }
 0x6d4   :  { %12577 = vmatprep.subr.bf16.mxu0 %v15357_v1  ;;  %v15411_v1 = vld [vmem:[#allocation12 + $0x724] ss:$16 sps:$4 sm:$0xff]  }
 0x6d5   :  { %12731 = vmatpush1.bf16.msra.mxu1 %v15352_v35  ;;  %v15406_v35 = vld [vmem:[#allocation12 + $0x708] ss:$16 sps:$4 sm:$0xff]  }
 0x6d6   :  { %12741 = vmatprep.subr.bf16.mxu1 %v15360_v50  ;;  %v15414_v50 = vld [vmem:[#allocation12 + $0x72c] ss:$16 sps:$4 sm:$0xff]  }
 0x6e9   :  { %v10529_v26 = vpop.f32.mrb[36].mxu0 }
 0x6ea   :  { %v14907_v60 = vadd.f32 %v10529_v26, %v4411_v2  ;;  %v10531_v17 = vpop.f32.mrb[37].mxu0  ;;  %v15409_v2 = vld [vmem:[#allocation12 + $0x720] ss:$16 sps:$4 sm:$0xff]   ;;  %v15420_v26 = vld [vmem:[#allocation12 + $0x74c] ss:$16 sps:$4 sm:$0xff]  }
 0x6eb   :  { %v16164_v62 = vpop.f32.mrb[36].mxu1  ;;  %v14908_v33 = vadd.f32 %v10531_v17, %v4415_v24  ;;  %v10533_v6 = vpop.f32.mrb[38].mxu0  ;;  %v15412_v24 = vld [vmem:[#allocation12 + $0x728] ss:$16 sps:$4 sm:$0xff]  }
 0x6ec   :  { %v10859_v52 = vpop.f32.mrb[37].mxu1  ;;  %vm10868_vm4 = vcmp.gt.f32.partialorder %v14907_v60, 0.0  ;;  %v10876_v32 = vmul.f32 0.01, %v14907_v60  ;;  %v10534_v7 = vpop.f32.mrb[39].mxu0 }
 0x6ed   :  { %v14910_v29 = vadd.f32 %v10859_v52, %v4423_v12  ;;  %v10861_v3 = vpop.f32.mrb[38].mxu1  ;;  %vm10869_vm5 = vcmp.gt.f32.partialorder %v14908_v33, 0.0  ;;  %v10877_v45 = vmul.f32 0.01, %v14908_v33  ;;  %v15417_v12 = vld [vmem:[#allocation12 + $0x744] ss:$16 sps:$4 sm:$0xff]  }
 0x6ee   :  { %v10884_v43 = vsel %vm10868_vm4, %v14907_v60, %v10876_v32  ;;  %v10862_v9 = vpop.f32.mrb[39].mxu1  ;;  %v15415_v60 = vld [vmem:[#allocation12 + $0x740] ss:$16 sps:$4 sm:$0xff]   ;;  %v15418_v17 = vld [vmem:[#allocation12 + $0x748] ss:$16 sps:$4 sm:$0xff]  }
 0x6ef   :  { %vm10871_vm6 = vcmp.gt.f32.partialorder %v14910_v29, 0.0  ;;  %v10879_v59 = vmul.f32 0.01, %v14910_v29  ;;  %v10885_v11 = vsel %vm10869_vm5, %v14908_v33, %v10877_v45  ;;  %v10892_v23 = vpack.c.bf16 %v10884_v43, %v10884_v43  ;;  %v15423_v33 = vld [vmem:[#allocation12 + $0x764] ss:$16 sps:$4 sm:$0xff]   ;;  %v15491_v9 = vld [vmem:[#allocation11] sm:$0xff] }
 0x6f0   :  { %v10893_v55 = vpack.c.bf16 %v10885_v11, %v10885_v11  ;;  %v15426_v52 = vld [vmem:[#allocation12 + $0x76c] ss:$16 sps:$4 sm:$0xff]   ;;  %v15421_v6 = vld [vmem:[#allocation12 + $0x760] ss:$16 sps:$4 sm:$0xff]   ;;  %v15424_v32 = vld [vmem:[#allocation12 + $0x768] ss:$16 sps:$4 sm:$0xff]   ;;  %v4419_v11 = vrot.slane %v15491_v9, %v16035_v36 }
 0x6f1   :  { %v10887_v13 = vsel %vm10871_vm6, %v14910_v29, %v10879_v59  ;;  %v15429_v29 = vld [vmem:[#allocation12 + $0x784] ss:$16 sps:$4 sm:$0xff]   ;;  %v15432_v3 = vld [vmem:[#allocation12 + $0x78c] ss:$16 sps:$4 sm:$0xff]   ;;  %v15427_v7 = vld [vmem:[#allocation12 + $0x780] ss:$16 sps:$4 sm:$0xff]  }
 0x6f2   :  { %12568 = vmatprep.mubr.bf16.mxu0 %v10893_v55  ;;  %12732 = vmatprep.mubr.bf16.mxu1 %v10893_v55  ;;  %v10895_v30 = vpack.c.bf16 %v10887_v13, %v10887_v13  ;;  %v15430_v45 = vld [vmem:[#allocation12 + $0x788] ss:$16 sps:$4 sm:$0xff]   ;;  %v15435_v43 = vld [vmem:[#allocation12 + $0x7a4] ss:$16 sps:$4 sm:$0xff]   ;;  %v15438_v59 = vld [vmem:[#allocation12 + $0x7ac] ss:$16 sps:$4 sm:$0xff]  }
 0x6f3   :  { %12569 = vmatmul.mubr.bf16.vlgmr.msra.gmra.mrb[40].mxu0 %v10892_v23  ;;  %12733 = vmatmul.mubr.bf16.vlgmr.msra.gmra.mrb[40].mxu1 %v10892_v23  ;;  %v15433_v55 = vld [vmem:[#allocation12 + $0x7a0] ss:$16 sps:$4 sm:$0xff]   ;;  %v15444_v13 = vld [vmem:[#allocation12 + $0x7cc] ss:$16 sps:$4 sm:$0xff]   ;;  %v14909_v23 = vadd.f32 %v16164_v62, %v4419_v11 }
 0x6f4   :  { %12578 = vmatpush1.bf16.msra.mxu0 %v15355_v10  ;;  %12742 = vmatpush1.bf16.msra.mxu1 %v15358_v58  ;;  %v15436_v10 = vld [vmem:[#allocation12 + $0x7a8] ss:$16 sps:$4 sm:$0xff]   ;;  %v15441_v58 = vld [vmem:[#allocation12 + $0x7c4] ss:$16 sps:$4 sm:$0xff]   ;;  %v15445_v36 = vld [vmem:[#allocation12 + $0x7e0] ss:$16 sps:$4 sm:$0xff]  }
 0x6f5   :  { %12609 = vmatprep.mubr.bf16.mxu0 %v10895_v30  ;;  %12773 = vmatprep.mubr.bf16.mxu1 %v10895_v30  ;;  %v15447_v30 = vld [vmem:[#allocation12 + $0x7e4] ss:$16 sps:$4 sm:$0xff]   ;;  %vm10870_vm7 = vcmp.gt.f32.partialorder %v14909_v23, 0.0 }
 0x6f6   :  { %12579 = vmatprep.subr.bf16.mxu0 %v15363_v19  ;;  %12743 = vmatprep.subr.bf16.mxu1 %v15366_v34  ;;  %v15439_v19 = vld [vmem:[#allocation12 + $0x7c0] ss:$16 sps:$4 sm:$0xff]   ;;  %v15442_v34 = vld [vmem:[#allocation12 + $0x7c8] ss:$16 sps:$4 sm:$0xff]  }
 0x6f7   :  { %v15451_v62 = vld [vmem:[%s16287_s7 + $0x40] sm:$0xff]  }
 0x6f8   :  { %12580 = vmatpush1.bf16.msra.mxu0 %v15361_v20  ;;  %12744 = vmatpush1.bf16.msra.mxu1 %v15364_v27  ;;  %v15450_v20 = vld [vmem:[#allocation12 + $0x7ec] ss:$16 sps:$4 sm:$0xff]   ;;  %v10878_v27 = vmul.f32 0.01, %v14909_v23 }
 0x6f9   :  { %12581 = vmatprep.subr.bf16.mxu0 %v15369_v25  ;;  %12745 = vmatprep.subr.bf16.mxu1 %v15372_v48  ;;  %v15448_v25 = vld [vmem:[#allocation12 + $0x7e8] ss:$16 sps:$4 sm:$0xff]   ;;  %v15452_v48 = vld [vmem:[%s16287_s7 + $0xc0] sm:$0xff]  }
 0x6fc   :  { %12582 = vmatpush1.bf16.msra.mxu0 %v15367_v41  ;;  %12746 = vmatpush1.bf16.msra.mxu1 %v15370_v28  ;;  %v10886_v41 = vsel %vm10870_vm7, %v14909_v23, %v10878_v27  ;;  %v15453_v28 = vld [vmem:[%s16287_s7] sm:$0xff]  }
 0x6fd   :  { %12583 = vmatprep.subr.bf16.mxu0 %v15375_v5  ;;  %12747 = vmatprep.subr.bf16.mxu1 %v15378_v16  ;;  %v15454_v5 = vld [vmem:[%s16287_s7 + $0x80] sm:$0xff]   ;;  %v10894_v16 = vpack.c.bf16 %v10886_v41, %v10886_v41 }
 0x700   :  { %12584 = vmatpush1.bf16.msra.mxu0 %v15373_v47  ;;  %12748 = vmatpush1.bf16.msra.mxu1 %v15376_v40  ;;  %v15455_v47 = vld [vmem:[%s16287_s7 + $0x48] sm:$0xff]  }
 0x701   :  { %12585 = vmatprep.subr.bf16.mxu0 %v15381_v38  ;;  %12749 = vmatprep.subr.bf16.mxu1 %v15384_v63  ;;  %v15456_v40 = vld [vmem:[%s16287_s7 + $0xc8] sm:$0xff]  }
 0x702   :  { %v15457_v38 = vld [vmem:[%s16287_s7 + $0x8] sm:$0xff]  }
 0x703   :  { %v15458_v63 = vld [vmem:[%s16287_s7 + $0x88] sm:$0xff]  }
 0x704   :  { %12586 = vmatpush1.bf16.msra.mxu0 %v15379_v8  ;;  %12750 = vmatpush1.bf16.msra.mxu1 %v15382_v39  ;;  %v15459_v8 = vld [vmem:[%s16287_s7 + $0x50] sm:$0xff]  }
 0x705   :  { %12587 = vmatprep.subr.bf16.mxu0 %v15387_v42  ;;  %12751 = vmatprep.subr.bf16.mxu1 %v15390_v44  ;;  %v15460_v39 = vld [vmem:[%s16287_s7 + $0xd0] sm:$0xff]  }
 0x706   :  { %v15461_v42 = vld [vmem:[%s16287_s7 + $0x10] sm:$0xff]  }
 0x707   :  { %v15462_v44 = vld [vmem:[%s16287_s7 + $0x90] sm:$0xff]  }
 0x708   :  { %12588 = vmatpush1.bf16.msra.mxu0 %v15385_v46  ;;  %12752 = vmatpush1.bf16.msra.mxu1 %v15388_v18  ;;  %v15463_v46 = vld [vmem:[%s16287_s7 + $0x58] sm:$0xff]  }
 0x709   :  { %12589 = vmatprep.subr.bf16.mxu0 %v15393_v21  ;;  %12753 = vmatprep.subr.bf16.mxu1 %v15396_v0  ;;  %v15464_v18 = vld [vmem:[%s16287_s7 + $0xd8] sm:$0xff]  }
 0x70a   :  { %v15465_v21 = vld [vmem:[%s16287_s7 + $0x18] sm:$0xff]  }
 0x70b   :  { %v15466_v0 = vld [vmem:[%s16287_s7 + $0x98] sm:$0xff]  }
 0x70c   :  { %12590 = vmatpush1.bf16.msra.mxu0 %v15391_v51  ;;  %12754 = vmatpush1.bf16.msra.mxu1 %v15394_v31  ;;  %v15467_v51 = vld [vmem:[%s16287_s7 + $0x60] sm:$0xff]  }
 0x70d   :  { %12591 = vmatprep.subr.bf16.mxu0 %v15399_v37  ;;  %12755 = vmatprep.subr.bf16.mxu1 %v15402_v56  ;;  %v15468_v31 = vld [vmem:[%s16287_s7 + $0xe0] sm:$0xff]  }
 0x70e   :  { %v15469_v37 = vld [vmem:[%s16287_s7 + $0x20] sm:$0xff]  }
 0x70f   :  { %v15470_v56 = vld [vmem:[%s16287_s7 + $0xa0] sm:$0xff]  }
 0x710   :  { %12592 = vmatpush1.bf16.msra.mxu0 %v15397_v15  ;;  %12756 = vmatpush1.bf16.msra.mxu1 %v15400_v22  ;;  %v15471_v15 = vld [vmem:[%s16287_s7 + $0x68] sm:$0xff]  }
 0x711   :  { %12593 = vmatprep.subr.bf16.mxu0 %v15405_v53  ;;  %12757 = vmatprep.subr.bf16.mxu1 %v15408_v4  ;;  %v15472_v22 = vld [vmem:[%s16287_s7 + $0xe8] sm:$0xff]  }
 0x712   :  { %v15473_v53 = vld [vmem:[%s16287_s7 + $0x28] sm:$0xff]  }
 0x713   :  { %v15474_v4 = vld [vmem:[%s16287_s7 + $0xa8] sm:$0xff]  }
 0x714   :  { %12594 = vmatpush1.bf16.msra.mxu0 %v15403_v54  ;;  %12758 = vmatpush1.bf16.msra.mxu1 %v15406_v35  ;;  %v15475_v54 = vld [vmem:[%s16287_s7 + $0x70] sm:$0xff]  }
 0x715   :  { %12595 = vmatprep.subr.bf16.mxu0 %v15411_v1  ;;  %12759 = vmatprep.subr.bf16.mxu1 %v15414_v50  ;;  %v15476_v35 = vld [vmem:[%s16287_s7 + $0xf0] sm:$0xff]  }
 0x716   :  { %v15477_v1 = vld [vmem:[%s16287_s7 + $0x30] sm:$0xff]  }
 0x717   :  { %v15478_v50 = vld [vmem:[%s16287_s7 + $0xb0] sm:$0xff]  }
 0x718   :  { %12596 = vmatpush1.bf16.msra.mxu0 %v15409_v2  ;;  %12760 = vmatpush1.bf16.msra.mxu1 %v15412_v24  ;;  %v15479_v2 = vld [vmem:[%s16287_s7 + $0x78] sm:$0xff]  }
 0x719   :  { %12597 = vmatprep.subr.bf16.mxu0 %v15417_v12  ;;  %12761 = vmatprep.subr.bf16.mxu1 %v15420_v26  ;;  %v15480_v24 = vld [vmem:[%s16287_s7 + $0xf8] sm:$0xff]  }
 0x71a   :  { %v15481_v12 = vld [vmem:[%s16287_s7 + $0x38] sm:$0xff]  }
 0x71b   :  { %v15482_v26 = vld [vmem:[%s16287_s7 + $0xb8] sm:$0xff]   ;;  %s15717_s7 = smov [#allocation17]  }
 0x71c   :  { %12598 = vmatpush1.bf16.msra.mxu0 %v15415_v60  ;;  %12762 = vmatpush1.bf16.msra.mxu1 %v15418_v17  ;;  %v11152_v60 = vld [vmem:[#allocation14] sm:$0xf]  ;;  %s13149_s16 = sshll.u32 %s15717_s7, 4  ;;  %s13150_s16 = int_to_ptr.vmem [resolvable:$true] %s13149_s16 }
 0x71d   :  { %12599 = vmatprep.subr.bf16.mxu0 %v15423_v33  ;;  %12763 = vmatprep.subr.bf16.mxu1 %v15426_v52  ;;  %v11157_v17 = vrot.slane %v11152_v60, %v15945_v57  ;;  %v11165_v33 = vrot.slane %v11152_v60, %v15975_v49  ;;  %v11161_v52 = vrot.slane %v11152_v60, %v15921_v14  ;;  %s15668_s18 = scalar_lea.vmem %s13150_s16, 128  ;;  %p15673_p9 = scmp.lt.s32.totalorder %s13150_s16, %s13150_s16 }
 0x71e   :  { %p15669_p8 = scmp.ne.s32.totalorder %s13150_s16, %s15668_s18  ;;  %p15674_p10 = scmp.lt.s32.totalorder %s15668_s18, %s15668_s18 }
 0x720   :  { %12600 = vmatpush1.bf16.msra.mxu0 %v15421_v6  ;;  %12764 = vmatpush1.bf16.msra.mxu1 %v15424_v32  ;;  %v11169_v6 = vrot.slane %v11152_v60, %v15948_v61  ;;  %p15675_p11 = por %p15674_p10, %p15673_p9 }
 0x721   :  { %12601 = vmatprep.subr.bf16.mxu0 %v15429_v29  ;;  %12765 = vmatprep.subr.bf16.mxu1 %v15432_v3 }
 0x722   :  { %p15676_p12 = pnand %p15675_p11, %p15669_p8 }
 0x724   :  { %12602 = vmatpush1.bf16.msra.mxu0 %v15427_v7  ;;  %12766 = vmatpush1.bf16.msra.mxu1 %v15430_v45 }
 0x725   :  { %12603 = vmatprep.subr.bf16.mxu0 %v15435_v43  ;;  %12767 = vmatprep.subr.bf16.mxu1 %v15438_v59 }
 0x728   :  { %12604 = vmatpush1.bf16.msra.mxu0 %v15433_v55  ;;  %12768 = vmatpush1.bf16.msra.mxu1 %v15436_v10 }
 0x729   :  { %12605 = vmatprep.subr.bf16.mxu0 %v15441_v58  ;;  %12769 = vmatprep.subr.bf16.mxu1 %v15444_v13 }
 0x72c   :  { %12606 = vmatpush1.bf16.msra.mxu0 %v15439_v19  ;;  %12770 = vmatpush1.bf16.msra.mxu1 %v15442_v34 }
 0x72d   :  { %12607 = vmatprep.subr.bf16.mxu0 %v15447_v30  ;;  %12771 = vmatprep.subr.bf16.mxu1 %v15450_v20 }
 0x730   :  { %12608 = vmatpush1.bf16.msra.mxu0 %v15445_v36  ;;  %12772 = vmatpush1.bf16.msra.mxu1 %v15448_v25 }
 0x731   :  { %14859 = vmatprep.subr.bf16.mxu0 %v15451_v62  ;;  %14881 = vmatprep.subr.bf16.mxu1 %v15452_v48  ;;  %v14826_v48 = vld [vmem:[#allocation15] ss:$0 sm:$0xff] }
 0x733   :  { %12610 = vmatmul.mubr.bf16.vlgmr.msra.gmra.mrb[40].mxu0 %v10894_v16  ;;  %12774 = vmatmul.mubr.bf16.vlgmr.msra.gmra.mrb[40].mxu1 %v10894_v16 }
 0x734   :  { %14860 = vmatpush3.bf16.msra.mxu0 %v15453_v28  ;;  %14882 = vmatpush3.bf16.msra.mxu1 %v15454_v5 }
 0x735   :  { %14861 = vmatprep.subr.bf16.mxu0 %v15455_v47  ;;  %14883 = vmatprep.subr.bf16.mxu1 %v15456_v40 }
 0x738   :  { %14862 = vmatpush3.bf16.msra.mxu0 %v15457_v38  ;;  %14884 = vmatpush3.bf16.msra.mxu1 %v15458_v63 }
 0x739   :  { %14863 = vmatprep.subr.bf16.mxu0 %v15459_v8  ;;  %14885 = vmatprep.subr.bf16.mxu1 %v15460_v39 }
 0x73c   :  { %14864 = vmatpush3.bf16.msra.mxu0 %v15461_v42  ;;  %14886 = vmatpush3.bf16.msra.mxu1 %v15462_v44 }
 0x73d   :  { %14865 = vmatprep.subr.bf16.mxu0 %v15463_v46  ;;  %14887 = vmatprep.subr.bf16.mxu1 %v15464_v18 }
 0x740   :  { %14866 = vmatpush3.bf16.msra.mxu0 %v15465_v21  ;;  %14888 = vmatpush3.bf16.msra.mxu1 %v15466_v0 }
 0x741   :  { %14867 = vmatprep.subr.bf16.mxu0 %v15467_v51  ;;  %14889 = vmatprep.subr.bf16.mxu1 %v15468_v31 }
 0x744   :  { %14868 = vmatpush3.bf16.msra.mxu0 %v15469_v37  ;;  %14890 = vmatpush3.bf16.msra.mxu1 %v15470_v56 }
 0x745   :  { %14869 = vmatprep.subr.bf16.mxu0 %v15471_v15  ;;  %14891 = vmatprep.subr.bf16.mxu1 %v15472_v22 }
 0x748   :  { %14870 = vmatpush3.bf16.msra.mxu0 %v15473_v53  ;;  %14892 = vmatpush3.bf16.msra.mxu1 %v15474_v4 }
 0x749   :  { %14871 = vmatprep.subr.bf16.mxu0 %v15475_v54  ;;  %14893 = vmatprep.subr.bf16.mxu1 %v15476_v35 }
 0x74c   :  { %14872 = vmatpush3.bf16.msra.mxu0 %v15477_v1  ;;  %14894 = vmatpush3.bf16.msra.mxu1 %v15478_v50 }
 0x74d   :  { %14873 = vmatprep.subr.bf16.mxu0 %v15479_v2  ;;  %14895 = vmatprep.subr.bf16.mxu1 %v15480_v24 }
 0x750   :  { %14874 = vmatpush3.bf16.msra.mxu0 %v15481_v12  ;;  %14896 = vmatpush3.bf16.msra.mxu1 %v15482_v26 }
 0x806   :  { %v12611_v32 = vpop.f32.mrb[40].mxu0  ;;  %v12775_v29 = vpop.f32.mrb[40].mxu1 }
 0x807   :  { %v14911_v3 = vadd.f32 %v12611_v32, %v11157_v17  ;;  %v14913_v7 = vadd.f32 %v12775_v29, %v11165_v33  ;;  %v12613_v45 = vpop.f32.mrb[41].mxu0  ;;  %v12777_v43 = vpop.f32.mrb[41].mxu1 }
 0x808   :  { %v14912_v59 = vadd.f32 %v12613_v45, %v11161_v52  ;;  %v14914_v9 = vadd.f32 %v12777_v43, %v11169_v6  ;;  %v12615_v11 = vpop.f32.mrb[42].mxu0  ;;  %v12779_v55 = vpop.f32.mrb[42].mxu1 }
 0x809   :  { %vm12782_vm8 = vcmp.gt.f32.partialorder %v14911_v3, 0.0  ;;  %v12786_v10 = vmul.f32 0.01, %v14911_v3  ;;  %vm12784_vm9 = vcmp.gt.f32.partialorder %v14913_v7, 0.0  ;;  %v12788_v57 = vmul.f32 0.01, %v14913_v7 }
 0x80a   :  { %vm12783_vm10 = vcmp.gt.f32.partialorder %v14912_v59, 0.0  ;;  %v12787_v49 = vmul.f32 0.01, %v14912_v59  ;;  %vm12785_vm11 = vcmp.gt.f32.partialorder %v14914_v9, 0.0  ;;  %v12789_v14 = vmul.f32 0.01, %v14914_v9 }
 0x80b   :  { %v12790_v58 = vsel %vm12782_vm8, %v14911_v3, %v12786_v10  ;;  %v12792_v61 = vsel %vm12784_vm9, %v14913_v7, %v12788_v57  ;;  %v12616_v13 = vpop.f32.mrb[43].mxu0  ;;  %v12780_v23 = vpop.f32.mrb[43].mxu1 }
 0x80c   :  { %v12791_v19 = vsel %vm12783_vm10, %v14912_v59, %v12787_v49  ;;  %v12793_v34 = vsel %vm12785_vm11, %v14914_v9, %v12789_v14  ;;  %v12794_v27 = vpack.c.bf16 %v12790_v58, %v12790_v58  ;;  %v12796_v36 = vpack.c.bf16 %v12792_v61, %v12792_v61 }
 0x80d   :  { %v12795_v30 = vpack.c.bf16 %v12791_v19, %v12791_v19  ;;  %v12797_v20 = vpack.c.bf16 %v12793_v34, %v12793_v34 }
 0x80f   :  { %13093 = vmatprep.mubr.bf16.mxu0 %v12795_v30  ;;  %13133 = vmatprep.mubr.bf16.mxu1 %v12797_v20 }
 0x810   :  { %13094 = vmatmul.mubr.bf16.vlgmr.msra.gmra.mrb[44].mxu0 %v12794_v27  ;;  %13134 = vmatmul.mubr.bf16.vlgmr.msra.gmra.mrb[44].mxu1 %v12796_v36 }
 0x8e3   :  { %v14875_v25 = vpop.f32.mrb[44].mxu0  ;;  %v14897_v62 = vpop.f32.mrb[44].mxu1 }
 0x8e4   :  { %v14876_v41 = vpop.f32.mrb[45].mxu0  ;;  %v14898_v28 = vpop.f32.mrb[45].mxu1 }
 0x8e5   :  { %v14877_v5 = vadd.f32 %v14876_v41, %v14875_v25  ;;  %v14899_v16 = vadd.f32 %v14898_v28, %v14897_v62  ;;  %v14878_v47 = vpop.f32.mrb[46].mxu0  ;;  %v14900_v40 = vpop.f32.mrb[46].mxu1 }
 0x8e6   :  { %v14879_v38 = vpop.f32.mrb[47].mxu0  ;;  %v14901_v63 = vpop.f32.mrb[47].mxu1 }
 0x8e7   :  { %v13096_v8 = vadd.f32 %v14877_v5, %v14826_v48 }
 0x8e9   :  { %v13136_v39 = vadd.f32 %v14899_v16, %v13096_v8 }
 0x8eb   :  { %13142 = vst.msk [vmem:[#allocation17] sm:$0xff] %vm13141_vm12, %v13136_v39 }
 0x8ec   :  { %15679 = shalt.err (!%p15676_p12)
}
 0x8ed   :  { %s15680_s21 = scalar_lea.hbm %s16289_s9, 128 }
 0x8ee   :  { %p15681_p13 = scmp.ne.s32.totalorder %s16289_s9, %s15680_s21  ;;  %p15684_p0 = scmp.lt.u32.totalorder %s15680_s21, %s16289_s9 }
 0x8f0   :  { %p15686_p1 = pnand %p15684_p0, %p15681_p13 }
 0x8f2   :  { %15689 = shalt.err (!%p15686_p1)
}
 0x8f3   :  { %13152 = dma.vmem_to_hbm [thread:$0]  %s13150_s16, 128, %s16289_s9, [#allocation5]  }
 0x8f4   :  { %15700 = dma.done.wait [#allocation5], 128  }
 0x8f5   :  { %15701 = vsyncadd [#allocation5], 4294967168 }
 0x8f6   :  { %13156 = vsyncpa [#allocation4], 1 }
 0x8f7   :  { %13157 = vsyncpa [#allocation7], 1 }
 0x8f8   :  { %13158 = vsyncpa [#allocation10], 1 }
 0x8f9   :  { %13159 = vsyncpa [#allocation13], 1 }
 0x8fa   :  { %13160 = vsyncpa [#allocation16], 1 }
 0x8fb   :  { %13161 = vsyncpa [#allocation5], 1 }

</bundles_post_ra>
